<compile_context>
chip_gen: v7x
topology: tpu7x:2x2x1
jax: 0.10.0
libtpu: 0.0.40
codegen_flags: <defaults>
</compile_context>

<pallas_src>
import functools

import jax
import jax.numpy as jnp
from jax.experimental import pallas as pl
from jax.experimental.pallas import tpu as pltpu


# ----------------------------- tiling plan ---------------------------------- #

_W_BLOCK_BUDGET = 12 * 1024 * 1024   # double-buffered bf16 weight block budget
_TILE_BUDGET = 24 * 1024 * 1024      # whole-tile VMEM budget
_VMEM_LIMIT = 48 * 1024 * 1024       # scoped VMEM cap (v7x has 64 MiB physical)


def _round_up(v, m):
    return (v + m - 1) // m * m


def _plan_kn(K, N):
    """K/N tiling from (K, N) only, so prepare_params padding matches runtime.

    Returns (tk, Kp, tn, Np).  Preferred path: full-K single block
    (tk == Kp == K, unpadded) whenever the whole (K, Np) bf16 weight fits the
    VMEM budget -> single K grid step, no accumulator, no K pad copy.
    """
    Np = _round_up(N, 128)
    if 2 * K * Np * 2 <= _W_BLOCK_BUDGET:
        return K, K, Np, Np
    # Fallback: K-tiled accumulator path (not taken at this problem size).
    Kp = _round_up(K, 128)
    tk = 512 if Kp % 512 == 0 else (256 if Kp % 256 == 0 else 128)
    tn = 512 if Np % 512 == 0 else (256 if Np % 256 == 0 else 128)
    return tk, Kp, tn, Np


def _plan_m(M, tk, tn):
    """M tiling: single block if it fits VMEM, else 128..2048 tiles (x16)."""
    Mr = _round_up(max(M, 16), 16)        # bf16 packs 16 rows per sublane group
    per_row = 2 * tk * 2 + 2 * tn * 2 + tn * 4 + tn * 4   # x/out dbuf + f32 tmp
    if Mr * per_row <= _TILE_BUDGET:
        return Mr, Mr
    for tm in (2048, 1024, 512, 256, 128):
        if tm * per_row <= _TILE_BUDGET:
            return tm, _round_up(M, tm)
    return 128, _round_up(M, 128)


# ----------------------------- Pallas kernels -------------------------------- #

def _mm_single_kernel(x_ref, w_ref, b_ref, o_ref, *, relu):
    """Single-K-step tile: dot + bias (+ relu) written straight to o_ref."""
    y = jnp.dot(x_ref[...], w_ref[...], preferred_element_type=jnp.float32)
    y = y + b_ref[...]                      # bias (1, tn) f32 -> broadcast
    if relu:
        y = jnp.maximum(y, 0.0)
    o_ref[...] = y.astype(o_ref.dtype)


def _mm_acc_kernel(x_ref, w_ref, b_ref, o_ref, acc_ref, *, relu):
    """K-tiled tile with f32 VMEM accumulator (fallback for huge K only)."""
    @pl.when(pl.program_id(2) == 0)
    def _():
        acc_ref[...] = jnp.zeros_like(acc_ref)

    acc_ref[...] += jnp.dot(x_ref[...], w_ref[...],
                            preferred_element_type=jnp.float32)

    @pl.when(pl.program_id(2) == pl.num_programs(2) - 1)
    def _():
        y = acc_ref[...] + b_ref[...]
        if relu:
            y = jnp.maximum(y, 0.0)
        o_ref[...] = y.astype(o_ref.dtype)


def _fc_chain_kernel(x_ref, w1_ref, b1_ref, w2_ref, b2_ref, w3_ref, b3_ref,
                     o_ref):
    """Fused fc1(+relu) -> fc2(+relu) -> fc3 for a small (<=128-row) batch."""
    h = jnp.dot(x_ref[...], w1_ref[...], preferred_element_type=jnp.float32)
    h = jnp.maximum(h + b1_ref[...], 0.0).astype(jnp.bfloat16)
    h = jnp.dot(h, w2_ref[...], preferred_element_type=jnp.float32)
    h = jnp.maximum(h + b2_ref[...], 0.0).astype(jnp.bfloat16)
    h = jnp.dot(h, w3_ref[...], preferred_element_type=jnp.float32)
    o_ref[...] = (h + b3_ref[...]).astype(o_ref.dtype)


# --------------------------- matmul / layer wrappers ------------------------- #

def matmul_bias_act(x, w_p, b_p, n_out, *, relu, out_dtype):
    """y = act(x @ w + b)[:, :n_out] with kernel-ready padded weights."""
    M, K = x.shape
    Kp, Np = w_p.shape
    tk, kp2, tn, np2 = _plan_kn(K, n_out)
    assert (Kp, Np) == (kp2, np2), "weight was not prepared for this layer shape"
    tm, Mp = _plan_m(M, tk, tn)

    xp = x.astype(jnp.bfloat16)
    if (Mp, Kp) != (M, K):
        xp = jnp.pad(xp, ((0, Mp - M), (0, Kp - K)))

    k_steps = Kp // tk
    grid = (Mp // tm, Np // tn, k_steps)
    if k_steps == 1:
        kernel = functools.partial(_mm_single_kernel, relu=relu)
        scratch = []
    else:
        kernel = functools.partial(_mm_acc_kernel, relu=relu)
        scratch = [pltpu.VMEM((tm, tn), jnp.float32)]

    out = pl.pallas_call(
        kernel,
        out_shape=jax.ShapeDtypeStruct((Mp, Np), out_dtype),
        grid=grid,
        in_specs=[pl.BlockSpec((tm, tk), lambda i, j, k: (i, k)),
                  pl.BlockSpec((tk, tn), lambda i, j, k: (k, j)),
                  pl.BlockSpec((1, tn), lambda i, j, k: (0, j))],
        out_specs=pl.BlockSpec((tm, tn), lambda i, j, k: (i, j)),
        scratch_shapes=scratch,
        compiler_params=pltpu.CompilerParams(
            dimension_semantics=("parallel", "parallel", "arbitrary"),
            vmem_limit_bytes=_VMEM_LIMIT),
    )(xp, w_p, b_p)
    if (Mp, Np) != (M, n_out):
        out = out[:M, :n_out]
    return out


def conv2d_relu_pool(x_nhwc, w_p, b_p, cout, *, pool):
    """3x3 conv (stride 1, VALID) + ReLU [+ MaxPool2d(2,2)].  Matmul in Pallas."""
    N, H, W, Cin = x_nhwc.shape
    OH, OW = H - 2, W - 2
    # TODO(synk): do this patch extraction inside the Pallas kernel with a halo
    # BlockSpec to avoid materializing the 9x cols array at 224x224 scale.
    taps = [x_nhwc[:, kh:kh + OH, kw:kw + OW, :]
            for kh in range(3) for kw in range(3)]
    cols = jnp.concatenate(taps, axis=-1).reshape(N * OH * OW, 9 * Cin)
    y = matmul_bias_act(cols, w_p, b_p, cout, relu=True, out_dtype=jnp.bfloat16)
    y = y.reshape(N, OH, OW, cout)
    if pool:
        PH, PW = OH // 2, OW // 2
        yc = y[:, :2 * PH, :2 * PW, :]
        # Elementwise max of the 4 window taps; fuses in XLA with the slices.
        y = jnp.maximum(jnp.maximum(yc[:, 0::2, 0::2, :], yc[:, 0::2, 1::2, :]),
                        jnp.maximum(yc[:, 1::2, 0::2, :], yc[:, 1::2, 1::2, :]))
    return y


def fc_chain(x, q, n_out=2):
    """Fused fc1(+relu) -> fc2(+relu) -> fc3 in a single pallas_call."""
    M, K = x.shape
    Mp = _round_up(max(M, 16), 16)
    xp = x.astype(jnp.bfloat16)
    if Mp != M:
        xp = jnp.pad(xp, ((0, Mp - M), (0, 0)))

    w1, b1 = q["fc1_w"], q["fc1_b"]
    w2, b2 = q["fc2_w"], q["fc2_b"]
    w3, b3 = q["fc3_w"], q["fc3_b"]
    assert w1.shape[0] == K, "fc1 weight was not prepared for this flatten size"
    Np = w3.shape[1]

    operands = (xp, w1, b1, w2, b2, w3, b3)
    in_specs = [pl.BlockSpec(a.shape, lambda i: (0, 0)) for a in operands]
    out = pl.pallas_call(
        _fc_chain_kernel,
        out_shape=jax.ShapeDtypeStruct((Mp, Np), jnp.float32),
        grid=(1,),
        in_specs=in_specs,
        out_specs=pl.BlockSpec((Mp, Np), lambda i: (0, 0)),
        compiler_params=pltpu.CompilerParams(
            dimension_semantics=("arbitrary",),
            vmem_limit_bytes=_VMEM_LIMIT),
    )(*operands)
    return out[:M, :n_out]


# ------------------------------ parameters ---------------------------------- #

def _conv_stack_spatial(h, w):
    h, w = h - 2, w - 2          # conv1 3x3
    h, w = h // 2, w // 2        # maxpool 2x2
    h, w = h - 2, w - 2          # conv2 3x3
    h, w = h // 2, w // 2        # maxpool 2x2
    h, w = h - 2, w - 2          # conv3 3x3
    return h, w


def init_params(key, h, w):
    """PyTorch-layout parameters (OIHW conv weights, (din,dout) linear weights)."""
    ch, cw = _conv_stack_spatial(h, w)
    flat = 128 * ch * cw
    keys = jax.random.split(key, 12)

    def conv(kw_, kb_, cin, cout):
        scale = 1.0 / jnp.sqrt(jnp.float32(cin * 9))
        W = jax.random.uniform(kw_, (cout, cin, 3, 3), jnp.float32, -scale, scale)
        bb = jax.random.uniform(kb_, (cout,), jnp.float32, -scale, scale)
        return W, bb

    def dense(kw_, kb_, din, dout):
        scale = 1.0 / jnp.sqrt(jnp.float32(din))
        W = jax.random.uniform(kw_, (din, dout), jnp.float32, -scale, scale)
        bb = jax.random.uniform(kb_, (dout,), jnp.float32, -scale, scale)
        return W, bb

    p = {}
    p["conv1_w"], p["conv1_b"] = conv(keys[0], keys[1], 1, 32)
    p["conv2_w"], p["conv2_b"] = conv(keys[2], keys[3], 32, 64)
    p["conv3_w"], p["conv3_b"] = conv(keys[4], keys[5], 64, 128)
    p["fc1_w"], p["fc1_b"] = dense(keys[6], keys[7], flat, 1024)
    p["fc2_w"], p["fc2_b"] = dense(keys[8], keys[9], 1024, 256)
    p["fc3_w"], p["fc3_b"] = dense(keys[10], keys[11], 256, 2)
    return p


def prepare_params(p, h, w):
    """One-time re-layout: kernel-ready bf16 weights padded to the tiling plan."""
    ch, cw = _conv_stack_spatial(h, w)

    def pad_conv_wb(w2d, b, n_out):
        K, N = w2d.shape
        _, Kp, _, Np = _plan_kn(K, n_out)
        wp = jnp.zeros((Kp, Np), jnp.bfloat16).at[:K, :N].set(w2d.astype(jnp.bfloat16))
        bp = jnp.zeros((1, Np), jnp.float32).at[0, :N].set(b.astype(jnp.float32))
        return wp, bp

    def pad_fc_wb(w2d, b):
        K, N = w2d.shape
        Np = _round_up(N, 128)
        wp = jnp.zeros((K, Np), jnp.bfloat16).at[:, :N].set(w2d.astype(jnp.bfloat16))
        bp = jnp.zeros((1, Np), jnp.float32).at[0, :N].set(b.astype(jnp.float32))
        return wp, bp

    def prep_conv(wt, b):
        cout, cin, kh, kw = wt.shape
        w2d = jnp.transpose(wt, (2, 3, 1, 0)).reshape(kh * kw * cin, cout)  # im2col
        return pad_conv_wb(w2d, b, cout)

    q = {}
    q["conv1_w"], q["conv1_b"] = prep_conv(p["conv1_w"], p["conv1_b"])
    q["conv2_w"], q["conv2_b"] = prep_conv(p["conv2_w"], p["conv2_b"])
    q["conv3_w"], q["conv3_b"] = prep_conv(p["conv3_w"], p["conv3_b"])

    # Permute fc1 rows once from PyTorch (C,H,W) flatten order to NHWC order,
    # so the forward pass can flatten the conv output without a transpose.
    fc1 = p["fc1_w"].reshape(128, ch, cw, 1024).transpose(1, 2, 0, 3).reshape(-1, 1024)
    q["fc1_w"], q["fc1_b"] = pad_fc_wb(fc1, p["fc1_b"])
    q["fc2_w"], q["fc2_b"] = pad_fc_wb(p["fc2_w"], p["fc2_b"])
    q["fc3_w"], q["fc3_b"] = pad_fc_wb(p["fc3_w"], p["fc3_b"])
    return q


# -------------------------------- model -------------------------------------- #

def forward_once(q, x_nchw):
    x = jnp.transpose(x_nchw, (0, 2, 3, 1)).astype(jnp.bfloat16)   # NCHW -> NHWC
    x = conv2d_relu_pool(x, q["conv1_w"], q["conv1_b"], 32, pool=True)
    x = conv2d_relu_pool(x, q["conv2_w"], q["conv2_b"], 64, pool=True)
    x = conv2d_relu_pool(x, q["conv3_w"], q["conv3_b"], 128, pool=False)
    x = x.reshape(x.shape[0], -1)        # NHWC flatten; fc1 rows pre-permuted
    x = fc_chain(x, q, n_out=2)          # fused fc1+fc2+fc3, f32 output
    return x


def siamese_forward(params, input1, input2):
    # Run both branches through one set of kernels: weights are DMA'd once,
    # M doubles (better MXU occupancy), launch count halves.
    b = input1.shape[0]
    x = jnp.concatenate([input1, input2], axis=0)
    y = forward_once(params, x)
    return y[:b], y[b:]


# -------------------------------- main ---------------------------------------- #

if __name__ == "__main__":
    key = jax.random.PRNGKey(0)
    kp, k1, k2 = jax.random.split(key, 3)

    # Small spatial size (28x28) instead of 224x224; fc1 input dim is derived
    # from the conv stack exactly like the PyTorch __init__ does.
    H = W = 28
    B = 2
    raw_params = init_params(kp, H, W)
    params = prepare_params(raw_params, H, W)       # one-time re-layout / bf16 cast
    x1 = jax.random.normal(k1, (B, 1, H, W), jnp.float32)
    x2 = jax.random.normal(k2, (B, 1, H, W), jnp.float32)

    out1, out2 = jax.jit(siamese_forward)(params, x1, x2)
    jax.block_until_ready((out1, out2))
    assert out1.shape == (B, 2) and out2.shape == (B, 2)
    assert out1.dtype == jnp.float32 and out2.dtype == jnp.float32
    print("KERNEL_OK")
</pallas_src>

<mosaic_0001>
module attributes {stable_mosaic.version = 11 : i64} {
  func.func @_mm_single_kernel(%arg0: i32, %arg1: i32, %arg2: i32, %arg3: memref<2704x9xbf16, #tpu.memory_space<vmem>>, %arg4: memref<9x128xbf16, #tpu.memory_space<vmem>>, %arg5: memref<1x128xf32, #tpu.memory_space<vmem>>, %arg6: memref<2704x128xbf16, #tpu.memory_space<vmem>>) attributes {dimension_semantics = [#tpu.dimension_semantics<parallel>, #tpu.dimension_semantics<parallel>, #tpu.dimension_semantics<arbitrary>], iteration_bounds = array<i64: 1, 1, 1>, scalar_prefetch = 0 : i64, scratch_operands = 0 : i64, tpu.core_type = #tpu.core_type<tc>, window_params = [{transform_indices = @transform_0, window_bounds = array<i64: 2704, 9>}, {transform_indices = @transform_1, window_bounds = array<i64: 9, 128>}, {transform_indices = @transform_2, window_bounds = array<i64: 1, 128>}, {transform_indices = @transform_3, window_bounds = array<i64: 2704, 128>}]} {
    %c0 = arith.constant 0 : index
    %c0_0 = arith.constant 0 : index
    %0 = vector.load %arg3[%c0, %c0_0] : memref<2704x9xbf16, #tpu.memory_space<vmem>>, vector<2704x9xbf16>
    %c0_1 = arith.constant 0 : index
    %c0_2 = arith.constant 0 : index
    %1 = vector.load %arg4[%c0_1, %c0_2] : memref<9x128xbf16, #tpu.memory_space<vmem>>, vector<9x128xbf16>
    %cst = arith.constant dense<0.000000e+00> : vector<2704x128xf32>
    %2 = tpu.matmul %0, %1, %cst {dimension_numbers = #tpu.dot_dimension_numbers<[1], [0], [0], [1], [0, 0, 1, 1], [], []>} : vector<2704x9xbf16>, vector<9x128xbf16>, vector<2704x128xf32> -> vector<2704x128xf32>
    %c0_3 = arith.constant 0 : index
    %c0_4 = arith.constant 0 : index
    %3 = vector.load %arg5[%c0_3, %c0_4] : memref<1x128xf32, #tpu.memory_space<vmem>>, vector<1x128xf32>
    %4 = vector.broadcast %3 : vector<1x128xf32> to vector<2704x128xf32>
    %5 = arith.addf %2, %4 : vector<2704x128xf32>
    %cst_5 = arith.constant 0.000000e+00 : f32
    %6 = vector.broadcast %cst_5 : f32 to vector<2704x128xf32>
    %7 = arith.maximumf %5, %6 : vector<2704x128xf32>
    %8 = arith.truncf %7 : vector<2704x128xf32> to vector<2704x128xbf16>
    %c0_6 = arith.constant 0 : index
    %c0_7 = arith.constant 0 : index
    %9 = vector.load %arg6[%c0_6, %c0_7] : memref<2704x128xbf16, #tpu.memory_space<vmem>>, vector<2704x128xbf16>
    tpu.vector_store %arg6[%c0_6, %c0_7], %8 {strides = array<i32>} : memref<2704x128xbf16, #tpu.memory_space<vmem>>, vector<2704x128xbf16>,
    return
  }
  func.func @transform_0(%arg0: i32, %arg1: i32, %arg2: i32) -> (i32, i32) {
    %c0_i32 = arith.constant 0 : i32
    return %arg0, %arg2 : i32, i32
  }
  func.func @transform_1(%arg0: i32, %arg1: i32, %arg2: i32) -> (i32, i32) {
    %c0_i32 = arith.constant 0 : i32
    return %arg2, %arg1 : i32, i32
  }
  func.func @transform_2(%arg0: i32, %arg1: i32, %arg2: i32) -> (i32, i32) {
    %c0_i32 = arith.constant 0 : i32
    %c0_i32_0 = arith.constant 0 : i32
    return %c0_i32, %arg1 : i32, i32
  }
  func.func @transform_3(%arg0: i32, %arg1: i32, %arg2: i32) -> (i32, i32) {
    %c0_i32 = arith.constant 0 : i32
    return %arg0, %arg1 : i32, i32
  }
}

module attributes {stable_mosaic.version = 11 : i64} {
  func.func @_mm_single_kernel(%arg0: i32, %arg1: i32, %arg2: i32, %arg3: memref<496x288xbf16, #tpu.memory_space<vmem>>, %arg4: memref<288x128xbf16, #tpu.memory_space<vmem>>, %arg5: memref<1x128xf32, #tpu.memory_space<vmem>>, %arg6: memref<496x128xbf16, #tpu.memory_space<vmem>>) attributes {dimension_semantics = [#tpu.dimension_semantics<parallel>, #tpu.dimension_semantics<parallel>, #tpu.dimension_semantics<arbitrary>], iteration_bounds = array<i64: 1, 1, 1>, scalar_prefetch = 0 : i64, scratch_operands = 0 : i64, tpu.core_type = #tpu.core_type<tc>, window_params = [{transform_indices = @transform_0, window_bounds = array<i64: 496, 288>}, {transform_indices = @transform_1, window_bounds = array<i64: 288, 128>}, {transform_indices = @transform_2, window_bounds = array<i64: 1, 128>}, {transform_indices = @transform_3, window_bounds = array<i64: 496, 128>}]} {
    %c0 = arith.constant 0 : index
    %c0_0 = arith.constant 0 : index
    %0 = vector.load %arg3[%c0, %c0_0] : memref<496x288xbf16, #tpu.memory_space<vmem>>, vector<496x288xbf16>
    %c0_1 = arith.constant 0 : index
    %c0_2 = arith.constant 0 : index
    %1 = vector.load %arg4[%c0_1, %c0_2] : memref<288x128xbf16, #tpu.memory_space<vmem>>, vector<288x128xbf16>
    %cst = arith.constant dense<0.000000e+00> : vector<496x128xf32>
    %2 = tpu.matmul %0, %1, %cst {dimension_numbers = #tpu.dot_dimension_numbers<[1], [0], [0], [1], [0, 0, 1, 1], [], []>} : vector<496x288xbf16>, vector<288x128xbf16>, vector<496x128xf32> -> vector<496x128xf32>
    %c0_3 = arith.constant 0 : index
    %c0_4 = arith.constant 0 : index
    %3 = vector.load %arg5[%c0_3, %c0_4] : memref<1x128xf32, #tpu.memory_space<vmem>>, vector<1x128xf32>
    %4 = vector.broadcast %3 : vector<1x128xf32> to vector<496x128xf32>
    %5 = arith.addf %2, %4 : vector<496x128xf32>
    %cst_5 = arith.constant 0.000000e+00 : f32
    %6 = vector.broadcast %cst_5 : f32 to vector<496x128xf32>
    %7 = arith.maximumf %5, %6 : vector<496x128xf32>
    %8 = arith.truncf %7 : vector<496x128xf32> to vector<496x128xbf16>
    %c0_6 = arith.constant 0 : index
    %c0_7 = arith.constant 0 : index
    %9 = vector.load %arg6[%c0_6, %c0_7] : memref<496x128xbf16, #tpu.memory_space<vmem>>, vector<496x128xbf16>
    tpu.vector_store %arg6[%c0_6, %c0_7], %8 {strides = array<i32>} : memref<496x128xbf16, #tpu.memory_space<vmem>>, vector<496x128xbf16>,
    return
  }
  func.func @transform_0(%arg0: i32, %arg1: i32, %arg2: i32) -> (i32, i32) {
    %c0_i32 = arith.constant 0 : i32
    return %arg0, %arg2 : i32, i32
  }
  func.func @transform_1(%arg0: i32, %arg1: i32, %arg2: i32) -> (i32, i32) {
    %c0_i32 = arith.constant 0 : i32
    return %arg2, %arg1 : i32, i32
  }
  func.func @transform_2(%arg0: i32, %arg1: i32, %arg2: i32) -> (i32, i32) {
    %c0_i32 = arith.constant 0 : i32
    %c0_i32_0 = arith.constant 0 : i32
    return %c0_i32, %arg1 : i32, i32
  }
  func.func @transform_3(%arg0: i32, %arg1: i32, %arg2: i32) -> (i32, i32) {
    %c0_i32 = arith.constant 0 : i32
    return %arg0, %arg1 : i32, i32
  }
}

module attributes {stable_mosaic.version = 11 : i64} {
  func.func @_mm_single_kernel(%arg0: i32, %arg1: i32, %arg2: i32, %arg3: memref<48x576xbf16, #tpu.memory_space<vmem>>, %arg4: memref<576x128xbf16, #tpu.memory_space<vmem>>, %arg5: memref<1x128xf32, #tpu.memory_space<vmem>>, %arg6: memref<48x128xbf16, #tpu.memory_space<vmem>>) attributes {dimension_semantics = [#tpu.dimension_semantics<parallel>, #tpu.dimension_semantics<parallel>, #tpu.dimension_semantics<arbitrary>], iteration_bounds = array<i64: 1, 1, 1>, scalar_prefetch = 0 : i64, scratch_operands = 0 : i64, tpu.core_type = #tpu.core_type<tc>, window_params = [{transform_indices = @transform_0, window_bounds = array<i64: 48, 576>}, {transform_indices = @transform_1, window_bounds = array<i64: 576, 128>}, {transform_indices = @transform_2, window_bounds = array<i64: 1, 128>}, {transform_indices = @transform_3, window_bounds = array<i64: 48, 128>}]} {
    %c0 = arith.constant 0 : index
    %c0_0 = arith.constant 0 : index
    %0 = vector.load %arg3[%c0, %c0_0] : memref<48x576xbf16, #tpu.memory_space<vmem>>, vector<48x576xbf16>
    %c0_1 = arith.constant 0 : index
    %c0_2 = arith.constant 0 : index
    %1 = vector.load %arg4[%c0_1, %c0_2] : memref<576x128xbf16, #tpu.memory_space<vmem>>, vector<576x128xbf16>
    %cst = arith.constant dense<0.000000e+00> : vector<48x128xf32>
    %2 = tpu.matmul %0, %1, %cst {dimension_numbers = #tpu.dot_dimension_numbers<[1], [0], [0], [1], [0, 0, 1, 1], [], []>} : vector<48x576xbf16>, vector<576x128xbf16>, vector<48x128xf32> -> vector<48x128xf32>
    %c0_3 = arith.constant 0 : index
    %c0_4 = arith.constant 0 : index
    %3 = vector.load %arg5[%c0_3, %c0_4] : memref<1x128xf32, #tpu.memory_space<vmem>>, vector<1x128xf32>
    %4 = vector.broadcast %3 : vector<1x128xf32> to vector<48x128xf32>
    %5 = arith.addf %2, %4 : vector<48x128xf32>
    %cst_5 = arith.constant 0.000000e+00 : f32
    %6 = vector.broadcast %cst_5 : f32 to vector<48x128xf32>
    %7 = arith.maximumf %5, %6 : vector<48x128xf32>
    %8 = arith.truncf %7 : vector<48x128xf32> to vector<48x128xbf16>
    %c0_6 = arith.constant 0 : index
    %c0_7 = arith.constant 0 : index
    %9 = vector.load %arg6[%c0_6, %c0_7] : memref<48x128xbf16, #tpu.memory_space<vmem>>, vector<48x128xbf16>
    tpu.vector_store %arg6[%c0_6, %c0_7], %8 {strides = array<i32>} : memref<48x128xbf16, #tpu.memory_space<vmem>>, vector<48x128xbf16>,
    return
  }
  func.func @transform_0(%arg0: i32, %arg1: i32, %arg2: i32) -> (i32, i32) {
    %c0_i32 = arith.constant 0 : i32
    return %arg0, %arg2 : i32, i32
  }
  func.func @transform_1(%arg0: i32, %arg1: i32, %arg2: i32) -> (i32, i32) {
    %c0_i32 = arith.constant 0 : i32
    return %arg2, %arg1 : i32, i32
  }
  func.func @transform_2(%arg0: i32, %arg1: i32, %arg2: i32) -> (i32, i32) {
    %c0_i32 = arith.constant 0 : i32
    %c0_i32_0 = arith.constant 0 : i32
    return %c0_i32, %arg1 : i32, i32
  }
  func.func @transform_3(%arg0: i32, %arg1: i32, %arg2: i32) -> (i32, i32) {
    %c0_i32 = arith.constant 0 : i32
    return %arg0, %arg1 : i32, i32
  }
}

module attributes {stable_mosaic.version = 11 : i64} {
  func.func @_fc_chain_kernel(%arg0: i32, %arg1: memref<16x1152xbf16, #tpu.memory_space<vmem>>, %arg2: memref<1152x1024xbf16, #tpu.memory_space<vmem>>, %arg3: memref<1x1024xf32, #tpu.memory_space<vmem>>, %arg4: memref<1024x256xbf16, #tpu.memory_space<vmem>>, %arg5: memref<1x256xf32, #tpu.memory_space<vmem>>, %arg6: memref<256x128xbf16, #tpu.memory_space<vmem>>, %arg7: memref<1x128xf32, #tpu.memory_space<vmem>>, %arg8: memref<16x128xf32, #tpu.memory_space<vmem>>) attributes {dimension_semantics = [#tpu.dimension_semantics<arbitrary>], iteration_bounds = array<i64: 1>, scalar_prefetch = 0 : i64, scratch_operands = 0 : i64, tpu.core_type = #tpu.core_type<tc>, window_params = [{pipeline_mode = #tpu.pipeline_mode<synchronous>, transform_indices = @transform_0, window_bounds = array<i64: 16, 1152>}, {pipeline_mode = #tpu.pipeline_mode<synchronous>, transform_indices = @transform_1, window_bounds = array<i64: 1152, 1024>}, {pipeline_mode = #tpu.pipeline_mode<synchronous>, transform_indices = @transform_2, window_bounds = array<i64: 1, 1024>}, {pipeline_mode = #tpu.pipeline_mode<synchronous>, transform_indices = @transform_3, window_bounds = array<i64: 1024, 256>}, {pipeline_mode = #tpu.pipeline_mode<synchronous>, transform_indices = @transform_4, window_bounds = array<i64: 1, 256>}, {pipeline_mode = #tpu.pipeline_mode<synchronous>, transform_indices = @transform_5, window_bounds = array<i64: 256, 128>}, {pipeline_mode = #tpu.pipeline_mode<synchronous>, transform_indices = @transform_6, window_bounds = array<i64: 1, 128>}, {pipeline_mode = #tpu.pipeline_mode<synchronous>, transform_indices = @transform_7, window_bounds = array<i64: 16, 128>}]} {
    %c0 = arith.constant 0 : index
    %c0_0 = arith.constant 0 : index
    %0 = vector.load %arg1[%c0, %c0_0] : memref<16x1152xbf16, #tpu.memory_space<vmem>>, vector<16x1152xbf16>
    %c0_1 = arith.constant 0 : index
    %c0_2 = arith.constant 0 : index
    %1 = vector.load %arg2[%c0_1, %c0_2] : memref<1152x1024xbf16, #tpu.memory_space<vmem>>, vector<1152x1024xbf16>
    %cst = arith.constant dense<0.000000e+00> : vector<16x1024xf32>
    %2 = tpu.matmul %0, %1, %cst {dimension_numbers = #tpu.dot_dimension_numbers<[1], [0], [0], [1], [0, 0, 1, 1], [], []>} : vector<16x1152xbf16>, vector<1152x1024xbf16>, vector<16x1024xf32> -> vector<16x1024xf32>
    %c0_3 = arith.constant 0 : index
    %c0_4 = arith.constant 0 : index
    %3 = vector.load %arg3[%c0_3, %c0_4] : memref<1x1024xf32, #tpu.memory_space<vmem>>, vector<1x1024xf32>
    %4 = vector.broadcast %3 : vector<1x1024xf32> to vector<16x1024xf32>
    %5 = arith.addf %2, %4 : vector<16x1024xf32>
    %cst_5 = arith.constant 0.000000e+00 : f32
    %6 = vector.broadcast %cst_5 : f32 to vector<16x1024xf32>
    %7 = arith.maximumf %5, %6 : vector<16x1024xf32>
    %8 = arith.truncf %7 : vector<16x1024xf32> to vector<16x1024xbf16>
    %c0_6 = arith.constant 0 : index
    %c0_7 = arith.constant 0 : index
    %9 = vector.load %arg4[%c0_6, %c0_7] : memref<1024x256xbf16, #tpu.memory_space<vmem>>, vector<1024x256xbf16>
    %cst_8 = arith.constant dense<0.000000e+00> : vector<16x256xf32>
    %10 = tpu.matmul %8, %9, %cst_8 {dimension_numbers = #tpu.dot_dimension_numbers<[1], [0], [0], [1], [0, 0, 1, 1], [], []>} : vector<16x1024xbf16>, vector<1024x256xbf16>, vector<16x256xf32> -> vector<16x256xf32>
    %c0_9 = arith.constant 0 : index
    %c0_10 = arith.constant 0 : index
    %11 = vector.load %arg5[%c0_9, %c0_10] : memref<1x256xf32, #tpu.memory_space<vmem>>, vector<1x256xf32>
    %12 = vector.broadcast %11 : vector<1x256xf32> to vector<16x256xf32>
    %13 = arith.addf %10, %12 : vector<16x256xf32>
    %cst_11 = arith.constant 0.000000e+00 : f32
    %14 = vector.broadcast %cst_11 : f32 to vector<16x256xf32>
    %15 = arith.maximumf %13, %14 : vector<16x256xf32>
    %16 = arith.truncf %15 : vector<16x256xf32> to vector<16x256xbf16>
    %c0_12 = arith.constant 0 : index
    %c0_13 = arith.constant 0 : index
    %17 = vector.load %arg6[%c0_12, %c0_13] : memref<256x128xbf16, #tpu.memory_space<vmem>>, vector<256x128xbf16>
    %cst_14 = arith.constant dense<0.000000e+00> : vector<16x128xf32>
    %18 = tpu.matmul %16, %17, %cst_14 {dimension_numbers = #tpu.dot_dimension_numbers<[1], [0], [0], [1], [0, 0, 1, 1], [], []>} : vector<16x256xbf16>, vector<256x128xbf16>, vector<16x128xf32> -> vector<16x128xf32>
    %c0_15 = arith.constant 0 : index
    %c0_16 = arith.constant 0 : index
    %19 = vector.load %arg7[%c0_15, %c0_16] : memref<1x128xf32, #tpu.memory_space<vmem>>, vector<1x128xf32>
    %20 = vector.broadcast %19 : vector<1x128xf32> to vector<16x128xf32>
    %21 = arith.addf %18, %20 : vector<16x128xf32>
    %c0_17 = arith.constant 0 : index
    %c0_18 = arith.constant 0 : index
    %22 = vector.load %arg8[%c0_17, %c0_18] : memref<16x128xf32, #tpu.memory_space<vmem>>, vector<16x128xf32>
    tpu.vector_store %arg8[%c0_17, %c0_18], %21 {strides = array<i32>} : memref<16x128xf32, #tpu.memory_space<vmem>>, vector<16x128xf32>,
    return
  }
  func.func @transform_0(%arg0: i32) -> (i32, i32) {
    %c0_i32 = arith.constant 0 : i32
    %c0_i32_0 = arith.constant 0 : i32
    %c0_i32_1 = arith.constant 0 : i32
    return %c0_i32, %c0_i32_0 : i32, i32
  }
  func.func @transform_1(%arg0: i32) -> (i32, i32) {
    %c0_i32 = arith.constant 0 : i32
    %c0_i32_0 = arith.constant 0 : i32
    %c0_i32_1 = arith.constant 0 : i32
    return %c0_i32, %c0_i32_0 : i32, i32
  }
  func.func @transform_2(%arg0: i32) -> (i32, i32) {
    %c0_i32 = arith.constant 0 : i32
    %c0_i32_0 = arith.constant 0 : i32
    %c0_i32_1 = arith.constant 0 : i32
    return %c0_i32, %c0_i32_0 : i32, i32
  }
  func.func @transform_3(%arg0: i32) -> (i32, i32) {
    %c0_i32 = arith.constant 0 : i32
    %c0_i32_0 = arith.constant 0 : i32
    %c0_i32_1 = arith.constant 0 : i32
    return %c0_i32, %c0_i32_0 : i32, i32
  }
  func.func @transform_4(%arg0: i32) -> (i32, i32) {
    %c0_i32 = arith.constant 0 : i32
    %c0_i32_0 = arith.constant 0 : i32
    %c0_i32_1 = arith.constant 0 : i32
    return %c0_i32, %c0_i32_0 : i32, i32
  }
  func.func @transform_5(%arg0: i32) -> (i32, i32) {
    %c0_i32 = arith.constant 0 : i32
    %c0_i32_0 = arith.constant 0 : i32
    %c0_i32_1 = arith.constant 0 : i32
    return %c0_i32, %c0_i32_0 : i32, i32
  }
  func.func @transform_6(%arg0: i32) -> (i32, i32) {
    %c0_i32 = arith.constant 0 : i32
    %c0_i32_0 = arith.constant 0 : i32
    %c0_i32_1 = arith.constant 0 : i32
    return %c0_i32, %c0_i32_0 : i32, i32
  }
  func.func @transform_7(%arg0: i32) -> (i32, i32) {
    %c0_i32 = arith.constant 0 : i32
    %c0_i32_0 = arith.constant 0 : i32
    %c0_i32_1 = arith.constant 0 : i32
    return %c0_i32, %c0_i32_0 : i32, i32
  }
}

</mosaic_0001>

<bundles_post_ra>
// kernel: siamese_forward.4
= control target key start
LH: loop header
LB: loop body
LE: loop exit
PB: predicated region body
PF: predicated region fallthrough
CT: control target
= control target key end

     0   :  { %8 = vsyncpa [#allocation3], 0  ;;  %s10199_s0 = inlined_call_operand.vmem [shape: bf16[2704,9], index: 0, kind: input, shape index: {}]   ;;  %s10200_s1 = inlined_call_operand.hbm [shape: bf16[9,128], index: 1, kind: input, shape index: {}]   ;;  %s10201_s2 = inlined_call_operand.hbm [shape: f32[1,128], index: 2, kind: input, shape index: {}]   ;;  %s10202_s3 = inlined_call_operand.vmem [shape: bf16[2704,128], index: 3, kind: output, shape index: {}]  }
   0x1   :  { %9 = vsyncpa [#allocation5], 0  ;;  %s8279_s12 = smov [#allocation2]   ;;  %s8231_s16 = scalar_lea.hbm %s10200_s1, 128 }
   0x2   :  { %s17_s13 = sshll.u32 %s8279_s12, 4  ;;  %p8232_p0 = scmp.ne.s32.totalorder %s10200_s1, %s8231_s16  ;;  %s18_s13 = int_to_ptr.vmem [resolvable:$true] %s17_s13 }
   0x3   :  { %p8235_p1 = scmp.lt.u32.totalorder %s8231_s16, %s10200_s1 }
   0x5   :  { %p8237_p2 = pnand %p8235_p1, %p8232_p0 }
   0x7   :  { %8240 = shalt.err (!%p8237_p2)
}
   0x8   :  { %s8241_s21 = scalar_lea.vmem %s18_s13, 128  ;;  %p8246_p4 = scmp.lt.s32.totalorder %s18_s13, %s18_s13 }
   0x9   :  { %p8242_p3 = scmp.ne.s32.totalorder %s18_s13, %s8241_s21  ;;  %p8247_p5 = scmp.lt.s32.totalorder %s8241_s21, %s8241_s21 }
   0xb   :  { %p8248_p6 = por %p8247_p5, %p8246_p4 }
   0xd   :  { %p8249_p7 = pnand %p8248_p6, %p8242_p3 }
   0xf   :  { %8252 = shalt.err (!%p8249_p7)
}
  0x10   :  { %s8280_s22 = smov 64   ;;  %s8281_s23 = smov 4  }
  0x11   :  { %23 = dma.hbm_to_vmem [thread:$0]  %s10200_s1, 128, %s18_s13, [#allocation3], %s8280_s22, %s8280_s22, %s8281_s23  }
  0x12   :  { %s8282_s26 = smov [#allocation4]   ;;  %s8253_s30 = scalar_lea.hbm %s10201_s2, 16 }
  0x13   :  { %s30_s27 = sshll.u32 %s8282_s26, 4  ;;  %p8254_p8 = scmp.ne.s32.totalorder %s10201_s2, %s8253_s30  ;;  %s31_s27 = int_to_ptr.vmem [resolvable:$true] %s30_s27 }
  0x14   :  { %p8257_p9 = scmp.lt.u32.totalorder %s8253_s30, %s10201_s2 }
  0x16   :  { %p8259_p10 = pnand %p8257_p9, %p8254_p8 }
  0x18   :  { %8262 = shalt.err (!%p8259_p10)
}
  0x19   :  { %s8263_s8 = scalar_lea.vmem %s31_s27, 16  ;;  %s8267_s1 = scalar_lea.vmem %s31_s27, 32 }
  0x1a   :  { %p8264_p11 = scmp.ne.s32.totalorder %s31_s27, %s8263_s8  ;;  %p8268_p12 = scmp.lt.s32.totalorder %s31_s27, %s31_s27 }
  0x1b   :  { %p8269_p13 = scmp.lt.s32.totalorder %s8267_s1, %s8263_s8 }
  0x1d   :  { %p8270_p0 = por %p8269_p13, %p8268_p12 }
  0x1f   :  { %p8271_p1 = pnand %p8270_p0, %p8264_p11 }
  0x21   :  { %8274 = shalt.err (!%p8271_p1)
}
  0x22   :  { %33 = dma.hbm_to_vmem [thread:$0]  %s10201_s2, 16, %s31_s27, [#allocation5]  }
  0x23   :  { %8275 = dma.done.wait [#allocation3], 128  }
  0x24   :  { %8276 = vsyncadd [#allocation3], 4294967168 }
  0x25   :  { %8277 = dma.done.wait [#allocation5], 16  }
  0x26   :  { %8278 = vsyncadd [#allocation5], 4294967280  ;;  %vm1746_vm0 = vcmask 1043456   ;;  %v8283_v0 = vmov 0.0   ;;  %vm8284_vm1 = vmmov 0   ;;  %vm1747_vm2 = vcmask 1044480  }
  0x27   :  { %7371 = vmatprep.subr.bf16.mxu0 %v8283_v0  ;;  %8049 = vmatprep.subr.bf16.mxu1 %v8283_v0  ;;  %v8285_v1 = vmov 65535   ;;  %v8058_v4 = vld [vmem:[#allocation2] sm:$0x1f]   ;;  %v8060_v7 = vld [vmem:[%s10199_s0 + $0x2a8] sm:$0xff]   ;;  %vm1238_vm3 = vcmask 72704   ;;  %v8062_v9 = vld [vmem:[%s10199_s0 + $0x2b0] sm:$0xff]  }
  0x28   :  { %7373 = vmatprep.mubr.msk.bf16.mxu0 %vm8284_vm1, %v8283_v0  ;;  %7713 = vmatprep.mubr.msk.bf16.mxu1 %vm8284_vm1, %v8283_v0  ;;  %v1748_v2 = vsel %vm1746_vm0, 4294967295, %v8285_v1  ;;  %v8059_v6 = vld [vmem:[%s10199_s0] sm:$0xff]   ;;  %v8061_v8 = vld [vmem:[%s10199_s0 + $0x8] sm:$0xff]   ;;  %v8063_v10 = vld [vmem:[%s10199_s0 + $0x10] sm:$0xff]  }
  0x29   :  { %v1749_v3 = vsel %vm1747_vm2, %v1748_v2, 0  ;;  %v8064_v11 = vld [vmem:[%s10199_s0 + $0x2b8] sm:$0xff]   ;;  %v8066_v13 = vld [vmem:[%s10199_s0 + $0x2c0] sm:$0xff]   ;;  %v8068_v15 = vld [vmem:[%s10199_s0 + $0x2c8] sm:$0xff]  }
  0x2a   :  { %v1751_v5 = vand.u32 %v8058_v4, %v1749_v3  ;;  %v8065_v12 = vld [vmem:[%s10199_s0 + $0x18] sm:$0xff]   ;;  %v8067_v14 = vld [vmem:[%s10199_s0 + $0x20] sm:$0xff]   ;;  %v8069_v16 = vld [vmem:[%s10199_s0 + $0x28] sm:$0xff]  }
  0x2b   :  { %v8070_v17 = vld [vmem:[%s10199_s0 + $0x2d0] sm:$0xff]   ;;  %v8072_v19 = vld [vmem:[%s10199_s0 + $0x2d8] sm:$0xff]   ;;  %v8074_v21 = vld [vmem:[%s10199_s0 + $0x2e0] sm:$0xff]  }
  0x2c   :  { %7372 = vmatpush3.bf16.msra.mxu0 %v1751_v5  ;;  %8050 = vmatpush3.bf16.msra.mxu1 %v1751_v5  ;;  %v8071_v18 = vld [vmem:[%s10199_s0 + $0x30] sm:$0xff]   ;;  %v8073_v20 = vld [vmem:[%s10199_s0 + $0x38] sm:$0xff]   ;;  %v8075_v22 = vld [vmem:[%s10199_s0 + $0x40] sm:$0xff]  }
  0x2d   :  { %v8076_v23 = vld [vmem:[%s10199_s0 + $0x2e8] sm:$0xff]   ;;  %v8078_v25 = vld [vmem:[%s10199_s0 + $0x2f0] sm:$0xff]   ;;  %v8080_v27 = vld [vmem:[%s10199_s0 + $0x2f8] sm:$0xff]  }
  0x2e   :  { %v8077_v24 = vld [vmem:[%s10199_s0 + $0x48] sm:$0xff]   ;;  %v8079_v26 = vld [vmem:[%s10199_s0 + $0x50] sm:$0xff]   ;;  %v8081_v28 = vld [vmem:[%s10199_s0 + $0x58] sm:$0xff]  }
  0x2f   :  { %7374 = vmatmul.mubr.msk.bf16.vlgmr.msra.gmra.mrb[0].mxu0 %vm1238_vm3, %v8059_v6  ;;  %7714 = vmatmul.mubr.msk.bf16.vlgmr.msra.gmra.mrb[0].mxu1 %vm1238_vm3, %v8060_v7  ;;  %v8082_v29 = vld [vmem:[%s10199_s0 + $0x300] sm:$0xff]   ;;  %v8084_v31 = vld [vmem:[%s10199_s0 + $0x308] sm:$0xff]   ;;  %v8086_v33 = vld [vmem:[%s10199_s0 + $0x310] sm:$0xff]  }
  0x30   :  { %7377 = vmatprep.mubr.msk.bf16.mxu0 %vm8284_vm1, %v8283_v0  ;;  %7717 = vmatprep.mubr.msk.bf16.mxu1 %vm8284_vm1, %v8283_v0  ;;  %v8083_v30 = vld [vmem:[%s10199_s0 + $0x60] sm:$0xff]   ;;  %v8085_v32 = vld [vmem:[%s10199_s0 + $0x68] sm:$0xff]   ;;  %v8087_v34 = vld [vmem:[%s10199_s0 + $0x70] sm:$0xff]  }
  0x31   :  { %v8088_v35 = vld [vmem:[%s10199_s0 + $0x318] sm:$0xff]   ;;  %v8090_v37 = vld [vmem:[%s10199_s0 + $0x320] sm:$0xff]   ;;  %v8092_v39 = vld [vmem:[%s10199_s0 + $0x328] sm:$0xff]  }
  0x32   :  { %v8089_v36 = vld [vmem:[%s10199_s0 + $0x78] sm:$0xff]   ;;  %v8091_v38 = vld [vmem:[%s10199_s0 + $0x80] sm:$0xff]   ;;  %v8093_v40 = vld [vmem:[%s10199_s0 + $0x88] sm:$0xff]  }
  0x33   :  { %v8094_v41 = vld [vmem:[%s10199_s0 + $0x330] sm:$0xff]   ;;  %v8096_v43 = vld [vmem:[%s10199_s0 + $0x338] sm:$0xff]   ;;  %v8098_v45 = vld [vmem:[%s10199_s0 + $0x340] sm:$0xff]  }
  0x34   :  { %v8095_v42 = vld [vmem:[%s10199_s0 + $0x90] sm:$0xff]   ;;  %v8097_v44 = vld [vmem:[%s10199_s0 + $0x98] sm:$0xff]   ;;  %v8099_v46 = vld [vmem:[%s10199_s0 + $0xa0] sm:$0xff]  }
  0x35   :  { %v8100_v47 = vld [vmem:[%s10199_s0 + $0x348] sm:$0xff]   ;;  %v8102_v49 = vld [vmem:[%s10199_s0 + $0x350] sm:$0xff]   ;;  %v8104_v51 = vld [vmem:[%s10199_s0 + $0x358] sm:$0xff]  }
  0x36   :  { %v8101_v48 = vld [vmem:[%s10199_s0 + $0xa8] sm:$0xff]   ;;  %v8103_v50 = vld [vmem:[%s10199_s0 + $0xb0] sm:$0xff]   ;;  %v8105_v52 = vld [vmem:[%s10199_s0 + $0xb8] sm:$0xff]  }
  0x37   :  { %7378 = vmatmul.mubr.msk.bf16.gmra.mrb[4].mxu0 %vm1238_vm3, %v8061_v8  ;;  %7718 = vmatmul.mubr.msk.bf16.gmra.mrb[4].mxu1 %vm1238_vm3, %v8062_v9  ;;  %v8106_v53 = vld [vmem:[%s10199_s0 + $0x360] sm:$0xff]   ;;  %v8108_v55 = vld [vmem:[%s10199_s0 + $0x368] sm:$0xff]   ;;  %v8110_v57 = vld [vmem:[%s10199_s0 + $0x370] sm:$0xff]  }
  0x38   :  { %7381 = vmatprep.mubr.msk.bf16.mxu0 %vm8284_vm1, %v8283_v0  ;;  %7721 = vmatprep.mubr.msk.bf16.mxu1 %vm8284_vm1, %v8283_v0  ;;  %v8107_v54 = vld [vmem:[%s10199_s0 + $0xc0] sm:$0xff]   ;;  %v8109_v56 = vld [vmem:[%s10199_s0 + $0xc8] sm:$0xff]   ;;  %v8111_v58 = vld [vmem:[%s10199_s0 + $0xd0] sm:$0xff]  }
  0x39   :  { %v8112_v59 = vld [vmem:[%s10199_s0 + $0x378] sm:$0xff]   ;;  %v8656_v60 = vld [vmem:[#allocation4] ss:$0 sm:$0xff]  ;;  %v8114_v5 = vld [vmem:[%s10199_s0 + $0x380] sm:$0xff]  }
  0x3a   :  { %v8113_v2 = vld [vmem:[%s10199_s0 + $0xd8] sm:$0xff]  }
  0x3f   :  { %7382 = vmatmul.mubr.msk.bf16.gmra.mrb[8].mxu0 %vm1238_vm3, %v8063_v10  ;;  %7722 = vmatmul.mubr.msk.bf16.gmra.mrb[8].mxu1 %vm1238_vm3, %v8064_v11 }
  0x40   :  { %7385 = vmatprep.mubr.msk.bf16.mxu0 %vm8284_vm1, %v8283_v0  ;;  %7725 = vmatprep.mubr.msk.bf16.mxu1 %vm8284_vm1, %v8283_v0 }
  0x47   :  { %7386 = vmatmul.mubr.msk.bf16.gmra.mrb[12].mxu0 %vm1238_vm3, %v8065_v12  ;;  %7726 = vmatmul.mubr.msk.bf16.gmra.mrb[12].mxu1 %vm1238_vm3, %v8066_v13 }
  0x48   :  { %7389 = vmatprep.mubr.msk.bf16.mxu0 %vm8284_vm1, %v8283_v0  ;;  %7729 = vmatprep.mubr.msk.bf16.mxu1 %vm8284_vm1, %v8283_v0 }
  0x4f   :  { %7390 = vmatmul.mubr.msk.bf16.gmra.mrb[16].mxu0 %vm1238_vm3, %v8067_v14  ;;  %7730 = vmatmul.mubr.msk.bf16.gmra.mrb[16].mxu1 %vm1238_vm3, %v8068_v15 }
  0x50   :  { %7393 = vmatprep.mubr.msk.bf16.mxu0 %vm8284_vm1, %v8283_v0  ;;  %7733 = vmatprep.mubr.msk.bf16.mxu1 %vm8284_vm1, %v8283_v0 }
  0x57   :  { %7394 = vmatmul.mubr.msk.bf16.gmra.mrb[20].mxu0 %vm1238_vm3, %v8069_v16  ;;  %7734 = vmatmul.mubr.msk.bf16.gmra.mrb[20].mxu1 %vm1238_vm3, %v8070_v17 }
  0x58   :  { %7397 = vmatprep.mubr.msk.bf16.mxu0 %vm8284_vm1, %v8283_v0  ;;  %7737 = vmatprep.mubr.msk.bf16.mxu1 %vm8284_vm1, %v8283_v0 }
  0x5f   :  { %7398 = vmatmul.mubr.msk.bf16.gmra.mrb[24].mxu0 %vm1238_vm3, %v8071_v18  ;;  %7738 = vmatmul.mubr.msk.bf16.gmra.mrb[24].mxu1 %vm1238_vm3, %v8072_v19 }
  0x60   :  { %7401 = vmatprep.mubr.msk.bf16.mxu0 %vm8284_vm1, %v8283_v0  ;;  %7741 = vmatprep.mubr.msk.bf16.mxu1 %vm8284_vm1, %v8283_v0 }
  0x67   :  { %7402 = vmatmul.mubr.msk.bf16.gmra.mrb[28].mxu0 %vm1238_vm3, %v8073_v20  ;;  %7742 = vmatmul.mubr.msk.bf16.gmra.mrb[28].mxu1 %vm1238_vm3, %v8074_v21 }
  0x68   :  { %7405 = vmatprep.mubr.msk.bf16.mxu0 %vm8284_vm1, %v8283_v0  ;;  %7745 = vmatprep.mubr.msk.bf16.mxu1 %vm8284_vm1, %v8283_v0 }
  0x6f   :  { %7406 = vmatmul.mubr.msk.bf16.gmra.mrb[32].mxu0 %vm1238_vm3, %v8075_v22  ;;  %7746 = vmatmul.mubr.msk.bf16.gmra.mrb[32].mxu1 %vm1238_vm3, %v8076_v23  ;;  %v8115_v22 = vld [vmem:[%s10199_s0 + $0xe0] sm:$0xff]  }
  0x70   :  { %7409 = vmatprep.mubr.msk.bf16.mxu0 %vm8284_vm1, %v8283_v0  ;;  %7749 = vmatprep.mubr.msk.bf16.mxu1 %vm8284_vm1, %v8283_v0 }
  0x77   :  { %7410 = vmatmul.mubr.msk.bf16.gmra.mrb[36].mxu0 %vm1238_vm3, %v8077_v24  ;;  %7750 = vmatmul.mubr.msk.bf16.gmra.mrb[36].mxu1 %vm1238_vm3, %v8078_v25  ;;  %v8116_v25 = vld [vmem:[%s10199_s0 + $0x388] sm:$0xff]  }
  0x78   :  { %7413 = vmatprep.mubr.msk.bf16.mxu0 %vm8284_vm1, %v8283_v0  ;;  %7753 = vmatprep.mubr.msk.bf16.mxu1 %vm8284_vm1, %v8283_v0 }
  0x7f   :  { %7414 = vmatmul.mubr.msk.bf16.gmra.mrb[40].mxu0 %vm1238_vm3, %v8079_v26  ;;  %7754 = vmatmul.mubr.msk.bf16.gmra.mrb[40].mxu1 %vm1238_vm3, %v8080_v27 }
  0x80   :  { %7417 = vmatprep.mubr.msk.bf16.mxu0 %vm8284_vm1, %v8283_v0  ;;  %7757 = vmatprep.mubr.msk.bf16.mxu1 %vm8284_vm1, %v8283_v0 }
  0x87   :  { %7418 = vmatmul.mubr.msk.bf16.gmra.mrb[44].mxu0 %vm1238_vm3, %v8081_v28  ;;  %7758 = vmatmul.mubr.msk.bf16.gmra.mrb[44].mxu1 %vm1238_vm3, %v8082_v29 }
  0x88   :  { %7421 = vmatprep.mubr.msk.bf16.mxu0 %vm8284_vm1, %v8283_v0  ;;  %7761 = vmatprep.mubr.msk.bf16.mxu1 %vm8284_vm1, %v8283_v0 }
  0x8f   :  { %7422 = vmatmul.mubr.msk.bf16.gmra.mrb[48].mxu0 %vm1238_vm3, %v8083_v30  ;;  %7762 = vmatmul.mubr.msk.bf16.gmra.mrb[48].mxu1 %vm1238_vm3, %v8084_v31 }
  0x90   :  { %7425 = vmatprep.mubr.msk.bf16.mxu0 %vm8284_vm1, %v8283_v0  ;;  %7765 = vmatprep.mubr.msk.bf16.mxu1 %vm8284_vm1, %v8283_v0 }
  0x97   :  { %7426 = vmatmul.mubr.msk.bf16.gmra.mrb[52].mxu0 %vm1238_vm3, %v8085_v32  ;;  %7766 = vmatmul.mubr.msk.bf16.gmra.mrb[52].mxu1 %vm1238_vm3, %v8086_v33 }
  0x98   :  { %7429 = vmatprep.mubr.msk.bf16.mxu0 %vm8284_vm1, %v8283_v0  ;;  %7769 = vmatprep.mubr.msk.bf16.mxu1 %vm8284_vm1, %v8283_v0 }
  0x9f   :  { %7430 = vmatmul.mubr.msk.bf16.gmra.mrb[56].mxu0 %vm1238_vm3, %v8087_v34  ;;  %7770 = vmatmul.mubr.msk.bf16.gmra.mrb[56].mxu1 %vm1238_vm3, %v8088_v35 }
  0xa0   :  { %7433 = vmatprep.mubr.msk.bf16.mxu0 %vm8284_vm1, %v8283_v0  ;;  %7773 = vmatprep.mubr.msk.bf16.mxu1 %vm8284_vm1, %v8283_v0 }
  0xa7   :  { %7434 = vmatmul.mubr.msk.bf16.gmra.mrb[60].mxu0 %vm1238_vm3, %v8089_v36  ;;  %7774 = vmatmul.mubr.msk.bf16.gmra.mrb[60].mxu1 %vm1238_vm3, %v8090_v37 }
  0xa8   :  { %7437 = vmatprep.mubr.msk.bf16.mxu0 %vm8284_vm1, %v8283_v0  ;;  %7777 = vmatprep.mubr.msk.bf16.mxu1 %vm8284_vm1, %v8283_v0 }
  0xaf   :  { %7438 = vmatmul.mubr.msk.bf16.gmra.mrb[64].mxu0 %vm1238_vm3, %v8091_v38  ;;  %7778 = vmatmul.mubr.msk.bf16.gmra.mrb[64].mxu1 %vm1238_vm3, %v8092_v39 }
  0xb0   :  { %7441 = vmatprep.mubr.msk.bf16.mxu0 %vm8284_vm1, %v8283_v0  ;;  %7781 = vmatprep.mubr.msk.bf16.mxu1 %vm8284_vm1, %v8283_v0 }
  0xb7   :  { %7442 = vmatmul.mubr.msk.bf16.gmra.mrb[68].mxu0 %vm1238_vm3, %v8093_v40  ;;  %7782 = vmatmul.mubr.msk.bf16.gmra.mrb[68].mxu1 %vm1238_vm3, %v8094_v41 }
  0xb8   :  { %7445 = vmatprep.mubr.msk.bf16.mxu0 %vm8284_vm1, %v8283_v0  ;;  %7785 = vmatprep.mubr.msk.bf16.mxu1 %vm8284_vm1, %v8283_v0 }
  0xbf   :  { %7446 = vmatmul.mubr.msk.bf16.gmra.mrb[72].mxu0 %vm1238_vm3, %v8095_v42  ;;  %7786 = vmatmul.mubr.msk.bf16.gmra.mrb[72].mxu1 %vm1238_vm3, %v8096_v43  ;;  %v8117_v42 = vld [vmem:[%s10199_s0 + $0xe8] sm:$0xff]  }
  0xc0   :  { %7449 = vmatprep.mubr.msk.bf16.mxu0 %vm8284_vm1, %v8283_v0  ;;  %7789 = vmatprep.mubr.msk.bf16.mxu1 %vm8284_vm1, %v8283_v0 }
  0xc7   :  { %7450 = vmatmul.mubr.msk.bf16.gmra.mrb[76].mxu0 %vm1238_vm3, %v8097_v44  ;;  %7790 = vmatmul.mubr.msk.bf16.gmra.mrb[76].mxu1 %vm1238_vm3, %v8098_v45  ;;  %v8118_v45 = vld [vmem:[%s10199_s0 + $0x390] sm:$0xff]  }
  0xc8   :  { %7453 = vmatprep.mubr.msk.bf16.mxu0 %vm8284_vm1, %v8283_v0  ;;  %7793 = vmatprep.mubr.msk.bf16.mxu1 %vm8284_vm1, %v8283_v0 }
  0xcf   :  { %7454 = vmatmul.mubr.msk.bf16.gmra.mrb[80].mxu0 %vm1238_vm3, %v8099_v46  ;;  %7794 = vmatmul.mubr.msk.bf16.gmra.mrb[80].mxu1 %vm1238_vm3, %v8100_v47 }
  0xd0   :  { %7457 = vmatprep.mubr.msk.bf16.mxu0 %vm8284_vm1, %v8283_v0  ;;  %7797 = vmatprep.mubr.msk.bf16.mxu1 %vm8284_vm1, %v8283_v0 }
  0xd7   :  { %7458 = vmatmul.mubr.msk.bf16.gmra.mrb[84].mxu0 %vm1238_vm3, %v8101_v48  ;;  %7798 = vmatmul.mubr.msk.bf16.gmra.mrb[84].mxu1 %vm1238_vm3, %v8102_v49 }
  0xd8   :  { %7461 = vmatprep.mubr.msk.bf16.mxu0 %vm8284_vm1, %v8283_v0  ;;  %7801 = vmatprep.mubr.msk.bf16.mxu1 %vm8284_vm1, %v8283_v0 }
  0xdf   :  { %7462 = vmatmul.mubr.msk.bf16.gmra.mrb[88].mxu0 %vm1238_vm3, %v8103_v50  ;;  %7802 = vmatmul.mubr.msk.bf16.gmra.mrb[88].mxu1 %vm1238_vm3, %v8104_v51 }
  0xe0   :  { %7465 = vmatprep.mubr.msk.bf16.mxu0 %vm8284_vm1, %v8283_v0  ;;  %7805 = vmatprep.mubr.msk.bf16.mxu1 %vm8284_vm1, %v8283_v0 }
  0xe7   :  { %7466 = vmatmul.mubr.msk.bf16.gmra.mrb[92].mxu0 %vm1238_vm3, %v8105_v52  ;;  %7806 = vmatmul.mubr.msk.bf16.gmra.mrb[92].mxu1 %vm1238_vm3, %v8106_v53 }
  0xe8   :  { %7469 = vmatprep.mubr.msk.bf16.mxu0 %vm8284_vm1, %v8283_v0  ;;  %7809 = vmatprep.mubr.msk.bf16.mxu1 %vm8284_vm1, %v8283_v0 }
  0xef   :  { %7470 = vmatmul.mubr.msk.bf16.gmra.mrb[96].mxu0 %vm1238_vm3, %v8107_v54  ;;  %7810 = vmatmul.mubr.msk.bf16.gmra.mrb[96].mxu1 %vm1238_vm3, %v8108_v55 }
  0xf0   :  { %7473 = vmatprep.mubr.msk.bf16.mxu0 %vm8284_vm1, %v8283_v0  ;;  %7813 = vmatprep.mubr.msk.bf16.mxu1 %vm8284_vm1, %v8283_v0 }
  0xf7   :  { %7474 = vmatmul.mubr.msk.bf16.gmra.mrb[100].mxu0 %vm1238_vm3, %v8109_v56  ;;  %7814 = vmatmul.mubr.msk.bf16.gmra.mrb[100].mxu1 %vm1238_vm3, %v8110_v57 }
  0xf8   :  { %7477 = vmatprep.mubr.msk.bf16.mxu0 %vm8284_vm1, %v8283_v0  ;;  %7817 = vmatprep.mubr.msk.bf16.mxu1 %vm8284_vm1, %v8283_v0 }
  0xff   :  { %7478 = vmatmul.mubr.msk.bf16.gmra.mrb[104].mxu0 %vm1238_vm3, %v8111_v58  ;;  %7818 = vmatmul.mubr.msk.bf16.gmra.mrb[104].mxu1 %vm1238_vm3, %v8112_v59 }
 0x100   :  { %7481 = vmatprep.mubr.msk.bf16.mxu0 %vm8284_vm1, %v8283_v0  ;;  %7821 = vmatprep.mubr.msk.bf16.mxu1 %vm8284_vm1, %v8283_v0 }
 0x102   :  { %v1787_v61 = vpop.f32.mrb[0].mxu0  ;;  %v2467_v62 = vpop.f32.mrb[0].mxu1 }
 0x103   :  { %v1788_v63 = vadd.f32 %v8656_v60, %v1787_v61  ;;  %v7375_v1 = vpop.f32.mrb[1].mxu0  ;;  %v2468_v3 = vadd.f32 %v8656_v60, %v2467_v62  ;;  %v7715_v4 = vpop.f32.mrb[1].mxu1 }
 0x104   :  { %v1790_v6 = vpop.f32.mrb[2].mxu0  ;;  %v2470_v7 = vpop.f32.mrb[2].mxu1 }
 0x105   :  { %v1791_v8 = vadd.f32 %v8656_v60, %v1790_v6  ;;  %v7376_v9 = vpop.f32.mrb[3].mxu0  ;;  %v3308_v10 = vmax.f32 %v2468_v3, 0.0  ;;  %v2471_v11 = vadd.f32 %v8656_v60, %v2470_v7  ;;  %v7716_v12 = vpop.f32.mrb[3].mxu1  ;;  %v3138_v13 = vmax.f32 %v1788_v63, 0.0  ;;  %v8119_v63 = vld [vmem:[%s10199_s0 + $0xf0] sm:$0xff]   ;;  %v8120_v3 = vld [vmem:[%s10199_s0 + $0x398] sm:$0xff]  }
 0x107   :  { %v3139_v14 = vmax.f32 %v1791_v8, 0.0  ;;  %7482 = vmatmul.mubr.msk.bf16.gmra.mrb[108].mxu0 %vm1238_vm3, %v8113_v2  ;;  %v3309_v15 = vmax.f32 %v2471_v11, 0.0  ;;  %7822 = vmatmul.mubr.msk.bf16.gmra.mrb[108].mxu1 %vm1238_vm3, %v8114_v5 }
 0x108   :  { %7485 = vmatprep.mubr.msk.bf16.mxu0 %vm8284_vm1, %v8283_v0  ;;  %7825 = vmatprep.mubr.msk.bf16.mxu1 %vm8284_vm1, %v8283_v0 }
 0x109   :  { %v6191_v16 = vpack.c.bf16 %v3139_v14, %v3138_v13  ;;  %v6616_v17 = vpack.c.bf16 %v3309_v15, %v3308_v10 }
 0x10a   :  { %v1795_v18 = vpop.f32.mrb[4].mxu0  ;;  %v2475_v19 = vpop.f32.mrb[4].mxu1 }
 0x10b   :  { %6192 = vst [vmem:[%s10202_s3] sm:$0xff] %v6191_v16   ;;  %7117 = vst [vmem:[%s10202_s3 + $0x2a8] sm:$0xff] %v6616_v17   ;;  %v1796_v20 = vadd.f32 %v8656_v60, %v1795_v18  ;;  %v7379_v21 = vpop.f32.mrb[5].mxu0  ;;  %v2476_v23 = vadd.f32 %v8656_v60, %v2475_v19  ;;  %v7719_v24 = vpop.f32.mrb[5].mxu1 }
 0x10c   :  { %v1798_v26 = vpop.f32.mrb[6].mxu0  ;;  %v2478_v27 = vpop.f32.mrb[6].mxu1 }
 0x10d   :  { %v1799_v28 = vadd.f32 %v8656_v60, %v1798_v26  ;;  %v7380_v29 = vpop.f32.mrb[7].mxu0  ;;  %v3310_v30 = vmax.f32 %v2476_v23, 0.0  ;;  %v2479_v31 = vadd.f32 %v8656_v60, %v2478_v27  ;;  %v7720_v32 = vpop.f32.mrb[7].mxu1  ;;  %v3140_v33 = vmax.f32 %v1796_v20, 0.0  ;;  %v8121_v20 = vld [vmem:[%s10199_s0 + $0xf8] sm:$0xff]   ;;  %v8122_v23 = vld [vmem:[%s10199_s0 + $0x3a0] sm:$0xff]  }
 0x10f   :  { %v3141_v34 = vmax.f32 %v1799_v28, 0.0  ;;  %7486 = vmatmul.mubr.msk.bf16.gmra.mrb[112].mxu0 %vm1238_vm3, %v8115_v22  ;;  %v3311_v35 = vmax.f32 %v2479_v31, 0.0  ;;  %7826 = vmatmul.mubr.msk.bf16.gmra.mrb[112].mxu1 %vm1238_vm3, %v8116_v25 }
 0x110   :  { %7489 = vmatprep.mubr.msk.bf16.mxu0 %vm8284_vm1, %v8283_v0  ;;  %7829 = vmatprep.mubr.msk.bf16.mxu1 %vm8284_vm1, %v8283_v0 }
 0x111   :  { %v6196_v36 = vpack.c.bf16 %v3141_v34, %v3140_v33  ;;  %v6621_v37 = vpack.c.bf16 %v3311_v35, %v3310_v30 }
 0x112   :  { %v1803_v38 = vpop.f32.mrb[8].mxu0  ;;  %v2483_v39 = vpop.f32.mrb[8].mxu1 }
 0x113   :  { %7033 = vst [vmem:[%s10202_s3 + $0x8] sm:$0xff] %v6196_v36   ;;  %7118 = vst [vmem:[%s10202_s3 + $0x2b0] sm:$0xff] %v6621_v37   ;;  %v1804_v40 = vadd.f32 %v8656_v60, %v1803_v38  ;;  %v7383_v41 = vpop.f32.mrb[9].mxu0  ;;  %v2484_v43 = vadd.f32 %v8656_v60, %v2483_v39  ;;  %v7723_v44 = vpop.f32.mrb[9].mxu1 }
 0x114   :  { %v1806_v46 = vpop.f32.mrb[10].mxu0  ;;  %v2486_v47 = vpop.f32.mrb[10].mxu1 }
 0x115   :  { %v1807_v48 = vadd.f32 %v8656_v60, %v1806_v46  ;;  %v7384_v49 = vpop.f32.mrb[11].mxu0  ;;  %v3312_v50 = vmax.f32 %v2484_v43, 0.0  ;;  %v2487_v51 = vadd.f32 %v8656_v60, %v2486_v47  ;;  %v7724_v52 = vpop.f32.mrb[11].mxu1  ;;  %v3142_v53 = vmax.f32 %v1804_v40, 0.0  ;;  %v8123_v40 = vld [vmem:[%s10199_s0 + $0x100] sm:$0xff]   ;;  %v8124_v43 = vld [vmem:[%s10199_s0 + $0x3a8] sm:$0xff]  }
 0x117   :  { %v3143_v54 = vmax.f32 %v1807_v48, 0.0  ;;  %7490 = vmatmul.mubr.msk.bf16.gmra.mrb[116].mxu0 %vm1238_vm3, %v8117_v42  ;;  %v3313_v55 = vmax.f32 %v2487_v51, 0.0  ;;  %7830 = vmatmul.mubr.msk.bf16.gmra.mrb[116].mxu1 %vm1238_vm3, %v8118_v45 }
 0x118   :  { %7493 = vmatprep.mubr.msk.bf16.mxu0 %vm8284_vm1, %v8283_v0  ;;  %7833 = vmatprep.mubr.msk.bf16.mxu1 %vm8284_vm1, %v8283_v0 }
 0x119   :  { %v6201_v56 = vpack.c.bf16 %v3143_v54, %v3142_v53  ;;  %v6626_v57 = vpack.c.bf16 %v3313_v55, %v3312_v50 }
 0x11a   :  { %v1811_v58 = vpop.f32.mrb[12].mxu0  ;;  %v2491_v59 = vpop.f32.mrb[12].mxu1 }
 0x11b   :  { %7034 = vst [vmem:[%s10202_s3 + $0x10] sm:$0xff] %v6201_v56   ;;  %7119 = vst [vmem:[%s10202_s3 + $0x2b8] sm:$0xff] %v6626_v57   ;;  %v1812_v61 = vadd.f32 %v8656_v60, %v1811_v58  ;;  %v7387_v62 = vpop.f32.mrb[13].mxu0  ;;  %v2492_v1 = vadd.f32 %v8656_v60, %v2491_v59  ;;  %v7727_v2 = vpop.f32.mrb[13].mxu1 }
 0x11c   :  { %v1814_v4 = vpop.f32.mrb[14].mxu0  ;;  %v2494_v5 = vpop.f32.mrb[14].mxu1 }
 0x11d   :  { %v1815_v6 = vadd.f32 %v8656_v60, %v1814_v4  ;;  %v7388_v7 = vpop.f32.mrb[15].mxu0  ;;  %v3314_v8 = vmax.f32 %v2492_v1, 0.0  ;;  %v2495_v9 = vadd.f32 %v8656_v60, %v2494_v5  ;;  %v7728_v10 = vpop.f32.mrb[15].mxu1  ;;  %v3144_v11 = vmax.f32 %v1812_v61, 0.0  ;;  %v8125_v61 = vld [vmem:[%s10199_s0 + $0x108] sm:$0xff]   ;;  %v8126_v1 = vld [vmem:[%s10199_s0 + $0x3b0] sm:$0xff]  }
 0x11f   :  { %v3145_v12 = vmax.f32 %v1815_v6, 0.0  ;;  %7494 = vmatmul.mubr.msk.bf16.gmra.mrb[120].mxu0 %vm1238_vm3, %v8119_v63  ;;  %v3315_v13 = vmax.f32 %v2495_v9, 0.0  ;;  %7834 = vmatmul.mubr.msk.bf16.gmra.mrb[120].mxu1 %vm1238_vm3, %v8120_v3 }
 0x120   :  { %7497 = vmatprep.mubr.msk.bf16.mxu0 %vm8284_vm1, %v8283_v0  ;;  %7837 = vmatprep.mubr.msk.bf16.mxu1 %vm8284_vm1, %v8283_v0 }
 0x121   :  { %v6206_v14 = vpack.c.bf16 %v3145_v12, %v3144_v11  ;;  %v6631_v15 = vpack.c.bf16 %v3315_v13, %v3314_v8 }
 0x122   :  { %v1819_v16 = vpop.f32.mrb[16].mxu0  ;;  %v2499_v17 = vpop.f32.mrb[16].mxu1 }
 0x123   :  { %7035 = vst [vmem:[%s10202_s3 + $0x18] sm:$0xff] %v6206_v14   ;;  %7120 = vst [vmem:[%s10202_s3 + $0x2c0] sm:$0xff] %v6631_v15   ;;  %v1820_v18 = vadd.f32 %v8656_v60, %v1819_v16  ;;  %v7391_v19 = vpop.f32.mrb[17].mxu0  ;;  %v2500_v21 = vadd.f32 %v8656_v60, %v2499_v17  ;;  %v7731_v22 = vpop.f32.mrb[17].mxu1 }
 0x124   :  { %v1822_v24 = vpop.f32.mrb[18].mxu0  ;;  %v2502_v25 = vpop.f32.mrb[18].mxu1 }
 0x125   :  { %v1823_v26 = vadd.f32 %v8656_v60, %v1822_v24  ;;  %v7392_v27 = vpop.f32.mrb[19].mxu0  ;;  %v3316_v28 = vmax.f32 %v2500_v21, 0.0  ;;  %v2503_v29 = vadd.f32 %v8656_v60, %v2502_v25  ;;  %v7732_v30 = vpop.f32.mrb[19].mxu1  ;;  %v3146_v31 = vmax.f32 %v1820_v18, 0.0  ;;  %v8127_v18 = vld [vmem:[%s10199_s0 + $0x110] sm:$0xff]   ;;  %v8128_v21 = vld [vmem:[%s10199_s0 + $0x3b8] sm:$0xff]  }
 0x127   :  { %v3147_v32 = vmax.f32 %v1823_v26, 0.0  ;;  %7498 = vmatmul.mubr.msk.bf16.gmra.mrb[124].mxu0 %vm1238_vm3, %v8121_v20  ;;  %v3317_v33 = vmax.f32 %v2503_v29, 0.0  ;;  %7838 = vmatmul.mubr.msk.bf16.gmra.mrb[124].mxu1 %vm1238_vm3, %v8122_v23 }
 0x128   :  { %7501 = vmatprep.mubr.msk.bf16.mxu0 %vm8284_vm1, %v8283_v0  ;;  %7841 = vmatprep.mubr.msk.bf16.mxu1 %vm8284_vm1, %v8283_v0 }
 0x129   :  { %v6211_v34 = vpack.c.bf16 %v3147_v32, %v3146_v31  ;;  %v6636_v35 = vpack.c.bf16 %v3317_v33, %v3316_v28 }
 0x12a   :  { %v1827_v36 = vpop.f32.mrb[20].mxu0  ;;  %v2507_v37 = vpop.f32.mrb[20].mxu1 }
 0x12b   :  { %7036 = vst [vmem:[%s10202_s3 + $0x20] sm:$0xff] %v6211_v34   ;;  %7121 = vst [vmem:[%s10202_s3 + $0x2c8] sm:$0xff] %v6636_v35   ;;  %v1828_v38 = vadd.f32 %v8656_v60, %v1827_v36  ;;  %v7395_v39 = vpop.f32.mrb[21].mxu0  ;;  %v2508_v41 = vadd.f32 %v8656_v60, %v2507_v37  ;;  %v7735_v42 = vpop.f32.mrb[21].mxu1 }
 0x12c   :  { %v1830_v44 = vpop.f32.mrb[22].mxu0  ;;  %v2510_v45 = vpop.f32.mrb[22].mxu1 }
 0x12d   :  { %v1831_v46 = vadd.f32 %v8656_v60, %v1830_v44  ;;  %v7396_v47 = vpop.f32.mrb[23].mxu0  ;;  %v3318_v48 = vmax.f32 %v2508_v41, 0.0  ;;  %v2511_v49 = vadd.f32 %v8656_v60, %v2510_v45  ;;  %v7736_v50 = vpop.f32.mrb[23].mxu1  ;;  %v3148_v51 = vmax.f32 %v1828_v38, 0.0  ;;  %v8129_v38 = vld [vmem:[%s10199_s0 + $0x118] sm:$0xff]   ;;  %v8130_v41 = vld [vmem:[%s10199_s0 + $0x3c0] sm:$0xff]  }
 0x12f   :  { %v3149_v52 = vmax.f32 %v1831_v46, 0.0  ;;  %7502 = vmatmul.mubr.msk.bf16.gmra.mrb[128].mxu0 %vm1238_vm3, %v8123_v40  ;;  %v3319_v53 = vmax.f32 %v2511_v49, 0.0  ;;  %7842 = vmatmul.mubr.msk.bf16.gmra.mrb[128].mxu1 %vm1238_vm3, %v8124_v43 }
 0x130   :  { %7505 = vmatprep.mubr.msk.bf16.mxu0 %vm8284_vm1, %v8283_v0  ;;  %7845 = vmatprep.mubr.msk.bf16.mxu1 %vm8284_vm1, %v8283_v0 }
 0x131   :  { %v6216_v54 = vpack.c.bf16 %v3149_v52, %v3148_v51  ;;  %v6641_v55 = vpack.c.bf16 %v3319_v53, %v3318_v48 }
 0x132   :  { %v1835_v56 = vpop.f32.mrb[24].mxu0  ;;  %v2515_v57 = vpop.f32.mrb[24].mxu1 }
 0x133   :  { %7037 = vst [vmem:[%s10202_s3 + $0x28] sm:$0xff] %v6216_v54   ;;  %7122 = vst [vmem:[%s10202_s3 + $0x2d0] sm:$0xff] %v6641_v55   ;;  %v1836_v58 = vadd.f32 %v8656_v60, %v1835_v56  ;;  %v7399_v59 = vpop.f32.mrb[25].mxu0  ;;  %v2516_v62 = vadd.f32 %v8656_v60, %v2515_v57  ;;  %v7739_v63 = vpop.f32.mrb[25].mxu1 }
 0x134   :  { %v1838_v2 = vpop.f32.mrb[26].mxu0  ;;  %v2518_v3 = vpop.f32.mrb[26].mxu1 }
 0x135   :  { %v1839_v4 = vadd.f32 %v8656_v60, %v1838_v2  ;;  %v7400_v5 = vpop.f32.mrb[27].mxu0  ;;  %v3320_v6 = vmax.f32 %v2516_v62, 0.0  ;;  %v2519_v7 = vadd.f32 %v8656_v60, %v2518_v3  ;;  %v7740_v8 = vpop.f32.mrb[27].mxu1  ;;  %v3150_v9 = vmax.f32 %v1836_v58, 0.0  ;;  %v8131_v58 = vld [vmem:[%s10199_s0 + $0x120] sm:$0xff]   ;;  %v8132_v62 = vld [vmem:[%s10199_s0 + $0x3c8] sm:$0xff]  }
 0x137   :  { %v3151_v10 = vmax.f32 %v1839_v4, 0.0  ;;  %7506 = vmatmul.mubr.msk.bf16.gmra.mrb[132].mxu0 %vm1238_vm3, %v8125_v61  ;;  %v3321_v11 = vmax.f32 %v2519_v7, 0.0  ;;  %7846 = vmatmul.mubr.msk.bf16.gmra.mrb[132].mxu1 %vm1238_vm3, %v8126_v1 }
 0x138   :  { %7509 = vmatprep.mubr.msk.bf16.mxu0 %vm8284_vm1, %v8283_v0  ;;  %7849 = vmatprep.mubr.msk.bf16.mxu1 %vm8284_vm1, %v8283_v0 }
 0x139   :  { %v6221_v12 = vpack.c.bf16 %v3151_v10, %v3150_v9  ;;  %v6646_v13 = vpack.c.bf16 %v3321_v11, %v3320_v6 }
 0x13a   :  { %v1843_v14 = vpop.f32.mrb[28].mxu0  ;;  %v2523_v15 = vpop.f32.mrb[28].mxu1 }
 0x13b   :  { %7038 = vst [vmem:[%s10202_s3 + $0x30] sm:$0xff] %v6221_v12   ;;  %7123 = vst [vmem:[%s10202_s3 + $0x2d8] sm:$0xff] %v6646_v13   ;;  %v1844_v16 = vadd.f32 %v8656_v60, %v1843_v14  ;;  %v7403_v17 = vpop.f32.mrb[29].mxu0  ;;  %v2524_v19 = vadd.f32 %v8656_v60, %v2523_v15  ;;  %v7743_v20 = vpop.f32.mrb[29].mxu1 }
 0x13c   :  { %v1846_v22 = vpop.f32.mrb[30].mxu0  ;;  %v2526_v23 = vpop.f32.mrb[30].mxu1 }
 0x13d   :  { %v1847_v24 = vadd.f32 %v8656_v60, %v1846_v22  ;;  %v7404_v25 = vpop.f32.mrb[31].mxu0  ;;  %v3322_v26 = vmax.f32 %v2524_v19, 0.0  ;;  %v2527_v27 = vadd.f32 %v8656_v60, %v2526_v23  ;;  %v7744_v28 = vpop.f32.mrb[31].mxu1  ;;  %v3152_v29 = vmax.f32 %v1844_v16, 0.0  ;;  %v8133_v16 = vld [vmem:[%s10199_s0 + $0x128] sm:$0xff]   ;;  %v8134_v19 = vld [vmem:[%s10199_s0 + $0x3d0] sm:$0xff]  }
 0x13f   :  { %v3153_v30 = vmax.f32 %v1847_v24, 0.0  ;;  %7510 = vmatmul.mubr.msk.bf16.gmra.mrb[136].mxu0 %vm1238_vm3, %v8127_v18  ;;  %v3323_v31 = vmax.f32 %v2527_v27, 0.0  ;;  %7850 = vmatmul.mubr.msk.bf16.gmra.mrb[136].mxu1 %vm1238_vm3, %v8128_v21 }
 0x140   :  { %7513 = vmatprep.mubr.msk.bf16.mxu0 %vm8284_vm1, %v8283_v0  ;;  %7853 = vmatprep.mubr.msk.bf16.mxu1 %vm8284_vm1, %v8283_v0 }
 0x141   :  { %v6226_v32 = vpack.c.bf16 %v3153_v30, %v3152_v29  ;;  %v6651_v33 = vpack.c.bf16 %v3323_v31, %v3322_v26 }
 0x142   :  { %v1851_v34 = vpop.f32.mrb[32].mxu0  ;;  %v2531_v35 = vpop.f32.mrb[32].mxu1 }
 0x143   :  { %7039 = vst [vmem:[%s10202_s3 + $0x38] sm:$0xff] %v6226_v32   ;;  %7124 = vst [vmem:[%s10202_s3 + $0x2e0] sm:$0xff] %v6651_v33   ;;  %v1852_v36 = vadd.f32 %v8656_v60, %v1851_v34  ;;  %v7407_v37 = vpop.f32.mrb[33].mxu0  ;;  %v2532_v39 = vadd.f32 %v8656_v60, %v2531_v35  ;;  %v7747_v40 = vpop.f32.mrb[33].mxu1 }
 0x144   :  { %v1854_v42 = vpop.f32.mrb[34].mxu0  ;;  %v2534_v43 = vpop.f32.mrb[34].mxu1 }
 0x145   :  { %v1855_v44 = vadd.f32 %v8656_v60, %v1854_v42  ;;  %v7408_v45 = vpop.f32.mrb[35].mxu0  ;;  %v3324_v46 = vmax.f32 %v2532_v39, 0.0  ;;  %v2535_v47 = vadd.f32 %v8656_v60, %v2534_v43  ;;  %v7748_v48 = vpop.f32.mrb[35].mxu1  ;;  %v3154_v49 = vmax.f32 %v1852_v36, 0.0  ;;  %v8135_v36 = vld [vmem:[%s10199_s0 + $0x130] sm:$0xff]   ;;  %v8136_v39 = vld [vmem:[%s10199_s0 + $0x3d8] sm:$0xff]  }
 0x147   :  { %v3155_v50 = vmax.f32 %v1855_v44, 0.0  ;;  %7514 = vmatmul.mubr.msk.bf16.gmra.mrb[140].mxu0 %vm1238_vm3, %v8129_v38  ;;  %v3325_v51 = vmax.f32 %v2535_v47, 0.0  ;;  %7854 = vmatmul.mubr.msk.bf16.gmra.mrb[140].mxu1 %vm1238_vm3, %v8130_v41 }
 0x148   :  { %7517 = vmatprep.mubr.msk.bf16.mxu0 %vm8284_vm1, %v8283_v0  ;;  %7857 = vmatprep.mubr.msk.bf16.mxu1 %vm8284_vm1, %v8283_v0 }
 0x149   :  { %v6231_v52 = vpack.c.bf16 %v3155_v50, %v3154_v49  ;;  %v6656_v53 = vpack.c.bf16 %v3325_v51, %v3324_v46 }
 0x14a   :  { %v1859_v54 = vpop.f32.mrb[36].mxu0  ;;  %v2539_v55 = vpop.f32.mrb[36].mxu1 }
 0x14b   :  { %7040 = vst [vmem:[%s10202_s3 + $0x40] sm:$0xff] %v6231_v52   ;;  %7125 = vst [vmem:[%s10202_s3 + $0x2e8] sm:$0xff] %v6656_v53   ;;  %v1860_v56 = vadd.f32 %v8656_v60, %v1859_v54  ;;  %v7411_v57 = vpop.f32.mrb[37].mxu0  ;;  %v2540_v59 = vadd.f32 %v8656_v60, %v2539_v55  ;;  %v7751_v61 = vpop.f32.mrb[37].mxu1 }
 0x14c   :  { %v1862_v63 = vpop.f32.mrb[38].mxu0  ;;  %v2542_v1 = vpop.f32.mrb[38].mxu1 }
 0x14d   :  { %v1863_v2 = vadd.f32 %v8656_v60, %v1862_v63  ;;  %v7412_v3 = vpop.f32.mrb[39].mxu0  ;;  %v3326_v4 = vmax.f32 %v2540_v59, 0.0  ;;  %v2543_v5 = vadd.f32 %v8656_v60, %v2542_v1  ;;  %v7752_v6 = vpop.f32.mrb[39].mxu1  ;;  %v3156_v7 = vmax.f32 %v1860_v56, 0.0  ;;  %v8137_v56 = vld [vmem:[%s10199_s0 + $0x138] sm:$0xff]   ;;  %v8138_v59 = vld [vmem:[%s10199_s0 + $0x3e0] sm:$0xff]  }
 0x14f   :  { %v3157_v8 = vmax.f32 %v1863_v2, 0.0  ;;  %7518 = vmatmul.mubr.msk.bf16.gmra.mrb[144].mxu0 %vm1238_vm3, %v8131_v58  ;;  %v3327_v9 = vmax.f32 %v2543_v5, 0.0  ;;  %7858 = vmatmul.mubr.msk.bf16.gmra.mrb[144].mxu1 %vm1238_vm3, %v8132_v62 }
 0x150   :  { %7521 = vmatprep.mubr.msk.bf16.mxu0 %vm8284_vm1, %v8283_v0  ;;  %7861 = vmatprep.mubr.msk.bf16.mxu1 %vm8284_vm1, %v8283_v0 }
 0x151   :  { %v6236_v10 = vpack.c.bf16 %v3157_v8, %v3156_v7  ;;  %v6661_v11 = vpack.c.bf16 %v3327_v9, %v3326_v4 }
 0x152   :  { %v1867_v12 = vpop.f32.mrb[40].mxu0  ;;  %v2547_v13 = vpop.f32.mrb[40].mxu1 }
 0x153   :  { %7041 = vst [vmem:[%s10202_s3 + $0x48] sm:$0xff] %v6236_v10   ;;  %7126 = vst [vmem:[%s10202_s3 + $0x2f0] sm:$0xff] %v6661_v11   ;;  %v1868_v14 = vadd.f32 %v8656_v60, %v1867_v12  ;;  %v7415_v15 = vpop.f32.mrb[41].mxu0  ;;  %v2548_v17 = vadd.f32 %v8656_v60, %v2547_v13  ;;  %v7755_v18 = vpop.f32.mrb[41].mxu1 }
 0x154   :  { %v1870_v20 = vpop.f32.mrb[42].mxu0  ;;  %v2550_v21 = vpop.f32.mrb[42].mxu1 }
 0x155   :  { %v1871_v22 = vadd.f32 %v8656_v60, %v1870_v20  ;;  %v7416_v23 = vpop.f32.mrb[43].mxu0  ;;  %v3328_v24 = vmax.f32 %v2548_v17, 0.0  ;;  %v2551_v25 = vadd.f32 %v8656_v60, %v2550_v21  ;;  %v7756_v26 = vpop.f32.mrb[43].mxu1  ;;  %v3158_v27 = vmax.f32 %v1868_v14, 0.0  ;;  %v8139_v14 = vld [vmem:[%s10199_s0 + $0x140] sm:$0xff]   ;;  %v8140_v17 = vld [vmem:[%s10199_s0 + $0x3e8] sm:$0xff]  }
 0x157   :  { %v3159_v28 = vmax.f32 %v1871_v22, 0.0  ;;  %7522 = vmatmul.mubr.msk.bf16.gmra.mrb[148].mxu0 %vm1238_vm3, %v8133_v16  ;;  %v3329_v29 = vmax.f32 %v2551_v25, 0.0  ;;  %7862 = vmatmul.mubr.msk.bf16.gmra.mrb[148].mxu1 %vm1238_vm3, %v8134_v19 }
 0x158   :  { %7525 = vmatprep.mubr.msk.bf16.mxu0 %vm8284_vm1, %v8283_v0  ;;  %7865 = vmatprep.mubr.msk.bf16.mxu1 %vm8284_vm1, %v8283_v0 }
 0x159   :  { %v6241_v30 = vpack.c.bf16 %v3159_v28, %v3158_v27  ;;  %v6666_v31 = vpack.c.bf16 %v3329_v29, %v3328_v24 }
 0x15a   :  { %v1875_v32 = vpop.f32.mrb[44].mxu0  ;;  %v2555_v33 = vpop.f32.mrb[44].mxu1 }
 0x15b   :  { %7042 = vst [vmem:[%s10202_s3 + $0x50] sm:$0xff] %v6241_v30   ;;  %7127 = vst [vmem:[%s10202_s3 + $0x2f8] sm:$0xff] %v6666_v31   ;;  %v1876_v34 = vadd.f32 %v8656_v60, %v1875_v32  ;;  %v7419_v35 = vpop.f32.mrb[45].mxu0  ;;  %v2556_v37 = vadd.f32 %v8656_v60, %v2555_v33  ;;  %v7759_v38 = vpop.f32.mrb[45].mxu1 }
 0x15c   :  { %v1878_v40 = vpop.f32.mrb[46].mxu0  ;;  %v2558_v41 = vpop.f32.mrb[46].mxu1 }
 0x15d   :  { %v1879_v42 = vadd.f32 %v8656_v60, %v1878_v40  ;;  %v7420_v43 = vpop.f32.mrb[47].mxu0  ;;  %v3330_v44 = vmax.f32 %v2556_v37, 0.0  ;;  %v2559_v45 = vadd.f32 %v8656_v60, %v2558_v41  ;;  %v7760_v46 = vpop.f32.mrb[47].mxu1  ;;  %v3160_v47 = vmax.f32 %v1876_v34, 0.0  ;;  %v8141_v34 = vld [vmem:[%s10199_s0 + $0x148] sm:$0xff]   ;;  %v8142_v37 = vld [vmem:[%s10199_s0 + $0x3f0] sm:$0xff]  }
 0x15f   :  { %v3161_v48 = vmax.f32 %v1879_v42, 0.0  ;;  %7526 = vmatmul.mubr.msk.bf16.gmra.mrb[152].mxu0 %vm1238_vm3, %v8135_v36  ;;  %v3331_v49 = vmax.f32 %v2559_v45, 0.0  ;;  %7866 = vmatmul.mubr.msk.bf16.gmra.mrb[152].mxu1 %vm1238_vm3, %v8136_v39 }
 0x160   :  { %7529 = vmatprep.mubr.msk.bf16.mxu0 %vm8284_vm1, %v8283_v0  ;;  %7869 = vmatprep.mubr.msk.bf16.mxu1 %vm8284_vm1, %v8283_v0 }
 0x161   :  { %v6246_v50 = vpack.c.bf16 %v3161_v48, %v3160_v47  ;;  %v6671_v51 = vpack.c.bf16 %v3331_v49, %v3330_v44 }
 0x162   :  { %v1883_v52 = vpop.f32.mrb[48].mxu0  ;;  %v2563_v53 = vpop.f32.mrb[48].mxu1 }
 0x163   :  { %7043 = vst [vmem:[%s10202_s3 + $0x58] sm:$0xff] %v6246_v50   ;;  %7128 = vst [vmem:[%s10202_s3 + $0x300] sm:$0xff] %v6671_v51   ;;  %v1884_v54 = vadd.f32 %v8656_v60, %v1883_v52  ;;  %v7423_v55 = vpop.f32.mrb[49].mxu0  ;;  %v2564_v57 = vadd.f32 %v8656_v60, %v2563_v53  ;;  %v7763_v58 = vpop.f32.mrb[49].mxu1 }
 0x164   :  { %v1886_v61 = vpop.f32.mrb[50].mxu0  ;;  %v2566_v62 = vpop.f32.mrb[50].mxu1 }
 0x165   :  { %v1887_v63 = vadd.f32 %v8656_v60, %v1886_v61  ;;  %v7424_v1 = vpop.f32.mrb[51].mxu0  ;;  %v3332_v2 = vmax.f32 %v2564_v57, 0.0  ;;  %v2567_v3 = vadd.f32 %v8656_v60, %v2566_v62  ;;  %v7764_v4 = vpop.f32.mrb[51].mxu1  ;;  %v3162_v5 = vmax.f32 %v1884_v54, 0.0  ;;  %v8143_v54 = vld [vmem:[%s10199_s0 + $0x150] sm:$0xff]   ;;  %v8144_v57 = vld [vmem:[%s10199_s0 + $0x3f8] sm:$0xff]  }
 0x167   :  { %v3163_v6 = vmax.f32 %v1887_v63, 0.0  ;;  %7530 = vmatmul.mubr.msk.bf16.gmra.mrb[156].mxu0 %vm1238_vm3, %v8137_v56  ;;  %v3333_v7 = vmax.f32 %v2567_v3, 0.0  ;;  %7870 = vmatmul.mubr.msk.bf16.gmra.mrb[156].mxu1 %vm1238_vm3, %v8138_v59 }
 0x168   :  { %7533 = vmatprep.mubr.msk.bf16.mxu0 %vm8284_vm1, %v8283_v0  ;;  %7873 = vmatprep.mubr.msk.bf16.mxu1 %vm8284_vm1, %v8283_v0 }
 0x169   :  { %v6251_v8 = vpack.c.bf16 %v3163_v6, %v3162_v5  ;;  %v6676_v9 = vpack.c.bf16 %v3333_v7, %v3332_v2 }
 0x16a   :  { %v1891_v10 = vpop.f32.mrb[52].mxu0  ;;  %v2571_v11 = vpop.f32.mrb[52].mxu1 }
 0x16b   :  { %7044 = vst [vmem:[%s10202_s3 + $0x60] sm:$0xff] %v6251_v8   ;;  %7129 = vst [vmem:[%s10202_s3 + $0x308] sm:$0xff] %v6676_v9   ;;  %v1892_v12 = vadd.f32 %v8656_v60, %v1891_v10  ;;  %v7427_v13 = vpop.f32.mrb[53].mxu0  ;;  %v2572_v15 = vadd.f32 %v8656_v60, %v2571_v11  ;;  %v7767_v16 = vpop.f32.mrb[53].mxu1 }
 0x16c   :  { %v1894_v18 = vpop.f32.mrb[54].mxu0  ;;  %v2574_v19 = vpop.f32.mrb[54].mxu1 }
 0x16d   :  { %v1895_v20 = vadd.f32 %v8656_v60, %v1894_v18  ;;  %v7428_v21 = vpop.f32.mrb[55].mxu0  ;;  %v3334_v22 = vmax.f32 %v2572_v15, 0.0  ;;  %v2575_v23 = vadd.f32 %v8656_v60, %v2574_v19  ;;  %v7768_v24 = vpop.f32.mrb[55].mxu1  ;;  %v3164_v25 = vmax.f32 %v1892_v12, 0.0  ;;  %v8145_v12 = vld [vmem:[%s10199_s0 + $0x158] sm:$0xff]   ;;  %v8146_v15 = vld [vmem:[%s10199_s0 + $0x400] sm:$0xff]  }
 0x16f   :  { %v3165_v26 = vmax.f32 %v1895_v20, 0.0  ;;  %7534 = vmatmul.mubr.msk.bf16.gmra.mrb[160].mxu0 %vm1238_vm3, %v8139_v14  ;;  %v3335_v27 = vmax.f32 %v2575_v23, 0.0  ;;  %7874 = vmatmul.mubr.msk.bf16.gmra.mrb[160].mxu1 %vm1238_vm3, %v8140_v17 }
 0x170   :  { %7537 = vmatprep.mubr.msk.bf16.mxu0 %vm8284_vm1, %v8283_v0  ;;  %7877 = vmatprep.mubr.msk.bf16.mxu1 %vm8284_vm1, %v8283_v0 }
 0x171   :  { %v6256_v28 = vpack.c.bf16 %v3165_v26, %v3164_v25  ;;  %v6681_v29 = vpack.c.bf16 %v3335_v27, %v3334_v22 }
 0x172   :  { %v1899_v30 = vpop.f32.mrb[56].mxu0  ;;  %v2579_v31 = vpop.f32.mrb[56].mxu1 }
 0x173   :  { %7045 = vst [vmem:[%s10202_s3 + $0x68] sm:$0xff] %v6256_v28   ;;  %7130 = vst [vmem:[%s10202_s3 + $0x310] sm:$0xff] %v6681_v29   ;;  %v1900_v32 = vadd.f32 %v8656_v60, %v1899_v30  ;;  %v7431_v33 = vpop.f32.mrb[57].mxu0  ;;  %v2580_v35 = vadd.f32 %v8656_v60, %v2579_v31  ;;  %v7771_v36 = vpop.f32.mrb[57].mxu1 }
 0x174   :  { %v1902_v38 = vpop.f32.mrb[58].mxu0  ;;  %v2582_v39 = vpop.f32.mrb[58].mxu1 }
 0x175   :  { %v1903_v40 = vadd.f32 %v8656_v60, %v1902_v38  ;;  %v7432_v41 = vpop.f32.mrb[59].mxu0  ;;  %v3336_v42 = vmax.f32 %v2580_v35, 0.0  ;;  %v2583_v43 = vadd.f32 %v8656_v60, %v2582_v39  ;;  %v7772_v44 = vpop.f32.mrb[59].mxu1  ;;  %v3166_v45 = vmax.f32 %v1900_v32, 0.0  ;;  %v8147_v32 = vld [vmem:[%s10199_s0 + $0x160] sm:$0xff]   ;;  %v8148_v35 = vld [vmem:[%s10199_s0 + $0x408] sm:$0xff]  }
 0x177   :  { %v3167_v46 = vmax.f32 %v1903_v40, 0.0  ;;  %7538 = vmatmul.mubr.msk.bf16.gmra.mrb[164].mxu0 %vm1238_vm3, %v8141_v34  ;;  %v3337_v47 = vmax.f32 %v2583_v43, 0.0  ;;  %7878 = vmatmul.mubr.msk.bf16.gmra.mrb[164].mxu1 %vm1238_vm3, %v8142_v37 }
 0x178   :  { %7541 = vmatprep.mubr.msk.bf16.mxu0 %vm8284_vm1, %v8283_v0  ;;  %7881 = vmatprep.mubr.msk.bf16.mxu1 %vm8284_vm1, %v8283_v0 }
 0x179   :  { %v6261_v48 = vpack.c.bf16 %v3167_v46, %v3166_v45  ;;  %v6686_v49 = vpack.c.bf16 %v3337_v47, %v3336_v42 }
 0x17a   :  { %v1907_v50 = vpop.f32.mrb[60].mxu0  ;;  %v2587_v51 = vpop.f32.mrb[60].mxu1 }
 0x17b   :  { %7046 = vst [vmem:[%s10202_s3 + $0x70] sm:$0xff] %v6261_v48   ;;  %7131 = vst [vmem:[%s10202_s3 + $0x318] sm:$0xff] %v6686_v49   ;;  %v1908_v52 = vadd.f32 %v8656_v60, %v1907_v50  ;;  %v7435_v53 = vpop.f32.mrb[61].mxu0  ;;  %v2588_v55 = vadd.f32 %v8656_v60, %v2587_v51  ;;  %v7775_v56 = vpop.f32.mrb[61].mxu1 }
 0x17c   :  { %v1910_v58 = vpop.f32.mrb[62].mxu0  ;;  %v2590_v59 = vpop.f32.mrb[62].mxu1 }
 0x17d   :  { %v1911_v61 = vadd.f32 %v8656_v60, %v1910_v58  ;;  %v7436_v62 = vpop.f32.mrb[63].mxu0  ;;  %v3338_v63 = vmax.f32 %v2588_v55, 0.0  ;;  %v2591_v1 = vadd.f32 %v8656_v60, %v2590_v59  ;;  %v7776_v2 = vpop.f32.mrb[63].mxu1  ;;  %v3168_v3 = vmax.f32 %v1908_v52, 0.0  ;;  %v8149_v52 = vld [vmem:[%s10199_s0 + $0x168] sm:$0xff]   ;;  %v8150_v55 = vld [vmem:[%s10199_s0 + $0x410] sm:$0xff]  }
 0x17f   :  { %v3169_v4 = vmax.f32 %v1911_v61, 0.0  ;;  %7542 = vmatmul.mubr.msk.bf16.gmra.mrb[168].mxu0 %vm1238_vm3, %v8143_v54  ;;  %v3339_v5 = vmax.f32 %v2591_v1, 0.0  ;;  %7882 = vmatmul.mubr.msk.bf16.gmra.mrb[168].mxu1 %vm1238_vm3, %v8144_v57 }
 0x180   :  { %7545 = vmatprep.mubr.msk.bf16.mxu0 %vm8284_vm1, %v8283_v0  ;;  %7885 = vmatprep.mubr.msk.bf16.mxu1 %vm8284_vm1, %v8283_v0 }
 0x181   :  { %v6266_v6 = vpack.c.bf16 %v3169_v4, %v3168_v3  ;;  %v6691_v7 = vpack.c.bf16 %v3339_v5, %v3338_v63 }
 0x182   :  { %v1915_v8 = vpop.f32.mrb[64].mxu0  ;;  %v2595_v9 = vpop.f32.mrb[64].mxu1 }
 0x183   :  { %7047 = vst [vmem:[%s10202_s3 + $0x78] sm:$0xff] %v6266_v6   ;;  %7132 = vst [vmem:[%s10202_s3 + $0x320] sm:$0xff] %v6691_v7   ;;  %v1916_v10 = vadd.f32 %v8656_v60, %v1915_v8  ;;  %v7439_v11 = vpop.f32.mrb[65].mxu0  ;;  %v2596_v13 = vadd.f32 %v8656_v60, %v2595_v9  ;;  %v7779_v14 = vpop.f32.mrb[65].mxu1 }
 0x184   :  { %v1918_v16 = vpop.f32.mrb[66].mxu0  ;;  %v2598_v17 = vpop.f32.mrb[66].mxu1 }
 0x185   :  { %v1919_v18 = vadd.f32 %v8656_v60, %v1918_v16  ;;  %v7440_v19 = vpop.f32.mrb[67].mxu0  ;;  %v3340_v20 = vmax.f32 %v2596_v13, 0.0  ;;  %v2599_v21 = vadd.f32 %v8656_v60, %v2598_v17  ;;  %v7780_v22 = vpop.f32.mrb[67].mxu1  ;;  %v3170_v23 = vmax.f32 %v1916_v10, 0.0  ;;  %v8151_v10 = vld [vmem:[%s10199_s0 + $0x170] sm:$0xff]   ;;  %v8152_v13 = vld [vmem:[%s10199_s0 + $0x418] sm:$0xff]  }
 0x187   :  { %v3171_v24 = vmax.f32 %v1919_v18, 0.0  ;;  %7546 = vmatmul.mubr.msk.bf16.gmra.mrb[172].mxu0 %vm1238_vm3, %v8145_v12  ;;  %v3341_v25 = vmax.f32 %v2599_v21, 0.0  ;;  %7886 = vmatmul.mubr.msk.bf16.gmra.mrb[172].mxu1 %vm1238_vm3, %v8146_v15 }
 0x188   :  { %7549 = vmatprep.mubr.msk.bf16.mxu0 %vm8284_vm1, %v8283_v0  ;;  %7889 = vmatprep.mubr.msk.bf16.mxu1 %vm8284_vm1, %v8283_v0 }
 0x189   :  { %v6271_v26 = vpack.c.bf16 %v3171_v24, %v3170_v23  ;;  %v6696_v27 = vpack.c.bf16 %v3341_v25, %v3340_v20 }
 0x18a   :  { %v1923_v28 = vpop.f32.mrb[68].mxu0  ;;  %v2603_v29 = vpop.f32.mrb[68].mxu1 }
 0x18b   :  { %7048 = vst [vmem:[%s10202_s3 + $0x80] sm:$0xff] %v6271_v26   ;;  %7133 = vst [vmem:[%s10202_s3 + $0x328] sm:$0xff] %v6696_v27   ;;  %v1924_v30 = vadd.f32 %v8656_v60, %v1923_v28  ;;  %v7443_v31 = vpop.f32.mrb[69].mxu0  ;;  %v2604_v33 = vadd.f32 %v8656_v60, %v2603_v29  ;;  %v7783_v34 = vpop.f32.mrb[69].mxu1 }
 0x18c   :  { %v1926_v36 = vpop.f32.mrb[70].mxu0  ;;  %v2606_v37 = vpop.f32.mrb[70].mxu1 }
 0x18d   :  { %v1927_v38 = vadd.f32 %v8656_v60, %v1926_v36  ;;  %v7444_v39 = vpop.f32.mrb[71].mxu0  ;;  %v3342_v40 = vmax.f32 %v2604_v33, 0.0  ;;  %v2607_v41 = vadd.f32 %v8656_v60, %v2606_v37  ;;  %v7784_v42 = vpop.f32.mrb[71].mxu1  ;;  %v3172_v43 = vmax.f32 %v1924_v30, 0.0  ;;  %v8153_v30 = vld [vmem:[%s10199_s0 + $0x178] sm:$0xff]   ;;  %v8154_v33 = vld [vmem:[%s10199_s0 + $0x420] sm:$0xff]  }
 0x18f   :  { %v3173_v44 = vmax.f32 %v1927_v38, 0.0  ;;  %7550 = vmatmul.mubr.msk.bf16.gmra.mrb[176].mxu0 %vm1238_vm3, %v8147_v32  ;;  %v3343_v45 = vmax.f32 %v2607_v41, 0.0  ;;  %7890 = vmatmul.mubr.msk.bf16.gmra.mrb[176].mxu1 %vm1238_vm3, %v8148_v35 }
 0x190   :  { %7553 = vmatprep.mubr.msk.bf16.mxu0 %vm8284_vm1, %v8283_v0  ;;  %7893 = vmatprep.mubr.msk.bf16.mxu1 %vm8284_vm1, %v8283_v0 }
 0x191   :  { %v6276_v46 = vpack.c.bf16 %v3173_v44, %v3172_v43  ;;  %v6701_v47 = vpack.c.bf16 %v3343_v45, %v3342_v40 }
 0x192   :  { %v1931_v48 = vpop.f32.mrb[72].mxu0  ;;  %v2611_v49 = vpop.f32.mrb[72].mxu1 }
 0x193   :  { %7049 = vst [vmem:[%s10202_s3 + $0x88] sm:$0xff] %v6276_v46   ;;  %7134 = vst [vmem:[%s10202_s3 + $0x330] sm:$0xff] %v6701_v47   ;;  %v1932_v50 = vadd.f32 %v8656_v60, %v1931_v48  ;;  %v7447_v51 = vpop.f32.mrb[73].mxu0  ;;  %v2612_v53 = vadd.f32 %v8656_v60, %v2611_v49  ;;  %v7787_v54 = vpop.f32.mrb[73].mxu1 }
 0x194   :  { %v1934_v56 = vpop.f32.mrb[74].mxu0  ;;  %v2614_v57 = vpop.f32.mrb[74].mxu1 }
 0x195   :  { %v1935_v58 = vadd.f32 %v8656_v60, %v1934_v56  ;;  %v7448_v59 = vpop.f32.mrb[75].mxu0  ;;  %v3344_v61 = vmax.f32 %v2612_v53, 0.0  ;;  %v2615_v62 = vadd.f32 %v8656_v60, %v2614_v57  ;;  %v7788_v63 = vpop.f32.mrb[75].mxu1  ;;  %v3174_v1 = vmax.f32 %v1932_v50, 0.0  ;;  %v8155_v50 = vld [vmem:[%s10199_s0 + $0x180] sm:$0xff]   ;;  %v8156_v53 = vld [vmem:[%s10199_s0 + $0x428] sm:$0xff]  }
 0x197   :  { %v3175_v2 = vmax.f32 %v1935_v58, 0.0  ;;  %7554 = vmatmul.mubr.msk.bf16.gmra.mrb[180].mxu0 %vm1238_vm3, %v8149_v52  ;;  %v3345_v3 = vmax.f32 %v2615_v62, 0.0  ;;  %7894 = vmatmul.mubr.msk.bf16.gmra.mrb[180].mxu1 %vm1238_vm3, %v8150_v55 }
 0x198   :  { %7557 = vmatprep.mubr.msk.bf16.mxu0 %vm8284_vm1, %v8283_v0  ;;  %7897 = vmatprep.mubr.msk.bf16.mxu1 %vm8284_vm1, %v8283_v0 }
 0x199   :  { %v6281_v4 = vpack.c.bf16 %v3175_v2, %v3174_v1  ;;  %v6706_v5 = vpack.c.bf16 %v3345_v3, %v3344_v61 }
 0x19a   :  { %v1939_v6 = vpop.f32.mrb[76].mxu0  ;;  %v2619_v7 = vpop.f32.mrb[76].mxu1 }
 0x19b   :  { %7050 = vst [vmem:[%s10202_s3 + $0x90] sm:$0xff] %v6281_v4   ;;  %7135 = vst [vmem:[%s10202_s3 + $0x338] sm:$0xff] %v6706_v5   ;;  %v1940_v8 = vadd.f32 %v8656_v60, %v1939_v6  ;;  %v7451_v9 = vpop.f32.mrb[77].mxu0  ;;  %v2620_v11 = vadd.f32 %v8656_v60, %v2619_v7  ;;  %v7791_v12 = vpop.f32.mrb[77].mxu1 }
 0x19c   :  { %v1942_v14 = vpop.f32.mrb[78].mxu0  ;;  %v2622_v15 = vpop.f32.mrb[78].mxu1 }
 0x19d   :  { %v1943_v16 = vadd.f32 %v8656_v60, %v1942_v14  ;;  %v7452_v17 = vpop.f32.mrb[79].mxu0  ;;  %v3346_v18 = vmax.f32 %v2620_v11, 0.0  ;;  %v2623_v19 = vadd.f32 %v8656_v60, %v2622_v15  ;;  %v7792_v20 = vpop.f32.mrb[79].mxu1  ;;  %v3176_v21 = vmax.f32 %v1940_v8, 0.0  ;;  %v9102_v60 = vld [vmem:[#allocation4] ss:$0 sm:$0xff] }
 0x19e   :  { %v8157_v8 = vld [vmem:[%s10199_s0 + $0x188] sm:$0xff]   ;;  %v8158_v11 = vld [vmem:[%s10199_s0 + $0x430] sm:$0xff]  }
 0x19f   :  { %v3177_v22 = vmax.f32 %v1943_v16, 0.0  ;;  %7558 = vmatmul.mubr.msk.bf16.gmra.mrb[184].mxu0 %vm1238_vm3, %v8151_v10  ;;  %v3347_v23 = vmax.f32 %v2623_v19, 0.0  ;;  %7898 = vmatmul.mubr.msk.bf16.gmra.mrb[184].mxu1 %vm1238_vm3, %v8152_v13 }
 0x1a0   :  { %7561 = vmatprep.mubr.msk.bf16.mxu0 %vm8284_vm1, %v8283_v0  ;;  %7901 = vmatprep.mubr.msk.bf16.mxu1 %vm8284_vm1, %v8283_v0 }
 0x1a1   :  { %v6286_v24 = vpack.c.bf16 %v3177_v22, %v3176_v21  ;;  %v6711_v25 = vpack.c.bf16 %v3347_v23, %v3346_v18 }
 0x1a2   :  { %v1947_v26 = vpop.f32.mrb[80].mxu0  ;;  %v2627_v27 = vpop.f32.mrb[80].mxu1 }
 0x1a3   :  { %7051 = vst [vmem:[%s10202_s3 + $0x98] sm:$0xff] %v6286_v24   ;;  %7136 = vst [vmem:[%s10202_s3 + $0x340] sm:$0xff] %v6711_v25   ;;  %v1948_v28 = vadd.f32 %v9102_v60, %v1947_v26  ;;  %v7455_v29 = vpop.f32.mrb[81].mxu0  ;;  %v2628_v31 = vadd.f32 %v9102_v60, %v2627_v27  ;;  %v7795_v32 = vpop.f32.mrb[81].mxu1 }
 0x1a4   :  { %v1950_v34 = vpop.f32.mrb[82].mxu0  ;;  %v2630_v35 = vpop.f32.mrb[82].mxu1 }
 0x1a5   :  { %v1951_v36 = vadd.f32 %v9102_v60, %v1950_v34  ;;  %v7456_v37 = vpop.f32.mrb[83].mxu0  ;;  %v3348_v38 = vmax.f32 %v2628_v31, 0.0  ;;  %v2631_v39 = vadd.f32 %v9102_v60, %v2630_v35  ;;  %v7796_v40 = vpop.f32.mrb[83].mxu1  ;;  %v3178_v41 = vmax.f32 %v1948_v28, 0.0  ;;  %v8159_v28 = vld [vmem:[%s10199_s0 + $0x190] sm:$0xff]   ;;  %v8160_v31 = vld [vmem:[%s10199_s0 + $0x438] sm:$0xff]  }
 0x1a7   :  { %v3179_v42 = vmax.f32 %v1951_v36, 0.0  ;;  %7562 = vmatmul.mubr.msk.bf16.gmra.mrb[188].mxu0 %vm1238_vm3, %v8153_v30  ;;  %v3349_v43 = vmax.f32 %v2631_v39, 0.0  ;;  %7902 = vmatmul.mubr.msk.bf16.gmra.mrb[188].mxu1 %vm1238_vm3, %v8154_v33 }
 0x1a8   :  { %7565 = vmatprep.mubr.msk.bf16.mxu0 %vm8284_vm1, %v8283_v0  ;;  %7905 = vmatprep.mubr.msk.bf16.mxu1 %vm8284_vm1, %v8283_v0 }
 0x1a9   :  { %v6291_v44 = vpack.c.bf16 %v3179_v42, %v3178_v41  ;;  %v6716_v45 = vpack.c.bf16 %v3349_v43, %v3348_v38 }
 0x1aa   :  { %v1955_v46 = vpop.f32.mrb[84].mxu0  ;;  %v2635_v47 = vpop.f32.mrb[84].mxu1 }
 0x1ab   :  { %7052 = vst [vmem:[%s10202_s3 + $0xa0] sm:$0xff] %v6291_v44   ;;  %7137 = vst [vmem:[%s10202_s3 + $0x348] sm:$0xff] %v6716_v45   ;;  %v1956_v48 = vadd.f32 %v9102_v60, %v1955_v46  ;;  %v7459_v49 = vpop.f32.mrb[85].mxu0  ;;  %v2636_v51 = vadd.f32 %v9102_v60, %v2635_v47  ;;  %v7799_v52 = vpop.f32.mrb[85].mxu1 }
 0x1ac   :  { %v1958_v54 = vpop.f32.mrb[86].mxu0  ;;  %v2638_v55 = vpop.f32.mrb[86].mxu1 }
 0x1ad   :  { %v1959_v56 = vadd.f32 %v9102_v60, %v1958_v54  ;;  %v7460_v57 = vpop.f32.mrb[87].mxu0  ;;  %v3350_v58 = vmax.f32 %v2636_v51, 0.0  ;;  %v2639_v59 = vadd.f32 %v9102_v60, %v2638_v55  ;;  %v7800_v61 = vpop.f32.mrb[87].mxu1  ;;  %v3180_v62 = vmax.f32 %v1956_v48, 0.0  ;;  %v8161_v48 = vld [vmem:[%s10199_s0 + $0x198] sm:$0xff]   ;;  %v8162_v51 = vld [vmem:[%s10199_s0 + $0x440] sm:$0xff]  }
 0x1af   :  { %v3181_v63 = vmax.f32 %v1959_v56, 0.0  ;;  %7566 = vmatmul.mubr.msk.bf16.gmra.mrb[192].mxu0 %vm1238_vm3, %v8155_v50  ;;  %v3351_v1 = vmax.f32 %v2639_v59, 0.0  ;;  %7906 = vmatmul.mubr.msk.bf16.gmra.mrb[192].mxu1 %vm1238_vm3, %v8156_v53 }
 0x1b0   :  { %7569 = vmatprep.mubr.msk.bf16.mxu0 %vm8284_vm1, %v8283_v0  ;;  %7909 = vmatprep.mubr.msk.bf16.mxu1 %vm8284_vm1, %v8283_v0 }
 0x1b1   :  { %v6296_v2 = vpack.c.bf16 %v3181_v63, %v3180_v62  ;;  %v6721_v3 = vpack.c.bf16 %v3351_v1, %v3350_v58 }
 0x1b2   :  { %v1963_v4 = vpop.f32.mrb[88].mxu0  ;;  %v2643_v5 = vpop.f32.mrb[88].mxu1 }
 0x1b3   :  { %7053 = vst [vmem:[%s10202_s3 + $0xa8] sm:$0xff] %v6296_v2   ;;  %7138 = vst [vmem:[%s10202_s3 + $0x350] sm:$0xff] %v6721_v3   ;;  %v1964_v6 = vadd.f32 %v9102_v60, %v1963_v4  ;;  %v7463_v7 = vpop.f32.mrb[89].mxu0  ;;  %v2644_v9 = vadd.f32 %v9102_v60, %v2643_v5  ;;  %v7803_v10 = vpop.f32.mrb[89].mxu1 }
 0x1b4   :  { %v1966_v12 = vpop.f32.mrb[90].mxu0  ;;  %v2646_v13 = vpop.f32.mrb[90].mxu1 }
 0x1b5   :  { %v1967_v14 = vadd.f32 %v9102_v60, %v1966_v12  ;;  %v7464_v15 = vpop.f32.mrb[91].mxu0  ;;  %v3352_v16 = vmax.f32 %v2644_v9, 0.0  ;;  %v2647_v17 = vadd.f32 %v9102_v60, %v2646_v13  ;;  %v7804_v18 = vpop.f32.mrb[91].mxu1  ;;  %v3182_v19 = vmax.f32 %v1964_v6, 0.0  ;;  %v8163_v6 = vld [vmem:[%s10199_s0 + $0x1a0] sm:$0xff]   ;;  %v8164_v9 = vld [vmem:[%s10199_s0 + $0x448] sm:$0xff]  }
 0x1b7   :  { %v3183_v20 = vmax.f32 %v1967_v14, 0.0  ;;  %7570 = vmatmul.mubr.msk.bf16.gmra.mrb[196].mxu0 %vm1238_vm3, %v8157_v8  ;;  %v3353_v21 = vmax.f32 %v2647_v17, 0.0  ;;  %7910 = vmatmul.mubr.msk.bf16.gmra.mrb[196].mxu1 %vm1238_vm3, %v8158_v11 }
 0x1b8   :  { %7573 = vmatprep.mubr.msk.bf16.mxu0 %vm8284_vm1, %v8283_v0  ;;  %7913 = vmatprep.mubr.msk.bf16.mxu1 %vm8284_vm1, %v8283_v0 }
 0x1b9   :  { %v6301_v22 = vpack.c.bf16 %v3183_v20, %v3182_v19  ;;  %v6726_v23 = vpack.c.bf16 %v3353_v21, %v3352_v16 }
 0x1ba   :  { %v1971_v24 = vpop.f32.mrb[92].mxu0  ;;  %v2651_v25 = vpop.f32.mrb[92].mxu1 }
 0x1bb   :  { %7054 = vst [vmem:[%s10202_s3 + $0xb0] sm:$0xff] %v6301_v22   ;;  %7139 = vst [vmem:[%s10202_s3 + $0x358] sm:$0xff] %v6726_v23   ;;  %v1972_v26 = vadd.f32 %v9102_v60, %v1971_v24  ;;  %v7467_v27 = vpop.f32.mrb[93].mxu0  ;;  %v2652_v29 = vadd.f32 %v9102_v60, %v2651_v25  ;;  %v7807_v30 = vpop.f32.mrb[93].mxu1 }
 0x1bc   :  { %v1974_v32 = vpop.f32.mrb[94].mxu0  ;;  %v2654_v33 = vpop.f32.mrb[94].mxu1 }
 0x1bd   :  { %v1975_v34 = vadd.f32 %v9102_v60, %v1974_v32  ;;  %v7468_v35 = vpop.f32.mrb[95].mxu0  ;;  %v3354_v36 = vmax.f32 %v2652_v29, 0.0  ;;  %v2655_v37 = vadd.f32 %v9102_v60, %v2654_v33  ;;  %v7808_v38 = vpop.f32.mrb[95].mxu1  ;;  %v3184_v39 = vmax.f32 %v1972_v26, 0.0  ;;  %v8165_v26 = vld [vmem:[%s10199_s0 + $0x1a8] sm:$0xff]   ;;  %v8166_v29 = vld [vmem:[%s10199_s0 + $0x450] sm:$0xff]  }
 0x1bf   :  { %v3185_v40 = vmax.f32 %v1975_v34, 0.0  ;;  %7574 = vmatmul.mubr.msk.bf16.gmra.mrb[200].mxu0 %vm1238_vm3, %v8159_v28  ;;  %v3355_v41 = vmax.f32 %v2655_v37, 0.0  ;;  %7914 = vmatmul.mubr.msk.bf16.gmra.mrb[200].mxu1 %vm1238_vm3, %v8160_v31 }
 0x1c0   :  { %7577 = vmatprep.mubr.msk.bf16.mxu0 %vm8284_vm1, %v8283_v0  ;;  %7917 = vmatprep.mubr.msk.bf16.mxu1 %vm8284_vm1, %v8283_v0 }
 0x1c1   :  { %v6306_v42 = vpack.c.bf16 %v3185_v40, %v3184_v39  ;;  %v6731_v43 = vpack.c.bf16 %v3355_v41, %v3354_v36 }
 0x1c2   :  { %v1979_v44 = vpop.f32.mrb[96].mxu0  ;;  %v2659_v45 = vpop.f32.mrb[96].mxu1 }
 0x1c3   :  { %7055 = vst [vmem:[%s10202_s3 + $0xb8] sm:$0xff] %v6306_v42   ;;  %7140 = vst [vmem:[%s10202_s3 + $0x360] sm:$0xff] %v6731_v43   ;;  %v1980_v46 = vadd.f32 %v9102_v60, %v1979_v44  ;;  %v7471_v47 = vpop.f32.mrb[97].mxu0  ;;  %v2660_v49 = vadd.f32 %v9102_v60, %v2659_v45  ;;  %v7811_v50 = vpop.f32.mrb[97].mxu1 }
 0x1c4   :  { %v1982_v52 = vpop.f32.mrb[98].mxu0  ;;  %v2662_v53 = vpop.f32.mrb[98].mxu1 }
 0x1c5   :  { %v1983_v54 = vadd.f32 %v9102_v60, %v1982_v52  ;;  %v7472_v55 = vpop.f32.mrb[99].mxu0  ;;  %v3356_v56 = vmax.f32 %v2660_v49, 0.0  ;;  %v2663_v57 = vadd.f32 %v9102_v60, %v2662_v53  ;;  %v7812_v58 = vpop.f32.mrb[99].mxu1  ;;  %v3186_v59 = vmax.f32 %v1980_v46, 0.0  ;;  %v8167_v46 = vld [vmem:[%s10199_s0 + $0x1b0] sm:$0xff]   ;;  %v8168_v49 = vld [vmem:[%s10199_s0 + $0x458] sm:$0xff]  }
 0x1c7   :  { %v3187_v61 = vmax.f32 %v1983_v54, 0.0  ;;  %7578 = vmatmul.mubr.msk.bf16.gmra.mrb[204].mxu0 %vm1238_vm3, %v8161_v48  ;;  %v3357_v62 = vmax.f32 %v2663_v57, 0.0  ;;  %7918 = vmatmul.mubr.msk.bf16.gmra.mrb[204].mxu1 %vm1238_vm3, %v8162_v51 }
 0x1c8   :  { %7581 = vmatprep.mubr.msk.bf16.mxu0 %vm8284_vm1, %v8283_v0  ;;  %7921 = vmatprep.mubr.msk.bf16.mxu1 %vm8284_vm1, %v8283_v0 }
 0x1c9   :  { %v6311_v63 = vpack.c.bf16 %v3187_v61, %v3186_v59  ;;  %v6736_v1 = vpack.c.bf16 %v3357_v62, %v3356_v56 }
 0x1ca   :  { %v1987_v2 = vpop.f32.mrb[100].mxu0  ;;  %v2667_v3 = vpop.f32.mrb[100].mxu1 }
 0x1cb   :  { %7056 = vst [vmem:[%s10202_s3 + $0xc0] sm:$0xff] %v6311_v63   ;;  %7141 = vst [vmem:[%s10202_s3 + $0x368] sm:$0xff] %v6736_v1   ;;  %v1988_v4 = vadd.f32 %v9102_v60, %v1987_v2  ;;  %v7475_v5 = vpop.f32.mrb[101].mxu0  ;;  %v2668_v7 = vadd.f32 %v9102_v60, %v2667_v3  ;;  %v7815_v8 = vpop.f32.mrb[101].mxu1 }
 0x1cc   :  { %v1990_v10 = vpop.f32.mrb[102].mxu0  ;;  %v2670_v11 = vpop.f32.mrb[102].mxu1 }
 0x1cd   :  { %v1991_v12 = vadd.f32 %v9102_v60, %v1990_v10  ;;  %v7476_v13 = vpop.f32.mrb[103].mxu0  ;;  %v3358_v14 = vmax.f32 %v2668_v7, 0.0  ;;  %v2671_v15 = vadd.f32 %v9102_v60, %v2670_v11  ;;  %v7816_v16 = vpop.f32.mrb[103].mxu1  ;;  %v3188_v17 = vmax.f32 %v1988_v4, 0.0  ;;  %v8169_v4 = vld [vmem:[%s10199_s0 + $0x1b8] sm:$0xff]   ;;  %v8170_v7 = vld [vmem:[%s10199_s0 + $0x460] sm:$0xff]  }
 0x1cf   :  { %v3189_v18 = vmax.f32 %v1991_v12, 0.0  ;;  %7582 = vmatmul.mubr.msk.bf16.gmra.mrb[208].mxu0 %vm1238_vm3, %v8163_v6  ;;  %v3359_v19 = vmax.f32 %v2671_v15, 0.0  ;;  %7922 = vmatmul.mubr.msk.bf16.gmra.mrb[208].mxu1 %vm1238_vm3, %v8164_v9 }
 0x1d0   :  { %7585 = vmatprep.mubr.msk.bf16.mxu0 %vm8284_vm1, %v8283_v0  ;;  %7925 = vmatprep.mubr.msk.bf16.mxu1 %vm8284_vm1, %v8283_v0 }
 0x1d1   :  { %v6316_v20 = vpack.c.bf16 %v3189_v18, %v3188_v17  ;;  %v6741_v21 = vpack.c.bf16 %v3359_v19, %v3358_v14 }
 0x1d2   :  { %v1995_v22 = vpop.f32.mrb[104].mxu0  ;;  %v2675_v23 = vpop.f32.mrb[104].mxu1 }
 0x1d3   :  { %7057 = vst [vmem:[%s10202_s3 + $0xc8] sm:$0xff] %v6316_v20   ;;  %7142 = vst [vmem:[%s10202_s3 + $0x370] sm:$0xff] %v6741_v21   ;;  %v1996_v24 = vadd.f32 %v9102_v60, %v1995_v22  ;;  %v7479_v25 = vpop.f32.mrb[105].mxu0  ;;  %v2676_v27 = vadd.f32 %v9102_v60, %v2675_v23  ;;  %v7819_v28 = vpop.f32.mrb[105].mxu1 }
 0x1d4   :  { %v1998_v30 = vpop.f32.mrb[106].mxu0  ;;  %v2678_v31 = vpop.f32.mrb[106].mxu1 }
 0x1d5   :  { %v1999_v32 = vadd.f32 %v9102_v60, %v1998_v30  ;;  %v7480_v33 = vpop.f32.mrb[107].mxu0  ;;  %v3360_v34 = vmax.f32 %v2676_v27, 0.0  ;;  %v2679_v35 = vadd.f32 %v9102_v60, %v2678_v31  ;;  %v7820_v36 = vpop.f32.mrb[107].mxu1  ;;  %v3190_v37 = vmax.f32 %v1996_v24, 0.0  ;;  %v8171_v24 = vld [vmem:[%s10199_s0 + $0x1c0] sm:$0xff]   ;;  %v8172_v27 = vld [vmem:[%s10199_s0 + $0x468] sm:$0xff]  }
 0x1d7   :  { %v3191_v38 = vmax.f32 %v1999_v32, 0.0  ;;  %7586 = vmatmul.mubr.msk.bf16.gmra.mrb[212].mxu0 %vm1238_vm3, %v8165_v26  ;;  %v3361_v39 = vmax.f32 %v2679_v35, 0.0  ;;  %7926 = vmatmul.mubr.msk.bf16.gmra.mrb[212].mxu1 %vm1238_vm3, %v8166_v29 }
 0x1d8   :  { %7589 = vmatprep.mubr.msk.bf16.mxu0 %vm8284_vm1, %v8283_v0  ;;  %7929 = vmatprep.mubr.msk.bf16.mxu1 %vm8284_vm1, %v8283_v0 }
 0x1d9   :  { %v6321_v40 = vpack.c.bf16 %v3191_v38, %v3190_v37  ;;  %v6746_v41 = vpack.c.bf16 %v3361_v39, %v3360_v34 }
 0x1da   :  { %v2003_v42 = vpop.f32.mrb[108].mxu0  ;;  %v2683_v43 = vpop.f32.mrb[108].mxu1 }
 0x1db   :  { %7058 = vst [vmem:[%s10202_s3 + $0xd0] sm:$0xff] %v6321_v40   ;;  %7143 = vst [vmem:[%s10202_s3 + $0x378] sm:$0xff] %v6746_v41   ;;  %v2004_v44 = vadd.f32 %v9102_v60, %v2003_v42  ;;  %v7483_v45 = vpop.f32.mrb[109].mxu0  ;;  %v2684_v47 = vadd.f32 %v9102_v60, %v2683_v43  ;;  %v7823_v48 = vpop.f32.mrb[109].mxu1 }
 0x1dc   :  { %v2006_v50 = vpop.f32.mrb[110].mxu0  ;;  %v2686_v51 = vpop.f32.mrb[110].mxu1 }
 0x1dd   :  { %v2007_v52 = vadd.f32 %v9102_v60, %v2006_v50  ;;  %v7484_v53 = vpop.f32.mrb[111].mxu0  ;;  %v3362_v54 = vmax.f32 %v2684_v47, 0.0  ;;  %v2687_v55 = vadd.f32 %v9102_v60, %v2686_v51  ;;  %v7824_v56 = vpop.f32.mrb[111].mxu1  ;;  %v3192_v57 = vmax.f32 %v2004_v44, 0.0  ;;  %v8173_v44 = vld [vmem:[%s10199_s0 + $0x1c8] sm:$0xff]   ;;  %v8174_v47 = vld [vmem:[%s10199_s0 + $0x470] sm:$0xff]  }
 0x1df   :  { %v3193_v58 = vmax.f32 %v2007_v52, 0.0  ;;  %7590 = vmatmul.mubr.msk.bf16.gmra.mrb[216].mxu0 %vm1238_vm3, %v8167_v46  ;;  %v3363_v59 = vmax.f32 %v2687_v55, 0.0  ;;  %7930 = vmatmul.mubr.msk.bf16.gmra.mrb[216].mxu1 %vm1238_vm3, %v8168_v49 }
 0x1e0   :  { %7593 = vmatprep.mubr.msk.bf16.mxu0 %vm8284_vm1, %v8283_v0  ;;  %7933 = vmatprep.mubr.msk.bf16.mxu1 %vm8284_vm1, %v8283_v0 }
 0x1e1   :  { %v6326_v61 = vpack.c.bf16 %v3193_v58, %v3192_v57  ;;  %v6751_v62 = vpack.c.bf16 %v3363_v59, %v3362_v54 }
 0x1e2   :  { %v2011_v63 = vpop.f32.mrb[112].mxu0  ;;  %v2691_v1 = vpop.f32.mrb[112].mxu1 }
 0x1e3   :  { %7059 = vst [vmem:[%s10202_s3 + $0xd8] sm:$0xff] %v6326_v61   ;;  %7144 = vst [vmem:[%s10202_s3 + $0x380] sm:$0xff] %v6751_v62   ;;  %v2012_v2 = vadd.f32 %v9102_v60, %v2011_v63  ;;  %v7487_v3 = vpop.f32.mrb[113].mxu0  ;;  %v2692_v5 = vadd.f32 %v9102_v60, %v2691_v1  ;;  %v7827_v6 = vpop.f32.mrb[113].mxu1 }
 0x1e4   :  { %v2014_v8 = vpop.f32.mrb[114].mxu0  ;;  %v2694_v9 = vpop.f32.mrb[114].mxu1 }
 0x1e5   :  { %v2015_v10 = vadd.f32 %v9102_v60, %v2014_v8  ;;  %v7488_v11 = vpop.f32.mrb[115].mxu0  ;;  %v3364_v12 = vmax.f32 %v2692_v5, 0.0  ;;  %v2695_v13 = vadd.f32 %v9102_v60, %v2694_v9  ;;  %v7828_v14 = vpop.f32.mrb[115].mxu1  ;;  %v3194_v15 = vmax.f32 %v2012_v2, 0.0  ;;  %v8175_v2 = vld [vmem:[%s10199_s0 + $0x1d0] sm:$0xff]   ;;  %v8176_v5 = vld [vmem:[%s10199_s0 + $0x478] sm:$0xff]  }
 0x1e7   :  { %v3195_v16 = vmax.f32 %v2015_v10, 0.0  ;;  %7594 = vmatmul.mubr.msk.bf16.gmra.mrb[220].mxu0 %vm1238_vm3, %v8169_v4  ;;  %v3365_v17 = vmax.f32 %v2695_v13, 0.0  ;;  %7934 = vmatmul.mubr.msk.bf16.gmra.mrb[220].mxu1 %vm1238_vm3, %v8170_v7 }
 0x1e8   :  { %7597 = vmatprep.mubr.msk.bf16.mxu0 %vm8284_vm1, %v8283_v0  ;;  %7937 = vmatprep.mubr.msk.bf16.mxu1 %vm8284_vm1, %v8283_v0 }
 0x1e9   :  { %v6331_v18 = vpack.c.bf16 %v3195_v16, %v3194_v15  ;;  %v6756_v19 = vpack.c.bf16 %v3365_v17, %v3364_v12 }
 0x1ea   :  { %v2019_v20 = vpop.f32.mrb[116].mxu0  ;;  %v2699_v21 = vpop.f32.mrb[116].mxu1 }
 0x1eb   :  { %7060 = vst [vmem:[%s10202_s3 + $0xe0] sm:$0xff] %v6331_v18   ;;  %7145 = vst [vmem:[%s10202_s3 + $0x388] sm:$0xff] %v6756_v19   ;;  %v2020_v22 = vadd.f32 %v9102_v60, %v2019_v20  ;;  %v7491_v23 = vpop.f32.mrb[117].mxu0  ;;  %v2700_v25 = vadd.f32 %v9102_v60, %v2699_v21  ;;  %v7831_v26 = vpop.f32.mrb[117].mxu1 }
 0x1ec   :  { %v2022_v28 = vpop.f32.mrb[118].mxu0  ;;  %v2702_v29 = vpop.f32.mrb[118].mxu1 }
 0x1ed   :  { %v2023_v30 = vadd.f32 %v9102_v60, %v2022_v28  ;;  %v7492_v31 = vpop.f32.mrb[119].mxu0  ;;  %v3366_v32 = vmax.f32 %v2700_v25, 0.0  ;;  %v2703_v33 = vadd.f32 %v9102_v60, %v2702_v29  ;;  %v7832_v34 = vpop.f32.mrb[119].mxu1  ;;  %v3196_v35 = vmax.f32 %v2020_v22, 0.0  ;;  %v8177_v22 = vld [vmem:[%s10199_s0 + $0x1d8] sm:$0xff]   ;;  %v8178_v25 = vld [vmem:[%s10199_s0 + $0x480] sm:$0xff]  }
 0x1ef   :  { %v3197_v36 = vmax.f32 %v2023_v30, 0.0  ;;  %7598 = vmatmul.mubr.msk.bf16.gmra.mrb[224].mxu0 %vm1238_vm3, %v8171_v24  ;;  %v3367_v37 = vmax.f32 %v2703_v33, 0.0  ;;  %7938 = vmatmul.mubr.msk.bf16.gmra.mrb[224].mxu1 %vm1238_vm3, %v8172_v27 }
 0x1f0   :  { %7601 = vmatprep.mubr.msk.bf16.mxu0 %vm8284_vm1, %v8283_v0  ;;  %7941 = vmatprep.mubr.msk.bf16.mxu1 %vm8284_vm1, %v8283_v0 }
 0x1f1   :  { %v6336_v38 = vpack.c.bf16 %v3197_v36, %v3196_v35  ;;  %v6761_v39 = vpack.c.bf16 %v3367_v37, %v3366_v32 }
 0x1f2   :  { %v2027_v40 = vpop.f32.mrb[120].mxu0  ;;  %v2707_v41 = vpop.f32.mrb[120].mxu1 }
 0x1f3   :  { %7061 = vst [vmem:[%s10202_s3 + $0xe8] sm:$0xff] %v6336_v38   ;;  %7146 = vst [vmem:[%s10202_s3 + $0x390] sm:$0xff] %v6761_v39   ;;  %v2028_v42 = vadd.f32 %v9102_v60, %v2027_v40  ;;  %v7495_v43 = vpop.f32.mrb[121].mxu0  ;;  %v2708_v45 = vadd.f32 %v9102_v60, %v2707_v41  ;;  %v7835_v46 = vpop.f32.mrb[121].mxu1 }
 0x1f4   :  { %v2030_v48 = vpop.f32.mrb[122].mxu0  ;;  %v2710_v49 = vpop.f32.mrb[122].mxu1 }
 0x1f5   :  { %v2031_v50 = vadd.f32 %v9102_v60, %v2030_v48  ;;  %v7496_v51 = vpop.f32.mrb[123].mxu0  ;;  %v3368_v52 = vmax.f32 %v2708_v45, 0.0  ;;  %v2711_v53 = vadd.f32 %v9102_v60, %v2710_v49  ;;  %v7836_v54 = vpop.f32.mrb[123].mxu1  ;;  %v3198_v55 = vmax.f32 %v2028_v42, 0.0  ;;  %v8179_v42 = vld [vmem:[%s10199_s0 + $0x1e0] sm:$0xff]   ;;  %v8180_v45 = vld [vmem:[%s10199_s0 + $0x488] sm:$0xff]  }
 0x1f7   :  { %v3199_v56 = vmax.f32 %v2031_v50, 0.0  ;;  %7602 = vmatmul.mubr.msk.bf16.gmra.mrb[228].mxu0 %vm1238_vm3, %v8173_v44  ;;  %v3369_v57 = vmax.f32 %v2711_v53, 0.0  ;;  %7942 = vmatmul.mubr.msk.bf16.gmra.mrb[228].mxu1 %vm1238_vm3, %v8174_v47 }
 0x1f8   :  { %7605 = vmatprep.mubr.msk.bf16.mxu0 %vm8284_vm1, %v8283_v0  ;;  %7945 = vmatprep.mubr.msk.bf16.mxu1 %vm8284_vm1, %v8283_v0 }
 0x1f9   :  { %v6341_v58 = vpack.c.bf16 %v3199_v56, %v3198_v55  ;;  %v6766_v59 = vpack.c.bf16 %v3369_v57, %v3368_v52 }
 0x1fa   :  { %v2035_v61 = vpop.f32.mrb[124].mxu0  ;;  %v2715_v62 = vpop.f32.mrb[124].mxu1 }
 0x1fb   :  { %7062 = vst [vmem:[%s10202_s3 + $0xf0] sm:$0xff] %v6341_v58   ;;  %7147 = vst [vmem:[%s10202_s3 + $0x398] sm:$0xff] %v6766_v59   ;;  %v2036_v63 = vadd.f32 %v9102_v60, %v2035_v61  ;;  %v7499_v1 = vpop.f32.mrb[125].mxu0  ;;  %v2716_v3 = vadd.f32 %v9102_v60, %v2715_v62  ;;  %v7839_v4 = vpop.f32.mrb[125].mxu1 }
 0x1fc   :  { %v2038_v6 = vpop.f32.mrb[126].mxu0  ;;  %v2718_v7 = vpop.f32.mrb[126].mxu1 }
 0x1fd   :  { %v2039_v8 = vadd.f32 %v9102_v60, %v2038_v6  ;;  %v7500_v9 = vpop.f32.mrb[127].mxu0  ;;  %v3370_v10 = vmax.f32 %v2716_v3, 0.0  ;;  %v2719_v11 = vadd.f32 %v9102_v60, %v2718_v7  ;;  %v7840_v12 = vpop.f32.mrb[127].mxu1  ;;  %v3200_v13 = vmax.f32 %v2036_v63, 0.0  ;;  %v8181_v63 = vld [vmem:[%s10199_s0 + $0x1e8] sm:$0xff]   ;;  %v8182_v3 = vld [vmem:[%s10199_s0 + $0x490] sm:$0xff]  }
 0x1ff   :  { %v3201_v14 = vmax.f32 %v2039_v8, 0.0  ;;  %7606 = vmatmul.mubr.msk.bf16.gmra.mrb[232].mxu0 %vm1238_vm3, %v8175_v2  ;;  %v3371_v15 = vmax.f32 %v2719_v11, 0.0  ;;  %7946 = vmatmul.mubr.msk.bf16.gmra.mrb[232].mxu1 %vm1238_vm3, %v8176_v5 }
 0x200   :  { %7609 = vmatprep.mubr.msk.bf16.mxu0 %vm8284_vm1, %v8283_v0  ;;  %7949 = vmatprep.mubr.msk.bf16.mxu1 %vm8284_vm1, %v8283_v0 }
 0x201   :  { %v6346_v16 = vpack.c.bf16 %v3201_v14, %v3200_v13  ;;  %v6771_v17 = vpack.c.bf16 %v3371_v15, %v3370_v10 }
 0x202   :  { %v2043_v18 = vpop.f32.mrb[128].mxu0  ;;  %v2723_v19 = vpop.f32.mrb[128].mxu1 }
 0x203   :  { %7063 = vst [vmem:[%s10202_s3 + $0xf8] sm:$0xff] %v6346_v16   ;;  %7148 = vst [vmem:[%s10202_s3 + $0x3a0] sm:$0xff] %v6771_v17   ;;  %v2044_v20 = vadd.f32 %v9102_v60, %v2043_v18  ;;  %v7503_v21 = vpop.f32.mrb[129].mxu0  ;;  %v2724_v23 = vadd.f32 %v9102_v60, %v2723_v19  ;;  %v7843_v24 = vpop.f32.mrb[129].mxu1 }
 0x204   :  { %v2046_v26 = vpop.f32.mrb[130].mxu0  ;;  %v2726_v27 = vpop.f32.mrb[130].mxu1 }
 0x205   :  { %v2047_v28 = vadd.f32 %v9102_v60, %v2046_v26  ;;  %v7504_v29 = vpop.f32.mrb[131].mxu0  ;;  %v3372_v30 = vmax.f32 %v2724_v23, 0.0  ;;  %v2727_v31 = vadd.f32 %v9102_v60, %v2726_v27  ;;  %v7844_v32 = vpop.f32.mrb[131].mxu1  ;;  %v3202_v33 = vmax.f32 %v2044_v20, 0.0  ;;  %v8183_v20 = vld [vmem:[%s10199_s0 + $0x1f0] sm:$0xff]   ;;  %v8184_v23 = vld [vmem:[%s10199_s0 + $0x498] sm:$0xff]  }
 0x207   :  { %v3203_v34 = vmax.f32 %v2047_v28, 0.0  ;;  %7610 = vmatmul.mubr.msk.bf16.gmra.mrb[236].mxu0 %vm1238_vm3, %v8177_v22  ;;  %v3373_v35 = vmax.f32 %v2727_v31, 0.0  ;;  %7950 = vmatmul.mubr.msk.bf16.gmra.mrb[236].mxu1 %vm1238_vm3, %v8178_v25 }
 0x208   :  { %7613 = vmatprep.mubr.msk.bf16.mxu0 %vm8284_vm1, %v8283_v0  ;;  %7953 = vmatprep.mubr.msk.bf16.mxu1 %vm8284_vm1, %v8283_v0 }
 0x209   :  { %v6351_v36 = vpack.c.bf16 %v3203_v34, %v3202_v33  ;;  %v6776_v37 = vpack.c.bf16 %v3373_v35, %v3372_v30 }
 0x20a   :  { %v2051_v38 = vpop.f32.mrb[132].mxu0  ;;  %v2731_v39 = vpop.f32.mrb[132].mxu1 }
 0x20b   :  { %7064 = vst [vmem:[%s10202_s3 + $0x100] sm:$0xff] %v6351_v36   ;;  %7149 = vst [vmem:[%s10202_s3 + $0x3a8] sm:$0xff] %v6776_v37   ;;  %v2052_v40 = vadd.f32 %v9102_v60, %v2051_v38  ;;  %v7507_v41 = vpop.f32.mrb[133].mxu0  ;;  %v2732_v43 = vadd.f32 %v9102_v60, %v2731_v39  ;;  %v7847_v44 = vpop.f32.mrb[133].mxu1 }
 0x20c   :  { %v2054_v46 = vpop.f32.mrb[134].mxu0  ;;  %v2734_v47 = vpop.f32.mrb[134].mxu1 }
 0x20d   :  { %v2055_v48 = vadd.f32 %v9102_v60, %v2054_v46  ;;  %v7508_v49 = vpop.f32.mrb[135].mxu0  ;;  %v3374_v50 = vmax.f32 %v2732_v43, 0.0  ;;  %v2735_v51 = vadd.f32 %v9102_v60, %v2734_v47  ;;  %v7848_v52 = vpop.f32.mrb[135].mxu1  ;;  %v3204_v53 = vmax.f32 %v2052_v40, 0.0  ;;  %v8185_v40 = vld [vmem:[%s10199_s0 + $0x1f8] sm:$0xff]   ;;  %v8186_v43 = vld [vmem:[%s10199_s0 + $0x4a0] sm:$0xff]  }
 0x20f   :  { %v3205_v54 = vmax.f32 %v2055_v48, 0.0  ;;  %7614 = vmatmul.mubr.msk.bf16.gmra.mrb[240].mxu0 %vm1238_vm3, %v8179_v42  ;;  %v3375_v55 = vmax.f32 %v2735_v51, 0.0  ;;  %7954 = vmatmul.mubr.msk.bf16.gmra.mrb[240].mxu1 %vm1238_vm3, %v8180_v45 }
 0x210   :  { %7617 = vmatprep.mubr.msk.bf16.mxu0 %vm8284_vm1, %v8283_v0  ;;  %7957 = vmatprep.mubr.msk.bf16.mxu1 %vm8284_vm1, %v8283_v0 }
 0x211   :  { %v6356_v56 = vpack.c.bf16 %v3205_v54, %v3204_v53  ;;  %v6781_v57 = vpack.c.bf16 %v3375_v55, %v3374_v50 }
 0x212   :  { %v2059_v58 = vpop.f32.mrb[136].mxu0  ;;  %v2739_v59 = vpop.f32.mrb[136].mxu1 }
 0x213   :  { %7065 = vst [vmem:[%s10202_s3 + $0x108] sm:$0xff] %v6356_v56   ;;  %7150 = vst [vmem:[%s10202_s3 + $0x3b0] sm:$0xff] %v6781_v57   ;;  %v2060_v61 = vadd.f32 %v9102_v60, %v2059_v58  ;;  %v7511_v62 = vpop.f32.mrb[137].mxu0  ;;  %v2740_v1 = vadd.f32 %v9102_v60, %v2739_v59  ;;  %v7851_v2 = vpop.f32.mrb[137].mxu1 }
 0x214   :  { %v2062_v4 = vpop.f32.mrb[138].mxu0  ;;  %v2742_v5 = vpop.f32.mrb[138].mxu1 }
 0x215   :  { %v2063_v6 = vadd.f32 %v9102_v60, %v2062_v4  ;;  %v7512_v7 = vpop.f32.mrb[139].mxu0  ;;  %v3376_v8 = vmax.f32 %v2740_v1, 0.0  ;;  %v2743_v9 = vadd.f32 %v9102_v60, %v2742_v5  ;;  %v7852_v10 = vpop.f32.mrb[139].mxu1  ;;  %v3206_v11 = vmax.f32 %v2060_v61, 0.0  ;;  %v8187_v61 = vld [vmem:[%s10199_s0 + $0x200] sm:$0xff]   ;;  %v8188_v1 = vld [vmem:[%s10199_s0 + $0x4a8] sm:$0xff]  }
 0x217   :  { %v3207_v12 = vmax.f32 %v2063_v6, 0.0  ;;  %7618 = vmatmul.mubr.msk.bf16.gmra.mrb[244].mxu0 %vm1238_vm3, %v8181_v63  ;;  %v3377_v13 = vmax.f32 %v2743_v9, 0.0  ;;  %7958 = vmatmul.mubr.msk.bf16.gmra.mrb[244].mxu1 %vm1238_vm3, %v8182_v3 }
 0x218   :  { %7621 = vmatprep.mubr.msk.bf16.mxu0 %vm8284_vm1, %v8283_v0  ;;  %7961 = vmatprep.mubr.msk.bf16.mxu1 %vm8284_vm1, %v8283_v0 }
 0x219   :  { %v6361_v14 = vpack.c.bf16 %v3207_v12, %v3206_v11  ;;  %v6786_v15 = vpack.c.bf16 %v3377_v13, %v3376_v8 }
 0x21a   :  { %v2067_v16 = vpop.f32.mrb[140].mxu0  ;;  %v2747_v17 = vpop.f32.mrb[140].mxu1 }
 0x21b   :  { %7066 = vst [vmem:[%s10202_s3 + $0x110] sm:$0xff] %v6361_v14   ;;  %7151 = vst [vmem:[%s10202_s3 + $0x3b8] sm:$0xff] %v6786_v15   ;;  %v2068_v18 = vadd.f32 %v9102_v60, %v2067_v16  ;;  %v7515_v19 = vpop.f32.mrb[141].mxu0  ;;  %v2748_v21 = vadd.f32 %v9102_v60, %v2747_v17  ;;  %v7855_v22 = vpop.f32.mrb[141].mxu1 }
 0x21c   :  { %v2070_v24 = vpop.f32.mrb[142].mxu0  ;;  %v2750_v25 = vpop.f32.mrb[142].mxu1 }
 0x21d   :  { %v2071_v26 = vadd.f32 %v9102_v60, %v2070_v24  ;;  %v7516_v27 = vpop.f32.mrb[143].mxu0  ;;  %v3378_v28 = vmax.f32 %v2748_v21, 0.0  ;;  %v2751_v29 = vadd.f32 %v9102_v60, %v2750_v25  ;;  %v7856_v30 = vpop.f32.mrb[143].mxu1  ;;  %v3208_v31 = vmax.f32 %v2068_v18, 0.0  ;;  %v8189_v18 = vld [vmem:[%s10199_s0 + $0x208] sm:$0xff]   ;;  %v8190_v21 = vld [vmem:[%s10199_s0 + $0x4b0] sm:$0xff]  }
 0x21f   :  { %v3209_v32 = vmax.f32 %v2071_v26, 0.0  ;;  %7622 = vmatmul.mubr.msk.bf16.gmra.mrb[248].mxu0 %vm1238_vm3, %v8183_v20  ;;  %v3379_v33 = vmax.f32 %v2751_v29, 0.0  ;;  %7962 = vmatmul.mubr.msk.bf16.gmra.mrb[248].mxu1 %vm1238_vm3, %v8184_v23 }
 0x220   :  { %7625 = vmatprep.mubr.msk.bf16.mxu0 %vm8284_vm1, %v8283_v0  ;;  %7965 = vmatprep.mubr.msk.bf16.mxu1 %vm8284_vm1, %v8283_v0 }
 0x221   :  { %v6366_v34 = vpack.c.bf16 %v3209_v32, %v3208_v31  ;;  %v6791_v35 = vpack.c.bf16 %v3379_v33, %v3378_v28 }
 0x222   :  { %v2075_v36 = vpop.f32.mrb[144].mxu0  ;;  %v2755_v37 = vpop.f32.mrb[144].mxu1 }
 0x223   :  { %7067 = vst [vmem:[%s10202_s3 + $0x118] sm:$0xff] %v6366_v34   ;;  %7152 = vst [vmem:[%s10202_s3 + $0x3c0] sm:$0xff] %v6791_v35   ;;  %v2076_v38 = vadd.f32 %v9102_v60, %v2075_v36  ;;  %v7519_v39 = vpop.f32.mrb[145].mxu0  ;;  %v2756_v41 = vadd.f32 %v9102_v60, %v2755_v37  ;;  %v7859_v42 = vpop.f32.mrb[145].mxu1 }
 0x224   :  { %v2078_v44 = vpop.f32.mrb[146].mxu0  ;;  %v2758_v45 = vpop.f32.mrb[146].mxu1 }
 0x225   :  { %v2079_v46 = vadd.f32 %v9102_v60, %v2078_v44  ;;  %v7520_v47 = vpop.f32.mrb[147].mxu0  ;;  %v3380_v48 = vmax.f32 %v2756_v41, 0.0  ;;  %v2759_v49 = vadd.f32 %v9102_v60, %v2758_v45  ;;  %v7860_v50 = vpop.f32.mrb[147].mxu1  ;;  %v3210_v51 = vmax.f32 %v2076_v38, 0.0  ;;  %v8191_v38 = vld [vmem:[%s10199_s0 + $0x210] sm:$0xff]   ;;  %v8192_v41 = vld [vmem:[%s10199_s0 + $0x4b8] sm:$0xff]  }
 0x227   :  { %v3211_v52 = vmax.f32 %v2079_v46, 0.0  ;;  %7626 = vmatmul.mubr.msk.bf16.gmra.mrb[252].mxu0 %vm1238_vm3, %v8185_v40  ;;  %v3381_v53 = vmax.f32 %v2759_v49, 0.0  ;;  %7966 = vmatmul.mubr.msk.bf16.gmra.mrb[252].mxu1 %vm1238_vm3, %v8186_v43 }
 0x228   :  { %7629 = vmatprep.mubr.msk.bf16.mxu0 %vm8284_vm1, %v8283_v0  ;;  %7969 = vmatprep.mubr.msk.bf16.mxu1 %vm8284_vm1, %v8283_v0 }
 0x229   :  { %v6371_v54 = vpack.c.bf16 %v3211_v52, %v3210_v51  ;;  %v6796_v55 = vpack.c.bf16 %v3381_v53, %v3380_v48 }
 0x22a   :  { %v2083_v56 = vpop.f32.mrb[148].mxu0  ;;  %v2763_v57 = vpop.f32.mrb[148].mxu1 }
 0x22b   :  { %7068 = vst [vmem:[%s10202_s3 + $0x120] sm:$0xff] %v6371_v54   ;;  %7153 = vst [vmem:[%s10202_s3 + $0x3c8] sm:$0xff] %v6796_v55   ;;  %v2084_v58 = vadd.f32 %v9102_v60, %v2083_v56  ;;  %v7523_v59 = vpop.f32.mrb[149].mxu0  ;;  %v2764_v62 = vadd.f32 %v9102_v60, %v2763_v57  ;;  %v7863_v63 = vpop.f32.mrb[149].mxu1 }
 0x22c   :  { %v2086_v2 = vpop.f32.mrb[150].mxu0  ;;  %v2766_v3 = vpop.f32.mrb[150].mxu1 }
 0x22d   :  { %v2087_v4 = vadd.f32 %v9102_v60, %v2086_v2  ;;  %v7524_v5 = vpop.f32.mrb[151].mxu0  ;;  %v3382_v6 = vmax.f32 %v2764_v62, 0.0  ;;  %v2767_v7 = vadd.f32 %v9102_v60, %v2766_v3  ;;  %v7864_v8 = vpop.f32.mrb[151].mxu1  ;;  %v3212_v9 = vmax.f32 %v2084_v58, 0.0  ;;  %v8193_v58 = vld [vmem:[%s10199_s0 + $0x218] sm:$0xff]   ;;  %v8194_v62 = vld [vmem:[%s10199_s0 + $0x4c0] sm:$0xff]  }
 0x22f   :  { %v3213_v10 = vmax.f32 %v2087_v4, 0.0  ;;  %7630 = vmatmul.mubr.msk.bf16.gmra.mrb[0].mxu0 %vm1238_vm3, %v8187_v61  ;;  %v3383_v11 = vmax.f32 %v2767_v7, 0.0  ;;  %7970 = vmatmul.mubr.msk.bf16.gmra.mrb[0].mxu1 %vm1238_vm3, %v8188_v1 }
 0x230   :  { %7633 = vmatprep.mubr.msk.bf16.mxu0 %vm8284_vm1, %v8283_v0  ;;  %7973 = vmatprep.mubr.msk.bf16.mxu1 %vm8284_vm1, %v8283_v0 }
 0x231   :  { %v6376_v12 = vpack.c.bf16 %v3213_v10, %v3212_v9  ;;  %v6801_v13 = vpack.c.bf16 %v3383_v11, %v3382_v6 }
 0x232   :  { %v2091_v14 = vpop.f32.mrb[152].mxu0  ;;  %v2771_v15 = vpop.f32.mrb[152].mxu1 }
 0x233   :  { %7069 = vst [vmem:[%s10202_s3 + $0x128] sm:$0xff] %v6376_v12   ;;  %7154 = vst [vmem:[%s10202_s3 + $0x3d0] sm:$0xff] %v6801_v13   ;;  %v2092_v16 = vadd.f32 %v9102_v60, %v2091_v14  ;;  %v7527_v17 = vpop.f32.mrb[153].mxu0  ;;  %v2772_v19 = vadd.f32 %v9102_v60, %v2771_v15  ;;  %v7867_v20 = vpop.f32.mrb[153].mxu1 }
 0x234   :  { %v2094_v22 = vpop.f32.mrb[154].mxu0  ;;  %v2774_v23 = vpop.f32.mrb[154].mxu1 }
 0x235   :  { %v2095_v24 = vadd.f32 %v9102_v60, %v2094_v22  ;;  %v7528_v25 = vpop.f32.mrb[155].mxu0  ;;  %v3384_v26 = vmax.f32 %v2772_v19, 0.0  ;;  %v2775_v27 = vadd.f32 %v9102_v60, %v2774_v23  ;;  %v7868_v28 = vpop.f32.mrb[155].mxu1  ;;  %v3214_v29 = vmax.f32 %v2092_v16, 0.0  ;;  %v8195_v16 = vld [vmem:[%s10199_s0 + $0x220] sm:$0xff]   ;;  %v8196_v19 = vld [vmem:[%s10199_s0 + $0x4c8] sm:$0xff]  }
 0x237   :  { %v3215_v30 = vmax.f32 %v2095_v24, 0.0  ;;  %7634 = vmatmul.mubr.msk.bf16.gmra.mrb[4].mxu0 %vm1238_vm3, %v8189_v18  ;;  %v3385_v31 = vmax.f32 %v2775_v27, 0.0  ;;  %7974 = vmatmul.mubr.msk.bf16.gmra.mrb[4].mxu1 %vm1238_vm3, %v8190_v21 }
 0x238   :  { %7637 = vmatprep.mubr.msk.bf16.mxu0 %vm8284_vm1, %v8283_v0  ;;  %7977 = vmatprep.mubr.msk.bf16.mxu1 %vm8284_vm1, %v8283_v0 }
 0x239   :  { %v6381_v32 = vpack.c.bf16 %v3215_v30, %v3214_v29  ;;  %v6806_v33 = vpack.c.bf16 %v3385_v31, %v3384_v26 }
 0x23a   :  { %v2099_v34 = vpop.f32.mrb[156].mxu0  ;;  %v2779_v35 = vpop.f32.mrb[156].mxu1 }
 0x23b   :  { %7070 = vst [vmem:[%s10202_s3 + $0x130] sm:$0xff] %v6381_v32   ;;  %7155 = vst [vmem:[%s10202_s3 + $0x3d8] sm:$0xff] %v6806_v33   ;;  %v2100_v36 = vadd.f32 %v9102_v60, %v2099_v34  ;;  %v7531_v37 = vpop.f32.mrb[157].mxu0  ;;  %v2780_v39 = vadd.f32 %v9102_v60, %v2779_v35  ;;  %v7871_v40 = vpop.f32.mrb[157].mxu1 }
 0x23c   :  { %v2102_v42 = vpop.f32.mrb[158].mxu0  ;;  %v2782_v43 = vpop.f32.mrb[158].mxu1 }
 0x23d   :  { %v2103_v44 = vadd.f32 %v9102_v60, %v2102_v42  ;;  %v7532_v45 = vpop.f32.mrb[159].mxu0  ;;  %v3386_v46 = vmax.f32 %v2780_v39, 0.0  ;;  %v2783_v47 = vadd.f32 %v9102_v60, %v2782_v43  ;;  %v7872_v48 = vpop.f32.mrb[159].mxu1  ;;  %v3216_v49 = vmax.f32 %v2100_v36, 0.0  ;;  %v9544_v60 = vld [vmem:[#allocation4] ss:$0 sm:$0xff] }
 0x23e   :  { %v8197_v36 = vld [vmem:[%s10199_s0 + $0x228] sm:$0xff]   ;;  %v8198_v39 = vld [vmem:[%s10199_s0 + $0x4d0] sm:$0xff]  }
 0x23f   :  { %v3217_v50 = vmax.f32 %v2103_v44, 0.0  ;;  %7638 = vmatmul.mubr.msk.bf16.gmra.mrb[8].mxu0 %vm1238_vm3, %v8191_v38  ;;  %v3387_v51 = vmax.f32 %v2783_v47, 0.0  ;;  %7978 = vmatmul.mubr.msk.bf16.gmra.mrb[8].mxu1 %vm1238_vm3, %v8192_v41 }
 0x240   :  { %7641 = vmatprep.mubr.msk.bf16.mxu0 %vm8284_vm1, %v8283_v0  ;;  %7981 = vmatprep.mubr.msk.bf16.mxu1 %vm8284_vm1, %v8283_v0 }
 0x241   :  { %v6386_v52 = vpack.c.bf16 %v3217_v50, %v3216_v49  ;;  %v6811_v53 = vpack.c.bf16 %v3387_v51, %v3386_v46 }
 0x242   :  { %v2107_v54 = vpop.f32.mrb[160].mxu0  ;;  %v2787_v55 = vpop.f32.mrb[160].mxu1 }
 0x243   :  { %7071 = vst [vmem:[%s10202_s3 + $0x138] sm:$0xff] %v6386_v52   ;;  %7156 = vst [vmem:[%s10202_s3 + $0x3e0] sm:$0xff] %v6811_v53   ;;  %v2108_v56 = vadd.f32 %v9544_v60, %v2107_v54  ;;  %v7535_v57 = vpop.f32.mrb[161].mxu0  ;;  %v2788_v59 = vadd.f32 %v9544_v60, %v2787_v55  ;;  %v7875_v61 = vpop.f32.mrb[161].mxu1 }
 0x244   :  { %v2110_v63 = vpop.f32.mrb[162].mxu0  ;;  %v2790_v1 = vpop.f32.mrb[162].mxu1 }
 0x245   :  { %v2111_v2 = vadd.f32 %v9544_v60, %v2110_v63  ;;  %v7536_v3 = vpop.f32.mrb[163].mxu0  ;;  %v3388_v4 = vmax.f32 %v2788_v59, 0.0  ;;  %v2791_v5 = vadd.f32 %v9544_v60, %v2790_v1  ;;  %v7876_v6 = vpop.f32.mrb[163].mxu1  ;;  %v3218_v7 = vmax.f32 %v2108_v56, 0.0  ;;  %v8199_v56 = vld [vmem:[%s10199_s0 + $0x230] sm:$0xff]   ;;  %v8200_v59 = vld [vmem:[%s10199_s0 + $0x4d8] sm:$0xff]  }
 0x247   :  { %v3219_v8 = vmax.f32 %v2111_v2, 0.0  ;;  %7642 = vmatmul.mubr.msk.bf16.gmra.mrb[12].mxu0 %vm1238_vm3, %v8193_v58  ;;  %v3389_v9 = vmax.f32 %v2791_v5, 0.0  ;;  %7982 = vmatmul.mubr.msk.bf16.gmra.mrb[12].mxu1 %vm1238_vm3, %v8194_v62 }
 0x248   :  { %7645 = vmatprep.mubr.msk.bf16.mxu0 %vm8284_vm1, %v8283_v0  ;;  %7985 = vmatprep.mubr.msk.bf16.mxu1 %vm8284_vm1, %v8283_v0 }
 0x249   :  { %v6391_v10 = vpack.c.bf16 %v3219_v8, %v3218_v7  ;;  %v6816_v11 = vpack.c.bf16 %v3389_v9, %v3388_v4 }
 0x24a   :  { %v2115_v12 = vpop.f32.mrb[164].mxu0  ;;  %v2795_v13 = vpop.f32.mrb[164].mxu1 }
 0x24b   :  { %7072 = vst [vmem:[%s10202_s3 + $0x140] sm:$0xff] %v6391_v10   ;;  %7157 = vst [vmem:[%s10202_s3 + $0x3e8] sm:$0xff] %v6816_v11   ;;  %v2116_v14 = vadd.f32 %v9544_v60, %v2115_v12  ;;  %v7539_v15 = vpop.f32.mrb[165].mxu0  ;;  %v2796_v17 = vadd.f32 %v9544_v60, %v2795_v13  ;;  %v7879_v18 = vpop.f32.mrb[165].mxu1 }
 0x24c   :  { %v2118_v20 = vpop.f32.mrb[166].mxu0  ;;  %v2798_v21 = vpop.f32.mrb[166].mxu1 }
 0x24d   :  { %v2119_v22 = vadd.f32 %v9544_v60, %v2118_v20  ;;  %v7540_v23 = vpop.f32.mrb[167].mxu0  ;;  %v3390_v24 = vmax.f32 %v2796_v17, 0.0  ;;  %v2799_v25 = vadd.f32 %v9544_v60, %v2798_v21  ;;  %v7880_v26 = vpop.f32.mrb[167].mxu1  ;;  %v3220_v27 = vmax.f32 %v2116_v14, 0.0  ;;  %v8201_v14 = vld [vmem:[%s10199_s0 + $0x238] sm:$0xff]   ;;  %v8202_v17 = vld [vmem:[%s10199_s0 + $0x4e0] sm:$0xff]  }
 0x24f   :  { %v3221_v28 = vmax.f32 %v2119_v22, 0.0  ;;  %7646 = vmatmul.mubr.msk.bf16.gmra.mrb[16].mxu0 %vm1238_vm3, %v8195_v16  ;;  %v3391_v29 = vmax.f32 %v2799_v25, 0.0  ;;  %7986 = vmatmul.mubr.msk.bf16.gmra.mrb[16].mxu1 %vm1238_vm3, %v8196_v19 }
 0x250   :  { %7649 = vmatprep.mubr.msk.bf16.mxu0 %vm8284_vm1, %v8283_v0  ;;  %7989 = vmatprep.mubr.msk.bf16.mxu1 %vm8284_vm1, %v8283_v0 }
 0x251   :  { %v6396_v30 = vpack.c.bf16 %v3221_v28, %v3220_v27  ;;  %v6821_v31 = vpack.c.bf16 %v3391_v29, %v3390_v24 }
 0x252   :  { %v2123_v32 = vpop.f32.mrb[168].mxu0  ;;  %v2803_v33 = vpop.f32.mrb[168].mxu1 }
 0x253   :  { %7073 = vst [vmem:[%s10202_s3 + $0x148] sm:$0xff] %v6396_v30   ;;  %7158 = vst [vmem:[%s10202_s3 + $0x3f0] sm:$0xff] %v6821_v31   ;;  %v2124_v34 = vadd.f32 %v9544_v60, %v2123_v32  ;;  %v7543_v35 = vpop.f32.mrb[169].mxu0  ;;  %v2804_v37 = vadd.f32 %v9544_v60, %v2803_v33  ;;  %v7883_v38 = vpop.f32.mrb[169].mxu1 }
 0x254   :  { %v2126_v40 = vpop.f32.mrb[170].mxu0  ;;  %v2806_v41 = vpop.f32.mrb[170].mxu1 }
 0x255   :  { %v2127_v42 = vadd.f32 %v9544_v60, %v2126_v40  ;;  %v7544_v43 = vpop.f32.mrb[171].mxu0  ;;  %v3392_v44 = vmax.f32 %v2804_v37, 0.0  ;;  %v2807_v45 = vadd.f32 %v9544_v60, %v2806_v41  ;;  %v7884_v46 = vpop.f32.mrb[171].mxu1  ;;  %v3222_v47 = vmax.f32 %v2124_v34, 0.0  ;;  %v8203_v34 = vld [vmem:[%s10199_s0 + $0x240] sm:$0xff]   ;;  %v8204_v37 = vld [vmem:[%s10199_s0 + $0x4e8] sm:$0xff]  }
 0x257   :  { %v3223_v48 = vmax.f32 %v2127_v42, 0.0  ;;  %7650 = vmatmul.mubr.msk.bf16.gmra.mrb[20].mxu0 %vm1238_vm3, %v8197_v36  ;;  %v3393_v49 = vmax.f32 %v2807_v45, 0.0  ;;  %7990 = vmatmul.mubr.msk.bf16.gmra.mrb[20].mxu1 %vm1238_vm3, %v8198_v39 }
 0x258   :  { %7653 = vmatprep.mubr.msk.bf16.mxu0 %vm8284_vm1, %v8283_v0  ;;  %7993 = vmatprep.mubr.msk.bf16.mxu1 %vm8284_vm1, %v8283_v0 }
 0x259   :  { %v6401_v50 = vpack.c.bf16 %v3223_v48, %v3222_v47  ;;  %v6826_v51 = vpack.c.bf16 %v3393_v49, %v3392_v44 }
 0x25a   :  { %v2131_v52 = vpop.f32.mrb[172].mxu0  ;;  %v2811_v53 = vpop.f32.mrb[172].mxu1 }
 0x25b   :  { %7074 = vst [vmem:[%s10202_s3 + $0x150] sm:$0xff] %v6401_v50   ;;  %7159 = vst [vmem:[%s10202_s3 + $0x3f8] sm:$0xff] %v6826_v51   ;;  %v2132_v54 = vadd.f32 %v9544_v60, %v2131_v52  ;;  %v7547_v55 = vpop.f32.mrb[173].mxu0  ;;  %v2812_v57 = vadd.f32 %v9544_v60, %v2811_v53  ;;  %v7887_v58 = vpop.f32.mrb[173].mxu1 }
 0x25c   :  { %v2134_v61 = vpop.f32.mrb[174].mxu0  ;;  %v2814_v62 = vpop.f32.mrb[174].mxu1 }
 0x25d   :  { %v2135_v63 = vadd.f32 %v9544_v60, %v2134_v61  ;;  %v7548_v1 = vpop.f32.mrb[175].mxu0  ;;  %v3394_v2 = vmax.f32 %v2812_v57, 0.0  ;;  %v2815_v3 = vadd.f32 %v9544_v60, %v2814_v62  ;;  %v7888_v4 = vpop.f32.mrb[175].mxu1  ;;  %v3224_v5 = vmax.f32 %v2132_v54, 0.0  ;;  %v8205_v54 = vld [vmem:[%s10199_s0 + $0x248] sm:$0xff]   ;;  %v8206_v57 = vld [vmem:[%s10199_s0 + $0x4f0] sm:$0xff]  }
 0x25f   :  { %v3225_v6 = vmax.f32 %v2135_v63, 0.0  ;;  %7654 = vmatmul.mubr.msk.bf16.gmra.mrb[24].mxu0 %vm1238_vm3, %v8199_v56  ;;  %v3395_v7 = vmax.f32 %v2815_v3, 0.0  ;;  %7994 = vmatmul.mubr.msk.bf16.gmra.mrb[24].mxu1 %vm1238_vm3, %v8200_v59 }
 0x260   :  { %7657 = vmatprep.mubr.msk.bf16.mxu0 %vm8284_vm1, %v8283_v0  ;;  %7997 = vmatprep.mubr.msk.bf16.mxu1 %vm8284_vm1, %v8283_v0 }
 0x261   :  { %v6406_v8 = vpack.c.bf16 %v3225_v6, %v3224_v5  ;;  %v6831_v9 = vpack.c.bf16 %v3395_v7, %v3394_v2 }
 0x262   :  { %v2139_v10 = vpop.f32.mrb[176].mxu0  ;;  %v2819_v11 = vpop.f32.mrb[176].mxu1 }
 0x263   :  { %7075 = vst [vmem:[%s10202_s3 + $0x158] sm:$0xff] %v6406_v8   ;;  %7160 = vst [vmem:[%s10202_s3 + $0x400] sm:$0xff] %v6831_v9   ;;  %v2140_v12 = vadd.f32 %v9544_v60, %v2139_v10  ;;  %v7551_v13 = vpop.f32.mrb[177].mxu0  ;;  %v2820_v15 = vadd.f32 %v9544_v60, %v2819_v11  ;;  %v7891_v16 = vpop.f32.mrb[177].mxu1 }
 0x264   :  { %v2142_v18 = vpop.f32.mrb[178].mxu0  ;;  %v2822_v19 = vpop.f32.mrb[178].mxu1 }
 0x265   :  { %v2143_v20 = vadd.f32 %v9544_v60, %v2142_v18  ;;  %v7552_v21 = vpop.f32.mrb[179].mxu0  ;;  %v3396_v22 = vmax.f32 %v2820_v15, 0.0  ;;  %v2823_v23 = vadd.f32 %v9544_v60, %v2822_v19  ;;  %v7892_v24 = vpop.f32.mrb[179].mxu1  ;;  %v3226_v25 = vmax.f32 %v2140_v12, 0.0  ;;  %v8207_v12 = vld [vmem:[%s10199_s0 + $0x250] sm:$0xff]   ;;  %v8208_v15 = vld [vmem:[%s10199_s0 + $0x4f8] sm:$0xff]  }
 0x267   :  { %v3227_v26 = vmax.f32 %v2143_v20, 0.0  ;;  %7658 = vmatmul.mubr.msk.bf16.gmra.mrb[28].mxu0 %vm1238_vm3, %v8201_v14  ;;  %v3397_v27 = vmax.f32 %v2823_v23, 0.0  ;;  %7998 = vmatmul.mubr.msk.bf16.gmra.mrb[28].mxu1 %vm1238_vm3, %v8202_v17 }
 0x268   :  { %7661 = vmatprep.mubr.msk.bf16.mxu0 %vm8284_vm1, %v8283_v0  ;;  %8001 = vmatprep.mubr.msk.bf16.mxu1 %vm8284_vm1, %v8283_v0 }
 0x269   :  { %v6411_v28 = vpack.c.bf16 %v3227_v26, %v3226_v25  ;;  %v6836_v29 = vpack.c.bf16 %v3397_v27, %v3396_v22 }
 0x26a   :  { %v2147_v30 = vpop.f32.mrb[180].mxu0  ;;  %v2827_v31 = vpop.f32.mrb[180].mxu1 }
 0x26b   :  { %7076 = vst [vmem:[%s10202_s3 + $0x160] sm:$0xff] %v6411_v28   ;;  %7161 = vst [vmem:[%s10202_s3 + $0x408] sm:$0xff] %v6836_v29   ;;  %v2148_v32 = vadd.f32 %v9544_v60, %v2147_v30  ;;  %v7555_v33 = vpop.f32.mrb[181].mxu0  ;;  %v2828_v35 = vadd.f32 %v9544_v60, %v2827_v31  ;;  %v7895_v36 = vpop.f32.mrb[181].mxu1 }
 0x26c   :  { %v2150_v38 = vpop.f32.mrb[182].mxu0  ;;  %v2830_v39 = vpop.f32.mrb[182].mxu1 }
 0x26d   :  { %v2151_v40 = vadd.f32 %v9544_v60, %v2150_v38  ;;  %v7556_v41 = vpop.f32.mrb[183].mxu0  ;;  %v3398_v42 = vmax.f32 %v2828_v35, 0.0  ;;  %v2831_v43 = vadd.f32 %v9544_v60, %v2830_v39  ;;  %v7896_v44 = vpop.f32.mrb[183].mxu1  ;;  %v3228_v45 = vmax.f32 %v2148_v32, 0.0  ;;  %v8209_v32 = vld [vmem:[%s10199_s0 + $0x258] sm:$0xff]   ;;  %v8210_v35 = vld [vmem:[%s10199_s0 + $0x500] sm:$0xff]  }
 0x26f   :  { %v3229_v46 = vmax.f32 %v2151_v40, 0.0  ;;  %7662 = vmatmul.mubr.msk.bf16.gmra.mrb[32].mxu0 %vm1238_vm3, %v8203_v34  ;;  %v3399_v47 = vmax.f32 %v2831_v43, 0.0  ;;  %8002 = vmatmul.mubr.msk.bf16.gmra.mrb[32].mxu1 %vm1238_vm3, %v8204_v37 }
 0x270   :  { %7665 = vmatprep.mubr.msk.bf16.mxu0 %vm8284_vm1, %v8283_v0  ;;  %8005 = vmatprep.mubr.msk.bf16.mxu1 %vm8284_vm1, %v8283_v0 }
 0x271   :  { %v6416_v48 = vpack.c.bf16 %v3229_v46, %v3228_v45  ;;  %v6841_v49 = vpack.c.bf16 %v3399_v47, %v3398_v42 }
 0x272   :  { %v2155_v50 = vpop.f32.mrb[184].mxu0  ;;  %v2835_v51 = vpop.f32.mrb[184].mxu1 }
 0x273   :  { %7077 = vst [vmem:[%s10202_s3 + $0x168] sm:$0xff] %v6416_v48   ;;  %7162 = vst [vmem:[%s10202_s3 + $0x410] sm:$0xff] %v6841_v49   ;;  %v2156_v52 = vadd.f32 %v9544_v60, %v2155_v50  ;;  %v7559_v53 = vpop.f32.mrb[185].mxu0  ;;  %v2836_v55 = vadd.f32 %v9544_v60, %v2835_v51  ;;  %v7899_v56 = vpop.f32.mrb[185].mxu1 }
 0x274   :  { %v2158_v58 = vpop.f32.mrb[186].mxu0  ;;  %v2838_v59 = vpop.f32.mrb[186].mxu1 }
 0x275   :  { %v2159_v61 = vadd.f32 %v9544_v60, %v2158_v58  ;;  %v7560_v62 = vpop.f32.mrb[187].mxu0  ;;  %v3400_v63 = vmax.f32 %v2836_v55, 0.0  ;;  %v2839_v1 = vadd.f32 %v9544_v60, %v2838_v59  ;;  %v7900_v2 = vpop.f32.mrb[187].mxu1  ;;  %v3230_v3 = vmax.f32 %v2156_v52, 0.0  ;;  %v8211_v52 = vld [vmem:[%s10199_s0 + $0x260] sm:$0xff]   ;;  %v8212_v55 = vld [vmem:[%s10199_s0 + $0x508] sm:$0xff]  }
 0x277   :  { %v3231_v4 = vmax.f32 %v2159_v61, 0.0  ;;  %7666 = vmatmul.mubr.msk.bf16.gmra.mrb[36].mxu0 %vm1238_vm3, %v8205_v54  ;;  %v3401_v5 = vmax.f32 %v2839_v1, 0.0  ;;  %8006 = vmatmul.mubr.msk.bf16.gmra.mrb[36].mxu1 %vm1238_vm3, %v8206_v57 }
 0x278   :  { %7669 = vmatprep.mubr.msk.bf16.mxu0 %vm8284_vm1, %v8283_v0  ;;  %8009 = vmatprep.mubr.msk.bf16.mxu1 %vm8284_vm1, %v8283_v0 }
 0x279   :  { %v6421_v6 = vpack.c.bf16 %v3231_v4, %v3230_v3  ;;  %v6846_v7 = vpack.c.bf16 %v3401_v5, %v3400_v63 }
 0x27a   :  { %v2163_v8 = vpop.f32.mrb[188].mxu0  ;;  %v2843_v9 = vpop.f32.mrb[188].mxu1 }
 0x27b   :  { %7078 = vst [vmem:[%s10202_s3 + $0x170] sm:$0xff] %v6421_v6   ;;  %7163 = vst [vmem:[%s10202_s3 + $0x418] sm:$0xff] %v6846_v7   ;;  %v2164_v10 = vadd.f32 %v9544_v60, %v2163_v8  ;;  %v7563_v11 = vpop.f32.mrb[189].mxu0  ;;  %v2844_v13 = vadd.f32 %v9544_v60, %v2843_v9  ;;  %v7903_v14 = vpop.f32.mrb[189].mxu1 }
 0x27c   :  { %v2166_v16 = vpop.f32.mrb[190].mxu0  ;;  %v2846_v17 = vpop.f32.mrb[190].mxu1 }
 0x27d   :  { %v2167_v18 = vadd.f32 %v9544_v60, %v2166_v16  ;;  %v7564_v19 = vpop.f32.mrb[191].mxu0  ;;  %v3402_v20 = vmax.f32 %v2844_v13, 0.0  ;;  %v2847_v21 = vadd.f32 %v9544_v60, %v2846_v17  ;;  %v7904_v22 = vpop.f32.mrb[191].mxu1  ;;  %v3232_v23 = vmax.f32 %v2164_v10, 0.0  ;;  %v8213_v10 = vld [vmem:[%s10199_s0 + $0x268] sm:$0xff]   ;;  %v8214_v13 = vld [vmem:[%s10199_s0 + $0x510] sm:$0xff]  }
 0x27f   :  { %v3233_v24 = vmax.f32 %v2167_v18, 0.0  ;;  %7670 = vmatmul.mubr.msk.bf16.gmra.mrb[40].mxu0 %vm1238_vm3, %v8207_v12  ;;  %v3403_v25 = vmax.f32 %v2847_v21, 0.0  ;;  %8010 = vmatmul.mubr.msk.bf16.gmra.mrb[40].mxu1 %vm1238_vm3, %v8208_v15 }
 0x280   :  { %7673 = vmatprep.mubr.msk.bf16.mxu0 %vm8284_vm1, %v8283_v0  ;;  %8013 = vmatprep.mubr.msk.bf16.mxu1 %vm8284_vm1, %v8283_v0 }
 0x281   :  { %v6426_v26 = vpack.c.bf16 %v3233_v24, %v3232_v23  ;;  %v6851_v27 = vpack.c.bf16 %v3403_v25, %v3402_v20 }
 0x282   :  { %v2171_v28 = vpop.f32.mrb[192].mxu0  ;;  %v2851_v29 = vpop.f32.mrb[192].mxu1 }
 0x283   :  { %7079 = vst [vmem:[%s10202_s3 + $0x178] sm:$0xff] %v6426_v26   ;;  %7164 = vst [vmem:[%s10202_s3 + $0x420] sm:$0xff] %v6851_v27   ;;  %v2172_v30 = vadd.f32 %v9544_v60, %v2171_v28  ;;  %v7567_v31 = vpop.f32.mrb[193].mxu0  ;;  %v2852_v33 = vadd.f32 %v9544_v60, %v2851_v29  ;;  %v7907_v34 = vpop.f32.mrb[193].mxu1 }
 0x284   :  { %v2174_v36 = vpop.f32.mrb[194].mxu0  ;;  %v2854_v37 = vpop.f32.mrb[194].mxu1 }
 0x285   :  { %v2175_v38 = vadd.f32 %v9544_v60, %v2174_v36  ;;  %v7568_v39 = vpop.f32.mrb[195].mxu0  ;;  %v3404_v40 = vmax.f32 %v2852_v33, 0.0  ;;  %v2855_v41 = vadd.f32 %v9544_v60, %v2854_v37  ;;  %v7908_v42 = vpop.f32.mrb[195].mxu1  ;;  %v3234_v43 = vmax.f32 %v2172_v30, 0.0  ;;  %v8215_v30 = vld [vmem:[%s10199_s0 + $0x270] sm:$0xff]   ;;  %v8216_v33 = vld [vmem:[%s10199_s0 + $0x518] sm:$0xff]  }
 0x287   :  { %v3235_v44 = vmax.f32 %v2175_v38, 0.0  ;;  %7674 = vmatmul.mubr.msk.bf16.gmra.mrb[44].mxu0 %vm1238_vm3, %v8209_v32  ;;  %v3405_v45 = vmax.f32 %v2855_v41, 0.0  ;;  %8014 = vmatmul.mubr.msk.bf16.gmra.mrb[44].mxu1 %vm1238_vm3, %v8210_v35 }
 0x288   :  { %7677 = vmatprep.mubr.msk.bf16.mxu0 %vm8284_vm1, %v8283_v0  ;;  %8017 = vmatprep.mubr.msk.bf16.mxu1 %vm8284_vm1, %v8283_v0 }
 0x289   :  { %v6431_v46 = vpack.c.bf16 %v3235_v44, %v3234_v43  ;;  %v6856_v47 = vpack.c.bf16 %v3405_v45, %v3404_v40 }
 0x28a   :  { %v2179_v48 = vpop.f32.mrb[196].mxu0  ;;  %v2859_v49 = vpop.f32.mrb[196].mxu1 }
 0x28b   :  { %7080 = vst [vmem:[%s10202_s3 + $0x180] sm:$0xff] %v6431_v46   ;;  %7165 = vst [vmem:[%s10202_s3 + $0x428] sm:$0xff] %v6856_v47   ;;  %v2180_v50 = vadd.f32 %v9544_v60, %v2179_v48  ;;  %v7571_v51 = vpop.f32.mrb[197].mxu0  ;;  %v2860_v53 = vadd.f32 %v9544_v60, %v2859_v49  ;;  %v7911_v54 = vpop.f32.mrb[197].mxu1 }
 0x28c   :  { %v2182_v56 = vpop.f32.mrb[198].mxu0  ;;  %v2862_v57 = vpop.f32.mrb[198].mxu1 }
 0x28d   :  { %v2183_v58 = vadd.f32 %v9544_v60, %v2182_v56  ;;  %v7572_v59 = vpop.f32.mrb[199].mxu0  ;;  %v3406_v61 = vmax.f32 %v2860_v53, 0.0  ;;  %v2863_v62 = vadd.f32 %v9544_v60, %v2862_v57  ;;  %v7912_v63 = vpop.f32.mrb[199].mxu1  ;;  %v3236_v1 = vmax.f32 %v2180_v50, 0.0  ;;  %v8217_v50 = vld [vmem:[%s10199_s0 + $0x278] sm:$0xff]   ;;  %v8218_v53 = vld [vmem:[%s10199_s0 + $0x520] sm:$0xff]  }
 0x28f   :  { %v3237_v2 = vmax.f32 %v2183_v58, 0.0  ;;  %7678 = vmatmul.mubr.msk.bf16.gmra.mrb[48].mxu0 %vm1238_vm3, %v8211_v52  ;;  %v3407_v3 = vmax.f32 %v2863_v62, 0.0  ;;  %8018 = vmatmul.mubr.msk.bf16.gmra.mrb[48].mxu1 %vm1238_vm3, %v8212_v55 }
 0x290   :  { %7681 = vmatprep.mubr.msk.bf16.mxu0 %vm8284_vm1, %v8283_v0  ;;  %8021 = vmatprep.mubr.msk.bf16.mxu1 %vm8284_vm1, %v8283_v0 }
 0x291   :  { %v6436_v4 = vpack.c.bf16 %v3237_v2, %v3236_v1  ;;  %v6861_v5 = vpack.c.bf16 %v3407_v3, %v3406_v61 }
 0x292   :  { %v2187_v6 = vpop.f32.mrb[200].mxu0  ;;  %v2867_v7 = vpop.f32.mrb[200].mxu1 }
 0x293   :  { %7081 = vst [vmem:[%s10202_s3 + $0x188] sm:$0xff] %v6436_v4   ;;  %7166 = vst [vmem:[%s10202_s3 + $0x430] sm:$0xff] %v6861_v5   ;;  %v2188_v8 = vadd.f32 %v9544_v60, %v2187_v6  ;;  %v7575_v9 = vpop.f32.mrb[201].mxu0  ;;  %v2868_v11 = vadd.f32 %v9544_v60, %v2867_v7  ;;  %v7915_v12 = vpop.f32.mrb[201].mxu1 }
 0x294   :  { %v2190_v14 = vpop.f32.mrb[202].mxu0  ;;  %v2870_v15 = vpop.f32.mrb[202].mxu1 }
 0x295   :  { %v2191_v16 = vadd.f32 %v9544_v60, %v2190_v14  ;;  %v7576_v17 = vpop.f32.mrb[203].mxu0  ;;  %v3408_v18 = vmax.f32 %v2868_v11, 0.0  ;;  %v2871_v19 = vadd.f32 %v9544_v60, %v2870_v15  ;;  %v7916_v20 = vpop.f32.mrb[203].mxu1  ;;  %v3238_v21 = vmax.f32 %v2188_v8, 0.0  ;;  %v8219_v8 = vld [vmem:[%s10199_s0 + $0x280] sm:$0xff]   ;;  %v8220_v11 = vld [vmem:[%s10199_s0 + $0x528] sm:$0xff]  }
 0x297   :  { %v3239_v22 = vmax.f32 %v2191_v16, 0.0  ;;  %7682 = vmatmul.mubr.msk.bf16.gmra.mrb[52].mxu0 %vm1238_vm3, %v8213_v10  ;;  %v3409_v23 = vmax.f32 %v2871_v19, 0.0  ;;  %8022 = vmatmul.mubr.msk.bf16.gmra.mrb[52].mxu1 %vm1238_vm3, %v8214_v13 }
 0x298   :  { %7685 = vmatprep.mubr.msk.bf16.mxu0 %vm8284_vm1, %v8283_v0  ;;  %8025 = vmatprep.mubr.msk.bf16.mxu1 %vm8284_vm1, %v8283_v0 }
 0x299   :  { %v6441_v24 = vpack.c.bf16 %v3239_v22, %v3238_v21  ;;  %v6866_v25 = vpack.c.bf16 %v3409_v23, %v3408_v18 }
 0x29a   :  { %v2195_v26 = vpop.f32.mrb[204].mxu0  ;;  %v2875_v27 = vpop.f32.mrb[204].mxu1 }
 0x29b   :  { %7082 = vst [vmem:[%s10202_s3 + $0x190] sm:$0xff] %v6441_v24   ;;  %7167 = vst [vmem:[%s10202_s3 + $0x438] sm:$0xff] %v6866_v25   ;;  %v2196_v28 = vadd.f32 %v9544_v60, %v2195_v26  ;;  %v7579_v29 = vpop.f32.mrb[205].mxu0  ;;  %v2876_v31 = vadd.f32 %v9544_v60, %v2875_v27  ;;  %v7919_v32 = vpop.f32.mrb[205].mxu1 }
 0x29c   :  { %v2198_v34 = vpop.f32.mrb[206].mxu0  ;;  %v2878_v35 = vpop.f32.mrb[206].mxu1 }
 0x29d   :  { %v2199_v36 = vadd.f32 %v9544_v60, %v2198_v34  ;;  %v7580_v37 = vpop.f32.mrb[207].mxu0  ;;  %v3410_v38 = vmax.f32 %v2876_v31, 0.0  ;;  %v2879_v39 = vadd.f32 %v9544_v60, %v2878_v35  ;;  %v7920_v40 = vpop.f32.mrb[207].mxu1  ;;  %v3240_v41 = vmax.f32 %v2196_v28, 0.0  ;;  %v8221_v28 = vld [vmem:[%s10199_s0 + $0x288] sm:$0xff]   ;;  %v8222_v31 = vld [vmem:[%s10199_s0 + $0x530] sm:$0xff]  }
 0x29f   :  { %v3241_v42 = vmax.f32 %v2199_v36, 0.0  ;;  %7686 = vmatmul.mubr.msk.bf16.gmra.mrb[56].mxu0 %vm1238_vm3, %v8215_v30  ;;  %v3411_v43 = vmax.f32 %v2879_v39, 0.0  ;;  %8026 = vmatmul.mubr.msk.bf16.gmra.mrb[56].mxu1 %vm1238_vm3, %v8216_v33 }
 0x2a0   :  { %7689 = vmatprep.mubr.msk.bf16.mxu0 %vm8284_vm1, %v8283_v0  ;;  %8029 = vmatprep.mubr.msk.bf16.mxu1 %vm8284_vm1, %v8283_v0 }
 0x2a1   :  { %v6446_v44 = vpack.c.bf16 %v3241_v42, %v3240_v41  ;;  %v6871_v45 = vpack.c.bf16 %v3411_v43, %v3410_v38 }
 0x2a2   :  { %v2203_v46 = vpop.f32.mrb[208].mxu0  ;;  %v2883_v47 = vpop.f32.mrb[208].mxu1 }
 0x2a3   :  { %7083 = vst [vmem:[%s10202_s3 + $0x198] sm:$0xff] %v6446_v44   ;;  %7168 = vst [vmem:[%s10202_s3 + $0x440] sm:$0xff] %v6871_v45   ;;  %v2204_v48 = vadd.f32 %v9544_v60, %v2203_v46  ;;  %v7583_v49 = vpop.f32.mrb[209].mxu0  ;;  %v2884_v51 = vadd.f32 %v9544_v60, %v2883_v47  ;;  %v7923_v52 = vpop.f32.mrb[209].mxu1 }
 0x2a4   :  { %v2206_v54 = vpop.f32.mrb[210].mxu0  ;;  %v2886_v55 = vpop.f32.mrb[210].mxu1 }
 0x2a5   :  { %v2207_v56 = vadd.f32 %v9544_v60, %v2206_v54  ;;  %v7584_v57 = vpop.f32.mrb[211].mxu0  ;;  %v3412_v58 = vmax.f32 %v2884_v51, 0.0  ;;  %v2887_v59 = vadd.f32 %v9544_v60, %v2886_v55  ;;  %v7924_v61 = vpop.f32.mrb[211].mxu1  ;;  %v3242_v62 = vmax.f32 %v2204_v48, 0.0  ;;  %v8223_v48 = vld [vmem:[%s10199_s0 + $0x290] sm:$0xff]   ;;  %v8224_v51 = vld [vmem:[%s10199_s0 + $0x538] sm:$0xff]  }
 0x2a7   :  { %v3243_v63 = vmax.f32 %v2207_v56, 0.0  ;;  %7690 = vmatmul.mubr.msk.bf16.gmra.mrb[60].mxu0 %vm1238_vm3, %v8217_v50  ;;  %v3413_v1 = vmax.f32 %v2887_v59, 0.0  ;;  %8030 = vmatmul.mubr.msk.bf16.gmra.mrb[60].mxu1 %vm1238_vm3, %v8218_v53 }
 0x2a8   :  { %7693 = vmatprep.mubr.msk.bf16.mxu0 %vm8284_vm1, %v8283_v0  ;;  %8033 = vmatprep.mubr.msk.bf16.mxu1 %vm8284_vm1, %v8283_v0 }
 0x2a9   :  { %v6451_v2 = vpack.c.bf16 %v3243_v63, %v3242_v62  ;;  %v6876_v3 = vpack.c.bf16 %v3413_v1, %v3412_v58 }
 0x2aa   :  { %v2211_v4 = vpop.f32.mrb[212].mxu0  ;;  %v2891_v5 = vpop.f32.mrb[212].mxu1 }
 0x2ab   :  { %7084 = vst [vmem:[%s10202_s3 + $0x1a0] sm:$0xff] %v6451_v2   ;;  %7169 = vst [vmem:[%s10202_s3 + $0x448] sm:$0xff] %v6876_v3   ;;  %v2212_v6 = vadd.f32 %v9544_v60, %v2211_v4  ;;  %v7587_v7 = vpop.f32.mrb[213].mxu0  ;;  %v2892_v9 = vadd.f32 %v9544_v60, %v2891_v5  ;;  %v7927_v10 = vpop.f32.mrb[213].mxu1 }
 0x2ac   :  { %v2214_v12 = vpop.f32.mrb[214].mxu0  ;;  %v2894_v13 = vpop.f32.mrb[214].mxu1 }
 0x2ad   :  { %v2215_v14 = vadd.f32 %v9544_v60, %v2214_v12  ;;  %v7588_v15 = vpop.f32.mrb[215].mxu0  ;;  %v3414_v16 = vmax.f32 %v2892_v9, 0.0  ;;  %v2895_v17 = vadd.f32 %v9544_v60, %v2894_v13  ;;  %v7928_v18 = vpop.f32.mrb[215].mxu1  ;;  %v3244_v19 = vmax.f32 %v2212_v6, 0.0  ;;  %v8225_v6 = vld [vmem:[%s10199_s0 + $0x298] sm:$0xff]   ;;  %v8226_v9 = vld [vmem:[%s10199_s0 + $0x540] sm:$0xff]  }
 0x2af   :  { %v3245_v20 = vmax.f32 %v2215_v14, 0.0  ;;  %7694 = vmatmul.mubr.msk.bf16.gmra.mrb[64].mxu0 %vm1238_vm3, %v8219_v8  ;;  %v3415_v21 = vmax.f32 %v2895_v17, 0.0  ;;  %8034 = vmatmul.mubr.msk.bf16.gmra.mrb[64].mxu1 %vm1238_vm3, %v8220_v11 }
 0x2b0   :  { %7697 = vmatprep.mubr.msk.bf16.mxu0 %vm8284_vm1, %v8283_v0  ;;  %8037 = vmatprep.mubr.msk.bf16.mxu1 %vm8284_vm1, %v8283_v0 }
 0x2b1   :  { %v6456_v22 = vpack.c.bf16 %v3245_v20, %v3244_v19  ;;  %v6881_v23 = vpack.c.bf16 %v3415_v21, %v3414_v16 }
 0x2b2   :  { %v2219_v24 = vpop.f32.mrb[216].mxu0  ;;  %v2899_v25 = vpop.f32.mrb[216].mxu1 }
 0x2b3   :  { %7085 = vst [vmem:[%s10202_s3 + $0x1a8] sm:$0xff] %v6456_v22   ;;  %7170 = vst [vmem:[%s10202_s3 + $0x450] sm:$0xff] %v6881_v23   ;;  %v2220_v26 = vadd.f32 %v9544_v60, %v2219_v24  ;;  %v7591_v27 = vpop.f32.mrb[217].mxu0  ;;  %v2900_v29 = vadd.f32 %v9544_v60, %v2899_v25  ;;  %v7931_v30 = vpop.f32.mrb[217].mxu1 }
 0x2b4   :  { %v2222_v32 = vpop.f32.mrb[218].mxu0  ;;  %v2902_v33 = vpop.f32.mrb[218].mxu1 }
 0x2b5   :  { %v2223_v34 = vadd.f32 %v9544_v60, %v2222_v32  ;;  %v7592_v35 = vpop.f32.mrb[219].mxu0  ;;  %v3416_v36 = vmax.f32 %v2900_v29, 0.0  ;;  %v2903_v37 = vadd.f32 %v9544_v60, %v2902_v33  ;;  %v7932_v38 = vpop.f32.mrb[219].mxu1  ;;  %v3246_v39 = vmax.f32 %v2220_v26, 0.0  ;;  %v8227_v26 = vld [vmem:[%s10199_s0 + $0x2a0] sm:$0xff]  }
 0x2b7   :  { %v3247_v40 = vmax.f32 %v2223_v34, 0.0  ;;  %7698 = vmatmul.mubr.msk.bf16.gmra.mrb[68].mxu0 %vm1238_vm3, %v8221_v28  ;;  %v3417_v41 = vmax.f32 %v2903_v37, 0.0  ;;  %8038 = vmatmul.mubr.msk.bf16.gmra.mrb[68].mxu1 %vm1238_vm3, %v8222_v31 }
 0x2b8   :  { %7701 = vmatprep.mubr.msk.bf16.mxu0 %vm8284_vm1, %v8283_v0  ;;  %8041 = vmatprep.mubr.msk.bf16.mxu1 %vm8284_vm1, %v8283_v0 }
 0x2b9   :  { %v6461_v42 = vpack.c.bf16 %v3247_v40, %v3246_v39  ;;  %v6886_v43 = vpack.c.bf16 %v3417_v41, %v3416_v36 }
 0x2ba   :  { %v2227_v44 = vpop.f32.mrb[220].mxu0  ;;  %v2907_v45 = vpop.f32.mrb[220].mxu1 }
 0x2bb   :  { %7086 = vst [vmem:[%s10202_s3 + $0x1b0] sm:$0xff] %v6461_v42   ;;  %7171 = vst [vmem:[%s10202_s3 + $0x458] sm:$0xff] %v6886_v43   ;;  %v2228_v46 = vadd.f32 %v9544_v60, %v2227_v44  ;;  %v7595_v47 = vpop.f32.mrb[221].mxu0  ;;  %v2908_v49 = vadd.f32 %v9544_v60, %v2907_v45  ;;  %v7935_v50 = vpop.f32.mrb[221].mxu1 }
 0x2bc   :  { %v2230_v52 = vpop.f32.mrb[222].mxu0  ;;  %v2910_v53 = vpop.f32.mrb[222].mxu1 }
 0x2bd   :  { %v2231_v54 = vadd.f32 %v9544_v60, %v2230_v52  ;;  %v7596_v55 = vpop.f32.mrb[223].mxu0  ;;  %v3418_v56 = vmax.f32 %v2908_v49, 0.0  ;;  %v2911_v57 = vadd.f32 %v9544_v60, %v2910_v53  ;;  %v7936_v58 = vpop.f32.mrb[223].mxu1  ;;  %v3248_v59 = vmax.f32 %v2228_v46, 0.0 }
 0x2bf   :  { %v3249_v61 = vmax.f32 %v2231_v54, 0.0  ;;  %7702 = vmatmul.mubr.msk.bf16.gmra.mrb[72].mxu0 %vm1238_vm3, %v8223_v48  ;;  %v3419_v62 = vmax.f32 %v2911_v57, 0.0  ;;  %8042 = vmatmul.mubr.msk.bf16.gmra.mrb[72].mxu1 %vm1238_vm3, %v8224_v51 }
 0x2c0   :  { %7705 = vmatprep.mubr.msk.bf16.mxu0 %vm8284_vm1, %v8283_v0  ;;  %8045 = vmatprep.mubr.msk.bf16.mxu1 %vm8284_vm1, %v8283_v0 }
 0x2c1   :  { %v6466_v63 = vpack.c.bf16 %v3249_v61, %v3248_v59  ;;  %v6891_v1 = vpack.c.bf16 %v3419_v62, %v3418_v56 }
 0x2c2   :  { %v2235_v2 = vpop.f32.mrb[224].mxu0  ;;  %v2915_v3 = vpop.f32.mrb[224].mxu1 }
 0x2c3   :  { %7087 = vst [vmem:[%s10202_s3 + $0x1b8] sm:$0xff] %v6466_v63   ;;  %7172 = vst [vmem:[%s10202_s3 + $0x460] sm:$0xff] %v6891_v1   ;;  %v2236_v4 = vadd.f32 %v9544_v60, %v2235_v2  ;;  %v7599_v5 = vpop.f32.mrb[225].mxu0  ;;  %v2916_v7 = vadd.f32 %v9544_v60, %v2915_v3  ;;  %v7939_v8 = vpop.f32.mrb[225].mxu1 }
 0x2c4   :  { %v2238_v10 = vpop.f32.mrb[226].mxu0  ;;  %v2918_v11 = vpop.f32.mrb[226].mxu1 }
 0x2c5   :  { %v2239_v12 = vadd.f32 %v9544_v60, %v2238_v10  ;;  %v7600_v13 = vpop.f32.mrb[227].mxu0  ;;  %v3420_v14 = vmax.f32 %v2916_v7, 0.0  ;;  %v2919_v15 = vadd.f32 %v9544_v60, %v2918_v11  ;;  %v7940_v16 = vpop.f32.mrb[227].mxu1  ;;  %v3250_v17 = vmax.f32 %v2236_v4, 0.0 }
 0x2c7   :  { %v3251_v18 = vmax.f32 %v2239_v12, 0.0  ;;  %7706 = vmatmul.mubr.msk.bf16.gmra.mrb[76].mxu0 %vm1238_vm3, %v8225_v6  ;;  %v3421_v19 = vmax.f32 %v2919_v15, 0.0  ;;  %8046 = vmatmul.mubr.msk.bf16.gmra.mrb[76].mxu1 %vm1238_vm3, %v8226_v9 }
 0x2c8   :  { %7709 = vmatprep.mubr.msk.bf16.mxu0 %vm8284_vm1, %v8283_v0 }
 0x2c9   :  { %v6471_v20 = vpack.c.bf16 %v3251_v18, %v3250_v17  ;;  %v6896_v21 = vpack.c.bf16 %v3421_v19, %v3420_v14 }
 0x2ca   :  { %v2243_v22 = vpop.f32.mrb[228].mxu0  ;;  %v2923_v23 = vpop.f32.mrb[228].mxu1 }
 0x2cb   :  { %7088 = vst [vmem:[%s10202_s3 + $0x1c0] sm:$0xff] %v6471_v20   ;;  %7173 = vst [vmem:[%s10202_s3 + $0x468] sm:$0xff] %v6896_v21   ;;  %v2244_v24 = vadd.f32 %v9544_v60, %v2243_v22  ;;  %v7603_v25 = vpop.f32.mrb[229].mxu0  ;;  %v2924_v0 = vadd.f32 %v9544_v60, %v2923_v23  ;;  %v7943_v27 = vpop.f32.mrb[229].mxu1 }
 0x2cc   :  { %v2246_v28 = vpop.f32.mrb[230].mxu0  ;;  %v2926_v29 = vpop.f32.mrb[230].mxu1  ;;  %v9955_v25 = vld [vmem:[#allocation4] ss:$0 sm:$0xff] }
 0x2cd   :  { %v2247_v30 = vadd.f32 %v9544_v60, %v2246_v28  ;;  %v7604_v31 = vpop.f32.mrb[231].mxu0  ;;  %v3422_v32 = vmax.f32 %v2924_v0, 0.0  ;;  %v2927_v33 = vadd.f32 %v9544_v60, %v2926_v29  ;;  %v7944_v34 = vpop.f32.mrb[231].mxu1  ;;  %v3252_v35 = vmax.f32 %v2244_v24, 0.0 }
 0x2cf   :  { %v3253_v36 = vmax.f32 %v2247_v30, 0.0  ;;  %7710 = vmatmul.mubr.msk.bf16.gmra.mrb[80].mxu0 %vm1238_vm3, %v8227_v26  ;;  %v3423_v37 = vmax.f32 %v2927_v33, 0.0 }
 0x2d1   :  { %v6476_v38 = vpack.c.bf16 %v3253_v36, %v3252_v35  ;;  %v6901_v39 = vpack.c.bf16 %v3423_v37, %v3422_v32 }
 0x2d2   :  { %v2251_v40 = vpop.f32.mrb[232].mxu0  ;;  %v2931_v41 = vpop.f32.mrb[232].mxu1 }
 0x2d3   :  { %7089 = vst [vmem:[%s10202_s3 + $0x1c8] sm:$0xff] %v6476_v38   ;;  %7174 = vst [vmem:[%s10202_s3 + $0x470] sm:$0xff] %v6901_v39   ;;  %v2252_v42 = vadd.f32 %v9544_v60, %v2251_v40  ;;  %v7607_v43 = vpop.f32.mrb[233].mxu0  ;;  %v2932_v44 = vadd.f32 %v9544_v60, %v2931_v41  ;;  %v7947_v45 = vpop.f32.mrb[233].mxu1 }
 0x2d4   :  { %v2254_v46 = vpop.f32.mrb[234].mxu0  ;;  %v2934_v47 = vpop.f32.mrb[234].mxu1 }
 0x2d5   :  { %v2255_v48 = vadd.f32 %v9544_v60, %v2254_v46  ;;  %v7608_v49 = vpop.f32.mrb[235].mxu0  ;;  %v3424_v50 = vmax.f32 %v2932_v44, 0.0  ;;  %v2935_v51 = vadd.f32 %v9544_v60, %v2934_v47  ;;  %v7948_v52 = vpop.f32.mrb[235].mxu1  ;;  %v3254_v53 = vmax.f32 %v2252_v42, 0.0 }
 0x2d7   :  { %v3255_v54 = vmax.f32 %v2255_v48, 0.0  ;;  %v3425_v55 = vmax.f32 %v2935_v51, 0.0 }
 0x2d9   :  { %v6481_v56 = vpack.c.bf16 %v3255_v54, %v3254_v53  ;;  %v6906_v57 = vpack.c.bf16 %v3425_v55, %v3424_v50 }
 0x2da   :  { %v2259_v58 = vpop.f32.mrb[236].mxu0  ;;  %v2939_v59 = vpop.f32.mrb[236].mxu1 }
 0x2db   :  { %7090 = vst [vmem:[%s10202_s3 + $0x1d0] sm:$0xff] %v6481_v56   ;;  %7175 = vst [vmem:[%s10202_s3 + $0x478] sm:$0xff] %v6906_v57   ;;  %v2260_v61 = vadd.f32 %v9544_v60, %v2259_v58  ;;  %v7611_v62 = vpop.f32.mrb[237].mxu0  ;;  %v2940_v63 = vadd.f32 %v9544_v60, %v2939_v59  ;;  %v7951_v1 = vpop.f32.mrb[237].mxu1 }
 0x2dc   :  { %v2262_v2 = vpop.f32.mrb[238].mxu0  ;;  %v2942_v3 = vpop.f32.mrb[238].mxu1 }
 0x2dd   :  { %v2263_v4 = vadd.f32 %v9544_v60, %v2262_v2  ;;  %v7612_v5 = vpop.f32.mrb[239].mxu0  ;;  %v3426_v6 = vmax.f32 %v2940_v63, 0.0  ;;  %v2943_v7 = vadd.f32 %v9544_v60, %v2942_v3  ;;  %v7952_v8 = vpop.f32.mrb[239].mxu1  ;;  %v3256_v9 = vmax.f32 %v2260_v61, 0.0 }
 0x2df   :  { %v3257_v10 = vmax.f32 %v2263_v4, 0.0  ;;  %v3427_v11 = vmax.f32 %v2943_v7, 0.0 }
 0x2e1   :  { %v6486_v12 = vpack.c.bf16 %v3257_v10, %v3256_v9  ;;  %v6911_v13 = vpack.c.bf16 %v3427_v11, %v3426_v6 }
 0x2e2   :  { %v2267_v14 = vpop.f32.mrb[240].mxu0  ;;  %v2947_v15 = vpop.f32.mrb[240].mxu1 }
 0x2e3   :  { %7091 = vst [vmem:[%s10202_s3 + $0x1d8] sm:$0xff] %v6486_v12   ;;  %7176 = vst [vmem:[%s10202_s3 + $0x480] sm:$0xff] %v6911_v13   ;;  %v2268_v16 = vadd.f32 %v9544_v60, %v2267_v14  ;;  %v7615_v17 = vpop.f32.mrb[241].mxu0  ;;  %v2948_v18 = vadd.f32 %v9544_v60, %v2947_v15  ;;  %v7955_v19 = vpop.f32.mrb[241].mxu1 }
 0x2e4   :  { %v2270_v20 = vpop.f32.mrb[242].mxu0  ;;  %v2950_v21 = vpop.f32.mrb[242].mxu1 }
 0x2e5   :  { %v2271_v22 = vadd.f32 %v9544_v60, %v2270_v20  ;;  %v7616_v23 = vpop.f32.mrb[243].mxu0  ;;  %v3428_v24 = vmax.f32 %v2948_v18, 0.0  ;;  %v2951_v26 = vadd.f32 %v9955_v25, %v2950_v21  ;;  %v7956_v0 = vpop.f32.mrb[243].mxu1  ;;  %v3258_v27 = vmax.f32 %v2268_v16, 0.0 }
 0x2e7   :  { %v3259_v28 = vmax.f32 %v2271_v22, 0.0  ;;  %v3429_v29 = vmax.f32 %v2951_v26, 0.0 }
 0x2e9   :  { %v6491_v30 = vpack.c.bf16 %v3259_v28, %v3258_v27  ;;  %v6916_v31 = vpack.c.bf16 %v3429_v29, %v3428_v24 }
 0x2ea   :  { %v2275_v32 = vpop.f32.mrb[244].mxu0  ;;  %v2955_v33 = vpop.f32.mrb[244].mxu1 }
 0x2eb   :  { %7092 = vst [vmem:[%s10202_s3 + $0x1e0] sm:$0xff] %v6491_v30   ;;  %7177 = vst [vmem:[%s10202_s3 + $0x488] sm:$0xff] %v6916_v31   ;;  %v2276_v60 = vadd.f32 %v9955_v25, %v2275_v32  ;;  %v7619_v34 = vpop.f32.mrb[245].mxu0  ;;  %v2956_v35 = vadd.f32 %v9955_v25, %v2955_v33  ;;  %v7959_v36 = vpop.f32.mrb[245].mxu1 }
 0x2ec   :  { %v2278_v37 = vpop.f32.mrb[246].mxu0  ;;  %v2958_v38 = vpop.f32.mrb[246].mxu1 }
 0x2ed   :  { %v2279_v39 = vadd.f32 %v9955_v25, %v2278_v37  ;;  %v7620_v40 = vpop.f32.mrb[247].mxu0  ;;  %v3430_v41 = vmax.f32 %v2956_v35, 0.0  ;;  %v2959_v42 = vadd.f32 %v9955_v25, %v2958_v38  ;;  %v7960_v43 = vpop.f32.mrb[247].mxu1  ;;  %v3260_v44 = vmax.f32 %v2276_v60, 0.0 }
 0x2ef   :  { %v3261_v45 = vmax.f32 %v2279_v39, 0.0  ;;  %v3431_v46 = vmax.f32 %v2959_v42, 0.0 }
 0x2f1   :  { %v6496_v47 = vpack.c.bf16 %v3261_v45, %v3260_v44  ;;  %v6921_v48 = vpack.c.bf16 %v3431_v46, %v3430_v41 }
 0x2f2   :  { %v2283_v49 = vpop.f32.mrb[248].mxu0  ;;  %v2963_v50 = vpop.f32.mrb[248].mxu1 }
 0x2f3   :  { %7093 = vst [vmem:[%s10202_s3 + $0x1e8] sm:$0xff] %v6496_v47   ;;  %7178 = vst [vmem:[%s10202_s3 + $0x490] sm:$0xff] %v6921_v48   ;;  %v2284_v51 = vadd.f32 %v9955_v25, %v2283_v49  ;;  %v7623_v52 = vpop.f32.mrb[249].mxu0  ;;  %v2964_v53 = vadd.f32 %v9955_v25, %v2963_v50  ;;  %v7963_v54 = vpop.f32.mrb[249].mxu1 }
 0x2f4   :  { %v2286_v55 = vpop.f32.mrb[250].mxu0  ;;  %v2966_v56 = vpop.f32.mrb[250].mxu1 }
 0x2f5   :  { %v2287_v57 = vadd.f32 %v9955_v25, %v2286_v55  ;;  %v7624_v58 = vpop.f32.mrb[251].mxu0  ;;  %v3432_v59 = vmax.f32 %v2964_v53, 0.0  ;;  %v2967_v61 = vadd.f32 %v9955_v25, %v2966_v56  ;;  %v7964_v62 = vpop.f32.mrb[251].mxu1  ;;  %v3262_v63 = vmax.f32 %v2284_v51, 0.0 }
 0x2f7   :  { %v3263_v1 = vmax.f32 %v2287_v57, 0.0  ;;  %v3433_v2 = vmax.f32 %v2967_v61, 0.0 }
 0x2f9   :  { %v6501_v3 = vpack.c.bf16 %v3263_v1, %v3262_v63  ;;  %v6926_v4 = vpack.c.bf16 %v3433_v2, %v3432_v59 }
 0x2fa   :  { %v2291_v5 = vpop.f32.mrb[252].mxu0  ;;  %v2971_v6 = vpop.f32.mrb[252].mxu1 }
 0x2fb   :  { %7094 = vst [vmem:[%s10202_s3 + $0x1f0] sm:$0xff] %v6501_v3   ;;  %7179 = vst [vmem:[%s10202_s3 + $0x498] sm:$0xff] %v6926_v4   ;;  %v2292_v7 = vadd.f32 %v9955_v25, %v2291_v5  ;;  %v7627_v8 = vpop.f32.mrb[253].mxu0  ;;  %v2972_v9 = vadd.f32 %v9955_v25, %v2971_v6  ;;  %v7967_v10 = vpop.f32.mrb[253].mxu1 }
 0x2fc   :  { %v2294_v11 = vpop.f32.mrb[254].mxu0  ;;  %v2974_v12 = vpop.f32.mrb[254].mxu1 }
 0x2fd   :  { %v2295_v13 = vadd.f32 %v9955_v25, %v2294_v11  ;;  %v7628_v14 = vpop.f32.mrb[255].mxu0  ;;  %v3434_v15 = vmax.f32 %v2972_v9, 0.0  ;;  %v2975_v16 = vadd.f32 %v9955_v25, %v2974_v12  ;;  %v7968_v17 = vpop.f32.mrb[255].mxu1  ;;  %v3264_v18 = vmax.f32 %v2292_v7, 0.0 }
 0x2ff   :  { %v3265_v19 = vmax.f32 %v2295_v13, 0.0  ;;  %v3435_v20 = vmax.f32 %v2975_v16, 0.0 }
 0x301   :  { %v6506_v21 = vpack.c.bf16 %v3265_v19, %v3264_v18  ;;  %v6931_v22 = vpack.c.bf16 %v3435_v20, %v3434_v15 }
 0x302   :  { %v2299_v23 = vpop.f32.mrb[0].mxu0  ;;  %v2979_v24 = vpop.f32.mrb[0].mxu1 }
 0x303   :  { %7095 = vst [vmem:[%s10202_s3 + $0x1f8] sm:$0xff] %v6506_v21   ;;  %7180 = vst [vmem:[%s10202_s3 + $0x4a0] sm:$0xff] %v6931_v22   ;;  %v2300_v26 = vadd.f32 %v9955_v25, %v2299_v23  ;;  %v7631_v0 = vpop.f32.mrb[1].mxu0  ;;  %v2980_v27 = vadd.f32 %v9955_v25, %v2979_v24  ;;  %v7971_v28 = vpop.f32.mrb[1].mxu1 }
 0x304   :  { %v2302_v29 = vpop.f32.mrb[2].mxu0  ;;  %v2982_v30 = vpop.f32.mrb[2].mxu1 }
 0x305   :  { %v2303_v31 = vadd.f32 %v9955_v25, %v2302_v29  ;;  %v7632_v32 = vpop.f32.mrb[3].mxu0  ;;  %v3436_v33 = vmax.f32 %v2980_v27, 0.0  ;;  %v2983_v60 = vadd.f32 %v9955_v25, %v2982_v30  ;;  %v7972_v34 = vpop.f32.mrb[3].mxu1  ;;  %v3266_v35 = vmax.f32 %v2300_v26, 0.0 }
 0x307   :  { %v3267_v36 = vmax.f32 %v2303_v31, 0.0  ;;  %v3437_v37 = vmax.f32 %v2983_v60, 0.0 }
 0x309   :  { %v6511_v38 = vpack.c.bf16 %v3267_v36, %v3266_v35  ;;  %v6936_v39 = vpack.c.bf16 %v3437_v37, %v3436_v33 }
 0x30a   :  { %v2307_v40 = vpop.f32.mrb[4].mxu0  ;;  %v2987_v41 = vpop.f32.mrb[4].mxu1 }
 0x30b   :  { %7096 = vst [vmem:[%s10202_s3 + $0x200] sm:$0xff] %v6511_v38   ;;  %7181 = vst [vmem:[%s10202_s3 + $0x4a8] sm:$0xff] %v6936_v39   ;;  %v2308_v42 = vadd.f32 %v9955_v25, %v2307_v40  ;;  %v7635_v43 = vpop.f32.mrb[5].mxu0  ;;  %v2988_v44 = vadd.f32 %v9955_v25, %v2987_v41  ;;  %v7975_v45 = vpop.f32.mrb[5].mxu1 }
 0x30c   :  { %v2310_v46 = vpop.f32.mrb[6].mxu0  ;;  %v2990_v47 = vpop.f32.mrb[6].mxu1 }
 0x30d   :  { %v2311_v48 = vadd.f32 %v9955_v25, %v2310_v46  ;;  %v7636_v49 = vpop.f32.mrb[7].mxu0  ;;  %v3438_v50 = vmax.f32 %v2988_v44, 0.0  ;;  %v2991_v51 = vadd.f32 %v9955_v25, %v2990_v47  ;;  %v7976_v52 = vpop.f32.mrb[7].mxu1  ;;  %v3268_v53 = vmax.f32 %v2308_v42, 0.0 }
 0x30f   :  { %v3269_v54 = vmax.f32 %v2311_v48, 0.0  ;;  %v3439_v55 = vmax.f32 %v2991_v51, 0.0 }
 0x311   :  { %v6516_v56 = vpack.c.bf16 %v3269_v54, %v3268_v53  ;;  %v6941_v57 = vpack.c.bf16 %v3439_v55, %v3438_v50 }
 0x312   :  { %v2315_v58 = vpop.f32.mrb[8].mxu0  ;;  %v2995_v59 = vpop.f32.mrb[8].mxu1 }
 0x313   :  { %7097 = vst [vmem:[%s10202_s3 + $0x208] sm:$0xff] %v6516_v56   ;;  %7182 = vst [vmem:[%s10202_s3 + $0x4b0] sm:$0xff] %v6941_v57   ;;  %v2316_v61 = vadd.f32 %v9955_v25, %v2315_v58  ;;  %v7639_v62 = vpop.f32.mrb[9].mxu0  ;;  %v2996_v63 = vadd.f32 %v9955_v25, %v2995_v59  ;;  %v7979_v1 = vpop.f32.mrb[9].mxu1 }
 0x314   :  { %v2318_v2 = vpop.f32.mrb[10].mxu0  ;;  %v2998_v3 = vpop.f32.mrb[10].mxu1 }
 0x315   :  { %v2319_v4 = vadd.f32 %v9955_v25, %v2318_v2  ;;  %v7640_v5 = vpop.f32.mrb[11].mxu0  ;;  %v3440_v6 = vmax.f32 %v2996_v63, 0.0  ;;  %v2999_v7 = vadd.f32 %v9955_v25, %v2998_v3  ;;  %v7980_v8 = vpop.f32.mrb[11].mxu1  ;;  %v3270_v9 = vmax.f32 %v2316_v61, 0.0 }
 0x317   :  { %v3271_v10 = vmax.f32 %v2319_v4, 0.0  ;;  %v3441_v11 = vmax.f32 %v2999_v7, 0.0 }
 0x319   :  { %v6521_v12 = vpack.c.bf16 %v3271_v10, %v3270_v9  ;;  %v6946_v13 = vpack.c.bf16 %v3441_v11, %v3440_v6 }
 0x31a   :  { %v2323_v14 = vpop.f32.mrb[12].mxu0  ;;  %v3003_v15 = vpop.f32.mrb[12].mxu1 }
 0x31b   :  { %7098 = vst [vmem:[%s10202_s3 + $0x210] sm:$0xff] %v6521_v12   ;;  %7183 = vst [vmem:[%s10202_s3 + $0x4b8] sm:$0xff] %v6946_v13   ;;  %v2324_v16 = vadd.f32 %v9955_v25, %v2323_v14  ;;  %v7643_v17 = vpop.f32.mrb[13].mxu0  ;;  %v3004_v18 = vadd.f32 %v9955_v25, %v3003_v15  ;;  %v7983_v19 = vpop.f32.mrb[13].mxu1 }
 0x31c   :  { %v2326_v20 = vpop.f32.mrb[14].mxu0  ;;  %v3006_v21 = vpop.f32.mrb[14].mxu1 }
 0x31d   :  { %v2327_v22 = vadd.f32 %v9955_v25, %v2326_v20  ;;  %v7644_v23 = vpop.f32.mrb[15].mxu0  ;;  %v3442_v24 = vmax.f32 %v3004_v18, 0.0  ;;  %v3007_v26 = vadd.f32 %v9955_v25, %v3006_v21  ;;  %v7984_v0 = vpop.f32.mrb[15].mxu1  ;;  %v3272_v27 = vmax.f32 %v2324_v16, 0.0 }
 0x31f   :  { %v3273_v28 = vmax.f32 %v2327_v22, 0.0  ;;  %v3443_v29 = vmax.f32 %v3007_v26, 0.0 }
 0x321   :  { %v6526_v30 = vpack.c.bf16 %v3273_v28, %v3272_v27  ;;  %v6951_v31 = vpack.c.bf16 %v3443_v29, %v3442_v24 }
 0x322   :  { %v2331_v32 = vpop.f32.mrb[16].mxu0  ;;  %v3011_v33 = vpop.f32.mrb[16].mxu1 }
 0x323   :  { %7099 = vst [vmem:[%s10202_s3 + $0x218] sm:$0xff] %v6526_v30   ;;  %7184 = vst [vmem:[%s10202_s3 + $0x4c0] sm:$0xff] %v6951_v31   ;;  %v2332_v60 = vadd.f32 %v9955_v25, %v2331_v32  ;;  %v7647_v34 = vpop.f32.mrb[17].mxu0  ;;  %v3012_v35 = vadd.f32 %v9955_v25, %v3011_v33  ;;  %v7987_v36 = vpop.f32.mrb[17].mxu1 }
 0x324   :  { %v2334_v37 = vpop.f32.mrb[18].mxu0  ;;  %v3014_v38 = vpop.f32.mrb[18].mxu1 }
 0x325   :  { %v2335_v39 = vadd.f32 %v9955_v25, %v2334_v37  ;;  %v7648_v40 = vpop.f32.mrb[19].mxu0  ;;  %v3444_v41 = vmax.f32 %v3012_v35, 0.0  ;;  %v3015_v42 = vadd.f32 %v9955_v25, %v3014_v38  ;;  %v7988_v43 = vpop.f32.mrb[19].mxu1  ;;  %v3274_v44 = vmax.f32 %v2332_v60, 0.0 }
 0x327   :  { %v3275_v45 = vmax.f32 %v2335_v39, 0.0  ;;  %v3445_v46 = vmax.f32 %v3015_v42, 0.0 }
 0x329   :  { %v6531_v47 = vpack.c.bf16 %v3275_v45, %v3274_v44  ;;  %v6956_v48 = vpack.c.bf16 %v3445_v46, %v3444_v41 }
 0x32a   :  { %v2339_v49 = vpop.f32.mrb[20].mxu0  ;;  %v3019_v50 = vpop.f32.mrb[20].mxu1 }
 0x32b   :  { %7100 = vst [vmem:[%s10202_s3 + $0x220] sm:$0xff] %v6531_v47   ;;  %7185 = vst [vmem:[%s10202_s3 + $0x4c8] sm:$0xff] %v6956_v48   ;;  %v2340_v51 = vadd.f32 %v9955_v25, %v2339_v49  ;;  %v7651_v52 = vpop.f32.mrb[21].mxu0  ;;  %v3020_v53 = vadd.f32 %v9955_v25, %v3019_v50  ;;  %v7991_v54 = vpop.f32.mrb[21].mxu1 }
 0x32c   :  { %v2342_v55 = vpop.f32.mrb[22].mxu0  ;;  %v3022_v56 = vpop.f32.mrb[22].mxu1 }
 0x32d   :  { %v2343_v57 = vadd.f32 %v9955_v25, %v2342_v55  ;;  %v7652_v58 = vpop.f32.mrb[23].mxu0  ;;  %v3446_v59 = vmax.f32 %v3020_v53, 0.0  ;;  %v3023_v61 = vadd.f32 %v9955_v25, %v3022_v56  ;;  %v7992_v62 = vpop.f32.mrb[23].mxu1  ;;  %v3276_v63 = vmax.f32 %v2340_v51, 0.0 }
 0x32f   :  { %v3277_v1 = vmax.f32 %v2343_v57, 0.0  ;;  %v3447_v2 = vmax.f32 %v3023_v61, 0.0 }
 0x331   :  { %v6536_v3 = vpack.c.bf16 %v3277_v1, %v3276_v63  ;;  %v6961_v4 = vpack.c.bf16 %v3447_v2, %v3446_v59 }
 0x332   :  { %v2347_v5 = vpop.f32.mrb[24].mxu0  ;;  %v3027_v6 = vpop.f32.mrb[24].mxu1 }
 0x333   :  { %7101 = vst [vmem:[%s10202_s3 + $0x228] sm:$0xff] %v6536_v3   ;;  %7186 = vst [vmem:[%s10202_s3 + $0x4d0] sm:$0xff] %v6961_v4   ;;  %v2348_v7 = vadd.f32 %v9955_v25, %v2347_v5  ;;  %v7655_v8 = vpop.f32.mrb[25].mxu0  ;;  %v3028_v9 = vadd.f32 %v9955_v25, %v3027_v6  ;;  %v7995_v10 = vpop.f32.mrb[25].mxu1 }
 0x334   :  { %v2350_v11 = vpop.f32.mrb[26].mxu0  ;;  %v3030_v12 = vpop.f32.mrb[26].mxu1 }
 0x335   :  { %v2351_v13 = vadd.f32 %v9955_v25, %v2350_v11  ;;  %v7656_v14 = vpop.f32.mrb[27].mxu0  ;;  %v3448_v15 = vmax.f32 %v3028_v9, 0.0  ;;  %v3031_v16 = vadd.f32 %v9955_v25, %v3030_v12  ;;  %v7996_v17 = vpop.f32.mrb[27].mxu1  ;;  %v3278_v18 = vmax.f32 %v2348_v7, 0.0 }
 0x337   :  { %v3279_v19 = vmax.f32 %v2351_v13, 0.0  ;;  %v3449_v20 = vmax.f32 %v3031_v16, 0.0 }
 0x339   :  { %v6541_v21 = vpack.c.bf16 %v3279_v19, %v3278_v18  ;;  %v6966_v22 = vpack.c.bf16 %v3449_v20, %v3448_v15 }
 0x33a   :  { %v2355_v23 = vpop.f32.mrb[28].mxu0  ;;  %v3035_v24 = vpop.f32.mrb[28].mxu1 }
 0x33b   :  { %7102 = vst [vmem:[%s10202_s3 + $0x230] sm:$0xff] %v6541_v21   ;;  %7187 = vst [vmem:[%s10202_s3 + $0x4d8] sm:$0xff] %v6966_v22   ;;  %v2356_v26 = vadd.f32 %v9955_v25, %v2355_v23  ;;  %v7659_v0 = vpop.f32.mrb[29].mxu0  ;;  %v3036_v27 = vadd.f32 %v9955_v25, %v3035_v24  ;;  %v7999_v28 = vpop.f32.mrb[29].mxu1 }
 0x33c   :  { %v2358_v29 = vpop.f32.mrb[30].mxu0  ;;  %v3038_v30 = vpop.f32.mrb[30].mxu1 }
 0x33d   :  { %v2359_v31 = vadd.f32 %v9955_v25, %v2358_v29  ;;  %v7660_v32 = vpop.f32.mrb[31].mxu0  ;;  %v3450_v33 = vmax.f32 %v3036_v27, 0.0  ;;  %v3039_v60 = vadd.f32 %v9955_v25, %v3038_v30  ;;  %v8000_v34 = vpop.f32.mrb[31].mxu1  ;;  %v3280_v35 = vmax.f32 %v2356_v26, 0.0 }
 0x33f   :  { %v3281_v36 = vmax.f32 %v2359_v31, 0.0  ;;  %v3451_v37 = vmax.f32 %v3039_v60, 0.0 }
 0x341   :  { %v6546_v38 = vpack.c.bf16 %v3281_v36, %v3280_v35  ;;  %v6971_v39 = vpack.c.bf16 %v3451_v37, %v3450_v33 }
 0x342   :  { %v2363_v40 = vpop.f32.mrb[32].mxu0  ;;  %v3043_v41 = vpop.f32.mrb[32].mxu1 }
 0x343   :  { %7103 = vst [vmem:[%s10202_s3 + $0x238] sm:$0xff] %v6546_v38   ;;  %7188 = vst [vmem:[%s10202_s3 + $0x4e0] sm:$0xff] %v6971_v39   ;;  %v2364_v42 = vadd.f32 %v9955_v25, %v2363_v40  ;;  %v7663_v43 = vpop.f32.mrb[33].mxu0  ;;  %v3044_v44 = vadd.f32 %v9955_v25, %v3043_v41  ;;  %v8003_v45 = vpop.f32.mrb[33].mxu1 }
 0x344   :  { %v2366_v46 = vpop.f32.mrb[34].mxu0  ;;  %v3046_v47 = vpop.f32.mrb[34].mxu1 }
 0x345   :  { %v2367_v48 = vadd.f32 %v9955_v25, %v2366_v46  ;;  %v7664_v49 = vpop.f32.mrb[35].mxu0  ;;  %v3452_v50 = vmax.f32 %v3044_v44, 0.0  ;;  %v3047_v51 = vadd.f32 %v9955_v25, %v3046_v47  ;;  %v8004_v52 = vpop.f32.mrb[35].mxu1  ;;  %v3282_v53 = vmax.f32 %v2364_v42, 0.0 }
 0x347   :  { %v3283_v54 = vmax.f32 %v2367_v48, 0.0  ;;  %v3453_v55 = vmax.f32 %v3047_v51, 0.0 }
 0x349   :  { %v6551_v56 = vpack.c.bf16 %v3283_v54, %v3282_v53  ;;  %v6976_v57 = vpack.c.bf16 %v3453_v55, %v3452_v50 }
 0x34a   :  { %v2371_v58 = vpop.f32.mrb[36].mxu0  ;;  %v3051_v59 = vpop.f32.mrb[36].mxu1 }
 0x34b   :  { %7104 = vst [vmem:[%s10202_s3 + $0x240] sm:$0xff] %v6551_v56   ;;  %7189 = vst [vmem:[%s10202_s3 + $0x4e8] sm:$0xff] %v6976_v57   ;;  %v2372_v61 = vadd.f32 %v9955_v25, %v2371_v58  ;;  %v7667_v62 = vpop.f32.mrb[37].mxu0  ;;  %v3052_v63 = vadd.f32 %v9955_v25, %v3051_v59  ;;  %v8007_v1 = vpop.f32.mrb[37].mxu1 }
 0x34c   :  { %v2374_v2 = vpop.f32.mrb[38].mxu0  ;;  %v3054_v3 = vpop.f32.mrb[38].mxu1 }
 0x34d   :  { %v2375_v4 = vadd.f32 %v9955_v25, %v2374_v2  ;;  %v7668_v5 = vpop.f32.mrb[39].mxu0  ;;  %v3454_v6 = vmax.f32 %v3052_v63, 0.0  ;;  %v3055_v7 = vadd.f32 %v9955_v25, %v3054_v3  ;;  %v8008_v8 = vpop.f32.mrb[39].mxu1  ;;  %v3284_v9 = vmax.f32 %v2372_v61, 0.0 }
 0x34f   :  { %v3285_v10 = vmax.f32 %v2375_v4, 0.0  ;;  %v3455_v11 = vmax.f32 %v3055_v7, 0.0 }
 0x351   :  { %v6556_v12 = vpack.c.bf16 %v3285_v10, %v3284_v9  ;;  %v6981_v13 = vpack.c.bf16 %v3455_v11, %v3454_v6 }
 0x352   :  { %v2379_v14 = vpop.f32.mrb[40].mxu0  ;;  %v3059_v15 = vpop.f32.mrb[40].mxu1 }
 0x353   :  { %7105 = vst [vmem:[%s10202_s3 + $0x248] sm:$0xff] %v6556_v12   ;;  %7190 = vst [vmem:[%s10202_s3 + $0x4f0] sm:$0xff] %v6981_v13   ;;  %v2380_v16 = vadd.f32 %v9955_v25, %v2379_v14  ;;  %v7671_v17 = vpop.f32.mrb[41].mxu0  ;;  %v3060_v18 = vadd.f32 %v9955_v25, %v3059_v15  ;;  %v8011_v19 = vpop.f32.mrb[41].mxu1 }
 0x354   :  { %v2382_v20 = vpop.f32.mrb[42].mxu0  ;;  %v3062_v21 = vpop.f32.mrb[42].mxu1 }
 0x355   :  { %v2383_v22 = vadd.f32 %v9955_v25, %v2382_v20  ;;  %v7672_v23 = vpop.f32.mrb[43].mxu0  ;;  %v3456_v24 = vmax.f32 %v3060_v18, 0.0  ;;  %v3063_v26 = vadd.f32 %v9955_v25, %v3062_v21  ;;  %v8012_v0 = vpop.f32.mrb[43].mxu1  ;;  %v3286_v27 = vmax.f32 %v2380_v16, 0.0 }
 0x357   :  { %v3287_v28 = vmax.f32 %v2383_v22, 0.0  ;;  %v3457_v29 = vmax.f32 %v3063_v26, 0.0 }
 0x359   :  { %v6561_v30 = vpack.c.bf16 %v3287_v28, %v3286_v27  ;;  %v6986_v31 = vpack.c.bf16 %v3457_v29, %v3456_v24 }
 0x35a   :  { %v2387_v32 = vpop.f32.mrb[44].mxu0  ;;  %v3067_v33 = vpop.f32.mrb[44].mxu1 }
 0x35b   :  { %7106 = vst [vmem:[%s10202_s3 + $0x250] sm:$0xff] %v6561_v30   ;;  %7191 = vst [vmem:[%s10202_s3 + $0x4f8] sm:$0xff] %v6986_v31   ;;  %v2388_v60 = vadd.f32 %v9955_v25, %v2387_v32  ;;  %v7675_v34 = vpop.f32.mrb[45].mxu0  ;;  %v3068_v35 = vadd.f32 %v9955_v25, %v3067_v33  ;;  %v8015_v36 = vpop.f32.mrb[45].mxu1 }
 0x35c   :  { %v2390_v37 = vpop.f32.mrb[46].mxu0  ;;  %v3070_v38 = vpop.f32.mrb[46].mxu1 }
 0x35d   :  { %v2391_v39 = vadd.f32 %v9955_v25, %v2390_v37  ;;  %v7676_v40 = vpop.f32.mrb[47].mxu0  ;;  %v3458_v41 = vmax.f32 %v3068_v35, 0.0  ;;  %v3071_v42 = vadd.f32 %v9955_v25, %v3070_v38  ;;  %v8016_v43 = vpop.f32.mrb[47].mxu1  ;;  %v3288_v44 = vmax.f32 %v2388_v60, 0.0 }
 0x35f   :  { %v3289_v45 = vmax.f32 %v2391_v39, 0.0  ;;  %v3459_v46 = vmax.f32 %v3071_v42, 0.0 }
 0x361   :  { %v6566_v47 = vpack.c.bf16 %v3289_v45, %v3288_v44  ;;  %v6991_v48 = vpack.c.bf16 %v3459_v46, %v3458_v41 }
 0x362   :  { %v2395_v49 = vpop.f32.mrb[48].mxu0  ;;  %v3075_v50 = vpop.f32.mrb[48].mxu1 }
 0x363   :  { %7107 = vst [vmem:[%s10202_s3 + $0x258] sm:$0xff] %v6566_v47   ;;  %7192 = vst [vmem:[%s10202_s3 + $0x500] sm:$0xff] %v6991_v48   ;;  %v2396_v51 = vadd.f32 %v9955_v25, %v2395_v49  ;;  %v7679_v52 = vpop.f32.mrb[49].mxu0  ;;  %v3076_v53 = vadd.f32 %v9955_v25, %v3075_v50  ;;  %v8019_v54 = vpop.f32.mrb[49].mxu1 }
 0x364   :  { %v2398_v55 = vpop.f32.mrb[50].mxu0  ;;  %v3078_v56 = vpop.f32.mrb[50].mxu1 }
 0x365   :  { %v2399_v57 = vadd.f32 %v9955_v25, %v2398_v55  ;;  %v7680_v58 = vpop.f32.mrb[51].mxu0  ;;  %v3460_v59 = vmax.f32 %v3076_v53, 0.0  ;;  %v3079_v61 = vadd.f32 %v9955_v25, %v3078_v56  ;;  %v8020_v62 = vpop.f32.mrb[51].mxu1  ;;  %v3290_v63 = vmax.f32 %v2396_v51, 0.0 }
 0x367   :  { %v3291_v1 = vmax.f32 %v2399_v57, 0.0  ;;  %v3461_v2 = vmax.f32 %v3079_v61, 0.0 }
 0x369   :  { %v6571_v3 = vpack.c.bf16 %v3291_v1, %v3290_v63  ;;  %v6996_v4 = vpack.c.bf16 %v3461_v2, %v3460_v59 }
 0x36a   :  { %v2403_v5 = vpop.f32.mrb[52].mxu0  ;;  %v3083_v6 = vpop.f32.mrb[52].mxu1 }
 0x36b   :  { %7108 = vst [vmem:[%s10202_s3 + $0x260] sm:$0xff] %v6571_v3   ;;  %7193 = vst [vmem:[%s10202_s3 + $0x508] sm:$0xff] %v6996_v4   ;;  %v2404_v7 = vadd.f32 %v9955_v25, %v2403_v5  ;;  %v7683_v8 = vpop.f32.mrb[53].mxu0  ;;  %v3084_v9 = vadd.f32 %v9955_v25, %v3083_v6  ;;  %v8023_v10 = vpop.f32.mrb[53].mxu1 }
 0x36c   :  { %v2406_v11 = vpop.f32.mrb[54].mxu0  ;;  %v3086_v12 = vpop.f32.mrb[54].mxu1 }
 0x36d   :  { %v2407_v13 = vadd.f32 %v9955_v25, %v2406_v11  ;;  %v7684_v14 = vpop.f32.mrb[55].mxu0  ;;  %v3462_v15 = vmax.f32 %v3084_v9, 0.0  ;;  %v3087_v16 = vadd.f32 %v9955_v25, %v3086_v12  ;;  %v8024_v17 = vpop.f32.mrb[55].mxu1  ;;  %v3292_v18 = vmax.f32 %v2404_v7, 0.0 }
 0x36f   :  { %v3293_v19 = vmax.f32 %v2407_v13, 0.0  ;;  %v3463_v20 = vmax.f32 %v3087_v16, 0.0 }
 0x371   :  { %v6576_v21 = vpack.c.bf16 %v3293_v19, %v3292_v18  ;;  %v7001_v22 = vpack.c.bf16 %v3463_v20, %v3462_v15 }
 0x372   :  { %v2411_v23 = vpop.f32.mrb[56].mxu0  ;;  %v3091_v24 = vpop.f32.mrb[56].mxu1 }
 0x373   :  { %7109 = vst [vmem:[%s10202_s3 + $0x268] sm:$0xff] %v6576_v21   ;;  %7194 = vst [vmem:[%s10202_s3 + $0x510] sm:$0xff] %v7001_v22   ;;  %v2412_v26 = vadd.f32 %v9955_v25, %v2411_v23  ;;  %v7687_v0 = vpop.f32.mrb[57].mxu0  ;;  %v3092_v27 = vadd.f32 %v9955_v25, %v3091_v24  ;;  %v8027_v28 = vpop.f32.mrb[57].mxu1 }
 0x374   :  { %v2414_v29 = vpop.f32.mrb[58].mxu0  ;;  %v3094_v30 = vpop.f32.mrb[58].mxu1 }
 0x375   :  { %v2415_v31 = vadd.f32 %v9955_v25, %v2414_v29  ;;  %v7688_v32 = vpop.f32.mrb[59].mxu0  ;;  %v3464_v33 = vmax.f32 %v3092_v27, 0.0  ;;  %v3095_v60 = vadd.f32 %v9955_v25, %v3094_v30  ;;  %v8028_v34 = vpop.f32.mrb[59].mxu1  ;;  %v3294_v35 = vmax.f32 %v2412_v26, 0.0 }
 0x377   :  { %v3295_v36 = vmax.f32 %v2415_v31, 0.0  ;;  %v3465_v37 = vmax.f32 %v3095_v60, 0.0 }
 0x379   :  { %v6581_v38 = vpack.c.bf16 %v3295_v36, %v3294_v35  ;;  %v7006_v39 = vpack.c.bf16 %v3465_v37, %v3464_v33 }
 0x37a   :  { %v2419_v40 = vpop.f32.mrb[60].mxu0  ;;  %v3099_v41 = vpop.f32.mrb[60].mxu1 }
 0x37b   :  { %7110 = vst [vmem:[%s10202_s3 + $0x270] sm:$0xff] %v6581_v38   ;;  %7195 = vst [vmem:[%s10202_s3 + $0x518] sm:$0xff] %v7006_v39   ;;  %v2420_v42 = vadd.f32 %v9955_v25, %v2419_v40  ;;  %v7691_v43 = vpop.f32.mrb[61].mxu0  ;;  %v3100_v44 = vadd.f32 %v9955_v25, %v3099_v41  ;;  %v8031_v45 = vpop.f32.mrb[61].mxu1 }
 0x37c   :  { %v2422_v46 = vpop.f32.mrb[62].mxu0  ;;  %v3102_v47 = vpop.f32.mrb[62].mxu1 }
 0x37d   :  { %v2423_v48 = vadd.f32 %v9955_v25, %v2422_v46  ;;  %v7692_v49 = vpop.f32.mrb[63].mxu0  ;;  %v3466_v50 = vmax.f32 %v3100_v44, 0.0  ;;  %v3103_v51 = vadd.f32 %v9955_v25, %v3102_v47  ;;  %v8032_v52 = vpop.f32.mrb[63].mxu1  ;;  %v3296_v53 = vmax.f32 %v2420_v42, 0.0 }
 0x37f   :  { %v3297_v54 = vmax.f32 %v2423_v48, 0.0  ;;  %v3467_v55 = vmax.f32 %v3103_v51, 0.0 }
 0x381   :  { %v6586_v56 = vpack.c.bf16 %v3297_v54, %v3296_v53  ;;  %v7011_v57 = vpack.c.bf16 %v3467_v55, %v3466_v50 }
 0x382   :  { %v2427_v58 = vpop.f32.mrb[64].mxu0  ;;  %v3107_v59 = vpop.f32.mrb[64].mxu1 }
 0x383   :  { %7111 = vst [vmem:[%s10202_s3 + $0x278] sm:$0xff] %v6586_v56   ;;  %7196 = vst [vmem:[%s10202_s3 + $0x520] sm:$0xff] %v7011_v57   ;;  %v2428_v61 = vadd.f32 %v9955_v25, %v2427_v58  ;;  %v7695_v62 = vpop.f32.mrb[65].mxu0  ;;  %v3108_v63 = vadd.f32 %v9955_v25, %v3107_v59  ;;  %v8035_v1 = vpop.f32.mrb[65].mxu1 }
 0x384   :  { %v2430_v2 = vpop.f32.mrb[66].mxu0  ;;  %v3110_v3 = vpop.f32.mrb[66].mxu1 }
 0x385   :  { %v2431_v4 = vadd.f32 %v9955_v25, %v2430_v2  ;;  %v7696_v5 = vpop.f32.mrb[67].mxu0  ;;  %v3468_v6 = vmax.f32 %v3108_v63, 0.0  ;;  %v3111_v7 = vadd.f32 %v9955_v25, %v3110_v3  ;;  %v8036_v8 = vpop.f32.mrb[67].mxu1  ;;  %v3298_v9 = vmax.f32 %v2428_v61, 0.0 }
 0x387   :  { %v3299_v10 = vmax.f32 %v2431_v4, 0.0  ;;  %v3469_v11 = vmax.f32 %v3111_v7, 0.0 }
 0x389   :  { %v6591_v12 = vpack.c.bf16 %v3299_v10, %v3298_v9  ;;  %v7016_v13 = vpack.c.bf16 %v3469_v11, %v3468_v6 }
 0x38a   :  { %v2435_v14 = vpop.f32.mrb[68].mxu0  ;;  %v3115_v15 = vpop.f32.mrb[68].mxu1 }
 0x38b   :  { %7112 = vst [vmem:[%s10202_s3 + $0x280] sm:$0xff] %v6591_v12   ;;  %7197 = vst [vmem:[%s10202_s3 + $0x528] sm:$0xff] %v7016_v13   ;;  %v2436_v16 = vadd.f32 %v9955_v25, %v2435_v14  ;;  %v7699_v17 = vpop.f32.mrb[69].mxu0  ;;  %v3116_v18 = vadd.f32 %v9955_v25, %v3115_v15  ;;  %v8039_v19 = vpop.f32.mrb[69].mxu1 }
 0x38c   :  { %v2438_v20 = vpop.f32.mrb[70].mxu0  ;;  %v3118_v21 = vpop.f32.mrb[70].mxu1 }
 0x38d   :  { %v2439_v22 = vadd.f32 %v9955_v25, %v2438_v20  ;;  %v7700_v23 = vpop.f32.mrb[71].mxu0  ;;  %v3470_v24 = vmax.f32 %v3116_v18, 0.0  ;;  %v3119_v26 = vadd.f32 %v9955_v25, %v3118_v21  ;;  %v8040_v0 = vpop.f32.mrb[71].mxu1  ;;  %v3300_v27 = vmax.f32 %v2436_v16, 0.0 }
 0x38f   :  { %v3301_v28 = vmax.f32 %v2439_v22, 0.0  ;;  %v3471_v29 = vmax.f32 %v3119_v26, 0.0 }
 0x391   :  { %v6596_v30 = vpack.c.bf16 %v3301_v28, %v3300_v27  ;;  %v7021_v31 = vpack.c.bf16 %v3471_v29, %v3470_v24 }
 0x392   :  { %v2443_v32 = vpop.f32.mrb[72].mxu0  ;;  %v3123_v33 = vpop.f32.mrb[72].mxu1 }
 0x393   :  { %7113 = vst [vmem:[%s10202_s3 + $0x288] sm:$0xff] %v6596_v30   ;;  %7198 = vst [vmem:[%s10202_s3 + $0x530] sm:$0xff] %v7021_v31   ;;  %v2444_v60 = vadd.f32 %v9955_v25, %v2443_v32  ;;  %v7703_v34 = vpop.f32.mrb[73].mxu0  ;;  %v3124_v35 = vadd.f32 %v9955_v25, %v3123_v33  ;;  %v8043_v36 = vpop.f32.mrb[73].mxu1 }
 0x394   :  { %v2446_v37 = vpop.f32.mrb[74].mxu0  ;;  %v3126_v38 = vpop.f32.mrb[74].mxu1 }
 0x395   :  { %v2447_v39 = vadd.f32 %v9955_v25, %v2446_v37  ;;  %v7704_v40 = vpop.f32.mrb[75].mxu0  ;;  %v3472_v41 = vmax.f32 %v3124_v35, 0.0  ;;  %v3127_v42 = vadd.f32 %v9955_v25, %v3126_v38  ;;  %v8044_v43 = vpop.f32.mrb[75].mxu1  ;;  %v3302_v44 = vmax.f32 %v2444_v60, 0.0 }
 0x397   :  { %v3303_v45 = vmax.f32 %v2447_v39, 0.0  ;;  %v3473_v46 = vmax.f32 %v3127_v42, 0.0 }
 0x399   :  { %v6601_v47 = vpack.c.bf16 %v3303_v45, %v3302_v44  ;;  %v7026_v48 = vpack.c.bf16 %v3473_v46, %v3472_v41 }
 0x39a   :  { %v2451_v49 = vpop.f32.mrb[76].mxu0  ;;  %v3131_v50 = vpop.f32.mrb[76].mxu1 }
 0x39b   :  { %7114 = vst [vmem:[%s10202_s3 + $0x290] sm:$0xff] %v6601_v47   ;;  %7199 = vst [vmem:[%s10202_s3 + $0x538] sm:$0xff] %v7026_v48   ;;  %v2452_v51 = vadd.f32 %v9955_v25, %v2451_v49  ;;  %v7707_v52 = vpop.f32.mrb[77].mxu0  ;;  %v3132_v53 = vadd.f32 %v9955_v25, %v3131_v50  ;;  %v8047_v54 = vpop.f32.mrb[77].mxu1 }
 0x39c   :  { %v2454_v55 = vpop.f32.mrb[78].mxu0  ;;  %v3134_v56 = vpop.f32.mrb[78].mxu1 }
 0x39d   :  { %v2455_v57 = vadd.f32 %v9955_v25, %v2454_v55  ;;  %v7708_v58 = vpop.f32.mrb[79].mxu0  ;;  %v3474_v59 = vmax.f32 %v3132_v53, 0.0  ;;  %v3135_v61 = vadd.f32 %v9955_v25, %v3134_v56  ;;  %v8048_v62 = vpop.f32.mrb[79].mxu1  ;;  %v3304_v63 = vmax.f32 %v2452_v51, 0.0 }
 0x39f   :  { %v3305_v1 = vmax.f32 %v2455_v57, 0.0  ;;  %v3475_v2 = vmax.f32 %v3135_v61, 0.0 }
 0x3a1   :  { %v6606_v3 = vpack.c.bf16 %v3305_v1, %v3304_v63  ;;  %v7031_v4 = vpack.c.bf16 %v3475_v2, %v3474_v59 }
 0x3a2   :  { %v2459_v5 = vpop.f32.mrb[80].mxu0 }
 0x3a3   :  { %7115 = vst [vmem:[%s10202_s3 + $0x298] sm:$0xff] %v6606_v3   ;;  %7200 = vst [vmem:[%s10202_s3 + $0x540] sm:$0xff] %v7031_v4   ;;  %v2460_v6 = vadd.f32 %v9955_v25, %v2459_v5  ;;  %v7711_v7 = vpop.f32.mrb[81].mxu0 }
 0x3a4   :  { %v2462_v8 = vpop.f32.mrb[82].mxu0 }
 0x3a5   :  { %v2463_v9 = vadd.f32 %v9955_v25, %v2462_v8  ;;  %v7712_v10 = vpop.f32.mrb[83].mxu0  ;;  %v3306_v11 = vmax.f32 %v2460_v6, 0.0 }
 0x3a7   :  { %v3307_v12 = vmax.f32 %v2463_v9, 0.0 }
 0x3a9   :  { %v6611_v13 = vpack.c.bf16 %v3307_v12, %v3306_v11 }
 0x3ab   :  { %7116 = vst [vmem:[%s10202_s3 + $0x2a0] sm:$0xff] %v6611_v13  }
 0x3ac   :  { %5170 = vsyncpa [#allocation3], 1 }
 0x3ad   :  { %5171 = vsyncpa [#allocation5], 1 }

// kernel: siamese_forward.5
= control target key start
LH: loop header
LB: loop body
LE: loop exit
PB: predicated region body
PF: predicated region fallthrough
CT: control target
= control target key end

     0   :  { %v2669_v0 = vmov 0   ;;  %v2670_v2 = vmov 0.0   ;;  %vm2671_vm0 = vmmov 0   ;;  %vm755_vm1 = vcmask 261120   ;;  %s3482_s1 = inlined_call_operand.vmem [shape: bf16[288,128], index: 1, kind: input, shape index: {}]   ;;  %s3483_s0 = inlined_call_operand.vmem [shape: bf16[496,288], index: 0, kind: input, shape index: {}]   ;;  %s3484_s2 = inlined_call_operand.vmem [shape: f32[1,128], index: 2, kind: input, shape index: {}]   ;;  %s3485_s3 = inlined_call_operand.vmem [shape: bf16[496,128], index: 3, kind: output, shape index: {}]  }
   0x1   :  { %849 = vmatprep.subr.bf16.mxu1 %v2669_v0  ;;  %v2527_v1 = vld [vmem:[%s3482_s1] sm:$0xff]   ;;  %2272 = vmatprep.subr.bf16.mxu0 %v2670_v2  ;;  %v2528_v3 = vld [vmem:[%s3482_s1 + $0x8] sm:$0xff]   ;;  %v2529_v4 = vld [vmem:[%s3482_s1 + $0x10] sm:$0xff]  }
   0x2   :  { %2276 = vmatprep.mubr.msk.bf16.mxu0 %vm2671_vm0, %v2670_v2  ;;  %850 = vmatpush1.bf16.msra.mxu1 %v2527_v1  ;;  %v2530_v5 = vld [vmem:[%s3482_s1 + $0x18] sm:$0xff]   ;;  %v2531_v6 = vld [vmem:[%s3482_s1 + $0x20] sm:$0xff]   ;;  %v2543_v8 = vld [vmem:[%s3482_s1 + $0x88] sm:$0xff]  }
   0x3   :  { %851 = vmatprep.subr.bf16.mxu1 %v2669_v0  ;;  %v2541_v7 = vld [vmem:[%s3482_s1 + $0x80] sm:$0xff]   ;;  %v2532_v9 = vld [vmem:[%s3482_s1 + $0x28] sm:$0xff]   ;;  %v2533_v12 = vld [vmem:[%s3482_s1 + $0x30] sm:$0xff]  }
   0x4   :  { %2273 = vmatpush3.bf16.msra.mxu0 %v2541_v7  ;;  %v2547_v10 = vld [vmem:[%s3483_s0 + $0x4] ss:$12 sps:$4 sm:$0xff]   ;;  %v2548_v11 = vld [vmem:[%s3483_s0 + $0x8] ss:$12 sps:$4 sm:$0xff]   ;;  %v2534_v13 = vld [vmem:[%s3482_s1 + $0x38] sm:$0xff]  }
   0x5   :  { %2274 = vmatprep.subr.bf16.mxu0 %v2670_v2  ;;  %881 = vmatprep.mubr.bf16.mxu1 %v2547_v10  ;;  %v2551_v14 = vld [vmem:[%s3483_s0 + $0x20] ss:$12 sps:$4 sm:$0xff]   ;;  %v2555_v17 = vld [vmem:[%s3483_s0 + $0x38] ss:$12 sps:$4 sm:$0xff]   ;;  %v2537_v18 = vld [vmem:[%s3482_s1 + $0x50] sm:$0xff]  }
   0x6   :  { %852 = vmatpush1.bf16.msra.mxu1 %v2528_v3  ;;  %v2535_v15 = vld [vmem:[%s3482_s1 + $0x40] sm:$0xff]   ;;  %v2536_v16 = vld [vmem:[%s3482_s1 + $0x48] sm:$0xff]   ;;  %v2538_v19 = vld [vmem:[%s3482_s1 + $0x58] sm:$0xff]  }
   0x7   :  { %853 = vmatprep.subr.bf16.mxu1 %v2669_v0  ;;  %v2559_v20 = vld [vmem:[%s3483_s0 + $0x50] ss:$12 sps:$4 sm:$0xff]   ;;  %v2539_v21 = vld [vmem:[%s3482_s1 + $0x60] sm:$0xff]   ;;  %v2540_v22 = vld [vmem:[%s3482_s1 + $0x68] sm:$0xff]  }
   0x8   :  { %2275 = vmatpush3.bf16.msra.mxu0 %v2543_v8  ;;  %v2563_v23 = vld [vmem:[%s3483_s0 + $0x68] ss:$12 sps:$4 sm:$0xff]   ;;  %v2544_v25 = vld [vmem:[%s3482_s1 + $0x78] sm:$0xff]   ;;  %v2567_v26 = vld [vmem:[%s3483_s0 + $0x80] ss:$12 sps:$4 sm:$0xff]  }
   0x9   :  { %v2542_v24 = vld [vmem:[%s3482_s1 + $0x70] sm:$0xff]   ;;  %v2545_v27 = vld [vmem:[%s3483_s0] ss:$12 sps:$4 sm:$0xff]   ;;  %v2549_v28 = vld [vmem:[%s3483_s0 + $0x1c] ss:$12 sps:$4 sm:$0xff]  }
   0xa   :  { %854 = vmatpush1.bf16.msra.mxu1 %v2529_v4  ;;  %v2571_v29 = vld [vmem:[%s3483_s0 + $0x98] ss:$12 sps:$4 sm:$0xff]   ;;  %v2553_v31 = vld [vmem:[%s3483_s0 + $0x34] ss:$12 sps:$4 sm:$0xff]   ;;  %v2575_v32 = vld [vmem:[%s3483_s0 + $0xb0] ss:$12 sps:$4 sm:$0xff]  }
   0xb   :  { %855 = vmatprep.subr.bf16.mxu1 %v2669_v0  ;;  %2277 = vmatmul.mubr.msk.bf16.vlgmr.msra.gmra.mrb[0].mxu0 %vm755_vm1, %v2548_v11  ;;  %v2552_v30 = vld [vmem:[%s3483_s0 + $0x18] ss:$12 sps:$4 sm:$0xff]   ;;  %v2556_v33 = vld [vmem:[%s3483_s0 + $0x30] ss:$12 sps:$4 sm:$0xff]   ;;  %v2579_v35 = vld [vmem:[%s3483_s0 + $0xc8] ss:$12 sps:$4 sm:$0xff]  }
   0xc   :  { %2280 = vmatprep.mubr.msk.bf16.mxu0 %vm2671_vm0, %v2670_v2  ;;  %v2557_v34 = vld [vmem:[%s3483_s0 + $0x4c] ss:$12 sps:$4 sm:$0xff]   ;;  %v2560_v36 = vld [vmem:[%s3483_s0 + $0x48] ss:$12 sps:$4 sm:$0xff]   ;;  %v2561_v37 = vld [vmem:[%s3483_s0 + $0x64] ss:$12 sps:$4 sm:$0xff]  }
   0xd   :  { %v2583_v38 = vld [vmem:[%s3483_s0 + $0xe0] ss:$12 sps:$4 sm:$0xff]   ;;  %v2565_v40 = vld [vmem:[%s3483_s0 + $0x7c] ss:$12 sps:$4 sm:$0xff]   ;;  %v2587_v41 = vld [vmem:[%s3483_s0 + $0xf8] ss:$12 sps:$4 sm:$0xff]  }
   0xe   :  { %856 = vmatpush1.bf16.msra.mxu1 %v2530_v5  ;;  %v2564_v39 = vld [vmem:[%s3483_s0 + $0x60] ss:$12 sps:$4 sm:$0xff]   ;;  %v2568_v42 = vld [vmem:[%s3483_s0 + $0x78] ss:$12 sps:$4 sm:$0xff]   ;;  %v2591_v44 = vld [vmem:[%s3483_s0 + $0x110] ss:$12 sps:$4 sm:$0xff]  }
   0xf   :  { %857 = vmatprep.subr.bf16.mxu1 %v2669_v0  ;;  %v2569_v43 = vld [vmem:[%s3483_s0 + $0x94] ss:$12 sps:$4 sm:$0xff]   ;;  %v2572_v45 = vld [vmem:[%s3483_s0 + $0x90] ss:$12 sps:$4 sm:$0xff]   ;;  %v2573_v46 = vld [vmem:[%s3483_s0 + $0xac] ss:$12 sps:$4 sm:$0xff]  }
  0x10   :  { %v2595_v47 = vld [vmem:[%s3483_s0 + $0x128] ss:$12 sps:$4 sm:$0xff]   ;;  %v2577_v49 = vld [vmem:[%s3483_s0 + $0xc4] ss:$12 sps:$4 sm:$0xff]   ;;  %v2599_v50 = vld [vmem:[%s3483_s0 + $0x140] ss:$12 sps:$4 sm:$0xff]  }
  0x11   :  { %v2576_v48 = vld [vmem:[%s3483_s0 + $0xa8] ss:$12 sps:$4 sm:$0xff]   ;;  %v2580_v51 = vld [vmem:[%s3483_s0 + $0xc0] ss:$12 sps:$4 sm:$0xff]   ;;  %v2603_v53 = vld [vmem:[%s3483_s0 + $0x158] ss:$12 sps:$4 sm:$0xff]  }
  0x12   :  { %858 = vmatpush1.bf16.msra.mxu1 %v2531_v6  ;;  %v2581_v52 = vld [vmem:[%s3483_s0 + $0xdc] ss:$12 sps:$4 sm:$0xff]   ;;  %v2584_v54 = vld [vmem:[%s3483_s0 + $0xd8] ss:$12 sps:$4 sm:$0xff]   ;;  %v2585_v55 = vld [vmem:[%s3483_s0 + $0xf4] ss:$12 sps:$4 sm:$0xff]  }
  0x13   :  { %859 = vmatprep.subr.bf16.mxu1 %v2669_v0  ;;  %2281 = vmatmul.mubr.msk.bf16.gmra.mrb[4].mxu0 %vm755_vm1, %v2551_v14  ;;  %v2607_v56 = vld [vmem:[%s3483_s0 + $0x170] ss:$12 sps:$4 sm:$0xff]   ;;  %v2589_v58 = vld [vmem:[%s3483_s0 + $0x10c] ss:$12 sps:$4 sm:$0xff]   ;;  %v2611_v59 = vld [vmem:[%s3483_s0 + $0x188] ss:$12 sps:$4 sm:$0xff]  }
  0x14   :  { %2284 = vmatprep.mubr.msk.bf16.mxu0 %vm2671_vm0, %v2670_v2  ;;  %v2588_v57 = vld [vmem:[%s3483_s0 + $0xf0] ss:$12 sps:$4 sm:$0xff]   ;;  %v2592_v60 = vld [vmem:[%s3483_s0 + $0x108] ss:$12 sps:$4 sm:$0xff]   ;;  %v2615_v62 = vld [vmem:[%s3483_s0 + $0x1a0] ss:$12 sps:$4 sm:$0xff]  }
  0x15   :  { %v2593_v61 = vld [vmem:[%s3483_s0 + $0x124] ss:$12 sps:$4 sm:$0xff]   ;;  %v2596_v63 = vld [vmem:[%s3483_s0 + $0x120] ss:$12 sps:$4 sm:$0xff]   ;;  %v2627_v8 = vld [vmem:[%s3483_s0 + $0x1e8] ss:$12 sps:$4 sm:$0xff]  }
  0x16   :  { %860 = vmatpush1.bf16.msra.mxu1 %v2532_v9  ;;  %v2619_v1 = vld [vmem:[%s3483_s0 + $0x1b8] ss:$12 sps:$4 sm:$0xff]   ;;  %v2601_v4 = vld [vmem:[%s3483_s0 + $0x154] ss:$12 sps:$4 sm:$0xff]   ;;  %v2623_v5 = vld [vmem:[%s3483_s0 + $0x1d0] ss:$12 sps:$4 sm:$0xff]  }
  0x17   :  { %861 = vmatprep.subr.bf16.mxu1 %v2669_v0  ;;  %v2600_v3 = vld [vmem:[%s3483_s0 + $0x138] ss:$12 sps:$4 sm:$0xff]   ;;  %v2604_v6 = vld [vmem:[%s3483_s0 + $0x150] ss:$12 sps:$4 sm:$0xff]   ;;  %v2608_v9 = vld [vmem:[%s3483_s0 + $0x168] ss:$12 sps:$4 sm:$0xff]  }
  0x18   :  { %v2605_v7 = vld [vmem:[%s3483_s0 + $0x16c] ss:$12 sps:$4 sm:$0xff]   ;;  %v2609_v10 = vld [vmem:[%s3483_s0 + $0x184] ss:$12 sps:$4 sm:$0xff]  }
  0x19   :  { %v2631_v11 = vld [vmem:[%s3483_s0 + $0x200] ss:$12 sps:$4 sm:$0xff]   ;;  %v2635_v14 = vld [vmem:[%s3483_s0 + $0x218] ss:$12 sps:$4 sm:$0xff]  }
  0x1a   :  { %862 = vmatpush1.bf16.msra.mxu1 %v2533_v12  ;;  %v2612_v12 = vld [vmem:[%s3483_s0 + $0x180] ss:$12 sps:$4 sm:$0xff]  }
  0x1b   :  { %863 = vmatprep.subr.bf16.mxu1 %v2669_v0  ;;  %2285 = vmatmul.mubr.msk.bf16.gmra.mrb[8].mxu0 %vm755_vm1, %v2555_v17  ;;  %v2639_v17 = vld [vmem:[%s3483_s0 + $0x230] ss:$12 sps:$4 sm:$0xff]  }
  0x1c   :  { %2288 = vmatprep.mubr.msk.bf16.mxu0 %vm2671_vm0, %v2670_v2 }
  0x1e   :  { %864 = vmatpush1.bf16.msra.mxu1 %v2534_v13  ;;  %v2613_v13 = vld [vmem:[%s3483_s0 + $0x19c] ss:$12 sps:$4 sm:$0xff]  }
  0x1f   :  { %865 = vmatprep.subr.bf16.mxu1 %v2669_v0 }
  0x22   :  { %866 = vmatpush1.bf16.msra.mxu1 %v2535_v15  ;;  %v2616_v15 = vld [vmem:[%s3483_s0 + $0x198] ss:$12 sps:$4 sm:$0xff]  }
  0x23   :  { %867 = vmatprep.subr.bf16.mxu1 %v2669_v0  ;;  %2289 = vmatmul.mubr.msk.bf16.gmra.mrb[12].mxu0 %vm755_vm1, %v2559_v20  ;;  %v2643_v20 = vld [vmem:[%s3483_s0 + $0x248] ss:$12 sps:$4 sm:$0xff]  }
  0x24   :  { %2292 = vmatprep.mubr.msk.bf16.mxu0 %vm2671_vm0, %v2670_v2 }
  0x26   :  { %868 = vmatpush1.bf16.msra.mxu1 %v2536_v16  ;;  %v2617_v16 = vld [vmem:[%s3483_s0 + $0x1b4] ss:$12 sps:$4 sm:$0xff]  }
  0x27   :  { %869 = vmatprep.subr.bf16.mxu1 %v2669_v0 }
  0x2a   :  { %870 = vmatpush1.bf16.msra.mxu1 %v2537_v18  ;;  %v2620_v18 = vld [vmem:[%s3483_s0 + $0x1b0] ss:$12 sps:$4 sm:$0xff]  }
  0x2b   :  { %871 = vmatprep.subr.bf16.mxu1 %v2669_v0  ;;  %2293 = vmatmul.mubr.msk.bf16.gmra.mrb[16].mxu0 %vm755_vm1, %v2563_v23  ;;  %v2647_v23 = vld [vmem:[%s3483_s0 + $0x260] ss:$12 sps:$4 sm:$0xff]  }
  0x2c   :  { %2296 = vmatprep.mubr.msk.bf16.mxu0 %vm2671_vm0, %v2670_v2 }
  0x2e   :  { %872 = vmatpush1.bf16.msra.mxu1 %v2538_v19  ;;  %v2621_v19 = vld [vmem:[%s3483_s0 + $0x1cc] ss:$12 sps:$4 sm:$0xff]  }
  0x2f   :  { %873 = vmatprep.subr.bf16.mxu1 %v2669_v0 }
  0x32   :  { %874 = vmatpush1.bf16.msra.mxu1 %v2539_v21  ;;  %v2624_v21 = vld [vmem:[%s3483_s0 + $0x1c8] ss:$12 sps:$4 sm:$0xff]  }
  0x33   :  { %875 = vmatprep.subr.bf16.mxu1 %v2669_v0  ;;  %2297 = vmatmul.mubr.msk.bf16.gmra.mrb[20].mxu0 %vm755_vm1, %v2567_v26  ;;  %v2651_v26 = vld [vmem:[%s3483_s0 + $0x278] ss:$12 sps:$4 sm:$0xff]  }
  0x34   :  { %2300 = vmatprep.mubr.msk.bf16.mxu0 %vm2671_vm0, %v2670_v2 }
  0x36   :  { %876 = vmatpush1.bf16.msra.mxu1 %v2540_v22  ;;  %v2625_v22 = vld [vmem:[%s3483_s0 + $0x1e4] ss:$12 sps:$4 sm:$0xff]  }
  0x37   :  { %877 = vmatprep.subr.bf16.mxu1 %v2669_v0 }
  0x3a   :  { %878 = vmatpush1.bf16.msra.mxu1 %v2542_v24  ;;  %v2628_v24 = vld [vmem:[%s3483_s0 + $0x1e0] ss:$12 sps:$4 sm:$0xff]  }
  0x3b   :  { %879 = vmatprep.subr.bf16.mxu1 %v2669_v0  ;;  %2301 = vmatmul.mubr.msk.bf16.gmra.mrb[24].mxu0 %vm755_vm1, %v2571_v29  ;;  %v2597_v0 = vld [vmem:[%s3483_s0 + $0x13c] ss:$12 sps:$4 sm:$0xff]  }
  0x3c   :  { %2304 = vmatprep.mubr.msk.bf16.mxu0 %vm2671_vm0, %v2670_v2 }
  0x3e   :  { %880 = vmatpush1.bf16.msra.mxu1 %v2544_v25  ;;  %v2629_v25 = vld [vmem:[%s3483_s0 + $0x1fc] ss:$12 sps:$4 sm:$0xff]  }
  0x41   :  { %882 = vmatmul.mubr.bf16.vlgmr.msra.gmra.mrb[0].mxu1 %v2545_v27  ;;  %v2632_v27 = vld [vmem:[%s3483_s0 + $0x1f8] ss:$12 sps:$4 sm:$0xff]  }
  0x42   :  { %889 = vmatprep.mubr.bf16.mxu1 %v2549_v28  ;;  %v2633_v28 = vld [vmem:[%s3483_s0 + $0x214] ss:$12 sps:$4 sm:$0xff]  }
  0x43   :  { %2305 = vmatmul.mubr.msk.bf16.gmra.mrb[28].mxu0 %vm755_vm1, %v2575_v32 }
  0x44   :  { %2308 = vmatprep.mubr.msk.bf16.mxu0 %vm2671_vm0, %v2670_v2 }
  0x49   :  { %890 = vmatmul.mubr.bf16.gmra.mrb[4].mxu1 %v2552_v30 }
  0x4a   :  { %897 = vmatprep.mubr.bf16.mxu1 %v2553_v31  ;;  %v2655_v31 = vld [vmem:[%s3483_s0 + $0x290] ss:$12 sps:$4 sm:$0xff]  }
  0x4b   :  { %2309 = vmatmul.mubr.msk.bf16.gmra.mrb[32].mxu0 %vm755_vm1, %v2579_v35  ;;  %v2637_v35 = vld [vmem:[%s3483_s0 + $0x22c] ss:$12 sps:$4 sm:$0xff]  }
  0x4c   :  { %2312 = vmatprep.mubr.msk.bf16.mxu0 %vm2671_vm0, %v2670_v2 }
  0x51   :  { %898 = vmatmul.mubr.bf16.gmra.mrb[8].mxu1 %v2556_v33  ;;  %v2636_v33 = vld [vmem:[%s3483_s0 + $0x210] ss:$12 sps:$4 sm:$0xff]  }
  0x52   :  { %905 = vmatprep.mubr.bf16.mxu1 %v2557_v34 }
  0x53   :  { %2313 = vmatmul.mubr.msk.bf16.gmra.mrb[36].mxu0 %vm755_vm1, %v2583_v38  ;;  %v2659_v38 = vld [vmem:[%s3483_s0 + $0x2a8] ss:$12 sps:$4 sm:$0xff]  }
  0x54   :  { %2316 = vmatprep.mubr.msk.bf16.mxu0 %vm2671_vm0, %v2670_v2 }
  0x59   :  { %906 = vmatmul.mubr.bf16.gmra.mrb[12].mxu1 %v2560_v36 }
  0x5a   :  { %913 = vmatprep.mubr.bf16.mxu1 %v2561_v37 }
  0x5b   :  { %2317 = vmatmul.mubr.msk.bf16.gmra.mrb[40].mxu0 %vm755_vm1, %v2587_v41 }
  0x5c   :  { %2320 = vmatprep.mubr.msk.bf16.mxu0 %vm2671_vm0, %v2670_v2 }
  0x61   :  { %914 = vmatmul.mubr.bf16.gmra.mrb[16].mxu1 %v2564_v39 }
  0x62   :  { %921 = vmatprep.mubr.bf16.mxu1 %v2565_v40  ;;  %v2640_v40 = vld [vmem:[%s3483_s0 + $0x228] ss:$12 sps:$4 sm:$0xff]  }
  0x63   :  { %2321 = vmatmul.mubr.msk.bf16.gmra.mrb[44].mxu0 %vm755_vm1, %v2591_v44 }
  0x64   :  { %2324 = vmatprep.mubr.msk.bf16.mxu0 %vm2671_vm0, %v2670_v2 }
  0x69   :  { %922 = vmatmul.mubr.bf16.gmra.mrb[20].mxu1 %v2568_v42  ;;  %v2641_v42 = vld [vmem:[%s3483_s0 + $0x244] ss:$12 sps:$4 sm:$0xff]  }
  0x6a   :  { %929 = vmatprep.mubr.bf16.mxu1 %v2569_v43 }
  0x6b   :  { %2325 = vmatmul.mubr.msk.bf16.gmra.mrb[48].mxu0 %vm755_vm1, %v2595_v47  ;;  %v2644_v47 = vld [vmem:[%s3483_s0 + $0x240] ss:$12 sps:$4 sm:$0xff]  }
  0x6c   :  { %2328 = vmatprep.mubr.msk.bf16.mxu0 %vm2671_vm0, %v2670_v2 }
  0x71   :  { %930 = vmatmul.mubr.bf16.gmra.mrb[24].mxu1 %v2572_v45  ;;  %v2663_v45 = vld [vmem:[%s3483_s0 + $0x2c0] ss:$12 sps:$4 sm:$0xff]  }
  0x72   :  { %937 = vmatprep.mubr.bf16.mxu1 %v2573_v46 }
  0x73   :  { %2329 = vmatmul.mubr.msk.bf16.gmra.mrb[52].mxu0 %vm755_vm1, %v2599_v50 }
  0x74   :  { %2332 = vmatprep.mubr.msk.bf16.mxu0 %vm2671_vm0, %v2670_v2 }
  0x79   :  { %938 = vmatmul.mubr.bf16.gmra.mrb[28].mxu1 %v2576_v48 }
  0x7a   :  { %945 = vmatprep.mubr.bf16.mxu1 %v2577_v49  ;;  %v2645_v49 = vld [vmem:[%s3483_s0 + $0x25c] ss:$12 sps:$4 sm:$0xff]  }
  0x7b   :  { %2333 = vmatmul.mubr.msk.bf16.gmra.mrb[56].mxu0 %vm755_vm1, %v2603_v53 }
  0x7c   :  { %2336 = vmatprep.mubr.msk.bf16.mxu0 %vm2671_vm0, %v2670_v2 }
  0x81   :  { %946 = vmatmul.mubr.bf16.gmra.mrb[32].mxu1 %v2580_v51 }
  0x82   :  { %953 = vmatprep.mubr.bf16.mxu1 %v2581_v52  ;;  %v2667_v52 = vld [vmem:[%s3483_s0 + $0x2d8] ss:$12 sps:$4 sm:$0xff]  }
  0x83   :  { %2337 = vmatmul.mubr.msk.bf16.gmra.mrb[60].mxu0 %vm755_vm1, %v2607_v56 }
  0x84   :  { %2340 = vmatprep.mubr.msk.bf16.mxu0 %vm2671_vm0, %v2670_v2 }
  0x89   :  { %954 = vmatmul.mubr.bf16.gmra.mrb[36].mxu1 %v2584_v54  ;;  %v2648_v54 = vld [vmem:[%s3483_s0 + $0x258] ss:$12 sps:$4 sm:$0xff]  }
  0x8a   :  { %961 = vmatprep.mubr.bf16.mxu1 %v2585_v55 }
  0x8b   :  { %2341 = vmatmul.mubr.msk.bf16.gmra.mrb[64].mxu0 %vm755_vm1, %v2611_v59  ;;  %v2652_v59 = vld [vmem:[%s3483_s0 + $0x270] ss:$12 sps:$4 sm:$0xff]  }
  0x8c   :  { %2344 = vmatprep.mubr.msk.bf16.mxu0 %vm2671_vm0, %v2670_v2 }
  0x91   :  { %962 = vmatmul.mubr.bf16.gmra.mrb[40].mxu1 %v2588_v57 }
  0x92   :  { %969 = vmatprep.mubr.bf16.mxu1 %v2589_v58 }
  0x93   :  { %2345 = vmatmul.mubr.msk.bf16.gmra.mrb[68].mxu0 %vm755_vm1, %v2615_v62  ;;  %v3138_v62 = vld [vmem:[%s3484_s2] ss:$0 sm:$0xff] }
  0x94   :  { %2348 = vmatprep.mubr.msk.bf16.mxu0 %vm2671_vm0, %v2670_v2 }
  0x99   :  { %970 = vmatmul.mubr.bf16.gmra.mrb[44].mxu1 %v2592_v60 }
  0x9a   :  { %977 = vmatprep.mubr.bf16.mxu1 %v2593_v61  ;;  %v2653_v61 = vld [vmem:[%s3483_s0 + $0x28c] ss:$12 sps:$4 sm:$0xff]  }
  0x9b   :  { %2349 = vmatmul.mubr.msk.bf16.gmra.mrb[72].mxu0 %vm755_vm1, %v2619_v1 }
  0x9c   :  { %2352 = vmatprep.mubr.msk.bf16.mxu0 %vm2671_vm0, %v2670_v2 }
  0xa1   :  { %978 = vmatmul.mubr.bf16.gmra.mrb[48].mxu1 %v2596_v63 }
  0xa2   :  { %985 = vmatprep.mubr.bf16.mxu1 %v2597_v0 }
  0xa3   :  { %2353 = vmatmul.mubr.msk.bf16.gmra.mrb[76].mxu0 %vm755_vm1, %v2623_v5 }
  0xa4   :  { %2356 = vmatprep.mubr.msk.bf16.mxu0 %vm2671_vm0, %v2670_v2 }
  0xa9   :  { %986 = vmatmul.mubr.bf16.gmra.mrb[52].mxu1 %v2600_v3 }
  0xaa   :  { %993 = vmatprep.mubr.bf16.mxu1 %v2601_v4 }
  0xab   :  { %2357 = vmatmul.mubr.msk.bf16.gmra.mrb[80].mxu0 %vm755_vm1, %v2627_v8 }
  0xac   :  { %2360 = vmatprep.mubr.msk.bf16.mxu0 %vm2671_vm0, %v2670_v2 }
  0xb1   :  { %994 = vmatmul.mubr.bf16.gmra.mrb[56].mxu1 %v2604_v6  ;;  %v2656_v6 = vld [vmem:[%s3483_s0 + $0x288] ss:$12 sps:$4 sm:$0xff]  }
  0xb2   :  { %1001 = vmatprep.mubr.bf16.mxu1 %v2605_v7 }
  0xb3   :  { %2361 = vmatmul.mubr.msk.bf16.gmra.mrb[84].mxu0 %vm755_vm1, %v2631_v11 }
  0xb4   :  { %2364 = vmatprep.mubr.msk.bf16.mxu0 %vm2671_vm0, %v2670_v2 }
  0xb9   :  { %1002 = vmatmul.mubr.bf16.gmra.mrb[60].mxu1 %v2608_v9  ;;  %v2657_v9 = vld [vmem:[%s3483_s0 + $0x2a4] ss:$12 sps:$4 sm:$0xff]  }
  0xba   :  { %1009 = vmatprep.mubr.bf16.mxu1 %v2609_v10 }
  0xbb   :  { %2365 = vmatmul.mubr.msk.bf16.gmra.mrb[88].mxu0 %vm755_vm1, %v2635_v14 }
  0xbc   :  { %2368 = vmatprep.mubr.msk.bf16.mxu0 %vm2671_vm0, %v2670_v2 }
  0xc1   :  { %1010 = vmatmul.mubr.bf16.gmra.mrb[64].mxu1 %v2612_v12 }
  0xc2   :  { %1017 = vmatprep.mubr.bf16.mxu1 %v2613_v13 }
  0xc3   :  { %2369 = vmatmul.mubr.msk.bf16.gmra.mrb[92].mxu0 %vm755_vm1, %v2639_v17 }
  0xc4   :  { %2372 = vmatprep.mubr.msk.bf16.mxu0 %vm2671_vm0, %v2670_v2 }
  0xc9   :  { %1018 = vmatmul.mubr.bf16.gmra.mrb[68].mxu1 %v2616_v15 }
  0xca   :  { %1025 = vmatprep.mubr.bf16.mxu1 %v2617_v16 }
  0xcb   :  { %2373 = vmatmul.mubr.msk.bf16.gmra.mrb[96].mxu0 %vm755_vm1, %v2643_v20 }
  0xcc   :  { %2376 = vmatprep.mubr.msk.bf16.mxu0 %vm2671_vm0, %v2670_v2 }
  0xd1   :  { %1026 = vmatmul.mubr.bf16.gmra.mrb[72].mxu1 %v2620_v18 }
  0xd2   :  { %1033 = vmatprep.mubr.bf16.mxu1 %v2621_v19 }
  0xd3   :  { %2377 = vmatmul.mubr.msk.bf16.gmra.mrb[100].mxu0 %vm755_vm1, %v2647_v23  ;;  %v2660_v23 = vld [vmem:[%s3483_s0 + $0x2a0] ss:$12 sps:$4 sm:$0xff]  }
  0xd4   :  { %2380 = vmatprep.mubr.msk.bf16.mxu0 %vm2671_vm0, %v2670_v2 }
  0xd9   :  { %1034 = vmatmul.mubr.bf16.gmra.mrb[76].mxu1 %v2624_v21 }
  0xda   :  { %1041 = vmatprep.mubr.bf16.mxu1 %v2625_v22 }
  0xdb   :  { %2381 = vmatmul.mubr.msk.bf16.gmra.mrb[104].mxu0 %vm755_vm1, %v2651_v26  ;;  %v2661_v26 = vld [vmem:[%s3483_s0 + $0x2bc] ss:$12 sps:$4 sm:$0xff]  }
  0xdc   :  { %2384 = vmatprep.mubr.msk.bf16.mxu0 %vm2671_vm0, %v2670_v2 }
  0xde   :  { %v3063_v29 = vpop.f32.mrb[0].mxu0 }
  0xdf   :  { %v2278_v30 = vpop.f32.mrb[1].mxu0 }
  0xe0   :  { %v3068_v32 = vpop.f32.mrb[2].mxu0 }
  0xe1   :  { %1042 = vmatmul.mubr.bf16.gmra.mrb[80].mxu1 %v2628_v24  ;;  %v2279_v34 = vpop.f32.mrb[3].mxu0 }
  0xe2   :  { %1049 = vmatprep.mubr.bf16.mxu1 %v2629_v25 }
  0xe3   :  { %2385 = vmatmul.mubr.msk.bf16.gmra.mrb[108].mxu0 %vm755_vm1, %v2655_v31 }
  0xe4   :  { %2388 = vmatprep.mubr.msk.bf16.mxu0 %vm2671_vm0, %v2670_v2 }
  0xe6   :  { %v3079_v36 = vpop.f32.mrb[4].mxu0 }
  0xe7   :  { %v2282_v37 = vpop.f32.mrb[5].mxu0 }
  0xe8   :  { %v3084_v39 = vpop.f32.mrb[6].mxu0 }
  0xe9   :  { %1050 = vmatmul.mubr.bf16.gmra.mrb[84].mxu1 %v2632_v27  ;;  %v2283_v41 = vpop.f32.mrb[7].mxu0 }
  0xea   :  { %1057 = vmatprep.mubr.bf16.mxu1 %v2633_v28 }
  0xeb   :  { %2389 = vmatmul.mubr.msk.bf16.gmra.mrb[112].mxu0 %vm755_vm1, %v2659_v38 }
  0xec   :  { %2392 = vmatprep.mubr.msk.bf16.mxu0 %vm2671_vm0, %v2670_v2 }
  0xee   :  { %v3095_v43 = vpop.f32.mrb[8].mxu0 }
  0xef   :  { %v2286_v44 = vpop.f32.mrb[9].mxu0 }
  0xf0   :  { %v3100_v46 = vpop.f32.mrb[10].mxu0  ;;  %v2665_v44 = vld [vmem:[%s3483_s0 + $0x2d4] ss:$12 sps:$4 sm:$0xff]  }
  0xf1   :  { %1058 = vmatmul.mubr.bf16.gmra.mrb[88].mxu1 %v2636_v33  ;;  %v2287_v48 = vpop.f32.mrb[11].mxu0 }
  0xf2   :  { %1065 = vmatprep.mubr.bf16.mxu1 %v2637_v35 }
  0xf3   :  { %2393 = vmatmul.mubr.msk.bf16.gmra.mrb[116].mxu0 %vm755_vm1, %v2663_v45 }
  0xf4   :  { %2396 = vmatprep.mubr.msk.bf16.mxu0 %vm2671_vm0, %v2670_v2  ;;  %v2649_v2 = vld [vmem:[%s3483_s0 + $0x274] ss:$12 sps:$4 sm:$0xff]  }
  0xf6   :  { %v3111_v50 = vpop.f32.mrb[12].mxu0 }
  0xf7   :  { %v2290_v51 = vpop.f32.mrb[13].mxu0 }
  0xf8   :  { %v3116_v53 = vpop.f32.mrb[14].mxu0 }
  0xf9   :  { %1066 = vmatmul.mubr.bf16.gmra.mrb[92].mxu1 %v2640_v40  ;;  %v2291_v55 = vpop.f32.mrb[15].mxu0 }
  0xfa   :  { %1073 = vmatprep.mubr.bf16.mxu1 %v2641_v42 }
  0xfb   :  { %2397 = vmatmul.mubr.msk.bf16.gmra.mrb[120].mxu0 %vm755_vm1, %v2667_v52 }
  0xfe   :  { %v3125_v56 = vpop.f32.mrb[16].mxu0 }
  0xff   :  { %v2294_v57 = vpop.f32.mrb[17].mxu0 }
 0x100   :  { %v3127_v58 = vpop.f32.mrb[18].mxu0 }
 0x101   :  { %1074 = vmatmul.mubr.bf16.gmra.mrb[96].mxu1 %v2644_v47  ;;  %v2295_v60 = vpop.f32.mrb[19].mxu0 }
 0x102   :  { %1081 = vmatprep.mubr.bf16.mxu1 %v2645_v49 }
 0x106   :  { %v3140_v63 = vpop.f32.mrb[20].mxu0 }
 0x107   :  { %v2298_v0 = vpop.f32.mrb[21].mxu0 }
 0x108   :  { %v3142_v3 = vpop.f32.mrb[22].mxu0 }
 0x109   :  { %1082 = vmatmul.mubr.bf16.gmra.mrb[100].mxu1 %v2648_v54  ;;  %v2299_v7 = vpop.f32.mrb[23].mxu0 }
 0x10a   :  { %1089 = vmatprep.mubr.bf16.mxu1 %v2649_v2 }
 0x10e   :  { %v3154_v14 = vpop.f32.mrb[24].mxu0 }
 0x10f   :  { %v2302_v17 = vpop.f32.mrb[25].mxu0 }
 0x110   :  { %v3156_v19 = vpop.f32.mrb[26].mxu0 }
 0x111   :  { %1090 = vmatmul.mubr.bf16.gmra.mrb[104].mxu1 %v2652_v59  ;;  %v2303_v24 = vpop.f32.mrb[27].mxu0 }
 0x112   :  { %1097 = vmatprep.mubr.bf16.mxu1 %v2653_v61 }
 0x114   :  { %v883_v1 = vpop.f32.mrb[0].mxu1 }
 0x115   :  { %v884_v4 = vadd.f32 %v3138_v62, %v883_v1  ;;  %v885_v5 = vpop.f32.mrb[1].mxu1 }
 0x116   :  { %v886_v8 = vpop.f32.mrb[2].mxu1  ;;  %v3171_v31 = vpop.f32.mrb[28].mxu0 }
 0x117   :  { %v1165_v10 = vadd.f32 %v3063_v29, %v884_v4  ;;  %v887_v11 = vadd.f32 %v3138_v62, %v886_v8  ;;  %v888_v12 = vpop.f32.mrb[3].mxu1  ;;  %v2306_v34 = vpop.f32.mrb[29].mxu0 }
 0x118   :  { %v3173_v37 = vpop.f32.mrb[30].mxu0 }
 0x119   :  { %v1168_v13 = vadd.f32 %v3068_v32, %v887_v11  ;;  %1098 = vmatmul.mubr.bf16.gmra.mrb[108].mxu1 %v2656_v6  ;;  %v1411_v15 = vmax.f32 %v1165_v10, 0.0  ;;  %v2307_v42 = vpop.f32.mrb[31].mxu0 }
 0x11a   :  { %1105 = vmatprep.mubr.bf16.mxu1 %v2657_v9 }
 0x11b   :  { %v1412_v16 = vmax.f32 %v1168_v13, 0.0 }
 0x11c   :  { %v891_v18 = vpop.f32.mrb[4].mxu1 }
 0x11d   :  { %v2057_v20 = vpack.c.bf16 %v1412_v16, %v1411_v15  ;;  %v892_v21 = vadd.f32 %v3138_v62, %v891_v18  ;;  %v893_v22 = vpop.f32.mrb[5].mxu1 }
 0x11e   :  { %v894_v25 = vpop.f32.mrb[6].mxu1  ;;  %v3188_v51 = vpop.f32.mrb[32].mxu0 }
 0x11f   :  { %2058 = vst [vmem:[%s3485_s3] sm:$0xff] %v2057_v20   ;;  %v1173_v27 = vadd.f32 %v3079_v36, %v892_v21  ;;  %v895_v28 = vadd.f32 %v3138_v62, %v894_v25  ;;  %v896_v29 = vpop.f32.mrb[7].mxu1  ;;  %v2664_v36 = vld [vmem:[%s3483_s0 + $0x2b8] ss:$12 sps:$4 sm:$0xff]   ;;  %v2310_v55 = vpop.f32.mrb[33].mxu0 }
 0x120   :  { %v3190_v57 = vpop.f32.mrb[34].mxu0 }
 0x121   :  { %v1176_v30 = vadd.f32 %v3084_v39, %v895_v28  ;;  %1106 = vmatmul.mubr.bf16.gmra.mrb[112].mxu1 %v2660_v23  ;;  %v1413_v32 = vmax.f32 %v1173_v27, 0.0  ;;  %v2311_v0 = vpop.f32.mrb[35].mxu0 }
 0x122   :  { %1113 = vmatprep.mubr.bf16.mxu1 %v2661_v26 }
 0x123   :  { %v1414_v33 = vmax.f32 %v1176_v30, 0.0 }
 0x124   :  { %v899_v35 = vpop.f32.mrb[8].mxu1 }
 0x125   :  { %v2062_v38 = vpack.c.bf16 %v1414_v33, %v1413_v32  ;;  %v900_v40 = vadd.f32 %v3138_v62, %v899_v35  ;;  %v901_v41 = vpop.f32.mrb[9].mxu1 }
 0x126   :  { %v902_v39 = vpop.f32.mrb[10].mxu1  ;;  %v3202_v7 = vpop.f32.mrb[36].mxu0 }
 0x127   :  { %2209 = vst [vmem:[%s3485_s3 + $0x8] sm:$0xff] %v2062_v38   ;;  %v1181_v45 = vadd.f32 %v3095_v43, %v900_v40  ;;  %v903_v47 = vadd.f32 %v3138_v62, %v902_v39  ;;  %v904_v48 = vpop.f32.mrb[11].mxu1  ;;  %v2668_v43 = vld [vmem:[%s3483_s0 + $0x2d0] ss:$12 sps:$4 sm:$0xff]   ;;  %v2314_v10 = vpop.f32.mrb[37].mxu0 }
 0x128   :  { %v3204_v12 = vpop.f32.mrb[38].mxu0 }
 0x129   :  { %v1184_v49 = vadd.f32 %v3100_v46, %v903_v47  ;;  %1114 = vmatmul.mubr.bf16.gmra.mrb[116].mxu1 %v2664_v36  ;;  %v1415_v52 = vmax.f32 %v1181_v45, 0.0  ;;  %v2315_v17 = vpop.f32.mrb[39].mxu0 }
 0x12a   :  { %1121 = vmatprep.mubr.bf16.mxu1 %v2665_v44 }
 0x12b   :  { %v1416_v54 = vmax.f32 %v1184_v49, 0.0 }
 0x12c   :  { %v907_v2 = vpop.f32.mrb[12].mxu1 }
 0x12d   :  { %v2067_v59 = vpack.c.bf16 %v1416_v54, %v1415_v52  ;;  %v908_v60 = vadd.f32 %v3138_v62, %v907_v2  ;;  %v909_v61 = vpop.f32.mrb[13].mxu1 }
 0x12e   :  { %v910_v46 = vpop.f32.mrb[14].mxu1  ;;  %v3213_v22 = vpop.f32.mrb[40].mxu0 }
 0x12f   :  { %2210 = vst [vmem:[%s3485_s3 + $0x10] sm:$0xff] %v2067_v59   ;;  %v1189_v1 = vadd.f32 %v3111_v50, %v908_v60  ;;  %v911_v4 = vadd.f32 %v3138_v62, %v910_v46  ;;  %v912_v5 = vpop.f32.mrb[15].mxu1  ;;  %v2318_v25 = vpop.f32.mrb[41].mxu0 }
 0x130   :  { %v3215_v27 = vpop.f32.mrb[42].mxu0 }
 0x131   :  { %v1192_v6 = vadd.f32 %v3116_v53, %v911_v4  ;;  %1122 = vmatmul.mubr.bf16.gmra.mrb[120].mxu1 %v2668_v43  ;;  %v1417_v8 = vmax.f32 %v1189_v1, 0.0  ;;  %v2319_v32 = vpop.f32.mrb[43].mxu0 }
 0x133   :  { %v1418_v9 = vmax.f32 %v1192_v6, 0.0 }
 0x134   :  { %v915_v11 = vpop.f32.mrb[16].mxu1 }
 0x135   :  { %v2072_v13 = vpack.c.bf16 %v1418_v9, %v1417_v8  ;;  %v916_v15 = vadd.f32 %v3138_v62, %v915_v11  ;;  %v917_v16 = vpop.f32.mrb[17].mxu1 }
 0x136   :  { %v918_v50 = vpop.f32.mrb[18].mxu1  ;;  %v3224_v38 = vpop.f32.mrb[44].mxu0 }
 0x137   :  { %2211 = vst [vmem:[%s3485_s3 + $0x18] sm:$0xff] %v2072_v13   ;;  %v1197_v53 = vadd.f32 %v3125_v56, %v916_v15  ;;  %v919_v18 = vadd.f32 %v3138_v62, %v918_v50  ;;  %v920_v20 = vpop.f32.mrb[19].mxu1  ;;  %v2322_v36 = vpop.f32.mrb[45].mxu0 }
 0x138   :  { %v3226_v39 = vpop.f32.mrb[46].mxu0 }
 0x139   :  { %v1200_v21 = vadd.f32 %v3127_v58, %v919_v18  ;;  %v1419_v23 = vmax.f32 %v1197_v53, 0.0  ;;  %v2323_v48 = vpop.f32.mrb[47].mxu0 }
 0x13b   :  { %v1420_v24 = vmax.f32 %v1200_v21, 0.0 }
 0x13c   :  { %v923_v26 = vpop.f32.mrb[20].mxu1 }
 0x13d   :  { %v2077_v28 = vpack.c.bf16 %v1420_v24, %v1419_v23  ;;  %v924_v29 = vadd.f32 %v3138_v62, %v923_v26  ;;  %v925_v30 = vpop.f32.mrb[21].mxu1 }
 0x13e   :  { %v926_v33 = vpop.f32.mrb[22].mxu1  ;;  %v3235_v55 = vpop.f32.mrb[48].mxu0 }
 0x13f   :  { %2212 = vst [vmem:[%s3485_s3 + $0x20] sm:$0xff] %v2077_v28   ;;  %v1205_v56 = vadd.f32 %v3140_v63, %v924_v29  ;;  %v927_v58 = vadd.f32 %v3138_v62, %v926_v33  ;;  %v928_v34 = vpop.f32.mrb[23].mxu1  ;;  %v2326_v60 = vpop.f32.mrb[49].mxu0 }
 0x140   :  { %v3237_v43 = vpop.f32.mrb[50].mxu0 }
 0x141   :  { %v1208_v35 = vadd.f32 %v3142_v3, %v927_v58  ;;  %v1421_v40 = vmax.f32 %v1205_v56, 0.0  ;;  %v2327_v4 = vpop.f32.mrb[51].mxu0 }
 0x143   :  { %v1422_v41 = vmax.f32 %v1208_v35, 0.0 }
 0x144   :  { %v931_v42 = vpop.f32.mrb[24].mxu1 }
 0x145   :  { %v2082_v44 = vpack.c.bf16 %v1422_v41, %v1421_v40  ;;  %v932_v45 = vadd.f32 %v3138_v62, %v931_v42  ;;  %v933_v47 = vpop.f32.mrb[25].mxu1 }
 0x146   :  { %v934_v49 = vpop.f32.mrb[26].mxu1  ;;  %v3246_v9 = vpop.f32.mrb[52].mxu0 }
 0x147   :  { %2213 = vst [vmem:[%s3485_s3 + $0x28] sm:$0xff] %v2082_v44   ;;  %v1213_v63 = vadd.f32 %v3154_v14, %v932_v45  ;;  %v935_v3 = vadd.f32 %v3138_v62, %v934_v49  ;;  %v936_v52 = vpop.f32.mrb[27].mxu1  ;;  %v2330_v13 = vpop.f32.mrb[53].mxu0 }
 0x148   :  { %v3248_v16 = vpop.f32.mrb[54].mxu0 }
 0x149   :  { %v1216_v54 = vadd.f32 %v3156_v19, %v935_v3  ;;  %v1423_v2 = vmax.f32 %v1213_v63, 0.0  ;;  %v2331_v18 = vpop.f32.mrb[55].mxu0 }
 0x14b   :  { %v1424_v59 = vmax.f32 %v1216_v54, 0.0 }
 0x14c   :  { %v939_v61 = vpop.f32.mrb[28].mxu1 }
 0x14d   :  { %v2087_v0 = vpack.c.bf16 %v1424_v59, %v1423_v2  ;;  %v940_v46 = vadd.f32 %v3138_v62, %v939_v61  ;;  %v941_v1 = vpop.f32.mrb[29].mxu1 }
 0x14e   :  { %v942_v5 = vpop.f32.mrb[30].mxu1  ;;  %v3257_v24 = vpop.f32.mrb[56].mxu0 }
 0x14f   :  { %2214 = vst [vmem:[%s3485_s3 + $0x30] sm:$0xff] %v2087_v0   ;;  %v1221_v14 = vadd.f32 %v3171_v31, %v940_v46  ;;  %v943_v19 = vadd.f32 %v3138_v62, %v942_v5  ;;  %v944_v6 = vpop.f32.mrb[31].mxu1  ;;  %v2334_v28 = vpop.f32.mrb[57].mxu0 }
 0x150   :  { %v3259_v30 = vpop.f32.mrb[58].mxu0 }
 0x151   :  { %v1224_v8 = vadd.f32 %v3173_v37, %v943_v19  ;;  %v1425_v10 = vmax.f32 %v1221_v14, 0.0  ;;  %v2335_v58 = vpop.f32.mrb[59].mxu0 }
 0x153   :  { %v1426_v11 = vmax.f32 %v1224_v8, 0.0 }
 0x154   :  { %v947_v15 = vpop.f32.mrb[32].mxu1 }
 0x155   :  { %v2092_v17 = vpack.c.bf16 %v1426_v11, %v1425_v10  ;;  %v948_v50 = vadd.f32 %v3138_v62, %v947_v15  ;;  %v949_v53 = vpop.f32.mrb[33].mxu1 }
 0x156   :  { %v950_v20 = vpop.f32.mrb[34].mxu1  ;;  %v3268_v41 = vpop.f32.mrb[60].mxu0 }
 0x157   :  { %2215 = vst [vmem:[%s3485_s3 + $0x38] sm:$0xff] %v2092_v17   ;;  %v1229_v31 = vadd.f32 %v3188_v51, %v948_v50  ;;  %v951_v37 = vadd.f32 %v3138_v62, %v950_v20  ;;  %v952_v21 = vpop.f32.mrb[35].mxu1  ;;  %v2338_v44 = vpop.f32.mrb[61].mxu0 }
 0x158   :  { %v3270_v47 = vpop.f32.mrb[62].mxu0 }
 0x159   :  { %v1232_v23 = vadd.f32 %v3190_v57, %v951_v37  ;;  %v1427_v25 = vmax.f32 %v1229_v31, 0.0  ;;  %v2339_v3 = vpop.f32.mrb[63].mxu0 }
 0x15b   :  { %v1428_v26 = vmax.f32 %v1232_v23, 0.0 }
 0x15c   :  { %v955_v29 = vpop.f32.mrb[36].mxu1 }
 0x15d   :  { %v2097_v32 = vpack.c.bf16 %v1428_v26, %v1427_v25  ;;  %v956_v33 = vadd.f32 %v3138_v62, %v955_v29  ;;  %v957_v56 = vpop.f32.mrb[37].mxu1 }
 0x15e   :  { %v958_v34 = vpop.f32.mrb[38].mxu1  ;;  %v3279_v59 = vpop.f32.mrb[64].mxu0 }
 0x15f   :  { %2216 = vst [vmem:[%s3485_s3 + $0x40] sm:$0xff] %v2097_v32   ;;  %v1237_v51 = vadd.f32 %v3202_v7, %v956_v33  ;;  %v959_v57 = vadd.f32 %v3138_v62, %v958_v34  ;;  %v960_v35 = vpop.f32.mrb[39].mxu1  ;;  %v2342_v0 = vpop.f32.mrb[65].mxu0 }
 0x160   :  { %v3281_v1 = vpop.f32.mrb[66].mxu0 }
 0x161   :  { %v1240_v40 = vadd.f32 %v3204_v12, %v959_v57  ;;  %v1429_v36 = vmax.f32 %v1237_v51, 0.0  ;;  %v2343_v19 = vpop.f32.mrb[67].mxu0 }
 0x163   :  { %v1430_v42 = vmax.f32 %v1240_v40, 0.0 }
 0x164   :  { %v963_v45 = vpop.f32.mrb[40].mxu1 }
 0x165   :  { %v2102_v48 = vpack.c.bf16 %v1430_v42, %v1429_v36  ;;  %v964_v49 = vadd.f32 %v3138_v62, %v963_v45  ;;  %v965_v63 = vpop.f32.mrb[41].mxu1 }
 0x166   :  { %v966_v52 = vpop.f32.mrb[42].mxu1  ;;  %v3290_v11 = vpop.f32.mrb[68].mxu0 }
 0x167   :  { %2217 = vst [vmem:[%s3485_s3 + $0x48] sm:$0xff] %v2102_v48   ;;  %v1245_v7 = vadd.f32 %v3213_v22, %v964_v49  ;;  %v967_v12 = vadd.f32 %v3138_v62, %v966_v52  ;;  %v968_v54 = vpop.f32.mrb[43].mxu1  ;;  %v2346_v17 = vpop.f32.mrb[69].mxu0 }
 0x168   :  { %v3292_v53 = vpop.f32.mrb[70].mxu0 }
 0x169   :  { %v1248_v2 = vadd.f32 %v3215_v27, %v967_v12  ;;  %v1431_v60 = vmax.f32 %v1245_v7, 0.0  ;;  %v2347_v37 = vpop.f32.mrb[71].mxu0 }
 0x16b   :  { %v1432_v61 = vmax.f32 %v1248_v2, 0.0 }
 0x16c   :  { %v971_v46 = vpop.f32.mrb[44].mxu1 }
 0x16d   :  { %v2107_v4 = vpack.c.bf16 %v1432_v61, %v1431_v60  ;;  %v972_v5 = vadd.f32 %v3138_v62, %v971_v46  ;;  %v973_v14 = vpop.f32.mrb[45].mxu1 }
 0x16e   :  { %v974_v6 = vpop.f32.mrb[46].mxu1  ;;  %v3301_v26 = vpop.f32.mrb[72].mxu0 }
 0x16f   :  { %2218 = vst [vmem:[%s3485_s3 + $0x50] sm:$0xff] %v2107_v4   ;;  %v1253_v22 = vadd.f32 %v3224_v38, %v972_v5  ;;  %v975_v27 = vadd.f32 %v3138_v62, %v974_v6  ;;  %v976_v8 = vpop.f32.mrb[47].mxu1  ;;  %v2350_v32 = vpop.f32.mrb[73].mxu0 }
 0x170   :  { %v3303_v56 = vpop.f32.mrb[74].mxu0 }
 0x171   :  { %v1256_v10 = vadd.f32 %v3226_v39, %v975_v27  ;;  %v1433_v13 = vmax.f32 %v1253_v22, 0.0  ;;  %v2351_v57 = vpop.f32.mrb[75].mxu0 }
 0x173   :  { %v1434_v15 = vmax.f32 %v1256_v10, 0.0 }
 0x174   :  { %v979_v50 = vpop.f32.mrb[48].mxu1 }
 0x175   :  { %v2112_v18 = vpack.c.bf16 %v1434_v15, %v1433_v13  ;;  %v980_v20 = vadd.f32 %v3138_v62, %v979_v50  ;;  %v981_v31 = vpop.f32.mrb[49].mxu1 }
 0x176   :  { %v982_v21 = vpop.f32.mrb[50].mxu1  ;;  %v3312_v42 = vpop.f32.mrb[76].mxu0 }
 0x177   :  { %2219 = vst [vmem:[%s3485_s3 + $0x58] sm:$0xff] %v2112_v18   ;;  %v1261_v38 = vadd.f32 %v3235_v55, %v980_v20  ;;  %v983_v39 = vadd.f32 %v3138_v62, %v982_v21  ;;  %v984_v23 = vpop.f32.mrb[51].mxu1  ;;  %v2354_v48 = vpop.f32.mrb[77].mxu0 }
 0x178   :  { %v3314_v63 = vpop.f32.mrb[78].mxu0 }
 0x179   :  { %v1264_v25 = vadd.f32 %v3237_v43, %v983_v39  ;;  %v1435_v28 = vmax.f32 %v1261_v38, 0.0  ;;  %v2355_v12 = vpop.f32.mrb[79].mxu0 }
 0x17b   :  { %v1436_v29 = vmax.f32 %v1264_v25, 0.0 }
 0x17c   :  { %v987_v33 = vpop.f32.mrb[52].mxu1 }
 0x17d   :  { %v2117_v58 = vpack.c.bf16 %v1436_v29, %v1435_v28  ;;  %v988_v34 = vadd.f32 %v3138_v62, %v987_v33  ;;  %v989_v51 = vpop.f32.mrb[53].mxu1 }
 0x17e   :  { %v990_v35 = vpop.f32.mrb[54].mxu1  ;;  %v3323_v61 = vpop.f32.mrb[80].mxu0 }
 0x17f   :  { %2220 = vst [vmem:[%s3485_s3 + $0x60] sm:$0xff] %v2117_v58   ;;  %v1269_v55 = vadd.f32 %v3246_v9, %v988_v34  ;;  %v991_v43 = vadd.f32 %v3138_v62, %v990_v35  ;;  %v992_v40 = vpop.f32.mrb[55].mxu1  ;;  %v2358_v4 = vpop.f32.mrb[81].mxu0 }
 0x180   :  { %v3325_v14 = vpop.f32.mrb[82].mxu0 }
 0x181   :  { %v1272_v36 = vadd.f32 %v3248_v16, %v991_v43  ;;  %v1437_v44 = vmax.f32 %v1269_v55, 0.0  ;;  %v2359_v27 = vpop.f32.mrb[83].mxu0 }
 0x183   :  { %v1438_v45 = vmax.f32 %v1272_v36, 0.0 }
 0x184   :  { %v995_v49 = vpop.f32.mrb[56].mxu1 }
 0x185   :  { %v2122_v3 = vpack.c.bf16 %v1438_v45, %v1437_v44  ;;  %v996_v52 = vadd.f32 %v3138_v62, %v995_v49  ;;  %v997_v7 = vpop.f32.mrb[57].mxu1 }
 0x186   :  { %v998_v54 = vpop.f32.mrb[58].mxu1  ;;  %v3334_v15 = vpop.f32.mrb[84].mxu0 }
 0x187   :  { %2221 = vst [vmem:[%s3485_s3 + $0x68] sm:$0xff] %v2122_v3   ;;  %v1277_v9 = vadd.f32 %v3257_v24, %v996_v52  ;;  %v999_v16 = vadd.f32 %v3138_v62, %v998_v54  ;;  %v1000_v2 = vpop.f32.mrb[59].mxu1  ;;  %v2362_v18 = vpop.f32.mrb[85].mxu0 }
 0x188   :  { %v3336_v31 = vpop.f32.mrb[86].mxu0 }
 0x189   :  { %v1280_v60 = vadd.f32 %v3259_v30, %v999_v16  ;;  %v1439_v0 = vmax.f32 %v1277_v9, 0.0  ;;  %v2363_v39 = vpop.f32.mrb[87].mxu0 }
 0x18b   :  { %v1440_v46 = vmax.f32 %v1280_v60, 0.0 }
 0x18c   :  { %v1003_v5 = vpop.f32.mrb[60].mxu1 }
 0x18d   :  { %v2127_v19 = vpack.c.bf16 %v1440_v46, %v1439_v0  ;;  %v1004_v6 = vadd.f32 %v3138_v62, %v1003_v5  ;;  %v1005_v22 = vpop.f32.mrb[61].mxu1 }
 0x18e   :  { %v1006_v8 = vpop.f32.mrb[62].mxu1  ;;  %v3345_v29 = vpop.f32.mrb[88].mxu0 }
 0x18f   :  { %2222 = vst [vmem:[%s3485_s3 + $0x70] sm:$0xff] %v2127_v19   ;;  %v1285_v24 = vadd.f32 %v3268_v41, %v1004_v6  ;;  %v1007_v30 = vadd.f32 %v3138_v62, %v1006_v8  ;;  %v1008_v10 = vpop.f32.mrb[63].mxu1  ;;  %v2366_v58 = vpop.f32.mrb[89].mxu0 }
 0x190   :  { %v3347_v51 = vpop.f32.mrb[90].mxu0 }
 0x191   :  { %v1288_v13 = vadd.f32 %v3270_v47, %v1007_v30  ;;  %v1441_v17 = vmax.f32 %v1285_v24, 0.0  ;;  %v2367_v43 = vpop.f32.mrb[91].mxu0 }
 0x193   :  { %v1442_v50 = vmax.f32 %v1288_v13, 0.0 }
 0x194   :  { %v1011_v20 = vpop.f32.mrb[64].mxu1 }
 0x195   :  { %v2132_v37 = vpack.c.bf16 %v1442_v50, %v1441_v17  ;;  %v1012_v21 = vadd.f32 %v3138_v62, %v1011_v20  ;;  %v1013_v38 = vpop.f32.mrb[65].mxu1 }
 0x196   :  { %v1014_v23 = vpop.f32.mrb[66].mxu1  ;;  %v3356_v45 = vpop.f32.mrb[92].mxu0 }
 0x197   :  { %2223 = vst [vmem:[%s3485_s3 + $0x78] sm:$0xff] %v2132_v37   ;;  %v1293_v41 = vadd.f32 %v3279_v59, %v1012_v21  ;;  %v1015_v47 = vadd.f32 %v3138_v62, %v1014_v23  ;;  %v1016_v25 = vpop.f32.mrb[67].mxu1  ;;  %v2370_v3 = vpop.f32.mrb[93].mxu0 }
 0x198   :  { %v3358_v7 = vpop.f32.mrb[94].mxu0 }
 0x199   :  { %v1296_v28 = vadd.f32 %v3281_v1, %v1015_v47  ;;  %v1443_v32 = vmax.f32 %v1293_v41, 0.0  ;;  %v2371_v16 = vpop.f32.mrb[95].mxu0 }
 0x19b   :  { %v1444_v33 = vmax.f32 %v1296_v28, 0.0 }
 0x19c   :  { %v1019_v34 = vpop.f32.mrb[68].mxu1 }
 0x19d   :  { %v2137_v57 = vpack.c.bf16 %v1444_v33, %v1443_v32  ;;  %v1020_v35 = vadd.f32 %v3138_v62, %v1019_v34  ;;  %v1021_v55 = vpop.f32.mrb[69].mxu1 }
 0x19e   :  { %v1022_v40 = vpop.f32.mrb[70].mxu1  ;;  %v3367_v46 = vpop.f32.mrb[96].mxu0 }
 0x19f   :  { %2224 = vst [vmem:[%s3485_s3 + $0x80] sm:$0xff] %v2137_v57   ;;  %v1301_v59 = vadd.f32 %v3290_v11, %v1020_v35  ;;  %v1023_v1 = vadd.f32 %v3138_v62, %v1022_v40  ;;  %v1024_v36 = vpop.f32.mrb[71].mxu1  ;;  %v2374_v19 = vpop.f32.mrb[97].mxu0 }
 0x1a0   :  { %v3369_v22 = vpop.f32.mrb[98].mxu0 }
 0x1a1   :  { %v1304_v44 = vadd.f32 %v3292_v53, %v1023_v1  ;;  %v1445_v48 = vmax.f32 %v1301_v59, 0.0  ;;  %v2375_v30 = vpop.f32.mrb[99].mxu0 }
 0x1a3   :  { %v1446_v49 = vmax.f32 %v1304_v44, 0.0 }
 0x1a4   :  { %v1027_v52 = vpop.f32.mrb[72].mxu1 }
 0x1a5   :  { %v2142_v12 = vpack.c.bf16 %v1446_v49, %v1445_v48  ;;  %v1028_v54 = vadd.f32 %v3138_v62, %v1027_v52  ;;  %v1029_v9 = vpop.f32.mrb[73].mxu1 }
 0x1a6   :  { %v1030_v2 = vpop.f32.mrb[74].mxu1  ;;  %v3378_v50 = vpop.f32.mrb[100].mxu0 }
 0x1a7   :  { %2225 = vst [vmem:[%s3485_s3 + $0x88] sm:$0xff] %v2142_v12   ;;  %v1309_v11 = vadd.f32 %v3301_v26, %v1028_v54  ;;  %v1031_v53 = vadd.f32 %v3138_v62, %v1030_v2  ;;  %v1032_v60 = vpop.f32.mrb[75].mxu1  ;;  %v2378_v37 = vpop.f32.mrb[101].mxu0 }
 0x1a8   :  { %v3380_v38 = vpop.f32.mrb[102].mxu0 }
 0x1a9   :  { %v1312_v0 = vadd.f32 %v3303_v56, %v1031_v53  ;;  %v1447_v4 = vmax.f32 %v1309_v11, 0.0  ;;  %v2379_v47 = vpop.f32.mrb[103].mxu0 }
 0x1ab   :  { %v1448_v5 = vmax.f32 %v1312_v0, 0.0 }
 0x1ac   :  { %v1035_v6 = vpop.f32.mrb[76].mxu1 }
 0x1ad   :  { %v2147_v27 = vpack.c.bf16 %v1448_v5, %v1447_v4  ;;  %v1036_v8 = vadd.f32 %v3138_v62, %v1035_v6  ;;  %v1037_v24 = vpop.f32.mrb[77].mxu1 }
 0x1ae   :  { %v1038_v10 = vpop.f32.mrb[78].mxu1  ;;  %v3389_v33 = vpop.f32.mrb[104].mxu0 }
 0x1af   :  { %2226 = vst [vmem:[%s3485_s3 + $0x90] sm:$0xff] %v2147_v27   ;;  %v1317_v26 = vadd.f32 %v3312_v42, %v1036_v8  ;;  %v1039_v56 = vadd.f32 %v3138_v62, %v1038_v10  ;;  %v1040_v13 = vpop.f32.mrb[79].mxu1  ;;  %v2382_v57 = vpop.f32.mrb[105].mxu0 }
 0x1b0   :  { %v3391_v55 = vpop.f32.mrb[106].mxu0 }
 0x1b1   :  { %v1320_v17 = vadd.f32 %v3314_v63, %v1039_v56  ;;  %v1449_v18 = vmax.f32 %v1317_v26, 0.0  ;;  %v2383_v1 = vpop.f32.mrb[107].mxu0 }
 0x1b3   :  { %v1450_v20 = vmax.f32 %v1320_v17, 0.0 }
 0x1b4   :  { %v1043_v21 = vpop.f32.mrb[80].mxu1 }
 0x1b5   :  { %v2152_v39 = vpack.c.bf16 %v1450_v20, %v1449_v18  ;;  %v1044_v23 = vadd.f32 %v3138_v62, %v1043_v21  ;;  %v1045_v41 = vpop.f32.mrb[81].mxu1 }
 0x1b6   :  { %v1046_v25 = vpop.f32.mrb[82].mxu1  ;;  %v3400_v49 = vpop.f32.mrb[108].mxu0 }
 0x1b7   :  { %2227 = vst [vmem:[%s3485_s3 + $0x98] sm:$0xff] %v2152_v39   ;;  %v1325_v42 = vadd.f32 %v3323_v61, %v1044_v23  ;;  %v1047_v63 = vadd.f32 %v3138_v62, %v1046_v25  ;;  %v1048_v28 = vpop.f32.mrb[83].mxu1  ;;  %v2386_v12 = vpop.f32.mrb[109].mxu0 }
 0x1b8   :  { %v3402_v9 = vpop.f32.mrb[110].mxu0 }
 0x1b9   :  { %v1328_v32 = vadd.f32 %v3325_v14, %v1047_v63  ;;  %v1451_v58 = vmax.f32 %v1325_v42, 0.0  ;;  %v2387_v53 = vpop.f32.mrb[111].mxu0 }
 0x1bb   :  { %v1452_v34 = vmax.f32 %v1328_v32, 0.0 }
 0x1bc   :  { %v1051_v35 = vpop.f32.mrb[84].mxu1 }
 0x1bd   :  { %v2157_v43 = vpack.c.bf16 %v1452_v34, %v1451_v58  ;;  %v1052_v40 = vadd.f32 %v3138_v62, %v1051_v35  ;;  %v1053_v59 = vpop.f32.mrb[85].mxu1 }
 0x1be   :  { %v1054_v36 = vpop.f32.mrb[86].mxu1  ;;  %v3411_v5 = vpop.f32.mrb[112].mxu0 }
 0x1bf   :  { %2228 = vst [vmem:[%s3485_s3 + $0xa0] sm:$0xff] %v2157_v43   ;;  %v1333_v61 = vadd.f32 %v3334_v15, %v1052_v40  ;;  %v1055_v14 = vadd.f32 %v3138_v62, %v1054_v36  ;;  %v1056_v44 = vpop.f32.mrb[87].mxu1  ;;  %v2390_v27 = vpop.f32.mrb[113].mxu0 }
 0x1c0   :  { %v3413_v24 = vpop.f32.mrb[114].mxu0 }
 0x1c1   :  { %v1336_v48 = vadd.f32 %v3336_v31, %v1055_v14  ;;  %v1453_v3 = vmax.f32 %v1333_v61, 0.0  ;;  %v2391_v56 = vpop.f32.mrb[115].mxu0 }
 0x1c3   :  { %v1454_v52 = vmax.f32 %v1336_v48, 0.0 }
 0x1c4   :  { %v1059_v54 = vpop.f32.mrb[88].mxu1 }
 0x1c5   :  { %v2162_v16 = vpack.c.bf16 %v1454_v52, %v1453_v3  ;;  %v1060_v2 = vadd.f32 %v3138_v62, %v1059_v54  ;;  %v1061_v11 = vpop.f32.mrb[89].mxu1 }
 0x1c6   :  { %v1062_v60 = vpop.f32.mrb[90].mxu1  ;;  %v3422_v20 = vpop.f32.mrb[116].mxu0 }
 0x1c7   :  { %2229 = vst [vmem:[%s3485_s3 + $0xa8] sm:$0xff] %v2162_v16   ;;  %v1341_v15 = vadd.f32 %v3345_v29, %v1060_v2  ;;  %v1063_v31 = vadd.f32 %v3138_v62, %v1062_v60  ;;  %v1064_v0 = vpop.f32.mrb[91].mxu1  ;;  %v2394_v39 = vpop.f32.mrb[117].mxu0 }
 0x1c8   :  { %v3424_v41 = vpop.f32.mrb[118].mxu0 }
 0x1c9   :  { %v1344_v4 = vadd.f32 %v3347_v51, %v1063_v31  ;;  %v1455_v19 = vmax.f32 %v1341_v15, 0.0  ;;  %v2395_v63 = vpop.f32.mrb[119].mxu0 }
 0x1cb   :  { %v1456_v6 = vmax.f32 %v1344_v4, 0.0 }
 0x1cc   :  { %v1067_v8 = vpop.f32.mrb[92].mxu1 }
 0x1cd   :  { %v2167_v30 = vpack.c.bf16 %v1456_v6, %v1455_v19  ;;  %v1068_v10 = vadd.f32 %v3138_v62, %v1067_v8  ;;  %v1069_v26 = vpop.f32.mrb[93].mxu1 }
 0x1ce   :  { %v1070_v13 = vpop.f32.mrb[94].mxu1  ;;  %v3433_v34 = vpop.f32.mrb[120].mxu0 }
 0x1cf   :  { %2230 = vst [vmem:[%s3485_s3 + $0xb0] sm:$0xff] %v2167_v30   ;;  %v1349_v29 = vadd.f32 %v3356_v45, %v1068_v10  ;;  %v1071_v51 = vadd.f32 %v3138_v62, %v1070_v13  ;;  %v1072_v17 = vpop.f32.mrb[95].mxu1  ;;  %v2398_v43 = vpop.f32.mrb[121].mxu0 }
 0x1d0   :  { %v3435_v59 = vpop.f32.mrb[122].mxu0 }
 0x1d1   :  { %v1352_v18 = vadd.f32 %v3358_v7, %v1071_v51  ;;  %v1457_v37 = vmax.f32 %v1349_v29, 0.0  ;;  %v2399_v14 = vpop.f32.mrb[123].mxu0 }
 0x1d3   :  { %v1458_v21 = vmax.f32 %v1352_v18, 0.0 }
 0x1d4   :  { %v1075_v23 = vpop.f32.mrb[96].mxu1 }
 0x1d5   :  { %v2172_v47 = vpack.c.bf16 %v1458_v21, %v1457_v37  ;;  %v1076_v25 = vadd.f32 %v3138_v62, %v1075_v23  ;;  %v1077_v42 = vpop.f32.mrb[97].mxu1 }
 0x1d6   :  { %v1078_v28 = vpop.f32.mrb[98].mxu1 }
 0x1d7   :  { %2231 = vst [vmem:[%s3485_s3 + $0xb8] sm:$0xff] %v2172_v47   ;;  %v1357_v45 = vadd.f32 %v3367_v46, %v1076_v25  ;;  %v1079_v7 = vadd.f32 %v3138_v62, %v1078_v28  ;;  %v1080_v32 = vpop.f32.mrb[99].mxu1 }
 0x1d9   :  { %v1360_v58 = vadd.f32 %v3369_v22, %v1079_v7  ;;  %v1459_v57 = vmax.f32 %v1357_v45, 0.0 }
 0x1db   :  { %v1460_v35 = vmax.f32 %v1360_v58, 0.0 }
 0x1dc   :  { %v1083_v40 = vpop.f32.mrb[100].mxu1 }
 0x1dd   :  { %v2177_v1 = vpack.c.bf16 %v1460_v35, %v1459_v57  ;;  %v1084_v36 = vadd.f32 %v3138_v62, %v1083_v40  ;;  %v1085_v61 = vpop.f32.mrb[101].mxu1 }
 0x1de   :  { %v1086_v44 = vpop.f32.mrb[102].mxu1 }
 0x1df   :  { %2232 = vst [vmem:[%s3485_s3 + $0xc0] sm:$0xff] %v2177_v1   ;;  %v1365_v46 = vadd.f32 %v3378_v50, %v1084_v36  ;;  %v1087_v22 = vadd.f32 %v3138_v62, %v1086_v44  ;;  %v1088_v48 = vpop.f32.mrb[103].mxu1 }
 0x1e1   :  { %v1368_v3 = vadd.f32 %v3380_v38, %v1087_v22  ;;  %v1461_v52 = vmax.f32 %v1365_v46, 0.0 }
 0x1e3   :  { %v1462_v12 = vmax.f32 %v1368_v3, 0.0 }
 0x1e4   :  { %v1091_v54 = vpop.f32.mrb[104].mxu1 }
 0x1e5   :  { %v2182_v16 = vpack.c.bf16 %v1462_v12, %v1461_v52  ;;  %v1092_v2 = vadd.f32 %v3138_v62, %v1091_v54  ;;  %v1093_v11 = vpop.f32.mrb[105].mxu1 }
 0x1e6   :  { %v1094_v53 = vpop.f32.mrb[106].mxu1 }
 0x1e7   :  { %2233 = vst [vmem:[%s3485_s3 + $0xc8] sm:$0xff] %v2182_v16   ;;  %v1373_v60 = vadd.f32 %v3389_v33, %v1092_v2  ;;  %v1095_v50 = vadd.f32 %v3138_v62, %v1094_v53  ;;  %v1096_v15 = vpop.f32.mrb[107].mxu1 }
 0x1e9   :  { %v1376_v31 = vadd.f32 %v3391_v55, %v1095_v50  ;;  %v1463_v38 = vmax.f32 %v1373_v60, 0.0 }
 0x1eb   :  { %v1464_v0 = vmax.f32 %v1376_v31, 0.0 }
 0x1ec   :  { %v1099_v4 = vpop.f32.mrb[108].mxu1 }
 0x1ed   :  { %v2187_v19 = vpack.c.bf16 %v1464_v0, %v1463_v38  ;;  %v1100_v6 = vadd.f32 %v3138_v62, %v1099_v4  ;;  %v1101_v27 = vpop.f32.mrb[109].mxu1 }
 0x1ee   :  { %v1102_v8 = vpop.f32.mrb[110].mxu1 }
 0x1ef   :  { %2234 = vst [vmem:[%s3485_s3 + $0xd0] sm:$0xff] %v2187_v19   ;;  %v1381_v30 = vadd.f32 %v3400_v49, %v1100_v6  ;;  %v1103_v33 = vadd.f32 %v3138_v62, %v1102_v8  ;;  %v1104_v10 = vpop.f32.mrb[111].mxu1 }
 0x1f1   :  { %v1384_v26 = vadd.f32 %v3402_v9, %v1103_v33  ;;  %v1465_v55 = vmax.f32 %v1381_v30, 0.0 }
 0x1f3   :  { %v1466_v56 = vmax.f32 %v1384_v26, 0.0 }
 0x1f4   :  { %v1107_v13 = vpop.f32.mrb[112].mxu1 }
 0x1f5   :  { %v2192_v29 = vpack.c.bf16 %v1466_v56, %v1465_v55  ;;  %v1108_v51 = vadd.f32 %v3138_v62, %v1107_v13  ;;  %v1109_v17 = vpop.f32.mrb[113].mxu1 }
 0x1f6   :  { %v1110_v18 = vpop.f32.mrb[114].mxu1 }
 0x1f7   :  { %2235 = vst [vmem:[%s3485_s3 + $0xd8] sm:$0xff] %v2192_v29   ;;  %v1389_v37 = vadd.f32 %v3411_v5, %v1108_v51  ;;  %v1111_v49 = vadd.f32 %v3138_v62, %v1110_v18  ;;  %v1112_v21 = vpop.f32.mrb[115].mxu1 }
 0x1f9   :  { %v1392_v39 = vadd.f32 %v3413_v24, %v1111_v49  ;;  %v1467_v9 = vmax.f32 %v1389_v37, 0.0 }
 0x1fb   :  { %v1468_v23 = vmax.f32 %v1392_v39, 0.0 }
 0x1fc   :  { %v1115_v47 = vpop.f32.mrb[116].mxu1 }
 0x1fd   :  { %v2197_v25 = vpack.c.bf16 %v1468_v23, %v1467_v9  ;;  %v1116_v42 = vadd.f32 %v3138_v62, %v1115_v47  ;;  %v1117_v63 = vpop.f32.mrb[117].mxu1 }
 0x1fe   :  { %v1118_v28 = vpop.f32.mrb[118].mxu1 }
 0x1ff   :  { %2236 = vst [vmem:[%s3485_s3 + $0xe0] sm:$0xff] %v2197_v25   ;;  %v1397_v45 = vadd.f32 %v3422_v20, %v1116_v42  ;;  %v1119_v5 = vadd.f32 %v3138_v62, %v1118_v28  ;;  %v1120_v7 = vpop.f32.mrb[119].mxu1 }
 0x201   :  { %v1400_v32 = vadd.f32 %v3424_v41, %v1119_v5  ;;  %v1469_v24 = vmax.f32 %v1397_v45, 0.0 }
 0x203   :  { %v1470_v58 = vmax.f32 %v1400_v32, 0.0 }
 0x204   :  { %v1123_v57 = vpop.f32.mrb[120].mxu1 }
 0x205   :  { %v2202_v35 = vpack.c.bf16 %v1470_v58, %v1469_v24  ;;  %v1124_v43 = vadd.f32 %v3138_v62, %v1123_v57  ;;  %v1125_v40 = vpop.f32.mrb[121].mxu1 }
 0x206   :  { %v1126_v1 = vpop.f32.mrb[122].mxu1 }
 0x207   :  { %2237 = vst [vmem:[%s3485_s3 + $0xe8] sm:$0xff] %v2202_v35   ;;  %v1405_v36 = vadd.f32 %v3433_v34, %v1124_v43  ;;  %v1127_v20 = vadd.f32 %v3138_v62, %v1126_v1  ;;  %v1128_v61 = vpop.f32.mrb[123].mxu1 }
 0x209   :  { %v1408_v14 = vadd.f32 %v3435_v59, %v1127_v20  ;;  %v1471_v41 = vmax.f32 %v1405_v36, 0.0 }
 0x20b   :  { %v1472_v44 = vmax.f32 %v1408_v14, 0.0 }
 0x20d   :  { %v2207_v46 = vpack.c.bf16 %v1472_v44, %v1471_v41 }
 0x20f   :  { %2238 = vst [vmem:[%s3485_s3 + $0xf0] sm:$0xff] %v2207_v46  }

// kernel: siamese_forward.6
= control target key start
LH: loop header
LB: loop body
LE: loop exit
PB: predicated region body
PF: predicated region fallthrough
CT: control target
= control target key end

     0   :  { %v870_v34 = vmov 0.0   ;;  %vm871_vm0 = vmmov 0   ;;  %vm403_vm1 = vcmask 523264   ;;  %s1057_s1 = inlined_call_operand.vmem [shape: bf16[576,128], index: 1, kind: input, shape index: {}]   ;;  %s1058_s0 = inlined_call_operand.vmem [shape: bf16[48,576], index: 0, kind: input, shape index: {}]   ;;  %s1059_s2 = inlined_call_operand.vmem [shape: f32[1,128], index: 2, kind: input, shape index: {}]   ;;  %s1060_s3 = inlined_call_operand.vmem [shape: bf16[48,128], index: 3, kind: output, shape index: {}]  }
   0x1   :  { %v813_v0 = vld [vmem:[%s1057_s1 + $0x40] sm:$0xff]   ;;  %v817_v4 = vld [vmem:[%s1057_s1 + $0x48] sm:$0xff]   ;;  %v821_v8 = vld [vmem:[%s1057_s1 + $0x50] sm:$0xff]  }
   0x2   :  { %v814_v1 = vld [vmem:[%s1057_s1 + $0xc0] sm:$0xff]   ;;  %708 = vmatprep.subr.bf16.mxu0 %v813_v0  ;;  %v818_v5 = vld [vmem:[%s1057_s1 + $0xc8] sm:$0xff]   ;;  %v822_v9 = vld [vmem:[%s1057_s1 + $0xd0] sm:$0xff]  }
   0x3   :  { %v815_v2 = vld [vmem:[%s1057_s1] sm:$0xff]   ;;  %742 = vmatprep.subr.bf16.mxu1 %v814_v1  ;;  %v819_v6 = vld [vmem:[%s1057_s1 + $0x8] sm:$0xff]   ;;  %v823_v10 = vld [vmem:[%s1057_s1 + $0x10] sm:$0xff]  }
   0x4   :  { %v816_v3 = vld [vmem:[%s1057_s1 + $0x80] sm:$0xff]   ;;  %709 = vmatpush3.bf16.msra.mxu0 %v815_v2  ;;  %v820_v7 = vld [vmem:[%s1057_s1 + $0x88] sm:$0xff]   ;;  %v824_v11 = vld [vmem:[%s1057_s1 + $0x90] sm:$0xff]  }
   0x5   :  { %743 = vmatpush3.bf16.msra.mxu1 %v816_v3  ;;  %710 = vmatprep.subr.bf16.mxu0 %v817_v4  ;;  %v825_v12 = vld [vmem:[%s1057_s1 + $0x58] sm:$0xff]   ;;  %v829_v16 = vld [vmem:[%s1057_s1 + $0x60] sm:$0xff]   ;;  %v833_v20 = vld [vmem:[%s1057_s1 + $0x68] sm:$0xff]  }
   0x6   :  { %744 = vmatprep.subr.bf16.mxu1 %v818_v5  ;;  %v826_v13 = vld [vmem:[%s1057_s1 + $0xd8] sm:$0xff]   ;;  %v830_v17 = vld [vmem:[%s1057_s1 + $0xe0] sm:$0xff]   ;;  %v834_v21 = vld [vmem:[%s1057_s1 + $0xe8] sm:$0xff]  }
   0x7   :  { %v827_v14 = vld [vmem:[%s1057_s1 + $0x18] sm:$0xff]   ;;  %v831_v18 = vld [vmem:[%s1057_s1 + $0x20] sm:$0xff]   ;;  %v835_v22 = vld [vmem:[%s1057_s1 + $0x28] sm:$0xff]  }
   0x8   :  { %711 = vmatpush3.bf16.msra.mxu0 %v819_v6  ;;  %v828_v15 = vld [vmem:[%s1057_s1 + $0x98] sm:$0xff]   ;;  %v832_v19 = vld [vmem:[%s1057_s1 + $0xa0] sm:$0xff]   ;;  %v836_v23 = vld [vmem:[%s1057_s1 + $0xa8] sm:$0xff]  }
   0x9   :  { %745 = vmatpush3.bf16.msra.mxu1 %v820_v7  ;;  %712 = vmatprep.subr.bf16.mxu0 %v821_v8  ;;  %v837_v24 = vld [vmem:[%s1057_s1 + $0x70] sm:$0xff]   ;;  %v841_v28 = vld [vmem:[%s1057_s1 + $0x78] sm:$0xff]   ;;  %v850_v36 = vld [vmem:[%s1058_s0 + $0xc] ss:$20 sps:$4 sm:$0xff]  }
   0xa   :  { %746 = vmatprep.subr.bf16.mxu1 %v822_v9  ;;  %v838_v25 = vld [vmem:[%s1057_s1 + $0xf0] sm:$0xff]   ;;  %v842_v29 = vld [vmem:[%s1057_s1 + $0xf8] sm:$0xff]   ;;  %v851_v37 = vld [vmem:[%s1057_s1 + $0x100] sm:$0xff]   ;;  %502 = vmatprep.mubr.bf16.mxu1 %v850_v36 }
   0xb   :  { %v839_v26 = vld [vmem:[%s1057_s1 + $0x30] sm:$0xff]   ;;  %v843_v30 = vld [vmem:[%s1057_s1 + $0x38] sm:$0xff]   ;;  %v852_v38 = vld [vmem:[%s1058_s0 + $0x2c] ss:$20 sps:$4 sm:$0xff]  }
   0xc   :  { %713 = vmatpush3.bf16.msra.mxu0 %v823_v10  ;;  %v840_v27 = vld [vmem:[%s1057_s1 + $0xb0] sm:$0xff]   ;;  %v844_v31 = vld [vmem:[%s1057_s1 + $0xb8] sm:$0xff]   ;;  %v856_v40 = vld [vmem:[%s1057_s1 + $0x108] sm:$0xff]  }
   0xd   :  { %747 = vmatpush3.bf16.msra.mxu1 %v824_v11  ;;  %714 = vmatprep.subr.bf16.mxu0 %v825_v12  ;;  %v845_v32 = vld [vmem:[%s1058_s0] ss:$20 sps:$4 sm:$0xff]   ;;  %v847_v33 = vld [vmem:[%s1058_s0 + $0x4] ss:$20 sps:$4 sm:$0xff]   ;;  %v848_v35 = vld [vmem:[%s1058_s0 + $0x8] ss:$20 sps:$4 sm:$0xff]  }
   0xe   :  { %748 = vmatprep.subr.bf16.mxu1 %v826_v13  ;;  %445 = vmatprep.mubr.bf16.mxu0 %v847_v33  ;;  %v854_v39 = vld [vmem:[%s1058_s0 + $0x34] ss:$20 sps:$4 sm:$0xff]   ;;  %v858_v42 = vld [vmem:[%s1058_s0 + $0x30] ss:$20 sps:$4 sm:$0xff]   ;;  %v866_v46 = vld [vmem:[%s1057_s1 + $0x118] sm:$0xff]  }
   0xf   :  { %v857_v41 = vld [vmem:[%s1058_s0 + $0x28] ss:$20 sps:$4 sm:$0xff]   ;;  %v859_v44 = vld [vmem:[%s1057_s1 + $0x110] sm:$0xff]   ;;  %v865_v48 = vld [vmem:[%s1058_s0 + $0x58] ss:$20 sps:$4 sm:$0xff]  }
  0x10   :  { %715 = vmatpush3.bf16.msra.mxu0 %v827_v14  ;;  %v860_v43 = vld [vmem:[%s1058_s0 + $0x54] ss:$20 sps:$4 sm:$0xff]   ;;  %v862_v45 = vld [vmem:[%s1058_s0 + $0x5c] ss:$20 sps:$4 sm:$0xff]   ;;  %v868_v50 = vld [vmem:[%s1058_s0 + $0x38] ss:$20 sps:$4 sm:$0xff]  }
  0x11   :  { %749 = vmatpush3.bf16.msra.mxu1 %v828_v15  ;;  %716 = vmatprep.subr.bf16.mxu0 %v829_v16  ;;  %v864_v47 = vld [vmem:[%s1058_s0 + $0x50] ss:$20 sps:$4 sm:$0xff]   ;;  %v869_v51 = vld [vmem:[%s1058_s0 + $0x60] ss:$20 sps:$4 sm:$0xff]  }
  0x12   :  { %750 = vmatprep.subr.bf16.mxu1 %v830_v17  ;;  %v867_v49 = vld [vmem:[%s1058_s0 + $0x10] ss:$20 sps:$4 sm:$0xff]   ;;  %v624_v54 = vld [vmem:[%s1059_s2] ss:$0 sm:$0xff] }
  0x14   :  { %717 = vmatpush3.bf16.msra.mxu0 %v831_v18 }
  0x15   :  { %751 = vmatpush3.bf16.msra.mxu1 %v832_v19  ;;  %718 = vmatprep.subr.bf16.mxu0 %v833_v20 }
  0x16   :  { %752 = vmatprep.subr.bf16.mxu1 %v834_v21 }
  0x18   :  { %719 = vmatpush3.bf16.msra.mxu0 %v835_v22 }
  0x19   :  { %753 = vmatpush3.bf16.msra.mxu1 %v836_v23  ;;  %720 = vmatprep.subr.bf16.mxu0 %v837_v24 }
  0x1a   :  { %754 = vmatprep.subr.bf16.mxu1 %v838_v25 }
  0x1c   :  { %721 = vmatpush3.bf16.msra.mxu0 %v839_v26 }
  0x1d   :  { %755 = vmatpush3.bf16.msra.mxu1 %v840_v27  ;;  %722 = vmatprep.subr.bf16.mxu0 %v841_v28 }
  0x1e   :  { %756 = vmatprep.subr.bf16.mxu1 %v842_v29 }
  0x20   :  { %723 = vmatpush3.bf16.msra.mxu0 %v843_v30 }
  0x21   :  { %757 = vmatpush3.bf16.msra.mxu1 %v844_v31  ;;  %783 = vmatprep.subr.bf16.mxu0 %v870_v34 }
  0x22   :  { %803 = vmatprep.subr.bf16.mxu1 %v870_v34 }
  0x23   :  { %446 = vmatmul.mubr.bf16.vlgmr.msra.gmra.mrb[0].mxu0 %v845_v32 }
  0x24   :  { %503 = vmatmul.mubr.bf16.vlgmr.msra.gmra.mrb[0].mxu1 %v848_v35  ;;  %784 = vmatpush3.bf16.msra.mxu0 %v851_v37 }
  0x25   :  { %807 = vmatpush3.bf16.msra.mxu1 %v851_v37  ;;  %453 = vmatprep.mubr.bf16.mxu0 %v852_v38 }
  0x26   :  { %804 = vmatprep.subr.bf16.mxu1 %v870_v34  ;;  %510 = vmatprep.mubr.bf16.mxu1 %v854_v39 }
  0x27   :  { %785 = vmatprep.subr.bf16.mxu0 %v870_v34 }
  0x28   :  { %786 = vmatpush3.bf16.msra.mxu0 %v856_v40 }
  0x29   :  { %808 = vmatpush3.bf16.msra.mxu1 %v856_v40  ;;  %787 = vmatprep.subr.bf16.mxu0 %v870_v34 }
  0x2a   :  { %805 = vmatprep.subr.bf16.mxu1 %v870_v34 }
  0x2b   :  { %454 = vmatmul.mubr.bf16.gmra.mrb[4].mxu0 %v857_v41 }
  0x2c   :  { %511 = vmatmul.mubr.bf16.gmra.mrb[4].mxu1 %v858_v42  ;;  %461 = vmatprep.mubr.bf16.mxu0 %v860_v43 }
  0x2d   :  { %809 = vmatpush3.bf16.msra.mxu1 %v859_v44  ;;  %518 = vmatprep.mubr.bf16.mxu1 %v862_v45 }
  0x2e   :  { %788 = vmatpush3.bf16.msra.mxu0 %v859_v44  ;;  %806 = vmatprep.subr.bf16.mxu1 %v870_v34 }
  0x2f   :  { %789 = vmatprep.subr.bf16.mxu0 %v870_v34 }
  0x31   :  { %810 = vmatpush3.bf16.msra.mxu1 %v866_v46 }
  0x32   :  { %790 = vmatpush3.bf16.msra.mxu0 %v866_v46 }
  0x33   :  { %462 = vmatmul.mubr.bf16.gmra.mrb[8].mxu0 %v864_v47 }
  0x34   :  { %519 = vmatmul.mubr.bf16.gmra.mrb[8].mxu1 %v865_v48  ;;  %791 = vmatprep.mubr.msk.bf16.mxu0 %vm871_vm0, %v870_v34 }
  0x35   :  { %795 = vmatprep.mubr.msk.bf16.mxu1 %vm871_vm0, %v870_v34 }
  0x3b   :  { %792 = vmatmul.mubr.msk.bf16.vlgmr.msra.gmra.mrb[12].mxu0 %vm403_vm1, %v867_v49 }
  0x3c   :  { %796 = vmatmul.mubr.msk.bf16.vlgmr.msra.gmra.mrb[12].mxu1 %vm403_vm1, %v868_v50 }
  0x3d   :  { %799 = vmatprep.mubr.msk.bf16.mxu1 %vm871_vm0, %v870_v34 }
  0x44   :  { %800 = vmatmul.mubr.msk.bf16.gmra.mrb[16].mxu1 %vm403_vm1, %v869_v51 }
  0xf6   :  { %v724_v52 = vpop.f32.mrb[0].mxu0 }
  0xf7   :  { %v758_v53 = vpop.f32.mrb[0].mxu1  ;;  %v725_v55 = vpop.f32.mrb[1].mxu0 }
  0xf8   :  { %v726_v56 = vadd.f32 %v725_v55, %v724_v52  ;;  %v759_v57 = vpop.f32.mrb[1].mxu1  ;;  %v727_v58 = vpop.f32.mrb[2].mxu0 }
  0xf9   :  { %v760_v59 = vadd.f32 %v759_v57, %v758_v53  ;;  %v761_v60 = vpop.f32.mrb[2].mxu1  ;;  %v728_v61 = vpop.f32.mrb[3].mxu0 }
  0xfa   :  { %v448_v62 = vadd.f32 %v726_v56, %v624_v54  ;;  %v729_v63 = vadd.f32 %v728_v61, %v727_v58  ;;  %v762_v0 = vpop.f32.mrb[3].mxu1 }
  0xfb   :  { %v763_v1 = vadd.f32 %v762_v0, %v761_v60 }
  0xfc   :  { %v451_v2 = vadd.f32 %v729_v63, %v624_v54  ;;  %v505_v3 = vadd.f32 %v760_v59, %v448_v62 }
  0xfe   :  { %v730_v4 = vpop.f32.mrb[4].mxu0  ;;  %v508_v5 = vadd.f32 %v763_v1, %v451_v2 }
  0xff   :  { %v764_v6 = vpop.f32.mrb[4].mxu1  ;;  %v731_v7 = vpop.f32.mrb[5].mxu0 }
 0x100   :  { %v732_v8 = vadd.f32 %v731_v7, %v730_v4  ;;  %v765_v9 = vpop.f32.mrb[5].mxu1  ;;  %v733_v10 = vpop.f32.mrb[6].mxu0 }
 0x101   :  { %v766_v11 = vadd.f32 %v765_v9, %v764_v6  ;;  %v767_v12 = vpop.f32.mrb[6].mxu1  ;;  %v734_v13 = vpop.f32.mrb[7].mxu0 }
 0x102   :  { %v456_v14 = vadd.f32 %v732_v8, %v624_v54  ;;  %v735_v15 = vadd.f32 %v734_v13, %v733_v10  ;;  %v768_v16 = vpop.f32.mrb[7].mxu1 }
 0x103   :  { %v769_v17 = vadd.f32 %v768_v16, %v767_v12 }
 0x104   :  { %v459_v18 = vadd.f32 %v735_v15, %v624_v54  ;;  %v513_v19 = vadd.f32 %v766_v11, %v456_v14 }
 0x106   :  { %v736_v20 = vpop.f32.mrb[8].mxu0  ;;  %v516_v21 = vadd.f32 %v769_v17, %v459_v18 }
 0x107   :  { %v770_v22 = vpop.f32.mrb[8].mxu1  ;;  %v737_v23 = vpop.f32.mrb[9].mxu0 }
 0x108   :  { %v738_v24 = vadd.f32 %v737_v23, %v736_v20  ;;  %v771_v25 = vpop.f32.mrb[9].mxu1  ;;  %v739_v26 = vpop.f32.mrb[10].mxu0 }
 0x109   :  { %v772_v27 = vadd.f32 %v771_v25, %v770_v22  ;;  %v773_v28 = vpop.f32.mrb[10].mxu1  ;;  %v740_v29 = vpop.f32.mrb[11].mxu0 }
 0x10a   :  { %v464_v30 = vadd.f32 %v738_v24, %v624_v54  ;;  %v741_v31 = vadd.f32 %v740_v29, %v739_v26  ;;  %v774_v32 = vpop.f32.mrb[11].mxu1 }
 0x10b   :  { %v775_v33 = vadd.f32 %v774_v32, %v773_v28 }
 0x10c   :  { %v467_v34 = vadd.f32 %v741_v31, %v624_v54  ;;  %v521_v35 = vadd.f32 %v772_v27, %v464_v30 }
 0x10e   :  { %v561_v36 = vpop.f32.mrb[12].mxu0  ;;  %v524_v37 = vadd.f32 %v775_v33, %v467_v34 }
 0x10f   :  { %v562_v38 = vadd.f32 %v561_v36, %v505_v3  ;;  %v569_v39 = vpop.f32.mrb[12].mxu1  ;;  %v793_v40 = vpop.f32.mrb[13].mxu0 }
 0x110   :  { %v570_v41 = vadd.f32 %v569_v39, %v513_v19  ;;  %v797_v42 = vpop.f32.mrb[13].mxu1  ;;  %v564_v43 = vpop.f32.mrb[14].mxu0 }
 0x111   :  { %v565_v44 = vadd.f32 %v564_v43, %v508_v5  ;;  %v572_v45 = vpop.f32.mrb[14].mxu1  ;;  %v794_v46 = vpop.f32.mrb[15].mxu0  ;;  %v584_v49 = vmax.f32 %v562_v38, 0.0 }
 0x112   :  { %v573_v47 = vadd.f32 %v572_v45, %v516_v21  ;;  %v798_v48 = vpop.f32.mrb[15].mxu1  ;;  %v586_v51 = vmax.f32 %v570_v41, 0.0 }
 0x113   :  { %v585_v50 = vmax.f32 %v565_v44, 0.0 }
 0x114   :  { %v587_v52 = vmax.f32 %v573_v47, 0.0 }
 0x115   :  { %v694_v53 = vpack.c.bf16 %v585_v50, %v584_v49 }
 0x116   :  { %v699_v54 = vpack.c.bf16 %v587_v52, %v586_v51 }
 0x117   :  { %695 = vst [vmem:[%s1060_s3] sm:$0xff] %v694_v53   ;;  %v577_v55 = vpop.f32.mrb[16].mxu1 }
 0x118   :  { %706 = vst [vmem:[%s1060_s3 + $0x8] sm:$0xff] %v699_v54   ;;  %v578_v56 = vadd.f32 %v577_v55, %v521_v35  ;;  %v801_v57 = vpop.f32.mrb[17].mxu1 }
 0x119   :  { %v580_v58 = vpop.f32.mrb[18].mxu1 }
 0x11a   :  { %v581_v59 = vadd.f32 %v580_v58, %v524_v37  ;;  %v802_v60 = vpop.f32.mrb[19].mxu1  ;;  %v588_v61 = vmax.f32 %v578_v56, 0.0 }
 0x11c   :  { %v589_v62 = vmax.f32 %v581_v59, 0.0 }
 0x11e   :  { %v704_v63 = vpack.c.bf16 %v589_v62, %v588_v61 }
 0x120   :  { %707 = vst [vmem:[%s1060_s3 + $0x10] sm:$0xff] %v704_v63  }

// kernel: siamese_forward.7
= control target key start
LH: loop header
LB: loop body
LE: loop exit
PB: predicated region body
PF: predicated region fallthrough
CT: control target
= control target key end

     0   :  { %s9072_s1 = inlined_call_operand.vmem [shape: bf16[1152,1024], index: 1, kind: input, shape index: {}]   ;;  %s9073_s0 = inlined_call_operand.vmem [shape: bf16[16,1152], index: 0, kind: input, shape index: {}]   ;;  %s9074_s3 = inlined_call_operand.vmem [shape: bf16[1024,256], index: 3, kind: input, shape index: {}]   ;;  %s9075_s2 = inlined_call_operand.vmem [shape: f32[1,1024], index: 2, kind: input, shape index: {}]   ;;  %s9076_s5 = inlined_call_operand.vmem [shape: bf16[256,128], index: 5, kind: input, shape index: {}]   ;;  %s9077_s4 = inlined_call_operand.vmem [shape: f32[1,256], index: 4, kind: input, shape index: {}]   ;;  %s9078_s6 = inlined_call_operand.vmem [shape: f32[1,128], index: 6, kind: input, shape index: {}]   ;;  %s9079_s7 = inlined_call_operand.vmem [shape: f32[16,128], index: 7, kind: output, shape index: {}]  }
   0x1   :  { %v37_v0 = vld [vmem:[%s9072_s1] sm:$0xff]  ;;  %v6456_v59 = vld [vmem:[%s9073_s0 + $0x14] ss:$36 sps:$4 sm:$0xff]  }
   0x2   :  { %v41_v1 = vld [vmem:[%s9072_s1 + $0x20] sm:$0xff]  ;;  %3699 = vmatprep.mubr.bf16.mxu0 %v6456_v59 }
   0x3   :  { %v293_v2 = vld [vmem:[%s9072_s1 + $0x800] sm:$0xff]  ;;  %v5615_v3 = vcombine.high %v37_v0, %v41_v1  ;;  %v5614_v5 = vcombine.low %v37_v0, %v41_v1 }
   0x4   :  { %v297_v4 = vld [vmem:[%s9072_s1 + $0x820] sm:$0xff] }
   0x5   :  { %v45_v6 = vld [vmem:[%s9072_s1 + $0x40] sm:$0xff]  ;;  %v5871_v8 = vcombine.high %v293_v2, %v297_v4  ;;  %v5870_v9 = vcombine.low %v293_v2, %v297_v4  ;;  %3581 = vmatprep.subr.bf16.mxu1 %v5615_v3 }
   0x6   :  { %v49_v7 = vld [vmem:[%s9072_s1 + $0x60] sm:$0xff]  ;;  %3582 = vmatpush1.bf16.msra.mxu1 %v5614_v5 }
   0x7   :  { %v5623_v10 = vcombine.high %v45_v6, %v49_v7  ;;  %v301_v11 = vld [vmem:[%s9072_s1 + $0x840] sm:$0xff]  ;;  %3667 = vmatprep.subr.bf16.mxu0 %v5871_v8  ;;  %v5622_v18 = vcombine.low %v45_v6, %v49_v7 }
   0x8   :  { %v305_v12 = vld [vmem:[%s9072_s1 + $0x860] sm:$0xff]  ;;  %3668 = vmatpush1.bf16.msra.mxu0 %v5870_v9 }
   0x9   :  { %v53_v13 = vld [vmem:[%s9072_s1 + $0x80] sm:$0xff]  ;;  %v5879_v14 = vcombine.high %v301_v11, %v305_v12  ;;  %3583 = vmatprep.subr.bf16.mxu1 %v5623_v10  ;;  %v5878_v19 = vcombine.low %v301_v11, %v305_v12 }
   0xa   :  { %v57_v15 = vld [vmem:[%s9072_s1 + $0xa0] sm:$0xff]  ;;  %3584 = vmatpush1.bf16.msra.mxu1 %v5622_v18 }
   0xb   :  { %v309_v16 = vld [vmem:[%s9072_s1 + $0x880] sm:$0xff]  ;;  %v5631_v20 = vcombine.high %v53_v13, %v57_v15  ;;  %3669 = vmatprep.subr.bf16.mxu0 %v5879_v14  ;;  %v5630_v26 = vcombine.low %v53_v13, %v57_v15 }
   0xc   :  { %v313_v17 = vld [vmem:[%s9072_s1 + $0x8a0] sm:$0xff]  ;;  %3670 = vmatpush1.bf16.msra.mxu0 %v5878_v19 }
   0xd   :  { %v5887_v21 = vcombine.high %v309_v16, %v313_v17  ;;  %v61_v22 = vld [vmem:[%s9072_s1 + $0xc0] sm:$0xff]  ;;  %3585 = vmatprep.subr.bf16.mxu1 %v5631_v20  ;;  %v5886_v27 = vcombine.low %v309_v16, %v313_v17 }
   0xe   :  { %v65_v23 = vld [vmem:[%s9072_s1 + $0xe0] sm:$0xff]  ;;  %3586 = vmatpush1.bf16.msra.mxu1 %v5630_v26 }
   0xf   :  { %v317_v24 = vld [vmem:[%s9072_s1 + $0x8c0] sm:$0xff]  ;;  %v5639_v28 = vcombine.high %v61_v22, %v65_v23  ;;  %3671 = vmatprep.subr.bf16.mxu0 %v5887_v21  ;;  %v5638_v34 = vcombine.low %v61_v22, %v65_v23 }
  0x10   :  { %v321_v25 = vld [vmem:[%s9072_s1 + $0x8e0] sm:$0xff]  ;;  %3672 = vmatpush1.bf16.msra.mxu0 %v5886_v27 }
  0x11   :  { %v5895_v29 = vcombine.high %v317_v24, %v321_v25  ;;  %v69_v30 = vld [vmem:[%s9072_s1 + $0x100] sm:$0xff]  ;;  %3587 = vmatprep.subr.bf16.mxu1 %v5639_v28  ;;  %v5894_v35 = vcombine.low %v317_v24, %v321_v25 }
  0x12   :  { %v73_v31 = vld [vmem:[%s9072_s1 + $0x120] sm:$0xff]  ;;  %3588 = vmatpush1.bf16.msra.mxu1 %v5638_v34 }
  0x13   :  { %v325_v32 = vld [vmem:[%s9072_s1 + $0x900] sm:$0xff]  ;;  %v5647_v36 = vcombine.high %v69_v30, %v73_v31  ;;  %3673 = vmatprep.subr.bf16.mxu0 %v5895_v29  ;;  %v5646_v42 = vcombine.low %v69_v30, %v73_v31 }
  0x14   :  { %v329_v33 = vld [vmem:[%s9072_s1 + $0x920] sm:$0xff]  ;;  %3674 = vmatpush1.bf16.msra.mxu0 %v5894_v35 }
  0x15   :  { %v5903_v37 = vcombine.high %v325_v32, %v329_v33  ;;  %v77_v38 = vld [vmem:[%s9072_s1 + $0x140] sm:$0xff]  ;;  %3589 = vmatprep.subr.bf16.mxu1 %v5647_v36  ;;  %v5902_v43 = vcombine.low %v325_v32, %v329_v33 }
  0x16   :  { %v81_v39 = vld [vmem:[%s9072_s1 + $0x160] sm:$0xff]  ;;  %3590 = vmatpush1.bf16.msra.mxu1 %v5646_v42 }
  0x17   :  { %v333_v40 = vld [vmem:[%s9072_s1 + $0x940] sm:$0xff]  ;;  %v5655_v44 = vcombine.high %v77_v38, %v81_v39  ;;  %3675 = vmatprep.subr.bf16.mxu0 %v5903_v37  ;;  %v5654_v50 = vcombine.low %v77_v38, %v81_v39 }
  0x18   :  { %v337_v41 = vld [vmem:[%s9072_s1 + $0x960] sm:$0xff]  ;;  %3676 = vmatpush1.bf16.msra.mxu0 %v5902_v43 }
  0x19   :  { %v5911_v45 = vcombine.high %v333_v40, %v337_v41  ;;  %v85_v46 = vld [vmem:[%s9072_s1 + $0x180] sm:$0xff]  ;;  %3591 = vmatprep.subr.bf16.mxu1 %v5655_v44  ;;  %v5910_v52 = vcombine.low %v333_v40, %v337_v41 }
  0x1a   :  { %v89_v47 = vld [vmem:[%s9072_s1 + $0x1a0] sm:$0xff]  ;;  %3592 = vmatpush1.bf16.msra.mxu1 %v5654_v50 }
  0x1b   :  { %v341_v48 = vld [vmem:[%s9072_s1 + $0x980] sm:$0xff]  ;;  %v5663_v53 = vcombine.high %v85_v46, %v89_v47  ;;  %3677 = vmatprep.subr.bf16.mxu0 %v5911_v45  ;;  %v5662_v60 = vcombine.low %v85_v46, %v89_v47 }
  0x1c   :  { %v345_v49 = vld [vmem:[%s9072_s1 + $0x9a0] sm:$0xff]  ;;  %3678 = vmatpush1.bf16.msra.mxu0 %v5910_v52 }
  0x1d   :  { %v93_v51 = vld [vmem:[%s9072_s1 + $0x1c0] sm:$0xff]  ;;  %v5919_v55 = vcombine.high %v341_v48, %v345_v49  ;;  %3593 = vmatprep.subr.bf16.mxu1 %v5663_v53  ;;  %v5918_v61 = vcombine.low %v341_v48, %v345_v49 }
  0x1e   :  { %v97_v54 = vld [vmem:[%s9072_s1 + $0x1e0] sm:$0xff]  ;;  %3594 = vmatpush1.bf16.msra.mxu1 %v5662_v60 }
  0x1f   :  { %v349_v56 = vld [vmem:[%s9072_s1 + $0x9c0] sm:$0xff]  ;;  %v5671_v62 = vcombine.high %v93_v51, %v97_v54  ;;  %3679 = vmatprep.subr.bf16.mxu0 %v5919_v55  ;;  %v5670_v4 = vcombine.low %v93_v51, %v97_v54 }
  0x20   :  { %v353_v57 = vld [vmem:[%s9072_s1 + $0x9e0] sm:$0xff]  ;;  %3680 = vmatpush1.bf16.msra.mxu0 %v5918_v61 }
  0x21   :  { %v6831_v58 = vld [vmem:[%s9073_s0 + $0x4] ss:$36 sps:$4 sm:$0xff]   ;;  %v5927_v63 = vcombine.high %v349_v56, %v353_v57  ;;  %3595 = vmatprep.subr.bf16.mxu1 %v5671_v62  ;;  %v5926_v5 = vcombine.low %v349_v56, %v353_v57 }
  0x22   :  { %3613 = vmatprep.mubr.bf16.mxu1 %v6831_v58  ;;  %v101_v0 = vld [vmem:[%s9072_s1 + $0x200] sm:$0xff]  ;;  %3596 = vmatpush1.bf16.msra.mxu1 %v5670_v4 }
  0x23   :  { %v105_v1 = vld [vmem:[%s9072_s1 + $0x220] sm:$0xff]  ;;  %3681 = vmatprep.subr.bf16.mxu0 %v5927_v63 }
  0x24   :  { %v357_v2 = vld [vmem:[%s9072_s1 + $0xa00] sm:$0xff]  ;;  %v5679_v6 = vcombine.high %v101_v0, %v105_v1  ;;  %v5678_v12 = vcombine.low %v101_v0, %v105_v1  ;;  %3682 = vmatpush1.bf16.msra.mxu0 %v5926_v5 }
  0x25   :  { %v361_v3 = vld [vmem:[%s9072_s1 + $0xa20] sm:$0xff] }
  0x26   :  { %v5935_v7 = vcombine.high %v357_v2, %v361_v3  ;;  %v109_v8 = vld [vmem:[%s9072_s1 + $0x240] sm:$0xff]  ;;  %3597 = vmatprep.subr.bf16.mxu1 %v5679_v6  ;;  %v5934_v13 = vcombine.low %v357_v2, %v361_v3 }
  0x27   :  { %v113_v9 = vld [vmem:[%s9072_s1 + $0x260] sm:$0xff]  ;;  %3598 = vmatpush1.bf16.msra.mxu1 %v5678_v12 }
  0x28   :  { %v365_v10 = vld [vmem:[%s9072_s1 + $0xa40] sm:$0xff]  ;;  %v5687_v14 = vcombine.high %v109_v8, %v113_v9  ;;  %3683 = vmatprep.subr.bf16.mxu0 %v5935_v7  ;;  %v5686_v20 = vcombine.low %v109_v8, %v113_v9 }
  0x29   :  { %v369_v11 = vld [vmem:[%s9072_s1 + $0xa60] sm:$0xff]  ;;  %3684 = vmatpush1.bf16.msra.mxu0 %v5934_v13 }
  0x2a   :  { %v5943_v15 = vcombine.high %v365_v10, %v369_v11  ;;  %v117_v16 = vld [vmem:[%s9072_s1 + $0x280] sm:$0xff]  ;;  %3599 = vmatprep.subr.bf16.mxu1 %v5687_v14  ;;  %v5942_v21 = vcombine.low %v365_v10, %v369_v11 }
  0x2b   :  { %v121_v17 = vld [vmem:[%s9072_s1 + $0x2a0] sm:$0xff]  ;;  %3600 = vmatpush1.bf16.msra.mxu1 %v5686_v20 }
  0x2c   :  { %v373_v18 = vld [vmem:[%s9072_s1 + $0xa80] sm:$0xff]  ;;  %v5695_v22 = vcombine.high %v117_v16, %v121_v17  ;;  %3685 = vmatprep.subr.bf16.mxu0 %v5943_v15  ;;  %v5694_v28 = vcombine.low %v117_v16, %v121_v17  ;;  %v6459_v15 = vld [vmem:[%s9073_s0 + $0x10] ss:$36 sps:$4 sm:$0xff]  }
  0x2d   :  { %v377_v19 = vld [vmem:[%s9072_s1 + $0xaa0] sm:$0xff]  ;;  %3686 = vmatpush1.bf16.msra.mxu0 %v5942_v21  ;;  %v6974_v21 = vld [vmem:[%s9073_s0 + $0xc] ss:$36 sps:$4 sm:$0xff]  }
  0x2e   :  { %v5951_v23 = vcombine.high %v373_v18, %v377_v19  ;;  %v125_v24 = vld [vmem:[%s9072_s1 + $0x2c0] sm:$0xff]  ;;  %3601 = vmatprep.subr.bf16.mxu1 %v5695_v22  ;;  %v5950_v29 = vcombine.low %v373_v18, %v377_v19 }
  0x2f   :  { %v129_v25 = vld [vmem:[%s9072_s1 + $0x2e0] sm:$0xff]  ;;  %3602 = vmatpush1.bf16.msra.mxu1 %v5694_v28 }
  0x30   :  { %v381_v26 = vld [vmem:[%s9072_s1 + $0xac0] sm:$0xff]  ;;  %v5703_v30 = vcombine.high %v125_v24, %v129_v25  ;;  %3687 = vmatprep.subr.bf16.mxu0 %v5951_v23  ;;  %v5702_v36 = vcombine.low %v125_v24, %v129_v25 }
  0x31   :  { %v385_v27 = vld [vmem:[%s9072_s1 + $0xae0] sm:$0xff]  ;;  %3688 = vmatpush1.bf16.msra.mxu0 %v5950_v29 }
  0x32   :  { %v5959_v31 = vcombine.high %v381_v26, %v385_v27  ;;  %v133_v32 = vld [vmem:[%s9072_s1 + $0x300] sm:$0xff]  ;;  %3603 = vmatprep.subr.bf16.mxu1 %v5703_v30  ;;  %v5958_v37 = vcombine.low %v381_v26, %v385_v27 }
  0x33   :  { %v137_v33 = vld [vmem:[%s9072_s1 + $0x320] sm:$0xff]  ;;  %3604 = vmatpush1.bf16.msra.mxu1 %v5702_v36 }
  0x34   :  { %v389_v34 = vld [vmem:[%s9072_s1 + $0xb00] sm:$0xff]  ;;  %v5711_v38 = vcombine.high %v133_v32, %v137_v33  ;;  %3689 = vmatprep.subr.bf16.mxu0 %v5959_v31  ;;  %v5710_v44 = vcombine.low %v133_v32, %v137_v33 }
  0x35   :  { %v393_v35 = vld [vmem:[%s9072_s1 + $0xb20] sm:$0xff]  ;;  %3690 = vmatpush1.bf16.msra.mxu0 %v5958_v37 }
  0x36   :  { %v5967_v39 = vcombine.high %v389_v34, %v393_v35  ;;  %v141_v40 = vld [vmem:[%s9072_s1 + $0x340] sm:$0xff]  ;;  %3605 = vmatprep.subr.bf16.mxu1 %v5711_v38  ;;  %v5966_v45 = vcombine.low %v389_v34, %v393_v35 }
  0x37   :  { %v145_v41 = vld [vmem:[%s9072_s1 + $0x360] sm:$0xff]  ;;  %3606 = vmatpush1.bf16.msra.mxu1 %v5710_v44 }
  0x38   :  { %v397_v42 = vld [vmem:[%s9072_s1 + $0xb40] sm:$0xff]  ;;  %v5719_v46 = vcombine.high %v141_v40, %v145_v41  ;;  %3691 = vmatprep.subr.bf16.mxu0 %v5967_v39  ;;  %v5718_v52 = vcombine.low %v141_v40, %v145_v41 }
  0x39   :  { %v401_v43 = vld [vmem:[%s9072_s1 + $0xb60] sm:$0xff]  ;;  %3692 = vmatpush1.bf16.msra.mxu0 %v5966_v45 }
  0x3a   :  { %v5975_v47 = vcombine.high %v397_v42, %v401_v43  ;;  %v149_v48 = vld [vmem:[%s9072_s1 + $0x380] sm:$0xff]  ;;  %3607 = vmatprep.subr.bf16.mxu1 %v5719_v46  ;;  %v5974_v53 = vcombine.low %v397_v42, %v401_v43 }
  0x3b   :  { %v153_v49 = vld [vmem:[%s9072_s1 + $0x3a0] sm:$0xff]  ;;  %3608 = vmatpush1.bf16.msra.mxu1 %v5718_v52 }
  0x3c   :  { %v405_v50 = vld [vmem:[%s9072_s1 + $0xb80] sm:$0xff]  ;;  %v5727_v54 = vcombine.high %v149_v48, %v153_v49  ;;  %3693 = vmatprep.subr.bf16.mxu0 %v5975_v47  ;;  %v5726_v61 = vcombine.low %v149_v48, %v153_v49 }
  0x3d   :  { %v409_v51 = vld [vmem:[%s9072_s1 + $0xba0] sm:$0xff]  ;;  %3694 = vmatpush1.bf16.msra.mxu0 %v5974_v53 }
  0x3e   :  { %v5983_v55 = vcombine.high %v405_v50, %v409_v51  ;;  %v157_v56 = vld [vmem:[%s9072_s1 + $0x3c0] sm:$0xff]  ;;  %3609 = vmatprep.subr.bf16.mxu1 %v5727_v54  ;;  %v5982_v62 = vcombine.low %v405_v50, %v409_v51 }
  0x3f   :  { %v161_v57 = vld [vmem:[%s9072_s1 + $0x3e0] sm:$0xff]  ;;  %3610 = vmatpush1.bf16.msra.mxu1 %v5726_v61 }
  0x40   :  { %v413_v59 = vld [vmem:[%s9072_s1 + $0xbc0] sm:$0xff]  ;;  %v5735_v63 = vcombine.high %v157_v56, %v161_v57  ;;  %3695 = vmatprep.subr.bf16.mxu0 %v5983_v55  ;;  %v5734_v5 = vcombine.low %v157_v56, %v161_v57 }
  0x41   :  { %v417_v60 = vld [vmem:[%s9072_s1 + $0xbe0] sm:$0xff]  ;;  %3696 = vmatpush1.bf16.msra.mxu0 %v5982_v62 }
  0x42   :  { %v5991_v0 = vcombine.high %v413_v59, %v417_v60  ;;  %v165_v1 = vld [vmem:[%s9072_s1 + $0x400] sm:$0xff]  ;;  %3611 = vmatprep.subr.bf16.mxu1 %v5735_v63  ;;  %v5990_v6 = vcombine.low %v413_v59, %v417_v60 }
  0x43   :  { %v169_v2 = vld [vmem:[%s9072_s1 + $0x420] sm:$0xff]  ;;  %3612 = vmatpush1.bf16.msra.mxu1 %v5734_v5 }
  0x44   :  { %v421_v3 = vld [vmem:[%s9072_s1 + $0xc00] sm:$0xff]  ;;  %v5743_v7 = vcombine.high %v165_v1, %v169_v2  ;;  %3697 = vmatprep.subr.bf16.mxu0 %v5991_v0  ;;  %v5742_v14 = vcombine.low %v165_v1, %v169_v2 }
  0x45   :  { %v425_v4 = vld [vmem:[%s9072_s1 + $0xc20] sm:$0xff]  ;;  %3698 = vmatpush1.bf16.msra.mxu0 %v5990_v6 }
  0x46   :  { %v5999_v8 = vcombine.high %v421_v3, %v425_v4  ;;  %v173_v9 = vld [vmem:[%s9072_s1 + $0x440] sm:$0xff]  ;;  %3624 = vmatprep.subr.bf16.mxu1 %v5743_v7  ;;  %v5998_v16 = vcombine.low %v421_v3, %v425_v4 }
  0x47   :  { %v177_v10 = vld [vmem:[%s9072_s1 + $0x460] sm:$0xff] }
  0x48   :  { %v6954_v11 = vld [vmem:[%s9073_s0] ss:$36 sps:$4 sm:$0xff]   ;;  %v5751_v17 = vcombine.high %v173_v9, %v177_v10  ;;  %3710 = vmatprep.subr.bf16.mxu0 %v5999_v8  ;;  %3700 = vmatmul.mubr.bf16.vlgmr.msra.gmra.mrb[0].mxu0 %v6459_v15  ;;  %v5750_v25 = vcombine.low %v173_v9, %v177_v10 }
  0x49   :  { %v429_v12 = vld [vmem:[%s9072_s1 + $0xc40] sm:$0xff]  ;;  %3614 = vmatmul.mubr.bf16.vlgmr.msra.gmra.mrb[0].mxu1 %v6954_v11  ;;  %3711 = vmatpush1.bf16.msra.mxu0 %v5998_v16 }
  0x4a   :  { %v433_v13 = vld [vmem:[%s9072_s1 + $0xc60] sm:$0xff]  ;;  %3625 = vmatpush1.bf16.msra.mxu1 %v5742_v14  ;;  %3656 = vmatprep.mubr.bf16.mxu1 %v6974_v21 }
  0x4b   :  { %v6007_v18 = vcombine.high %v429_v12, %v433_v13  ;;  %v181_v19 = vld [vmem:[%s9072_s1 + $0x480] sm:$0xff]  ;;  %3626 = vmatprep.subr.bf16.mxu1 %v5751_v17  ;;  %v6006_v26 = vcombine.low %v429_v12, %v433_v13 }
  0x4c   :  { %v185_v20 = vld [vmem:[%s9072_s1 + $0x4a0] sm:$0xff] }
  0x4d   :  { %v437_v22 = vld [vmem:[%s9072_s1 + $0xc80] sm:$0xff]  ;;  %v5759_v27 = vcombine.high %v181_v19, %v185_v20  ;;  %3712 = vmatprep.subr.bf16.mxu0 %v6007_v18  ;;  %v5758_v33 = vcombine.low %v181_v19, %v185_v20 }
  0x4e   :  { %v441_v23 = vld [vmem:[%s9072_s1 + $0xca0] sm:$0xff]  ;;  %3627 = vmatpush1.bf16.msra.mxu1 %v5750_v25  ;;  %3713 = vmatpush1.bf16.msra.mxu0 %v6006_v26 }
  0x4f   :  { %v6463_v24 = vld [vmem:[%s9073_s0 + $0x1c] ss:$36 sps:$4 sm:$0xff]   ;;  %v6015_v28 = vcombine.high %v437_v22, %v441_v23  ;;  %3628 = vmatprep.subr.bf16.mxu1 %v5759_v27  ;;  %v6014_v34 = vcombine.low %v437_v22, %v441_v23 }
  0x50   :  { %v189_v29 = vld [vmem:[%s9072_s1 + $0x4c0] sm:$0xff]  ;;  %3742 = vmatprep.mubr.bf16.mxu0 %v6463_v24 }
  0x51   :  { %v193_v30 = vld [vmem:[%s9072_s1 + $0x4e0] sm:$0xff]  ;;  %3714 = vmatprep.subr.bf16.mxu0 %v6015_v28 }
  0x52   :  { %v445_v31 = vld [vmem:[%s9072_s1 + $0xcc0] sm:$0xff]  ;;  %v5767_v35 = vcombine.high %v189_v29, %v193_v30  ;;  %3629 = vmatpush1.bf16.msra.mxu1 %v5758_v33  ;;  %v5766_v41 = vcombine.low %v189_v29, %v193_v30  ;;  %3715 = vmatpush1.bf16.msra.mxu0 %v6014_v34 }
  0x53   :  { %v449_v32 = vld [vmem:[%s9072_s1 + $0xce0] sm:$0xff] }
  0x54   :  { %v6023_v36 = vcombine.high %v445_v31, %v449_v32  ;;  %v197_v37 = vld [vmem:[%s9072_s1 + $0x500] sm:$0xff]  ;;  %3630 = vmatprep.subr.bf16.mxu1 %v5767_v35  ;;  %v6022_v42 = vcombine.low %v445_v31, %v449_v32 }
  0x55   :  { %v201_v38 = vld [vmem:[%s9072_s1 + $0x520] sm:$0xff] }
  0x56   :  { %v453_v39 = vld [vmem:[%s9072_s1 + $0xd00] sm:$0xff]  ;;  %v5775_v43 = vcombine.high %v197_v37, %v201_v38  ;;  %3716 = vmatprep.subr.bf16.mxu0 %v6023_v36  ;;  %3631 = vmatpush1.bf16.msra.mxu1 %v5766_v41  ;;  %v5774_v49 = vcombine.low %v197_v37, %v201_v38 }
  0x57   :  { %v457_v40 = vld [vmem:[%s9072_s1 + $0xd20] sm:$0xff]  ;;  %3717 = vmatpush1.bf16.msra.mxu0 %v6022_v42 }
  0x58   :  { %v6031_v44 = vcombine.high %v453_v39, %v457_v40  ;;  %v205_v45 = vld [vmem:[%s9072_s1 + $0x540] sm:$0xff]  ;;  %3632 = vmatprep.subr.bf16.mxu1 %v5775_v43  ;;  %v6030_v50 = vcombine.low %v453_v39, %v457_v40 }
  0x59   :  { %v209_v46 = vld [vmem:[%s9072_s1 + $0x560] sm:$0xff] }
  0x5a   :  { %v461_v47 = vld [vmem:[%s9072_s1 + $0xd40] sm:$0xff]  ;;  %v5783_v51 = vcombine.high %v205_v45, %v209_v46  ;;  %3718 = vmatprep.subr.bf16.mxu0 %v6031_v44  ;;  %3633 = vmatpush1.bf16.msra.mxu1 %v5774_v49  ;;  %v5782_v57 = vcombine.low %v205_v45, %v209_v46 }
  0x5b   :  { %v465_v48 = vld [vmem:[%s9072_s1 + $0xd60] sm:$0xff]  ;;  %3719 = vmatpush1.bf16.msra.mxu0 %v6030_v50 }
  0x5c   :  { %v6039_v52 = vcombine.high %v461_v47, %v465_v48  ;;  %v213_v53 = vld [vmem:[%s9072_s1 + $0x580] sm:$0xff]  ;;  %3634 = vmatprep.subr.bf16.mxu1 %v5783_v51  ;;  %v6038_v59 = vcombine.low %v461_v47, %v465_v48 }
  0x5d   :  { %v217_v54 = vld [vmem:[%s9072_s1 + $0x5a0] sm:$0xff] }
  0x5e   :  { %v469_v55 = vld [vmem:[%s9072_s1 + $0xd80] sm:$0xff]  ;;  %v5791_v60 = vcombine.high %v213_v53, %v217_v54  ;;  %3720 = vmatprep.subr.bf16.mxu0 %v6039_v52  ;;  %3635 = vmatpush1.bf16.msra.mxu1 %v5782_v57  ;;  %v5790_v2 = vcombine.low %v213_v53, %v217_v54 }
  0x5f   :  { %v473_v56 = vld [vmem:[%s9072_s1 + $0xda0] sm:$0xff]  ;;  %3721 = vmatpush1.bf16.msra.mxu0 %v6038_v59 }
  0x60   :  { %v6047_v61 = vcombine.high %v469_v55, %v473_v56  ;;  %v221_v62 = vld [vmem:[%s9072_s1 + $0x5c0] sm:$0xff]  ;;  %3636 = vmatprep.subr.bf16.mxu1 %v5791_v60  ;;  %v6046_v3 = vcombine.low %v469_v55, %v473_v56 }
  0x61   :  { %v225_v63 = vld [vmem:[%s9072_s1 + $0x5e0] sm:$0xff] }
  0x62   :  { %v477_v0 = vld [vmem:[%s9072_s1 + $0xdc0] sm:$0xff]  ;;  %v5799_v4 = vcombine.high %v221_v62, %v225_v63  ;;  %3722 = vmatprep.subr.bf16.mxu0 %v6047_v61  ;;  %3637 = vmatpush1.bf16.msra.mxu1 %v5790_v2  ;;  %v5798_v10 = vcombine.low %v221_v62, %v225_v63 }
  0x63   :  { %v481_v1 = vld [vmem:[%s9072_s1 + $0xde0] sm:$0xff]  ;;  %3723 = vmatpush1.bf16.msra.mxu0 %v6046_v3 }
  0x64   :  { %v6055_v5 = vcombine.high %v477_v0, %v481_v1  ;;  %v229_v6 = vld [vmem:[%s9072_s1 + $0x600] sm:$0xff]  ;;  %3638 = vmatprep.subr.bf16.mxu1 %v5799_v4  ;;  %v6054_v12 = vcombine.low %v477_v0, %v481_v1 }
  0x65   :  { %v233_v7 = vld [vmem:[%s9072_s1 + $0x620] sm:$0xff] }
  0x66   :  { %v485_v8 = vld [vmem:[%s9072_s1 + $0xe00] sm:$0xff]  ;;  %v5807_v13 = vcombine.high %v229_v6, %v233_v7  ;;  %3724 = vmatprep.subr.bf16.mxu0 %v6055_v5  ;;  %3639 = vmatpush1.bf16.msra.mxu1 %v5798_v10  ;;  %v5806_v19 = vcombine.low %v229_v6, %v233_v7  ;;  %v42_v10 = vld [vmem:[%s9072_s1 + $0x28] sm:$0xff] }
  0x67   :  { %v489_v9 = vld [vmem:[%s9072_s1 + $0xe20] sm:$0xff]  ;;  %3725 = vmatpush1.bf16.msra.mxu0 %v6054_v12 }
  0x68   :  { %v6063_v14 = vcombine.high %v485_v8, %v489_v9  ;;  %v237_v15 = vld [vmem:[%s9072_s1 + $0x640] sm:$0xff]  ;;  %3640 = vmatprep.subr.bf16.mxu1 %v5807_v13  ;;  %v6062_v20 = vcombine.low %v485_v8, %v489_v9  ;;  %v38_v9 = vld [vmem:[%s9072_s1 + $0x8] sm:$0xff] }
  0x69   :  { %v241_v16 = vld [vmem:[%s9072_s1 + $0x660] sm:$0xff] }
  0x6a   :  { %v493_v17 = vld [vmem:[%s9072_s1 + $0xe40] sm:$0xff]  ;;  %v5815_v22 = vcombine.high %v237_v15, %v241_v16  ;;  %3726 = vmatprep.subr.bf16.mxu0 %v6063_v14  ;;  %3641 = vmatpush1.bf16.msra.mxu1 %v5806_v19  ;;  %v5814_v28 = vcombine.low %v237_v15, %v241_v16  ;;  %v5617_v16 = vcombine.high %v38_v9, %v42_v10  ;;  %v50_v19 = vld [vmem:[%s9072_s1 + $0x68] sm:$0xff] }
  0x6b   :  { %v497_v18 = vld [vmem:[%s9072_s1 + $0xe60] sm:$0xff]  ;;  %3727 = vmatpush1.bf16.msra.mxu0 %v6062_v20  ;;  %v7164_v20 = vld [vmem:[%s9073_s0 + $0x8] ss:$36 sps:$4 sm:$0xff]  }
  0x6c   :  { %v6071_v23 = vcombine.high %v493_v17, %v497_v18  ;;  %v245_v24 = vld [vmem:[%s9072_s1 + $0x680] sm:$0xff]  ;;  %3642 = vmatprep.subr.bf16.mxu1 %v5815_v22  ;;  %v6070_v29 = vcombine.low %v493_v17, %v497_v18  ;;  %v46_v18 = vld [vmem:[%s9072_s1 + $0x48] sm:$0xff] }
  0x6d   :  { %v249_v25 = vld [vmem:[%s9072_s1 + $0x6a0] sm:$0xff] }
  0x6e   :  { %v501_v26 = vld [vmem:[%s9072_s1 + $0xe80] sm:$0xff]  ;;  %v5823_v30 = vcombine.high %v245_v24, %v249_v25  ;;  %3728 = vmatprep.subr.bf16.mxu0 %v6071_v23  ;;  %3643 = vmatpush1.bf16.msra.mxu1 %v5814_v28  ;;  %v5822_v36 = vcombine.low %v245_v24, %v249_v25  ;;  %v5616_v24 = vcombine.low %v38_v9, %v42_v10  ;;  %v6465_v25 = vld [vmem:[%s9073_s0 + $0x18] ss:$36 sps:$4 sm:$0xff]  }
  0x6f   :  { %v505_v27 = vld [vmem:[%s9072_s1 + $0xea0] sm:$0xff]  ;;  %3729 = vmatpush1.bf16.msra.mxu0 %v6070_v29  ;;  %v54_v29 = vld [vmem:[%s9072_s1 + $0x88] sm:$0xff] }
  0x70   :  { %v6079_v31 = vcombine.high %v501_v26, %v505_v27  ;;  %v253_v32 = vld [vmem:[%s9072_s1 + $0x6c0] sm:$0xff]  ;;  %3644 = vmatprep.subr.bf16.mxu1 %v5823_v30  ;;  %v6078_v37 = vcombine.low %v501_v26, %v505_v27  ;;  %v5625_v27 = vcombine.high %v46_v18, %v50_v19  ;;  %v58_v30 = vld [vmem:[%s9072_s1 + $0xa8] sm:$0xff] }
  0x71   :  { %v257_v33 = vld [vmem:[%s9072_s1 + $0x6e0] sm:$0xff] }
  0x72   :  { %v509_v34 = vld [vmem:[%s9072_s1 + $0xec0] sm:$0xff]  ;;  %v5831_v38 = vcombine.high %v253_v32, %v257_v33  ;;  %3730 = vmatprep.subr.bf16.mxu0 %v6079_v31  ;;  %3645 = vmatpush1.bf16.msra.mxu1 %v5822_v36  ;;  %v5830_v44 = vcombine.low %v253_v32, %v257_v33  ;;  %v5624_v33 = vcombine.low %v46_v18, %v50_v19  ;;  %v39_v18 = vld [vmem:[%s9072_s1 + $0x10] sm:$0xff] }
  0x73   :  { %v513_v35 = vld [vmem:[%s9072_s1 + $0xee0] sm:$0xff]  ;;  %3731 = vmatpush1.bf16.msra.mxu0 %v6078_v37  ;;  %v62_v37 = vld [vmem:[%s9072_s1 + $0xc8] sm:$0xff]  ;;  %v43_v19 = vld [vmem:[%s9072_s1 + $0x30] sm:$0xff] }
  0x74   :  { %v6087_v39 = vcombine.high %v509_v34, %v513_v35  ;;  %v261_v40 = vld [vmem:[%s9072_s1 + $0x700] sm:$0xff]  ;;  %3646 = vmatprep.subr.bf16.mxu1 %v5831_v38  ;;  %v6086_v45 = vcombine.low %v509_v34, %v513_v35  ;;  %v5633_v35 = vcombine.high %v54_v29, %v58_v30  ;;  %v66_v38 = vld [vmem:[%s9072_s1 + $0xe8] sm:$0xff] }
  0x75   :  { %v265_v41 = vld [vmem:[%s9072_s1 + $0x720] sm:$0xff] }
  0x76   :  { %v517_v42 = vld [vmem:[%s9072_s1 + $0xf00] sm:$0xff]  ;;  %v5839_v46 = vcombine.high %v261_v40, %v265_v41  ;;  %3732 = vmatprep.subr.bf16.mxu0 %v6087_v39  ;;  %3647 = vmatpush1.bf16.msra.mxu1 %v5830_v44  ;;  %v5838_v52 = vcombine.low %v261_v40, %v265_v41  ;;  %v6691_v39 = vmov 0   ;;  %v5641_v44 = vcombine.high %v62_v37, %v66_v38 }
  0x77   :  { %v521_v43 = vld [vmem:[%s9072_s1 + $0xf20] sm:$0xff]  ;;  %3733 = vmatpush1.bf16.msra.mxu0 %v6086_v45 }
  0x78   :  { %v6095_v47 = vcombine.high %v517_v42, %v521_v43  ;;  %v269_v48 = vld [vmem:[%s9072_s1 + $0x740] sm:$0xff]  ;;  %3648 = vmatprep.subr.bf16.mxu1 %v5839_v46  ;;  %v6094_v53 = vcombine.low %v517_v42, %v521_v43  ;;  %v5632_v42 = vcombine.low %v54_v29, %v58_v30  ;;  %v70_v46 = vld [vmem:[%s9072_s1 + $0x108] sm:$0xff]  ;;  %v51_v29 = vld [vmem:[%s9072_s1 + $0x70] sm:$0xff] }
  0x79   :  { %v273_v49 = vld [vmem:[%s9072_s1 + $0x760] sm:$0xff] }
  0x7a   :  { %v525_v50 = vld [vmem:[%s9072_s1 + $0xf40] sm:$0xff]  ;;  %v5847_v54 = vcombine.high %v269_v48, %v273_v49  ;;  %3734 = vmatprep.subr.bf16.mxu0 %v6095_v47  ;;  %3649 = vmatpush1.bf16.msra.mxu1 %v5838_v52  ;;  %v5846_v61 = vcombine.low %v269_v48, %v273_v49  ;;  %v74_v47 = vld [vmem:[%s9072_s1 + $0x128] sm:$0xff] }
  0x7b   :  { %v529_v51 = vld [vmem:[%s9072_s1 + $0xf60] sm:$0xff]  ;;  %3735 = vmatpush1.bf16.msra.mxu0 %v6094_v53  ;;  %v5649_v52 = vcombine.high %v70_v46, %v74_v47 }
  0x7c   :  { %v6103_v55 = vcombine.high %v525_v50, %v529_v51  ;;  %v277_v56 = vld [vmem:[%s9072_s1 + $0x780] sm:$0xff]  ;;  %3650 = vmatprep.subr.bf16.mxu1 %v5847_v54  ;;  %v6102_v62 = vcombine.low %v525_v50, %v529_v51  ;;  %v5640_v50 = vcombine.low %v62_v37, %v66_v38  ;;  %v78_v54 = vld [vmem:[%s9072_s1 + $0x148] sm:$0xff]  ;;  %v55_v37 = vld [vmem:[%s9072_s1 + $0x90] sm:$0xff] }
  0x7d   :  { %v281_v57 = vld [vmem:[%s9072_s1 + $0x7a0] sm:$0xff]  ;;  %v59_v38 = vld [vmem:[%s9072_s1 + $0xb0] sm:$0xff] }
  0x7e   :  { %v533_v59 = vld [vmem:[%s9072_s1 + $0xf80] sm:$0xff]  ;;  %v5855_v63 = vcombine.high %v277_v56, %v281_v57  ;;  %3736 = vmatprep.subr.bf16.mxu0 %v6103_v55  ;;  %3651 = vmatpush1.bf16.msra.mxu1 %v5846_v61  ;;  %v5854_v5 = vcombine.low %v277_v56, %v281_v57  ;;  %v82_v55 = vld [vmem:[%s9072_s1 + $0x168] sm:$0xff] }
  0x7f   :  { %v537_v60 = vld [vmem:[%s9072_s1 + $0xfa0] sm:$0xff]  ;;  %3737 = vmatpush1.bf16.msra.mxu0 %v6102_v62  ;;  %v5657_v61 = vcombine.high %v78_v54, %v82_v55 }
  0x80   :  { %v6111_v0 = vcombine.high %v533_v59, %v537_v60  ;;  %v285_v1 = vld [vmem:[%s9072_s1 + $0x7c0] sm:$0xff]  ;;  %3652 = vmatprep.subr.bf16.mxu1 %v5855_v63  ;;  %v6110_v6 = vcombine.low %v533_v59, %v537_v60  ;;  %v5648_v59 = vcombine.low %v70_v46, %v74_v47  ;;  %v86_v63 = vld [vmem:[%s9072_s1 + $0x188] sm:$0xff]  ;;  %v63_v46 = vld [vmem:[%s9072_s1 + $0xd0] sm:$0xff] }
  0x81   :  { %v289_v2 = vld [vmem:[%s9072_s1 + $0x7e0] sm:$0xff]  ;;  %v67_v47 = vld [vmem:[%s9072_s1 + $0xf0] sm:$0xff] }
  0x82   :  { %v541_v3 = vld [vmem:[%s9072_s1 + $0xfc0] sm:$0xff]  ;;  %v5863_v7 = vcombine.high %v285_v1, %v289_v2  ;;  %3738 = vmatprep.subr.bf16.mxu0 %v6111_v0  ;;  %3653 = vmatpush1.bf16.msra.mxu1 %v5854_v5  ;;  %v5862_v14 = vcombine.low %v285_v1, %v289_v2  ;;  %v90_v0 = vld [vmem:[%s9072_s1 + $0x1a8] sm:$0xff] }
  0x83   :  { %v545_v4 = vld [vmem:[%s9072_s1 + $0xfe0] sm:$0xff]  ;;  %3739 = vmatpush1.bf16.msra.mxu0 %v6110_v6  ;;  %v5665_v5 = vcombine.high %v86_v63, %v90_v0 }
  0x84   :  { %v6119_v8 = vcombine.high %v541_v3, %v545_v4  ;;  %v549_v12 = vld [vmem:[%s9072_s1 + $0x1000] sm:$0xff]  ;;  %3654 = vmatprep.subr.bf16.mxu1 %v5863_v7  ;;  %v6118_v15 = vcombine.low %v541_v3, %v545_v4  ;;  %v5656_v3 = vcombine.low %v78_v54, %v82_v55  ;;  %v94_v7 = vld [vmem:[%s9072_s1 + $0x1c8] sm:$0xff]  ;;  %v75_v54 = vld [vmem:[%s9072_s1 + $0x130] sm:$0xff] }
  0x85   :  { %v553_v13 = vld [vmem:[%s9072_s1 + $0x1020] sm:$0xff] }
  0x86   :  { %3740 = vmatprep.subr.bf16.mxu0 %v6119_v8  ;;  %v6127_v17 = vcombine.high %v549_v12, %v553_v13  ;;  %v557_v22 = vld [vmem:[%s9072_s1 + $0x1040] sm:$0xff]  ;;  %3655 = vmatpush1.bf16.msra.mxu1 %v5862_v14  ;;  %v6126_v26 = vcombine.low %v549_v12, %v553_v13  ;;  %v98_v8 = vld [vmem:[%s9072_s1 + $0x1e8] sm:$0xff]  ;;  %v5664_v12 = vcombine.low %v86_v63, %v90_v0  ;;  %v83_v63 = vld [vmem:[%s9072_s1 + $0x170] sm:$0xff] }
  0x87   :  { %v561_v23 = vld [vmem:[%s9072_s1 + $0x1060] sm:$0xff]  ;;  %3741 = vmatpush1.bf16.msra.mxu0 %v6118_v15  ;;  %3796 = vmatprep.subr.bf16.mxu1 %v5617_v16  ;;  %v5673_v14 = vcombine.high %v94_v7, %v98_v8  ;;  %v102_v16 = vld [vmem:[%s9072_s1 + $0x208] sm:$0xff] }
  0x88   :  { %3753 = vmatprep.subr.bf16.mxu0 %v6127_v17  ;;  %v6135_v28 = vcombine.high %v557_v22, %v561_v23  ;;  %v565_v31 = vld [vmem:[%s9072_s1 + $0x1080] sm:$0xff]  ;;  %v6134_v34 = vcombine.low %v557_v22, %v561_v23  ;;  %v106_v17 = vld [vmem:[%s9072_s1 + $0x228] sm:$0xff]  ;;  %v5672_v22 = vcombine.low %v94_v7, %v98_v8  ;;  %v91_v7 = vld [vmem:[%s9072_s1 + $0x1b0] sm:$0xff] }
  0x89   :  { %3657 = vmatmul.mubr.bf16.vlgmr.msra.gmra.mrb[0].mxu1 %v7164_v20  ;;  %v569_v32 = vld [vmem:[%s9072_s1 + $0x10a0] sm:$0xff] }
  0x8a   :  { %3743 = vmatmul.mubr.bf16.vlgmr.msra.gmra.mrb[0].mxu0 %v6465_v25  ;;  %3797 = vmatpush1.bf16.msra.mxu1 %v5616_v24  ;;  %v6143_v36 = vcombine.high %v565_v31, %v569_v32  ;;  %v573_v40 = vld [vmem:[%s9072_s1 + $0x10c0] sm:$0xff]  ;;  %v6142_v43 = vcombine.low %v565_v31, %v569_v32  ;;  %v5681_v24 = vcombine.high %v102_v16, %v106_v17 }
  0x8b   :  { %3754 = vmatpush1.bf16.msra.mxu0 %v6126_v26  ;;  %3798 = vmatprep.subr.bf16.mxu1 %v5625_v27  ;;  %v577_v41 = vld [vmem:[%s9072_s1 + $0x10e0] sm:$0xff]  ;;  %v5619_v25 = vcombine.high %v39_v18, %v43_v19  ;;  %v110_v26 = vld [vmem:[%s9072_s1 + $0x248] sm:$0xff]  ;;  %v5680_v31 = vcombine.low %v102_v16, %v106_v17  ;;  %v5618_v32 = vcombine.low %v39_v18, %v43_v19  ;;  %v99_v16 = vld [vmem:[%s9072_s1 + $0x1f0] sm:$0xff] }
  0x8c   :  { %3755 = vmatprep.subr.bf16.mxu0 %v6135_v28  ;;  %3785 = vmatprep.mubr.bf16.mxu0 %v6691_v39  ;;  %v6151_v45 = vcombine.high %v573_v40, %v577_v41  ;;  %v581_v48 = vld [vmem:[%s9072_s1 + $0x1100] sm:$0xff]  ;;  %v6150_v51 = vcombine.low %v573_v40, %v577_v41  ;;  %v114_v27 = vld [vmem:[%s9072_s1 + $0x268] sm:$0xff]  ;;  %v47_v28 = vld [vmem:[%s9072_s1 + $0x50] sm:$0xff] }
  0x8d   :  { %3828 = vmatprep.mubr.bf16.mxu1 %v6831_v58  ;;  %v585_v49 = vld [vmem:[%s9072_s1 + $0x1120] sm:$0xff]  ;;  %v5688_v40 = vcombine.low %v110_v26, %v114_v27  ;;  %v5626_v41 = vcombine.low %v47_v28, %v51_v29 }
  0x8e   :  { %3799 = vmatpush1.bf16.msra.mxu1 %v5624_v33  ;;  %v6159_v53 = vcombine.high %v581_v48, %v585_v49  ;;  %v589_v56 = vld [vmem:[%s9072_s1 + $0x1140] sm:$0xff]  ;;  %v6158_v60 = vcombine.low %v581_v48, %v585_v49  ;;  %v5689_v33 = vcombine.high %v110_v26, %v114_v27  ;;  %v5634_v49 = vcombine.low %v55_v37, %v59_v38  ;;  %v107_v26 = vld [vmem:[%s9072_s1 + $0x230] sm:$0xff] }
  0x8f   :  { %3756 = vmatpush1.bf16.msra.mxu0 %v6134_v34  ;;  %3800 = vmatprep.subr.bf16.mxu1 %v5633_v35  ;;  %v593_v57 = vld [vmem:[%s9072_s1 + $0x1160] sm:$0xff]  ;;  %v5627_v34 = vcombine.high %v47_v28, %v51_v29  ;;  %v118_v35 = vld [vmem:[%s9072_s1 + $0x288] sm:$0xff] }
  0x90   :  { %3757 = vmatprep.subr.bf16.mxu0 %v6143_v36  ;;  %v6167_v62 = vcombine.high %v589_v56, %v593_v57  ;;  %v597_v1 = vld [vmem:[%s9072_s1 + $0x1180] sm:$0xff]  ;;  %v6166_v4 = vcombine.low %v589_v56, %v593_v57  ;;  %v122_v36 = vld [vmem:[%s9072_s1 + $0x2a8] sm:$0xff]  ;;  %v5642_v56 = vcombine.low %v63_v46, %v67_v47 }
  0x91   :  { %v601_v2 = vld [vmem:[%s9072_s1 + $0x11a0] sm:$0xff]  ;;  %v5696_v48 = vcombine.low %v118_v35, %v122_v36 }
  0x92   :  { %3801 = vmatpush1.bf16.msra.mxu1 %v5632_v42  ;;  %v6175_v6 = vcombine.high %v597_v1, %v601_v2  ;;  %v605_v9 = vld [vmem:[%s9072_s1 + $0x11c0] sm:$0xff]  ;;  %v6174_v13 = vcombine.low %v597_v1, %v601_v2  ;;  %v5697_v42 = vcombine.high %v118_v35, %v122_v36 }
  0x93   :  { %3758 = vmatpush1.bf16.msra.mxu0 %v6142_v43  ;;  %3802 = vmatprep.subr.bf16.mxu1 %v5641_v44  ;;  %v609_v10 = vld [vmem:[%s9072_s1 + $0x11e0] sm:$0xff]  ;;  %v5635_v43 = vcombine.high %v55_v37, %v59_v38  ;;  %v126_v44 = vld [vmem:[%s9072_s1 + $0x2c8] sm:$0xff] }
  0x94   :  { %3759 = vmatprep.subr.bf16.mxu0 %v6151_v45  ;;  %v6183_v15 = vcombine.high %v605_v9, %v609_v10  ;;  %v6182_v23 = vcombine.low %v605_v9, %v609_v10  ;;  %v6466_v30 = vld [vmem:[%s9073_s0 + $0x20] ss:$36 sps:$4 sm:$0xff]   ;;  %v130_v45 = vld [vmem:[%s9072_s1 + $0x2e8] sm:$0xff] }
  0x95   :  { %v5704_v55 = vcombine.low %v126_v44, %v130_v45 }
  0x96   :  { %3803 = vmatpush1.bf16.msra.mxu1 %v5640_v50  ;;  %v5705_v50 = vcombine.high %v126_v44, %v130_v45 }
  0x97   :  { %3760 = vmatpush1.bf16.msra.mxu0 %v6150_v51  ;;  %3804 = vmatprep.subr.bf16.mxu1 %v5649_v52  ;;  %v5643_v51 = vcombine.high %v63_v46, %v67_v47  ;;  %v138_v52 = vld [vmem:[%s9072_s1 + $0x328] sm:$0xff] }
  0x98   :  { %3761 = vmatprep.subr.bf16.mxu0 %v6159_v53  ;;  %v71_v53 = vld [vmem:[%s9072_s1 + $0x110] sm:$0xff] }
  0x99   :  { %v5650_v1 = vcombine.low %v71_v53, %v75_v54 }
  0x9a   :  { %3805 = vmatpush1.bf16.msra.mxu1 %v5648_v59  ;;  %v5651_v59 = vcombine.high %v71_v53, %v75_v54  ;;  %v198_v54 = vld [vmem:[%s9072_s1 + $0x508] sm:$0xff] }
  0x9b   :  { %3762 = vmatpush1.bf16.msra.mxu0 %v6158_v60  ;;  %3806 = vmatprep.subr.bf16.mxu1 %v5657_v61  ;;  %v142_v60 = vld [vmem:[%s9072_s1 + $0x348] sm:$0xff] }
  0x9c   :  { %3763 = vmatprep.subr.bf16.mxu0 %v6167_v62  ;;  %v146_v61 = vld [vmem:[%s9072_s1 + $0x368] sm:$0xff]  ;;  %v79_v62 = vld [vmem:[%s9072_s1 + $0x150] sm:$0xff] }
  0x9d   :  { %v5721_v2 = vcombine.high %v142_v60, %v146_v61  ;;  %v5720_v8 = vcombine.low %v142_v60, %v146_v61  ;;  %v5658_v9 = vcombine.low %v79_v62, %v83_v63 }
  0x9e   :  { %3807 = vmatpush1.bf16.msra.mxu1 %v5656_v3  ;;  %v5659_v3 = vcombine.high %v79_v62, %v83_v63  ;;  %v206_v63 = vld [vmem:[%s9072_s1 + $0x548] sm:$0xff] }
  0x9f   :  { %3764 = vmatpush1.bf16.msra.mxu0 %v6166_v4  ;;  %3808 = vmatprep.subr.bf16.mxu1 %v5665_v5  ;;  %v150_v4 = vld [vmem:[%s9072_s1 + $0x388] sm:$0xff] }
  0xa0   :  { %3765 = vmatprep.subr.bf16.mxu0 %v6175_v6  ;;  %v154_v5 = vld [vmem:[%s9072_s1 + $0x3a8] sm:$0xff]  ;;  %v87_v6 = vld [vmem:[%s9072_s1 + $0x190] sm:$0xff] }
  0xa1   :  { %v5729_v10 = vcombine.high %v150_v4, %v154_v5  ;;  %v5728_v17 = vcombine.low %v150_v4, %v154_v5  ;;  %v5666_v18 = vcombine.low %v87_v6, %v91_v7 }
  0xa2   :  { %3809 = vmatpush1.bf16.msra.mxu1 %v5664_v12  ;;  %v5667_v12 = vcombine.high %v87_v6, %v91_v7  ;;  %v214_v7 = vld [vmem:[%s9072_s1 + $0x588] sm:$0xff] }
  0xa3   :  { %3766 = vmatpush1.bf16.msra.mxu0 %v6174_v13  ;;  %3810 = vmatprep.subr.bf16.mxu1 %v5673_v14  ;;  %v158_v13 = vld [vmem:[%s9072_s1 + $0x3c8] sm:$0xff] }
  0xa4   :  { %3767 = vmatprep.subr.bf16.mxu0 %v6183_v15  ;;  %v162_v14 = vld [vmem:[%s9072_s1 + $0x3e8] sm:$0xff]  ;;  %v95_v15 = vld [vmem:[%s9072_s1 + $0x1d0] sm:$0xff] }
  0xa5   :  { %v5737_v19 = vcombine.high %v158_v13, %v162_v14  ;;  %v5736_v27 = vcombine.low %v158_v13, %v162_v14  ;;  %v5674_v28 = vcombine.low %v95_v15, %v99_v16 }
  0xa6   :  { %3811 = vmatpush1.bf16.msra.mxu1 %v5672_v22  ;;  %v5675_v22 = vcombine.high %v95_v15, %v99_v16  ;;  %v222_v16 = vld [vmem:[%s9072_s1 + $0x5c8] sm:$0xff] }
  0xa7   :  { %3768 = vmatpush1.bf16.msra.mxu0 %v6182_v23  ;;  %3812 = vmatprep.subr.bf16.mxu1 %v5681_v24  ;;  %v166_v23 = vld [vmem:[%s9072_s1 + $0x408] sm:$0xff] }
  0xa8   :  { %4011 = vmatprep.subr.bf16.mxu0 %v5619_v25  ;;  %v170_v24 = vld [vmem:[%s9072_s1 + $0x428] sm:$0xff]  ;;  %v103_v25 = vld [vmem:[%s9072_s1 + $0x210] sm:$0xff] }
  0xa9   :  { %v5745_v29 = vcombine.high %v166_v23, %v170_v24  ;;  %v5744_v35 = vcombine.low %v166_v23, %v170_v24  ;;  %v5682_v36 = vcombine.low %v103_v25, %v107_v26 }
  0xaa   :  { %3786 = vmatmul.mubr.bf16.vlgmr.msra.gmra.mrb[0].mxu0 %v6466_v30  ;;  %3813 = vmatpush1.bf16.msra.mxu1 %v5680_v31  ;;  %v5683_v30 = vcombine.high %v103_v25, %v107_v26  ;;  %v174_v31 = vld [vmem:[%s9072_s1 + $0x448] sm:$0xff] }
  0xab   :  { %4012 = vmatpush1.bf16.msra.mxu0 %v5618_v32  ;;  %3814 = vmatprep.subr.bf16.mxu1 %v5689_v33  ;;  %v178_v32 = vld [vmem:[%s9072_s1 + $0x468] sm:$0xff]  ;;  %v111_v33 = vld [vmem:[%s9072_s1 + $0x250] sm:$0xff] }
  0xac   :  { %4013 = vmatprep.subr.bf16.mxu0 %v5627_v34  ;;  %4043 = vmatprep.mubr.bf16.mxu0 %v6831_v58  ;;  %v134_v58 = vld [vmem:[%s9072_s1 + $0x308] sm:$0xff]  ;;  %v115_v34 = vld [vmem:[%s9072_s1 + $0x270] sm:$0xff]  ;;  %v5753_v37 = vcombine.high %v174_v31, %v178_v32  ;;  %v5752_v44 = vcombine.low %v174_v31, %v178_v32 }
  0xad   :  { %v5713_v57 = vcombine.high %v134_v58, %v138_v52  ;;  %v5712_v0 = vcombine.low %v134_v58, %v138_v52  ;;  %v5691_v38 = vcombine.high %v111_v33, %v115_v34  ;;  %v5690_v45 = vcombine.low %v111_v33, %v115_v34  ;;  %v230_v26 = vld [vmem:[%s9072_s1 + $0x608] sm:$0xff] }
  0xae   :  { %3815 = vmatpush1.bf16.msra.mxu1 %v5688_v40  ;;  %v182_v40 = vld [vmem:[%s9072_s1 + $0x488] sm:$0xff] }
  0xaf   :  { %4014 = vmatpush1.bf16.msra.mxu0 %v5626_v41  ;;  %3816 = vmatprep.subr.bf16.mxu1 %v5697_v42  ;;  %v186_v41 = vld [vmem:[%s9072_s1 + $0x4a8] sm:$0xff]  ;;  %v119_v42 = vld [vmem:[%s9072_s1 + $0x290] sm:$0xff] }
  0xb0   :  { %4015 = vmatprep.subr.bf16.mxu0 %v5635_v43  ;;  %v123_v43 = vld [vmem:[%s9072_s1 + $0x2b0] sm:$0xff]  ;;  %v5761_v46 = vcombine.high %v182_v40, %v186_v41  ;;  %v238_v34 = vld [vmem:[%s9072_s1 + $0x648] sm:$0xff] }
  0xb1   :  { %v5699_v47 = vcombine.high %v119_v42, %v123_v43  ;;  %v5698_v58 = vcombine.low %v119_v42, %v123_v43  ;;  %v246_v43 = vld [vmem:[%s9072_s1 + $0x688] sm:$0xff] }
  0xb2   :  { %3817 = vmatpush1.bf16.msra.mxu1 %v5696_v48  ;;  %v194_v48 = vld [vmem:[%s9072_s1 + $0x4e8] sm:$0xff] }
  0xb3   :  { %4016 = vmatpush1.bf16.msra.mxu0 %v5634_v49  ;;  %3818 = vmatprep.subr.bf16.mxu1 %v5705_v50  ;;  %v127_v49 = vld [vmem:[%s9072_s1 + $0x2d0] sm:$0xff] }
  0xb4   :  { %4017 = vmatprep.subr.bf16.mxu0 %v5643_v51  ;;  %v131_v50 = vld [vmem:[%s9072_s1 + $0x2f0] sm:$0xff]  ;;  %v5760_v51 = vcombine.low %v182_v40, %v186_v41 }
  0xb5   :  { %v5707_v53 = vcombine.high %v127_v49, %v131_v50  ;;  %v5706_v60 = vcombine.low %v127_v49, %v131_v50 }
  0xb6   :  { %3819 = vmatpush1.bf16.msra.mxu1 %v5704_v55  ;;  %v202_v55 = vld [vmem:[%s9072_s1 + $0x528] sm:$0xff] }
  0xb7   :  { %4018 = vmatpush1.bf16.msra.mxu0 %v5642_v56  ;;  %3820 = vmatprep.subr.bf16.mxu1 %v5713_v57  ;;  %v135_v56 = vld [vmem:[%s9072_s1 + $0x310] sm:$0xff]  ;;  %v5777_v61 = vcombine.high %v198_v54, %v202_v55 }
  0xb8   :  { %4019 = vmatprep.subr.bf16.mxu0 %v5651_v59  ;;  %v139_v57 = vld [vmem:[%s9072_s1 + $0x330] sm:$0xff] }
  0xb9   :  { %v5715_v62 = vcombine.high %v135_v56, %v139_v57  ;;  %v5714_v4 = vcombine.low %v135_v56, %v139_v57 }
  0xba   :  { %3821 = vmatpush1.bf16.msra.mxu1 %v5712_v0  ;;  %v210_v0 = vld [vmem:[%s9072_s1 + $0x568] sm:$0xff] }
  0xbb   :  { %4020 = vmatpush1.bf16.msra.mxu0 %v5650_v1  ;;  %3822 = vmatprep.subr.bf16.mxu1 %v5721_v2  ;;  %v143_v1 = vld [vmem:[%s9072_s1 + $0x350] sm:$0xff]  ;;  %v5785_v5 = vcombine.high %v206_v63, %v210_v0 }
  0xbc   :  { %4021 = vmatprep.subr.bf16.mxu0 %v5659_v3  ;;  %v147_v2 = vld [vmem:[%s9072_s1 + $0x370] sm:$0xff]  ;;  %v5776_v3 = vcombine.low %v198_v54, %v202_v55 }
  0xbd   :  { %v5723_v6 = vcombine.high %v143_v1, %v147_v2  ;;  %v5722_v13 = vcombine.low %v143_v1, %v147_v2  ;;  %v270_v2 = vld [vmem:[%s9072_s1 + $0x748] sm:$0xff] }
  0xbe   :  { %3823 = vmatpush1.bf16.msra.mxu1 %v5720_v8  ;;  %v218_v8 = vld [vmem:[%s9072_s1 + $0x5a8] sm:$0xff] }
  0xbf   :  { %4022 = vmatpush1.bf16.msra.mxu0 %v5658_v9  ;;  %3824 = vmatprep.subr.bf16.mxu1 %v5729_v10  ;;  %v151_v9 = vld [vmem:[%s9072_s1 + $0x390] sm:$0xff]  ;;  %v5793_v14 = vcombine.high %v214_v7, %v218_v8 }
  0xc0   :  { %4023 = vmatprep.subr.bf16.mxu0 %v5667_v12  ;;  %v155_v10 = vld [vmem:[%s9072_s1 + $0x3b0] sm:$0xff]  ;;  %v5784_v12 = vcombine.low %v206_v63, %v210_v0 }
  0xc1   :  { %v5731_v15 = vcombine.high %v151_v9, %v155_v10  ;;  %v5730_v23 = vcombine.low %v151_v9, %v155_v10  ;;  %v278_v10 = vld [vmem:[%s9072_s1 + $0x788] sm:$0xff] }
  0xc2   :  { %3825 = vmatpush1.bf16.msra.mxu1 %v5728_v17  ;;  %v226_v17 = vld [vmem:[%s9072_s1 + $0x5e8] sm:$0xff] }
  0xc3   :  { %4024 = vmatpush1.bf16.msra.mxu0 %v5666_v18  ;;  %3826 = vmatprep.subr.bf16.mxu1 %v5737_v19  ;;  %v159_v18 = vld [vmem:[%s9072_s1 + $0x3d0] sm:$0xff]  ;;  %v5801_v24 = vcombine.high %v222_v16, %v226_v17 }
  0xc4   :  { %4025 = vmatprep.subr.bf16.mxu0 %v5675_v22  ;;  %v163_v19 = vld [vmem:[%s9072_s1 + $0x3f0] sm:$0xff]  ;;  %v5792_v22 = vcombine.low %v214_v7, %v218_v8 }
  0xc5   :  { %v5739_v25 = vcombine.high %v159_v18, %v163_v19  ;;  %v5738_v31 = vcombine.low %v159_v18, %v163_v19  ;;  %v286_v19 = vld [vmem:[%s9072_s1 + $0x7c8] sm:$0xff] }
  0xc6   :  { %3827 = vmatpush1.bf16.msra.mxu1 %v5736_v27  ;;  %v234_v27 = vld [vmem:[%s9072_s1 + $0x628] sm:$0xff] }
  0xc7   :  { %4026 = vmatpush1.bf16.msra.mxu0 %v5674_v28  ;;  %3839 = vmatprep.subr.bf16.mxu1 %v5745_v29  ;;  %v167_v28 = vld [vmem:[%s9072_s1 + $0x410] sm:$0xff]  ;;  %v5809_v32 = vcombine.high %v230_v26, %v234_v27 }
  0xc8   :  { %4027 = vmatprep.subr.bf16.mxu0 %v5683_v30  ;;  %v171_v29 = vld [vmem:[%s9072_s1 + $0x430] sm:$0xff]  ;;  %v5800_v30 = vcombine.low %v222_v16, %v226_v17 }
  0xc9   :  { %3829 = vmatmul.mubr.bf16.vlgmr.msra.gmra.mrb[4].mxu1 %v6954_v11  ;;  %v190_v11 = vld [vmem:[%s9072_s1 + $0x4c8] sm:$0xff]  ;;  %v5747_v33 = vcombine.high %v167_v28, %v171_v29  ;;  %v5746_v40 = vcombine.low %v167_v28, %v171_v29 }
  0xca   :  { %3840 = vmatpush1.bf16.msra.mxu1 %v5744_v35  ;;  %3871 = vmatprep.mubr.bf16.mxu1 %v6974_v21  ;;  %v5769_v52 = vcombine.high %v190_v11, %v194_v48  ;;  %v5768_v59 = vcombine.low %v190_v11, %v194_v48  ;;  %v242_v35 = vld [vmem:[%s9072_s1 + $0x668] sm:$0xff] }
  0xcb   :  { %4028 = vmatpush1.bf16.msra.mxu0 %v5682_v36  ;;  %3841 = vmatprep.subr.bf16.mxu1 %v5753_v37  ;;  %v175_v36 = vld [vmem:[%s9072_s1 + $0x450] sm:$0xff]  ;;  %v5817_v41 = vcombine.high %v238_v34, %v242_v35  ;;  %v5816_v11 = vcombine.low %v238_v34, %v242_v35  ;;  %v294_v29 = vld [vmem:[%s9072_s1 + $0x808] sm:$0xff] }
  0xcc   :  { %4029 = vmatprep.subr.bf16.mxu0 %v5691_v38  ;;  %v179_v37 = vld [vmem:[%s9072_s1 + $0x470] sm:$0xff]  ;;  %v5808_v38 = vcombine.low %v230_v26, %v234_v27 }
  0xcd   :  { %v5755_v42 = vcombine.high %v175_v36, %v179_v37  ;;  %v5754_v48 = vcombine.low %v175_v36, %v179_v37  ;;  %v302_v37 = vld [vmem:[%s9072_s1 + $0x848] sm:$0xff] }
  0xce   :  { %3842 = vmatpush1.bf16.msra.mxu1 %v5752_v44  ;;  %v250_v44 = vld [vmem:[%s9072_s1 + $0x6a8] sm:$0xff] }
  0xcf   :  { %4030 = vmatpush1.bf16.msra.mxu0 %v5690_v45  ;;  %3843 = vmatprep.subr.bf16.mxu1 %v5761_v46  ;;  %v183_v45 = vld [vmem:[%s9072_s1 + $0x490] sm:$0xff]  ;;  %v5825_v49 = vcombine.high %v246_v43, %v250_v44  ;;  %v5824_v54 = vcombine.low %v246_v43, %v250_v44 }
  0xd0   :  { %4031 = vmatprep.subr.bf16.mxu0 %v5699_v47  ;;  %v187_v46 = vld [vmem:[%s9072_s1 + $0x4b0] sm:$0xff]  ;;  %v6675_v47 = vld [vmem:[%s9073_s0] ss:$36 sps:$4 sm:$0xff]  }
  0xd1   :  { %v5763_v50 = vcombine.high %v183_v45, %v187_v46  ;;  %v5762_v55 = vcombine.low %v183_v45, %v187_v46  ;;  %v310_v46 = vld [vmem:[%s9072_s1 + $0x888] sm:$0xff] }
  0xd2   :  { %3844 = vmatpush1.bf16.msra.mxu1 %v5760_v51  ;;  %v254_v51 = vld [vmem:[%s9072_s1 + $0x6c8] sm:$0xff] }
  0xd3   :  { %4032 = vmatpush1.bf16.msra.mxu0 %v5698_v58  ;;  %3845 = vmatprep.subr.bf16.mxu1 %v5769_v52  ;;  %v258_v58 = vld [vmem:[%s9072_s1 + $0x6e8] sm:$0xff]  ;;  %v191_v52 = vld [vmem:[%s9072_s1 + $0x4d0] sm:$0xff] }
  0xd4   :  { %4033 = vmatprep.subr.bf16.mxu0 %v5707_v53  ;;  %v195_v53 = vld [vmem:[%s9072_s1 + $0x4f0] sm:$0xff]  ;;  %v5833_v56 = vcombine.high %v254_v51, %v258_v58 }
  0xd5   :  { %v5771_v57 = vcombine.high %v191_v52, %v195_v53  ;;  %v5770_v63 = vcombine.low %v191_v52, %v195_v53  ;;  %v318_v53 = vld [vmem:[%s9072_s1 + $0x8c8] sm:$0xff] }
  0xd6   :  { %3846 = vmatpush1.bf16.msra.mxu1 %v5768_v59  ;;  %v266_v59 = vld [vmem:[%s9072_s1 + $0x728] sm:$0xff] }
  0xd7   :  { %4034 = vmatpush1.bf16.msra.mxu0 %v5706_v60  ;;  %3847 = vmatprep.subr.bf16.mxu1 %v5777_v61  ;;  %v199_v60 = vld [vmem:[%s9072_s1 + $0x510] sm:$0xff] }
  0xd8   :  { %4035 = vmatprep.subr.bf16.mxu0 %v5715_v62  ;;  %v203_v61 = vld [vmem:[%s9072_s1 + $0x530] sm:$0xff]  ;;  %v5832_v62 = vcombine.low %v254_v51, %v258_v58 }
  0xd9   :  { %v5779_v1 = vcombine.high %v199_v60, %v203_v61  ;;  %v5778_v7 = vcombine.low %v199_v60, %v203_v61  ;;  %v326_v61 = vld [vmem:[%s9072_s1 + $0x908] sm:$0xff] }
  0xda   :  { %3848 = vmatpush1.bf16.msra.mxu1 %v5776_v3  ;;  %v274_v3 = vld [vmem:[%s9072_s1 + $0x768] sm:$0xff] }
  0xdb   :  { %4036 = vmatpush1.bf16.msra.mxu0 %v5714_v4  ;;  %3849 = vmatprep.subr.bf16.mxu1 %v5785_v5  ;;  %v207_v4 = vld [vmem:[%s9072_s1 + $0x550] sm:$0xff]  ;;  %v5849_v8 = vcombine.high %v270_v2, %v274_v3 }
  0xdc   :  { %4037 = vmatprep.subr.bf16.mxu0 %v5723_v6  ;;  %v211_v5 = vld [vmem:[%s9072_s1 + $0x570] sm:$0xff] }
  0xdd   :  { %v5787_v9 = vcombine.high %v207_v4, %v211_v5  ;;  %v5786_v16 = vcombine.low %v207_v4, %v211_v5  ;;  %v334_v5 = vld [vmem:[%s9072_s1 + $0x948] sm:$0xff] }
  0xde   :  { %3850 = vmatpush1.bf16.msra.mxu1 %v5784_v12  ;;  %v282_v12 = vld [vmem:[%s9072_s1 + $0x7a8] sm:$0xff] }
  0xdf   :  { %4038 = vmatpush1.bf16.msra.mxu0 %v5722_v13  ;;  %3851 = vmatprep.subr.bf16.mxu1 %v5793_v14  ;;  %v215_v13 = vld [vmem:[%s9072_s1 + $0x590] sm:$0xff]  ;;  %v5857_v17 = vcombine.high %v278_v10, %v282_v12 }
  0xe0   :  { %4039 = vmatprep.subr.bf16.mxu0 %v5731_v15  ;;  %v219_v14 = vld [vmem:[%s9072_s1 + $0x5b0] sm:$0xff]  ;;  %v5848_v15 = vcombine.low %v270_v2, %v274_v3 }
  0xe1   :  { %v5795_v18 = vcombine.high %v215_v13, %v219_v14  ;;  %v5794_v26 = vcombine.low %v215_v13, %v219_v14  ;;  %v342_v14 = vld [vmem:[%s9072_s1 + $0x988] sm:$0xff] }
  0xe2   :  { %3852 = vmatpush1.bf16.msra.mxu1 %v5792_v22  ;;  %v290_v22 = vld [vmem:[%s9072_s1 + $0x7e8] sm:$0xff] }
  0xe3   :  { %4040 = vmatpush1.bf16.msra.mxu0 %v5730_v23  ;;  %3853 = vmatprep.subr.bf16.mxu1 %v5801_v24  ;;  %v223_v23 = vld [vmem:[%s9072_s1 + $0x5d0] sm:$0xff]  ;;  %v5865_v27 = vcombine.high %v286_v19, %v290_v22 }
  0xe4   :  { %4041 = vmatprep.subr.bf16.mxu0 %v5739_v25  ;;  %v227_v24 = vld [vmem:[%s9072_s1 + $0x5f0] sm:$0xff]  ;;  %v5856_v25 = vcombine.low %v278_v10, %v282_v12 }
  0xe5   :  { %v5803_v28 = vcombine.high %v223_v23, %v227_v24  ;;  %v5802_v34 = vcombine.low %v223_v23, %v227_v24  ;;  %v350_v24 = vld [vmem:[%s9072_s1 + $0x9c8] sm:$0xff] }
  0xe6   :  { %3854 = vmatpush1.bf16.msra.mxu1 %v5800_v30  ;;  %v298_v30 = vld [vmem:[%s9072_s1 + $0x828] sm:$0xff] }
  0xe7   :  { %4042 = vmatpush1.bf16.msra.mxu0 %v5738_v31  ;;  %3855 = vmatprep.subr.bf16.mxu1 %v5809_v32  ;;  %v231_v31 = vld [vmem:[%s9072_s1 + $0x610] sm:$0xff]  ;;  %v5873_v35 = vcombine.high %v294_v29, %v298_v30 }
  0xe8   :  { %4054 = vmatprep.subr.bf16.mxu0 %v5747_v33  ;;  %v235_v32 = vld [vmem:[%s9072_s1 + $0x630] sm:$0xff]  ;;  %v5864_v33 = vcombine.low %v286_v19, %v290_v22 }
  0xe9   :  { %v5811_v36 = vcombine.high %v231_v31, %v235_v32  ;;  %v5810_v43 = vcombine.low %v231_v31, %v235_v32  ;;  %v358_v32 = vld [vmem:[%s9072_s1 + $0xa08] sm:$0xff] }
  0xea   :  { %3856 = vmatpush1.bf16.msra.mxu1 %v5808_v38  ;;  %4044 = vmatmul.mubr.bf16.vlgmr.msra.gmra.mrb[4].mxu0 %v6675_v47  ;;  %v306_v38 = vld [vmem:[%s9072_s1 + $0x868] sm:$0xff] }
  0xeb   :  { %4055 = vmatpush1.bf16.msra.mxu0 %v5746_v40  ;;  %3857 = vmatprep.subr.bf16.mxu1 %v5817_v41  ;;  %v239_v40 = vld [vmem:[%s9072_s1 + $0x650] sm:$0xff]  ;;  %v5881_v44 = vcombine.high %v302_v37, %v306_v38  ;;  %v314_v47 = vld [vmem:[%s9072_s1 + $0x8a8] sm:$0xff] }
  0xec   :  { %4056 = vmatprep.subr.bf16.mxu0 %v5755_v42  ;;  %4086 = vmatprep.mubr.bf16.mxu0 %v6974_v21  ;;  %v262_v21 = vld [vmem:[%s9072_s1 + $0x708] sm:$0xff]  ;;  %v243_v41 = vld [vmem:[%s9072_s1 + $0x670] sm:$0xff]  ;;  %v5872_v42 = vcombine.low %v294_v29, %v298_v30  ;;  %v5889_v58 = vcombine.high %v310_v46, %v314_v47 }
  0xed   :  { %v5841_v0 = vcombine.high %v262_v21, %v266_v59  ;;  %v5840_v6 = vcombine.low %v262_v21, %v266_v59  ;;  %v5819_v45 = vcombine.high %v239_v40, %v243_v41  ;;  %v5818_v51 = vcombine.low %v239_v40, %v243_v41  ;;  %v366_v41 = vld [vmem:[%s9072_s1 + $0xa48] sm:$0xff] }
  0xee   :  { %3858 = vmatpush1.bf16.msra.mxu1 %v5816_v11  ;;  %v247_v11 = vld [vmem:[%s9072_s1 + $0x690] sm:$0xff] }
  0xef   :  { %4057 = vmatpush1.bf16.msra.mxu0 %v5754_v48  ;;  %3859 = vmatprep.subr.bf16.mxu1 %v5825_v49  ;;  %v251_v48 = vld [vmem:[%s9072_s1 + $0x6b0] sm:$0xff]  ;;  %v5880_v49 = vcombine.low %v302_v37, %v306_v38 }
  0xf0   :  { %4058 = vmatprep.subr.bf16.mxu0 %v5763_v50  ;;  %v7588_v50 = vld [vmem:[%s9073_s0 + $0x14] ss:$36 sps:$4 sm:$0xff]   ;;  %v5827_v52 = vcombine.high %v247_v11, %v251_v48  ;;  %v5826_v21 = vcombine.low %v247_v11, %v251_v48  ;;  %v374_v48 = vld [vmem:[%s9072_s1 + $0xa88] sm:$0xff] }
  0xf2   :  { %3860 = vmatpush1.bf16.msra.mxu1 %v5824_v54  ;;  %v322_v54 = vld [vmem:[%s9072_s1 + $0x8e8] sm:$0xff] }
  0xf3   :  { %4059 = vmatpush1.bf16.msra.mxu0 %v5762_v55  ;;  %3861 = vmatprep.subr.bf16.mxu1 %v5833_v56  ;;  %v255_v55 = vld [vmem:[%s9072_s1 + $0x6d0] sm:$0xff]  ;;  %v5897_v59 = vcombine.high %v318_v53, %v322_v54 }
  0xf4   :  { %4060 = vmatprep.subr.bf16.mxu0 %v5771_v57  ;;  %v259_v56 = vld [vmem:[%s9072_s1 + $0x6f0] sm:$0xff]  ;;  %v5888_v57 = vcombine.low %v310_v46, %v314_v47 }
  0xf5   :  { %v5835_v60 = vcombine.high %v255_v55, %v259_v56  ;;  %v5834_v2 = vcombine.low %v255_v55, %v259_v56  ;;  %v382_v56 = vld [vmem:[%s9072_s1 + $0xac8] sm:$0xff] }
  0xf6   :  { %3862 = vmatpush1.bf16.msra.mxu1 %v5832_v62  ;;  %v330_v62 = vld [vmem:[%s9072_s1 + $0x928] sm:$0xff] }
  0xf7   :  { %4061 = vmatpush1.bf16.msra.mxu0 %v5770_v63  ;;  %3863 = vmatprep.subr.bf16.mxu1 %v5841_v0  ;;  %v263_v63 = vld [vmem:[%s9072_s1 + $0x710] sm:$0xff]  ;;  %v5905_v3 = vcombine.high %v326_v61, %v330_v62 }
  0xf8   :  { %4062 = vmatprep.subr.bf16.mxu0 %v5779_v1  ;;  %v267_v0 = vld [vmem:[%s9072_s1 + $0x730] sm:$0xff]  ;;  %v5896_v1 = vcombine.low %v318_v53, %v322_v54 }
  0xf9   :  { %v5843_v4 = vcombine.high %v263_v63, %v267_v0  ;;  %v5842_v10 = vcombine.low %v263_v63, %v267_v0  ;;  %v394_v63 = vld [vmem:[%s9072_s1 + $0xb28] sm:$0xff]  ;;  %v327_v0 = vld [vmem:[%s9072_s1 + $0x910] sm:$0xff] }
  0xfa   :  { %3864 = vmatpush1.bf16.msra.mxu1 %v5840_v6  ;;  %v338_v6 = vld [vmem:[%s9072_s1 + $0x968] sm:$0xff] }
  0xfb   :  { %4063 = vmatpush1.bf16.msra.mxu0 %v5778_v7  ;;  %3865 = vmatprep.subr.bf16.mxu1 %v5849_v8  ;;  %v271_v7 = vld [vmem:[%s9072_s1 + $0x750] sm:$0xff]  ;;  %v5913_v12 = vcombine.high %v334_v5, %v338_v6 }
  0xfc   :  { %4064 = vmatprep.subr.bf16.mxu0 %v5787_v9  ;;  %v275_v8 = vld [vmem:[%s9072_s1 + $0x770] sm:$0xff]  ;;  %v5904_v9 = vcombine.low %v326_v61, %v330_v62 }
  0xfd   :  { %v5851_v13 = vcombine.high %v271_v7, %v275_v8  ;;  %v5850_v19 = vcombine.low %v271_v7, %v275_v8  ;;  %v402_v7 = vld [vmem:[%s9072_s1 + $0xb68] sm:$0xff]  ;;  %v335_v8 = vld [vmem:[%s9072_s1 + $0x950] sm:$0xff] }
  0xfe   :  { %3866 = vmatpush1.bf16.msra.mxu1 %v5848_v15  ;;  %v346_v15 = vld [vmem:[%s9072_s1 + $0x9a8] sm:$0xff] }
  0xff   :  { %4065 = vmatpush1.bf16.msra.mxu0 %v5786_v16  ;;  %3867 = vmatprep.subr.bf16.mxu1 %v5857_v17  ;;  %v279_v16 = vld [vmem:[%s9072_s1 + $0x790] sm:$0xff]  ;;  %v5921_v22 = vcombine.high %v342_v14, %v346_v15 }
 0x100   :  { %4066 = vmatprep.subr.bf16.mxu0 %v5795_v18  ;;  %v283_v17 = vld [vmem:[%s9072_s1 + $0x7b0] sm:$0xff]  ;;  %v5912_v18 = vcombine.low %v334_v5, %v338_v6  ;;  %v398_v6 = vld [vmem:[%s9072_s1 + $0xb48] sm:$0xff] }
 0x101   :  { %v5859_v23 = vcombine.high %v279_v16, %v283_v17  ;;  %v5858_v29 = vcombine.low %v279_v16, %v283_v17  ;;  %v410_v16 = vld [vmem:[%s9072_s1 + $0xba8] sm:$0xff]  ;;  %v343_v17 = vld [vmem:[%s9072_s1 + $0x990] sm:$0xff] }
 0x102   :  { %3868 = vmatpush1.bf16.msra.mxu1 %v5856_v25  ;;  %v354_v25 = vld [vmem:[%s9072_s1 + $0x9e8] sm:$0xff] }
 0x103   :  { %4067 = vmatpush1.bf16.msra.mxu0 %v5794_v26  ;;  %3869 = vmatprep.subr.bf16.mxu1 %v5865_v27  ;;  %v287_v26 = vld [vmem:[%s9072_s1 + $0x7d0] sm:$0xff]  ;;  %v5929_v30 = vcombine.high %v350_v24, %v354_v25 }
 0x104   :  { %4068 = vmatprep.subr.bf16.mxu0 %v5803_v28  ;;  %v291_v27 = vld [vmem:[%s9072_s1 + $0x7f0] sm:$0xff]  ;;  %v5920_v28 = vcombine.low %v342_v14, %v346_v15  ;;  %v406_v15 = vld [vmem:[%s9072_s1 + $0xb88] sm:$0xff] }
 0x105   :  { %v5867_v31 = vcombine.high %v287_v26, %v291_v27  ;;  %v5866_v37 = vcombine.low %v287_v26, %v291_v27  ;;  %v418_v26 = vld [vmem:[%s9072_s1 + $0xbe8] sm:$0xff]  ;;  %v351_v27 = vld [vmem:[%s9072_s1 + $0x9d0] sm:$0xff] }
 0x106   :  { %3870 = vmatpush1.bf16.msra.mxu1 %v5864_v33  ;;  %v362_v33 = vld [vmem:[%s9072_s1 + $0xa28] sm:$0xff] }
 0x107   :  { %4069 = vmatpush1.bf16.msra.mxu0 %v5802_v34  ;;  %3882 = vmatprep.subr.bf16.mxu1 %v5873_v35  ;;  %v295_v34 = vld [vmem:[%s9072_s1 + $0x810] sm:$0xff]  ;;  %v5937_v38 = vcombine.high %v358_v32, %v362_v33 }
 0x108   :  { %4070 = vmatprep.subr.bf16.mxu0 %v5811_v36  ;;  %v299_v35 = vld [vmem:[%s9072_s1 + $0x830] sm:$0xff]  ;;  %v5928_v36 = vcombine.low %v350_v24, %v354_v25  ;;  %v414_v25 = vld [vmem:[%s9072_s1 + $0xbc8] sm:$0xff] }
 0x109   :  { %3872 = vmatmul.mubr.bf16.vlgmr.msra.gmra.mrb[4].mxu1 %v7164_v20  ;;  %v5875_v40 = vcombine.high %v295_v34, %v299_v35  ;;  %v5874_v46 = vcombine.low %v295_v34, %v299_v35  ;;  %v426_v34 = vld [vmem:[%s9072_s1 + $0xc28] sm:$0xff]  ;;  %v359_v35 = vld [vmem:[%s9072_s1 + $0xa10] sm:$0xff] }
 0x10a   :  { %3883 = vmatpush1.bf16.msra.mxu1 %v5872_v42  ;;  %3914 = vmatprep.mubr.bf16.mxu1 %v7588_v50  ;;  %v370_v42 = vld [vmem:[%s9072_s1 + $0xa68] sm:$0xff] }
 0x10b   :  { %4071 = vmatpush1.bf16.msra.mxu0 %v5810_v43  ;;  %3884 = vmatprep.subr.bf16.mxu1 %v5881_v44  ;;  %v303_v43 = vld [vmem:[%s9072_s1 + $0x850] sm:$0xff]  ;;  %v5945_v47 = vcombine.high %v366_v41, %v370_v42 }
 0x10c   :  { %4072 = vmatprep.subr.bf16.mxu0 %v5819_v45  ;;  %v307_v44 = vld [vmem:[%s9072_s1 + $0x870] sm:$0xff]  ;;  %v5936_v45 = vcombine.low %v358_v32, %v362_v33  ;;  %v422_v33 = vld [vmem:[%s9072_s1 + $0xc08] sm:$0xff] }
 0x10d   :  { %v5883_v11 = vcombine.high %v303_v43, %v307_v44  ;;  %v5882_v53 = vcombine.low %v303_v43, %v307_v44  ;;  %v434_v43 = vld [vmem:[%s9072_s1 + $0xc68] sm:$0xff]  ;;  %v367_v44 = vld [vmem:[%s9072_s1 + $0xa50] sm:$0xff] }
 0x10e   :  { %3885 = vmatpush1.bf16.msra.mxu1 %v5880_v49  ;;  %v378_v49 = vld [vmem:[%s9072_s1 + $0xaa8] sm:$0xff] }
 0x10f   :  { %4073 = vmatpush1.bf16.msra.mxu0 %v5818_v51  ;;  %3886 = vmatprep.subr.bf16.mxu1 %v5889_v58  ;;  %v311_v51 = vld [vmem:[%s9072_s1 + $0x890] sm:$0xff]  ;;  %v5953_v54 = vcombine.high %v374_v48, %v378_v49 }
 0x110   :  { %4074 = vmatprep.subr.bf16.mxu0 %v5827_v52  ;;  %v315_v58 = vld [vmem:[%s9072_s1 + $0x8b0] sm:$0xff]  ;;  %v5944_v52 = vcombine.low %v366_v41, %v370_v42  ;;  %v430_v42 = vld [vmem:[%s9072_s1 + $0xc48] sm:$0xff] }
 0x111   :  { %v5891_v55 = vcombine.high %v311_v51, %v315_v58 }
 0x112   :  { %3887 = vmatpush1.bf16.msra.mxu1 %v5888_v57  ;;  %v386_v57 = vld [vmem:[%s9072_s1 + $0xae8] sm:$0xff] }
 0x113   :  { %4075 = vmatpush1.bf16.msra.mxu0 %v5826_v21  ;;  %3888 = vmatprep.subr.bf16.mxu1 %v5897_v59  ;;  %v323_v21 = vld [vmem:[%s9072_s1 + $0x8f0] sm:$0xff]  ;;  %v5952_v59 = vcombine.low %v374_v48, %v378_v49  ;;  %v5961_v61 = vcombine.high %v382_v56, %v386_v57  ;;  %v438_v48 = vld [vmem:[%s9072_s1 + $0xc88] sm:$0xff] }
 0x114   :  { %4076 = vmatprep.subr.bf16.mxu0 %v5835_v60  ;;  %v5890_v60 = vcombine.low %v311_v51, %v315_v58  ;;  %v442_v49 = vld [vmem:[%s9072_s1 + $0xca8] sm:$0xff]  ;;  %v375_v58 = vld [vmem:[%s9072_s1 + $0xa90] sm:$0xff] }
 0x116   :  { %3889 = vmatpush1.bf16.msra.mxu1 %v5896_v1  ;;  %v331_v1 = vld [vmem:[%s9072_s1 + $0x930] sm:$0xff] }
 0x117   :  { %4077 = vmatpush1.bf16.msra.mxu0 %v5834_v2  ;;  %3890 = vmatprep.subr.bf16.mxu1 %v5905_v3  ;;  %v5960_v2 = vcombine.low %v382_v56, %v386_v57  ;;  %v5907_v5 = vcombine.high %v327_v0, %v331_v1  ;;  %v6017_v57 = vcombine.high %v438_v48, %v442_v49 }
 0x118   :  { %4078 = vmatprep.subr.bf16.mxu0 %v5843_v4 }
 0x11a   :  { %3891 = vmatpush1.bf16.msra.mxu1 %v5904_v9  ;;  %v339_v9 = vld [vmem:[%s9072_s1 + $0x970] sm:$0xff] }
 0x11b   :  { %4079 = vmatpush1.bf16.msra.mxu0 %v5842_v10  ;;  %3892 = vmatprep.subr.bf16.mxu1 %v5913_v12  ;;  %v5906_v12 = vcombine.low %v327_v0, %v331_v1  ;;  %v5915_v14 = vcombine.high %v335_v8, %v339_v9  ;;  %v454_v0 = vld [vmem:[%s9072_s1 + $0xd08] sm:$0xff] }
 0x11c   :  { %4080 = vmatprep.subr.bf16.mxu0 %v5851_v13  ;;  %v5977_v13 = vcombine.high %v398_v6, %v402_v7  ;;  %v458_v1 = vld [vmem:[%s9072_s1 + $0xd28] sm:$0xff] }
 0x11e   :  { %3893 = vmatpush1.bf16.msra.mxu1 %v5912_v18  ;;  %v347_v18 = vld [vmem:[%s9072_s1 + $0x9b0] sm:$0xff] }
 0x11f   :  { %4081 = vmatpush1.bf16.msra.mxu0 %v5850_v19  ;;  %3894 = vmatprep.subr.bf16.mxu1 %v5921_v22  ;;  %v5976_v19 = vcombine.low %v398_v6, %v402_v7  ;;  %v5914_v22 = vcombine.low %v335_v8, %v339_v9  ;;  %v5923_v24 = vcombine.high %v343_v17, %v347_v18  ;;  %v462_v8 = vld [vmem:[%s9072_s1 + $0xd48] sm:$0xff] }
 0x120   :  { %4082 = vmatprep.subr.bf16.mxu0 %v5859_v23  ;;  %v5985_v23 = vcombine.high %v406_v15, %v410_v16  ;;  %v6033_v7 = vcombine.high %v454_v0, %v458_v1  ;;  %v466_v9 = vld [vmem:[%s9072_s1 + $0xd68] sm:$0xff] }
 0x122   :  { %3895 = vmatpush1.bf16.msra.mxu1 %v5920_v28  ;;  %v355_v28 = vld [vmem:[%s9072_s1 + $0x9f0] sm:$0xff] }
 0x123   :  { %4083 = vmatpush1.bf16.msra.mxu0 %v5858_v29  ;;  %3896 = vmatprep.subr.bf16.mxu1 %v5929_v30  ;;  %v5984_v29 = vcombine.low %v406_v15, %v410_v16  ;;  %v5922_v30 = vcombine.low %v343_v17, %v347_v18  ;;  %v5931_v32 = vcombine.high %v351_v27, %v355_v28  ;;  %v470_v17 = vld [vmem:[%s9072_s1 + $0xd88] sm:$0xff] }
 0x124   :  { %4084 = vmatprep.subr.bf16.mxu0 %v5867_v31  ;;  %v5993_v31 = vcombine.high %v414_v25, %v418_v26  ;;  %v6041_v16 = vcombine.high %v462_v8, %v466_v9  ;;  %v474_v18 = vld [vmem:[%s9072_s1 + $0xda8] sm:$0xff] }
 0x126   :  { %3897 = vmatpush1.bf16.msra.mxu1 %v5928_v36  ;;  %v363_v36 = vld [vmem:[%s9072_s1 + $0xa30] sm:$0xff] }
 0x127   :  { %4085 = vmatpush1.bf16.msra.mxu0 %v5866_v37  ;;  %3898 = vmatprep.subr.bf16.mxu1 %v5937_v38  ;;  %v5992_v37 = vcombine.low %v414_v25, %v418_v26  ;;  %v5930_v38 = vcombine.low %v351_v27, %v355_v28  ;;  %v5939_v41 = vcombine.high %v359_v35, %v363_v36  ;;  %v478_v27 = vld [vmem:[%s9072_s1 + $0xdc8] sm:$0xff] }
 0x128   :  { %4097 = vmatprep.subr.bf16.mxu0 %v5875_v40  ;;  %v6001_v40 = vcombine.high %v422_v33, %v426_v34  ;;  %v6049_v26 = vcombine.high %v470_v17, %v474_v18  ;;  %v482_v28 = vld [vmem:[%s9072_s1 + $0xde8] sm:$0xff] }
 0x12a   :  { %3899 = vmatpush1.bf16.msra.mxu1 %v5936_v45  ;;  %4087 = vmatmul.mubr.bf16.vlgmr.msra.gmra.mrb[4].mxu0 %v7164_v20  ;;  %v319_v20 = vld [vmem:[%s9072_s1 + $0x8d0] sm:$0xff] }
 0x12b   :  { %4098 = vmatpush1.bf16.msra.mxu0 %v5874_v46  ;;  %3900 = vmatprep.subr.bf16.mxu1 %v5945_v47  ;;  %v5899_v62 = vcombine.high %v319_v20, %v323_v21  ;;  %v5898_v3 = vcombine.low %v319_v20, %v323_v21  ;;  %v371_v45 = vld [vmem:[%s9072_s1 + $0xa70] sm:$0xff]  ;;  %v6000_v46 = vcombine.low %v422_v33, %v426_v34  ;;  %v446_v20 = vld [vmem:[%s9072_s1 + $0xcc8] sm:$0xff] }
 0x12c   :  { %4099 = vmatprep.subr.bf16.mxu0 %v5883_v11  ;;  %4129 = vmatprep.mubr.bf16.mxu0 %v7588_v50  ;;  %v390_v50 = vld [vmem:[%s9072_s1 + $0xb08] sm:$0xff]  ;;  %v5938_v47 = vcombine.low %v359_v35, %v363_v36  ;;  %v6009_v11 = vcombine.high %v430_v42, %v434_v43  ;;  %v5947_v51 = vcombine.high %v367_v44, %v371_v45 }
 0x12d   :  { %v5969_v4 = vcombine.high %v390_v50, %v394_v63  ;;  %v5968_v10 = vcombine.low %v390_v50, %v394_v63  ;;  %v5946_v56 = vcombine.low %v367_v44, %v371_v45  ;;  %v450_v21 = vld [vmem:[%s9072_s1 + $0xce8] sm:$0xff]  ;;  %v6048_v35 = vcombine.low %v470_v17, %v474_v18  ;;  %v427_v44 = vld [vmem:[%s9072_s1 + $0xc30] sm:$0xff] }
 0x12e   :  { %3901 = vmatpush1.bf16.msra.mxu1 %v5944_v52  ;;  %v7785_v52 = vld [vmem:[%s9073_s0 + $0x10] ss:$36 sps:$4 sm:$0xff]   ;;  %v6025_v63 = vcombine.high %v446_v20, %v450_v21  ;;  %v6056_v45 = vcombine.low %v478_v27, %v482_v28  ;;  %v526_v17 = vld [vmem:[%s9072_s1 + $0xf48] sm:$0xff] }
 0x12f   :  { %4100 = vmatpush1.bf16.msra.mxu0 %v5882_v53  ;;  %3902 = vmatprep.subr.bf16.mxu1 %v5953_v54  ;;  %v379_v53 = vld [vmem:[%s9072_s1 + $0xab0] sm:$0xff]  ;;  %v6008_v54 = vcombine.low %v430_v42, %v434_v43  ;;  %v530_v18 = vld [vmem:[%s9072_s1 + $0xf68] sm:$0xff] }
 0x130   :  { %4101 = vmatprep.subr.bf16.mxu0 %v5891_v55  ;;  %v7794_v55 = vld [vmem:[%s9073_s0 + $0x1c] ss:$36 sps:$4 sm:$0xff]   ;;  %v5954_v50 = vcombine.low %v375_v58, %v379_v53  ;;  %v423_v42 = vld [vmem:[%s9072_s1 + $0xc10] sm:$0xff] }
 0x132   :  { %3903 = vmatpush1.bf16.msra.mxu1 %v5952_v59  ;;  %v5955_v59 = vcombine.high %v375_v58, %v379_v53  ;;  %v435_v58 = vld [vmem:[%s9072_s1 + $0xc70] sm:$0xff] }
 0x133   :  { %4102 = vmatpush1.bf16.msra.mxu0 %v5890_v60  ;;  %3904 = vmatprep.subr.bf16.mxu1 %v5961_v61  ;;  %v383_v60 = vld [vmem:[%s9072_s1 + $0xad0] sm:$0xff] }
 0x134   :  { %4103 = vmatprep.subr.bf16.mxu0 %v5899_v62  ;;  %v387_v61 = vld [vmem:[%s9072_s1 + $0xaf0] sm:$0xff]  ;;  %v6016_v62 = vcombine.low %v438_v48, %v442_v49  ;;  %v498_v48 = vld [vmem:[%s9072_s1 + $0xe68] sm:$0xff] }
 0x135   :  { %v5962_v6 = vcombine.low %v383_v60, %v387_v61  ;;  %v431_v49 = vld [vmem:[%s9072_s1 + $0xc50] sm:$0xff] }
 0x136   :  { %3905 = vmatpush1.bf16.msra.mxu1 %v5960_v2  ;;  %v391_v2 = vld [vmem:[%s9072_s1 + $0xb10] sm:$0xff] }
 0x137   :  { %4104 = vmatpush1.bf16.msra.mxu0 %v5898_v3  ;;  %3906 = vmatprep.subr.bf16.mxu1 %v5969_v4  ;;  %v5963_v3 = vcombine.high %v383_v60, %v387_v61  ;;  %v395_v4 = vld [vmem:[%s9072_s1 + $0xb30] sm:$0xff] }
 0x138   :  { %4105 = vmatprep.subr.bf16.mxu0 %v5907_v5  ;;  %v6024_v5 = vcombine.low %v446_v20, %v450_v21  ;;  %v5970_v15 = vcombine.low %v391_v2, %v395_v4  ;;  %v506_v20 = vld [vmem:[%s9072_s1 + $0xea8] sm:$0xff]  ;;  %v439_v21 = vld [vmem:[%s9072_s1 + $0xc90] sm:$0xff] }
 0x139   :  { %v443_v60 = vld [vmem:[%s9072_s1 + $0xcb0] sm:$0xff] }
 0x13a   :  { %3907 = vmatpush1.bf16.msra.mxu1 %v5968_v10  ;;  %v399_v10 = vld [vmem:[%s9072_s1 + $0xb50] sm:$0xff] }
 0x13b   :  { %4106 = vmatpush1.bf16.msra.mxu0 %v5906_v12  ;;  %3908 = vmatprep.subr.bf16.mxu1 %v5977_v13  ;;  %v5971_v12 = vcombine.high %v391_v2, %v395_v4  ;;  %v403_v13 = vld [vmem:[%s9072_s1 + $0xb70] sm:$0xff]  ;;  %v615_v2 = vlaneseq }
 0x13c   :  { %4107 = vmatprep.subr.bf16.mxu0 %v5915_v14  ;;  %v6032_v14 = vcombine.low %v454_v0, %v458_v1  ;;  %v5978_v25 = vcombine.low %v399_v10, %v403_v13  ;;  %v514_v0 = vld [vmem:[%s9072_s1 + $0xee8] sm:$0xff]  ;;  %v447_v1 = vld [vmem:[%s9072_s1 + $0xcd0] sm:$0xff] }
 0x13e   :  { %3909 = vmatpush1.bf16.msra.mxu1 %v5976_v19  ;;  %v407_v19 = vld [vmem:[%s9072_s1 + $0xb90] sm:$0xff] }
 0x13f   :  { %4108 = vmatpush1.bf16.msra.mxu0 %v5914_v22  ;;  %3910 = vmatprep.subr.bf16.mxu1 %v5985_v23  ;;  %v5979_v22 = vcombine.high %v399_v10, %v403_v13  ;;  %v411_v23 = vld [vmem:[%s9072_s1 + $0xbb0] sm:$0xff]  ;;  %v7924_v10 = vshrl.u32 %v615_v2, 7 }
 0x140   :  { %4109 = vmatprep.subr.bf16.mxu0 %v5923_v24  ;;  %v6040_v24 = vcombine.low %v462_v8, %v466_v9  ;;  %v522_v8 = vld [vmem:[%s9072_s1 + $0xf28] sm:$0xff]  ;;  %v455_v9 = vld [vmem:[%s9072_s1 + $0xd10] sm:$0xff] }
 0x142   :  { %3911 = vmatpush1.bf16.msra.mxu1 %v5984_v29  ;;  %v415_v29 = vld [vmem:[%s9072_s1 + $0xbd0] sm:$0xff] }
 0x143   :  { %4110 = vmatpush1.bf16.msra.mxu0 %v5922_v30  ;;  %3912 = vmatprep.subr.bf16.mxu1 %v5993_v31  ;;  %v5987_v31 = vcombine.high %v407_v19, %v411_v23 }
 0x144   :  { %4111 = vmatprep.subr.bf16.mxu0 %v5931_v32  ;;  %v419_v32 = vld [vmem:[%s9072_s1 + $0xbf0] sm:$0xff] }
 0x145   :  { %v5995_v43 = vcombine.high %v415_v29, %v419_v32 }
 0x146   :  { %3913 = vmatpush1.bf16.msra.mxu1 %v5992_v37  ;;  %v5986_v37 = vcombine.low %v407_v19, %v411_v23  ;;  %v463_v19 = vld [vmem:[%s9072_s1 + $0xd50] sm:$0xff] }
 0x147   :  { %4112 = vmatpush1.bf16.msra.mxu0 %v5930_v38  ;;  %3925 = vmatprep.subr.bf16.mxu1 %v6001_v40  ;;  %v6057_v38 = vcombine.high %v478_v27, %v482_v28  ;;  %v486_v40 = vld [vmem:[%s9072_s1 + $0xe08] sm:$0xff]  ;;  %v6105_v28 = vcombine.high %v526_v17, %v530_v18 }
 0x148   :  { %4113 = vmatprep.subr.bf16.mxu0 %v5939_v41  ;;  %v490_v41 = vld [vmem:[%s9072_s1 + $0xe28] sm:$0xff] }
 0x149   :  { %3915 = vmatmul.mubr.bf16.vlgmr.msra.gmra.mrb[4].mxu1 %v7785_v52  ;;  %v6064_v53 = vcombine.low %v486_v40, %v490_v41 }
 0x14a   :  { %3926 = vmatpush1.bf16.msra.mxu1 %v6000_v46  ;;  %3957 = vmatprep.mubr.bf16.mxu1 %v7794_v55  ;;  %v5994_v46 = vcombine.low %v415_v29, %v419_v32  ;;  %v534_v29 = vld [vmem:[%s9072_s1 + $0xf88] sm:$0xff]  ;;  %v471_v32 = vld [vmem:[%s9072_s1 + $0xd90] sm:$0xff] }
 0x14b   :  { %4114 = vmatpush1.bf16.msra.mxu0 %v5938_v47  ;;  %3927 = vmatprep.subr.bf16.mxu1 %v6009_v11  ;;  %v6065_v47 = vcombine.high %v486_v40, %v490_v41  ;;  %v494_v11 = vld [vmem:[%s9072_s1 + $0xe48] sm:$0xff]  ;;  %v6104_v41 = vcombine.low %v526_v17, %v530_v18 }
 0x14c   :  { %4115 = vmatprep.subr.bf16.mxu0 %v5947_v51  ;;  %v6003_v51 = vcombine.high %v423_v42, %v427_v44  ;;  %v6072_v61 = vcombine.low %v494_v11, %v498_v48  ;;  %v566_v18 = vld [vmem:[%s9072_s1 + $0x1088] sm:$0xff] }
 0x14e   :  { %3928 = vmatpush1.bf16.msra.mxu1 %v6008_v54  ;;  %v6002_v54 = vcombine.low %v423_v42, %v427_v44  ;;  %v542_v44 = vld [vmem:[%s9072_s1 + $0xfc8] sm:$0xff] }
 0x14f   :  { %4116 = vmatpush1.bf16.msra.mxu0 %v5946_v56  ;;  %3929 = vmatprep.subr.bf16.mxu1 %v6017_v57  ;;  %v6073_v56 = vcombine.high %v494_v11, %v498_v48  ;;  %v502_v57 = vld [vmem:[%s9072_s1 + $0xe88] sm:$0xff]  ;;  %v483_v48 = vld [vmem:[%s9072_s1 + $0xdf0] sm:$0xff] }
 0x150   :  { %4117 = vmatprep.subr.bf16.mxu0 %v5955_v59  ;;  %v6011_v59 = vcombine.high %v431_v49, %v435_v58  ;;  %v6080_v4 = vcombine.low %v502_v57, %v506_v20 }
 0x152   :  { %3930 = vmatpush1.bf16.msra.mxu1 %v6016_v62  ;;  %v6010_v62 = vcombine.low %v431_v49, %v435_v58 }
 0x153   :  { %4118 = vmatpush1.bf16.msra.mxu0 %v5954_v50  ;;  %3931 = vmatprep.subr.bf16.mxu1 %v6025_v63  ;;  %v6081_v50 = vcombine.high %v502_v57, %v506_v20  ;;  %v510_v63 = vld [vmem:[%s9072_s1 + $0xec8] sm:$0xff] }
 0x154   :  { %4119 = vmatprep.subr.bf16.mxu0 %v5963_v3  ;;  %v451_v3 = vld [vmem:[%s9072_s1 + $0xcf0] sm:$0xff]  ;;  %v6088_v13 = vcombine.low %v510_v63, %v514_v0 }
 0x156   :  { %3932 = vmatpush1.bf16.msra.mxu1 %v6024_v5  ;;  %v6018_v5 = vcombine.low %v439_v21, %v443_v60 }
 0x157   :  { %4120 = vmatpush1.bf16.msra.mxu0 %v5962_v6  ;;  %3933 = vmatprep.subr.bf16.mxu1 %v6033_v7  ;;  %v6089_v6 = vcombine.high %v510_v63, %v514_v0  ;;  %v518_v7 = vld [vmem:[%s9072_s1 + $0xf08] sm:$0xff] }
 0x158   :  { %4121 = vmatprep.subr.bf16.mxu0 %v5971_v12  ;;  %v459_v12 = vld [vmem:[%s9072_s1 + $0xd30] sm:$0xff] }
 0x159   :  { %v6035_v23 = vcombine.high %v455_v9, %v459_v12  ;;  %v6034_v27 = vcombine.low %v455_v9, %v459_v12  ;;  %v499_v12 = vld [vmem:[%s9072_s1 + $0xe70] sm:$0xff] }
 0x15a   :  { %3934 = vmatpush1.bf16.msra.mxu1 %v6032_v14  ;;  %v613_v14 = vld [vmem:[%s9075_s2] sm:$0xff] }
 0x15b   :  { %4122 = vmatpush1.bf16.msra.mxu0 %v5970_v15  ;;  %3935 = vmatprep.subr.bf16.mxu1 %v6041_v16  ;;  %v6026_v15 = vcombine.low %v447_v1, %v451_v3  ;;  %v6097_v16 = vcombine.high %v518_v7, %v522_v8 }
 0x15c   :  { %v7854_v30 = vpop.f32.mrb[0].mxu1  ;;  %4123 = vmatprep.subr.bf16.mxu0 %v5979_v22  ;;  %v617_v22 = vsub.s32 0, %v7924_v10 }
 0x15d   :  { %v7859_v33 = vpop.f32.mrb[1].mxu1 }
 0x15e   :  { %v7861_v34 = vpop.f32.mrb[2].mxu1  ;;  %3936 = vmatpush1.bf16.msra.mxu1 %v6040_v24  ;;  %v467_v24 = vld [vmem:[%s9072_s1 + $0xd70] sm:$0xff] }
 0x15f   :  { %4124 = vmatpush1.bf16.msra.mxu0 %v5978_v25  ;;  %v7863_v36 = vpop.f32.mrb[3].mxu1  ;;  %3937 = vmatprep.subr.bf16.mxu1 %v6049_v26  ;;  %v621_v25 = vsub.s32 1, %v7924_v10  ;;  %v6096_v26 = vcombine.low %v518_v7, %v522_v8  ;;  %v6042_v42 = vcombine.low %v463_v19, %v467_v24  ;;  %v562_v7 = vld [vmem:[%s9072_s1 + $0x1068] sm:$0xff]  ;;  %v495_v8 = vld [vmem:[%s9072_s1 + $0xe50] sm:$0xff] }
 0x160   :  { %4125 = vmatprep.subr.bf16.mxu0 %v5987_v31  ;;  %v538_v31 = vld [vmem:[%s9072_s1 + $0xfa8] sm:$0xff]  ;;  %v6075_v17 = vcombine.high %v495_v8, %v499_v12 }
 0x161   :  { %v622_v40 = vrot.slane %v613_v14, %v621_v25 }
 0x162   :  { %3938 = vmatpush1.bf16.msra.mxu1 %v6048_v35  ;;  %v618_v35 = vrot.slane %v613_v14, %v617_v22 }
 0x163   :  { %4126 = vmatpush1.bf16.msra.mxu0 %v5986_v37  ;;  %3939 = vmatprep.subr.bf16.mxu1 %v6057_v38  ;;  %v6043_v37 = vcombine.high %v463_v19, %v467_v24  ;;  %v475_v38 = vld [vmem:[%s9072_s1 + $0xdb0] sm:$0xff]  ;;  %v6359_v49 = vadd.f32 %v7859_v33, %v622_v40  ;;  %v6363_v20 = vadd.f32 %v7863_v36, %v622_v40  ;;  %v554_v33 = vld [vmem:[%s9072_s1 + $0x1028] sm:$0xff] }
 0x164   :  { %4127 = vmatprep.subr.bf16.mxu0 %v5995_v43  ;;  %v6113_v43 = vcombine.high %v534_v29, %v538_v31  ;;  %v6051_v11 = vcombine.high %v471_v32, %v475_v38  ;;  %v6361_v58 = vadd.f32 %v7861_v34, %v618_v35  ;;  %v6050_v57 = vcombine.low %v471_v32, %v475_v38  ;;  %v487_v34 = vld [vmem:[%s9072_s1 + $0xe10] sm:$0xff]  ;;  %v570_v19 = vld [vmem:[%s9072_s1 + $0x10a8] sm:$0xff] }
 0x165   :  { %v503_v24 = vld [vmem:[%s9072_s1 + $0xe90] sm:$0xff]  ;;  %v574_v32 = vld [vmem:[%s9072_s1 + $0x10c8] sm:$0xff]  ;;  %v6144_v40 = vcombine.low %v566_v18, %v570_v19 }
 0x166   :  { %3940 = vmatpush1.bf16.msra.mxu1 %v6056_v45  ;;  %v546_v45 = vld [vmem:[%s9072_s1 + $0xfe8] sm:$0xff]  ;;  %v515_v38 = vld [vmem:[%s9072_s1 + $0xef0] sm:$0xff] }
 0x167   :  { %4128 = vmatpush1.bf16.msra.mxu0 %v5994_v46  ;;  %3941 = vmatprep.subr.bf16.mxu1 %v6065_v47  ;;  %v479_v46 = vld [vmem:[%s9072_s1 + $0xdd0] sm:$0xff]  ;;  %v6357_v47 = vadd.f32 %v7854_v30, %v618_v35  ;;  %v6120_v2 = vcombine.low %v542_v44, %v546_v45  ;;  %v578_v35 = vld [vmem:[%s9072_s1 + $0x10e8] sm:$0xff] }
 0x168   :  { %4140 = vmatprep.subr.bf16.mxu0 %v6003_v51  ;;  %v6059_v36 = vcombine.high %v479_v46, %v483_v48 }
 0x16a   :  { %3942 = vmatpush1.bf16.msra.mxu1 %v6064_v53  ;;  %4130 = vmatmul.mubr.bf16.vlgmr.msra.gmra.mrb[4].mxu0 %v7785_v52  ;;  %v6019_v52 = vcombine.high %v439_v21, %v443_v60  ;;  %v550_v60 = vld [vmem:[%s9072_s1 + $0x1008] sm:$0xff] }
 0x16b   :  { %4141 = vmatpush1.bf16.msra.mxu0 %v6002_v54  ;;  %3943 = vmatprep.subr.bf16.mxu1 %v6073_v56  ;;  %v6112_v56 = vcombine.low %v534_v29, %v538_v31  ;;  %v6128_v14 = vcombine.low %v550_v60, %v554_v33  ;;  %v6145_v29 = vcombine.high %v566_v18, %v570_v19  ;;  %v52_v18 = vld [vmem:[%s9072_s1 + $0x78] sm:$0xff]  ;;  %v559_v19 = vld [vmem:[%s9072_s1 + $0x1050] sm:$0xff] }
 0x16c   :  { %4142 = vmatprep.subr.bf16.mxu0 %v6011_v59  ;;  %4172 = vmatprep.mubr.bf16.mxu0 %v7794_v55  ;;  %v6027_v55 = vcombine.high %v447_v1, %v451_v3  ;;  %v6121_v59 = vcombine.high %v542_v44, %v546_v45  ;;  %v582_v44 = vld [vmem:[%s9072_s1 + $0x1108] sm:$0xff] }
 0x16d   :  { %v586_v45 = vld [vmem:[%s9072_s1 + $0x1128] sm:$0xff] }
 0x16e   :  { %3944 = vmatpush1.bf16.msra.mxu1 %v6072_v61 }
 0x16f   :  { %4143 = vmatpush1.bf16.msra.mxu0 %v6010_v62  ;;  %3945 = vmatprep.subr.bf16.mxu1 %v6081_v50  ;;  %v491_v50 = vld [vmem:[%s9072_s1 + $0xe30] sm:$0xff] }
 0x170   :  { %4144 = vmatprep.subr.bf16.mxu0 %v6019_v52 }
 0x172   :  { %3946 = vmatpush1.bf16.msra.mxu1 %v6080_v4  ;;  %v6058_v4 = vcombine.low %v479_v46, %v483_v48  ;;  %v519_v46 = vld [vmem:[%s9072_s1 + $0xf10] sm:$0xff] }
 0x173   :  { %4145 = vmatpush1.bf16.msra.mxu0 %v6018_v5  ;;  %3947 = vmatprep.subr.bf16.mxu1 %v6089_v6  ;;  %v6129_v5 = vcombine.high %v550_v60, %v554_v33  ;;  %v558_v6 = vld [vmem:[%s9072_s1 + $0x1048] sm:$0xff]  ;;  %v535_v33 = vld [vmem:[%s9072_s1 + $0xf90] sm:$0xff] }
 0x174   :  { %4146 = vmatprep.subr.bf16.mxu0 %v6027_v55  ;;  %v6067_v55 = vcombine.high %v487_v34, %v491_v50  ;;  %v602_v60 = vld [vmem:[%s9072_s1 + $0x11a8] sm:$0xff] }
 0x176   :  { %3948 = vmatpush1.bf16.msra.mxu1 %v6088_v13 }
 0x177   :  { %4147 = vmatpush1.bf16.msra.mxu0 %v6026_v15  ;;  %3949 = vmatprep.subr.bf16.mxu1 %v6097_v16  ;;  %v6066_v15 = vcombine.low %v487_v34, %v491_v50  ;;  %v6137_v16 = vcombine.high %v558_v6, %v562_v7  ;;  %v539_v34 = vld [vmem:[%s9072_s1 + $0xfb0] sm:$0xff] }
 0x178   :  { %4148 = vmatprep.subr.bf16.mxu0 %v6035_v23  ;;  %v8015_v23 = vld [vmem:[%s9073_s0 + $0x18] ss:$36 sps:$4 sm:$0xff]   ;;  %v6115_v50 = vcombine.high %v535_v33, %v539_v34 }
 0x17a   :  { %3950 = vmatpush1.bf16.msra.mxu1 %v6096_v26  ;;  %v507_v26 = vld [vmem:[%s9072_s1 + $0xeb0] sm:$0xff] }
 0x17b   :  { %4149 = vmatpush1.bf16.msra.mxu0 %v6034_v27  ;;  %3951 = vmatprep.subr.bf16.mxu1 %v6105_v28  ;;  %v6136_v27 = vcombine.low %v558_v6, %v562_v7  ;;  %v6074_v28 = vcombine.low %v495_v8, %v499_v12  ;;  %v6083_v31 = vcombine.high %v503_v24, %v507_v26  ;;  %v40_v6 = vld [vmem:[%s9072_s1 + $0x18] sm:$0xff]  ;;  %v551_v8 = vld [vmem:[%s9072_s1 + $0x1010] sm:$0xff] }
 0x17c   :  { %4150 = vmatprep.subr.bf16.mxu0 %v6043_v37  ;;  %v511_v37 = vld [vmem:[%s9072_s1 + $0xed0] sm:$0xff]  ;;  %v44_v7 = vld [vmem:[%s9072_s1 + $0x38] sm:$0xff] }
 0x17d   :  { %v3787_v51 = vpop.f32.mrb[0].mxu0  ;;  %v6090_v48 = vcombine.low %v511_v37, %v515_v38 }
 0x17e   :  { %v6358_v53 = vadd.f32 %v6357_v47, %v3787_v51  ;;  %v3789_v54 = vpop.f32.mrb[1].mxu0  ;;  %3952 = vmatpush1.bf16.msra.mxu1 %v6104_v41  ;;  %v6082_v41 = vcombine.low %v503_v24, %v507_v26  ;;  %v523_v47 = vld [vmem:[%s9072_s1 + $0xf30] sm:$0xff]  ;;  %v5620_v26 = vcombine.low %v40_v6, %v44_v7 }
 0x17f   :  { %v6360_v21 = vadd.f32 %v6359_v49, %v3789_v54  ;;  %v3791_v30 = vpop.f32.mrb[2].mxu0  ;;  %4151 = vmatpush1.bf16.msra.mxu0 %v6042_v42  ;;  %3953 = vmatprep.subr.bf16.mxu1 %v6113_v43  ;;  %v6153_v42 = vcombine.high %v574_v32, %v578_v35  ;;  %v6091_v43 = vcombine.high %v511_v37, %v515_v38  ;;  %v527_v54 = vld [vmem:[%s9072_s1 + $0xf50] sm:$0xff] }
 0x180   :  { %v6362_v61 = vadd.f32 %v6361_v58, %v3791_v30  ;;  %v3793_v62 = vpop.f32.mrb[3].mxu0  ;;  %4152 = vmatprep.subr.bf16.mxu0 %v6051_v11  ;;  %v4441_v0 = vmax.f32 %v6358_v53, 0.0  ;;  %v6152_v11 = vcombine.low %v574_v32, %v578_v35  ;;  %v6161_v49 = vcombine.high %v582_v44, %v586_v45  ;;  %v590_v58 = vld [vmem:[%s9072_s1 + $0x1148] sm:$0xff]  ;;  %v563_v24 = vld [vmem:[%s9072_s1 + $0x1070] sm:$0xff]  ;;  %v60_v32 = vld [vmem:[%s9072_s1 + $0xb8] sm:$0xff] }
 0x181   :  { %v6364_v63 = vadd.f32 %v6363_v20, %v3793_v62  ;;  %v4442_v52 = vmax.f32 %v6360_v21, 0.0  ;;  %v6099_v51 = vcombine.high %v519_v46, %v523_v47  ;;  %v594_v53 = vld [vmem:[%s9072_s1 + $0x1168] sm:$0xff]  ;;  %v6098_v20 = vcombine.low %v519_v46, %v523_v47  ;;  %v8118_v35 = vld [vmem:[%s9073_s0 + $0x20] ss:$36 sps:$4 sm:$0xff]   ;;  %v567_v37 = vld [vmem:[%s9072_s1 + $0x1090] sm:$0xff] }
 0x182   :  { %v4449_v1 = vmax.f32 %v6362_v61, 0.0  ;;  %3954 = vmatpush1.bf16.msra.mxu1 %v6112_v56  ;;  %v531_v56 = vld [vmem:[%s9072_s1 + $0xf70] sm:$0xff]  ;;  %v6169_v21 = vcombine.high %v590_v58, %v594_v53  ;;  %v6168_v61 = vcombine.low %v590_v58, %v594_v53  ;;  %v6681_v47 = vld [vmem:[%s9073_s0 + $0x4] ss:$36 sps:$4 sm:$0xff]   ;;  %v72_v58 = vld [vmem:[%s9072_s1 + $0x118] sm:$0xff] }
 0x183   :  { %v4450_v3 = vmax.f32 %v6364_v63, 0.0  ;;  %4153 = vmatpush1.bf16.msra.mxu0 %v6050_v57  ;;  %3955 = vmatprep.subr.bf16.mxu1 %v6121_v59  ;;  %v6160_v57 = vcombine.low %v582_v44, %v586_v45  ;;  %v6107_v30 = vcombine.high %v527_v54, %v531_v56  ;;  %v598_v59 = vld [vmem:[%s9072_s1 + $0x1188] sm:$0xff]  ;;  %v6106_v62 = vcombine.low %v527_v54, %v531_v56  ;;  %v571_v38 = vld [vmem:[%s9072_s1 + $0x10b0] sm:$0xff]  ;;  %v64_v44 = vld [vmem:[%s9072_s1 + $0xd8] sm:$0xff] }
 0x184   :  { %v7999_v9 = vpack.c.bf16 %v4449_v1, %v4441_v0  ;;  %4154 = vmatprep.subr.bf16.mxu0 %v6059_v36  ;;  %v6177_v36 = vcombine.high %v598_v59, %v602_v60  ;;  %v606_v63 = vld [vmem:[%s9072_s1 + $0x11c8] sm:$0xff]  ;;  %v543_v1 = vld [vmem:[%s9072_s1 + $0xfd0] sm:$0xff]  ;;  %v68_v45 = vld [vmem:[%s9072_s1 + $0xf8] sm:$0xff] }
 0x185   :  { %v8004_v13 = vpack.c.bf16 %v4450_v3, %v4442_v52  ;;  %v610_v0 = vld [vmem:[%s9072_s1 + $0x11e8] sm:$0xff]  ;;  %v6176_v52 = vcombine.low %v598_v59, %v602_v60  ;;  %v6114_v3 = vcombine.low %v535_v33, %v539_v34  ;;  %v579_v46 = vld [vmem:[%s9072_s1 + $0x10f0] sm:$0xff]  ;;  %v76_v53 = vld [vmem:[%s9072_s1 + $0x138] sm:$0xff] }
 0x186   :  { %3956 = vmatpush1.bf16.msra.mxu1 %v6120_v2  ;;  %v547_v2 = vld [vmem:[%s9072_s1 + $0xff0] sm:$0xff]  ;;  %v6184_v12 = vcombine.low %v606_v63, %v610_v0  ;;  %v80_v59 = vld [vmem:[%s9072_s1 + $0x158] sm:$0xff] }
 0x187   :  { %4155 = vmatpush1.bf16.msra.mxu0 %v6058_v4  ;;  %3968 = vmatprep.subr.bf16.mxu1 %v6129_v5  ;;  %v6185_v4 = vcombine.high %v606_v63, %v610_v0  ;;  %v6123_v5 = vcombine.high %v543_v1, %v547_v2  ;;  %v583_v54 = vld [vmem:[%s9072_s1 + $0x1110] sm:$0xff]  ;;  %v84_v60 = vld [vmem:[%s9072_s1 + $0x178] sm:$0xff] }
 0x188   :  { %4156 = vmatprep.subr.bf16.mxu0 %v6067_v55  ;;  %v555_v55 = vld [vmem:[%s9072_s1 + $0x1030] sm:$0xff]  ;;  %v88_v63 = vld [vmem:[%s9072_s1 + $0x198] sm:$0xff] }
 0x189   :  { %3958 = vmatmul.mubr.bf16.vlgmr.msra.gmra.mrb[4].mxu1 %v8015_v23  ;;  %v587_v56 = vld [vmem:[%s9072_s1 + $0x1130] sm:$0xff]  ;;  %v92_v0 = vld [vmem:[%s9072_s1 + $0x1b8] sm:$0xff] }
 0x18a   :  { %3969 = vmatpush1.bf16.msra.mxu1 %v6128_v14  ;;  %4000 = vmatprep.mubr.bf16.mxu1 %v6691_v39  ;;  %v6122_v14 = vcombine.low %v543_v1, %v547_v2  ;;  %v591_v33 = vld [vmem:[%s9072_s1 + $0x1150] sm:$0xff] }
 0x18b   :  { %4157 = vmatpush1.bf16.msra.mxu0 %v6066_v15  ;;  %3970 = vmatprep.subr.bf16.mxu1 %v6137_v16  ;;  %v5621_v15 = vcombine.high %v40_v6, %v44_v7  ;;  %v6131_v16 = vcombine.high %v551_v8, %v555_v55  ;;  %v595_v34 = vld [vmem:[%s9072_s1 + $0x1170] sm:$0xff]  ;;  %v96_v6 = vld [vmem:[%s9072_s1 + $0x1d8] sm:$0xff] }
 0x18c   :  { %4158 = vmatprep.subr.bf16.mxu0 %v6075_v17  ;;  %v48_v17 = vld [vmem:[%s9072_s1 + $0x58] sm:$0xff]  ;;  %v599_v1 = vld [vmem:[%s9072_s1 + $0x1190] sm:$0xff] }
 0x18d   :  { %v603_v2 = vld [vmem:[%s9072_s1 + $0x11b0] sm:$0xff]  ;;  %v100_v7 = vld [vmem:[%s9072_s1 + $0x1f8] sm:$0xff] }
 0x18e   :  { %3971 = vmatpush1.bf16.msra.mxu1 %v6136_v27  ;;  %v6130_v27 = vcombine.low %v551_v8, %v555_v55  ;;  %v607_v8 = vld [vmem:[%s9072_s1 + $0x11d0] sm:$0xff] }
 0x18f   :  { %4159 = vmatpush1.bf16.msra.mxu0 %v6074_v28  ;;  %3972 = vmatprep.subr.bf16.mxu1 %v6145_v29  ;;  %v5629_v28 = vcombine.high %v48_v17, %v52_v18  ;;  %v6139_v29 = vcombine.high %v559_v19, %v563_v24  ;;  %v611_v55 = vld [vmem:[%s9072_s1 + $0x11f0] sm:$0xff] }
 0x190   :  { %4160 = vmatprep.subr.bf16.mxu0 %v6083_v31  ;;  %v56_v31 = vld [vmem:[%s9072_s1 + $0x98] sm:$0xff] }
 0x192   :  { %3973 = vmatpush1.bf16.msra.mxu1 %v6144_v40  ;;  %v5628_v40 = vcombine.low %v48_v17, %v52_v18  ;;  %v104_v17 = vld [vmem:[%s9072_s1 + $0x218] sm:$0xff] }
 0x193   :  { %4161 = vmatpush1.bf16.msra.mxu0 %v6082_v41  ;;  %3974 = vmatprep.subr.bf16.mxu1 %v6153_v42  ;;  %v6138_v41 = vcombine.low %v559_v19, %v563_v24  ;;  %v5637_v42 = vcombine.high %v56_v31, %v60_v32  ;;  %v108_v18 = vld [vmem:[%s9072_s1 + $0x238] sm:$0xff]  ;;  %v5676_v19 = vcombine.low %v96_v6, %v100_v7 }
 0x194   :  { %4162 = vmatprep.subr.bf16.mxu0 %v6091_v43  ;;  %v6147_v43 = vcombine.high %v567_v37, %v571_v38  ;;  %v6186_v24 = vcombine.low %v607_v8, %v611_v55 }
 0x196   :  { %3975 = vmatpush1.bf16.msra.mxu1 %v6152_v11  ;;  %v5636_v11 = vcombine.low %v56_v31, %v60_v32  ;;  %v5684_v31 = vcombine.low %v104_v17, %v108_v18  ;;  %v6467_v32 = vld [vmem:[%s9074_s3] ss:$8 sps:$4 sm:$0xff]  }
 0x197   :  { %4163 = vmatpush1.bf16.msra.mxu0 %v6090_v48  ;;  %3976 = vmatprep.subr.bf16.mxu1 %v6161_v49  ;;  %v6146_v48 = vcombine.low %v567_v37, %v571_v38  ;;  %v5645_v49 = vcombine.high %v64_v44, %v68_v45  ;;  %v6472_v38 = vld [vmem:[%s9074_s3 + $0x14] ss:$8 sps:$4 sm:$0xff]  }
 0x198   :  { %4164 = vmatprep.subr.bf16.mxu0 %v6099_v51 }
 0x19a   :  { %3977 = vmatpush1.bf16.msra.mxu1 %v6160_v57  ;;  %v5644_v57 = vcombine.low %v64_v44, %v68_v45  ;;  %v6475_v45 = vld [vmem:[%s9074_s3 + $0x24] ss:$8 sps:$4 sm:$0xff]  }
 0x19b   :  { %4165 = vmatpush1.bf16.msra.mxu0 %v6098_v20  ;;  %3978 = vmatprep.subr.bf16.mxu1 %v6169_v21  ;;  %v5653_v21 = vcombine.high %v72_v58, %v76_v53 }
 0x19c   :  { %4166 = vmatprep.subr.bf16.mxu0 %v6107_v30  ;;  %v6163_v30 = vcombine.high %v583_v54, %v587_v56 }
 0x19e   :  { %3979 = vmatpush1.bf16.msra.mxu1 %v6168_v61  ;;  %v5652_v61 = vcombine.low %v72_v58, %v76_v53  ;;  %v6476_v58 = vld [vmem:[%s9074_s3 + $0x30] ss:$8 sps:$4 sm:$0xff]  }
 0x19f   :  { %4167 = vmatpush1.bf16.msra.mxu0 %v6106_v62  ;;  %3980 = vmatprep.subr.bf16.mxu1 %v6177_v36  ;;  %v6162_v62 = vcombine.low %v583_v54, %v587_v56  ;;  %v5661_v36 = vcombine.high %v80_v59, %v84_v60  ;;  %v6481_v54 = vld [vmem:[%s9074_s3 + $0x44] ss:$8 sps:$4 sm:$0xff]   ;;  %v144_v56 = vld [vmem:[%s9072_s1 + $0x358] sm:$0xff] }
 0x1a0   :  { %4168 = vmatprep.subr.bf16.mxu0 %v6115_v50  ;;  %v6171_v50 = vcombine.high %v591_v33, %v595_v34 }
 0x1a2   :  { %3981 = vmatpush1.bf16.msra.mxu1 %v6176_v52  ;;  %v5660_v52 = vcombine.low %v80_v59, %v84_v60  ;;  %v6484_v59 = vld [vmem:[%s9074_s3 + $0x54] ss:$8 sps:$4 sm:$0xff]  }
 0x1a3   :  { %4169 = vmatpush1.bf16.msra.mxu0 %v6114_v3  ;;  %3982 = vmatprep.subr.bf16.mxu1 %v6185_v4  ;;  %v6170_v3 = vcombine.low %v591_v33, %v595_v34  ;;  %v5669_v4 = vcombine.high %v88_v63, %v92_v0  ;;  %v152_v60 = vld [vmem:[%s9072_s1 + $0x398] sm:$0xff] }
 0x1a4   :  { %4170 = vmatprep.subr.bf16.mxu0 %v6123_v5  ;;  %v6179_v5 = vcombine.high %v599_v1, %v603_v2  ;;  %v156_v33 = vld [vmem:[%s9072_s1 + $0x3b8] sm:$0xff] }
 0x1a6   :  { %3983 = vmatpush1.bf16.msra.mxu1 %v6184_v12  ;;  %v5668_v12 = vcombine.low %v88_v63, %v92_v0  ;;  %v164_v63 = vld [vmem:[%s9072_s1 + $0x3f8] sm:$0xff]  ;;  %v5732_v0 = vcombine.low %v152_v60, %v156_v33 }
 0x1a7   :  { %4171 = vmatpush1.bf16.msra.mxu0 %v6122_v14  ;;  %4226 = vmatprep.subr.bf16.mxu1 %v5621_v15  ;;  %v6178_v14 = vcombine.low %v599_v1, %v603_v2  ;;  %v5677_v15 = vcombine.high %v96_v6, %v100_v7  ;;  %v6485_v1 = vld [vmem:[%s9074_s3 + $0x60] ss:$8 sps:$4 sm:$0xff]   ;;  %v6488_v6 = vld [vmem:[%s9074_s3 + $0x70] ss:$8 sps:$4 sm:$0xff]  }
 0x1a8   :  { %4183 = vmatprep.subr.bf16.mxu0 %v6131_v16  ;;  %v6187_v16 = vcombine.high %v607_v8, %v611_v55  ;;  %v6493_v8 = vld [vmem:[%s9074_s3 + $0x84] ss:$8 sps:$4 sm:$0xff]   ;;  %v176_v55 = vld [vmem:[%s9072_s1 + $0x458] sm:$0xff] }
 0x1a9   :  { %4001 = vmatmul.mubr.bf16.vlgmr.msra.gmra.mrb[4].mxu1 %v8118_v35 }
 0x1aa   :  { %4173 = vmatmul.mubr.bf16.vlgmr.msra.gmra.mrb[4].mxu0 %v8015_v23  ;;  %4227 = vmatpush1.bf16.msra.mxu1 %v5620_v26  ;;  %v575_v23 = vld [vmem:[%s9072_s1 + $0x10d0] sm:$0xff]  ;;  %v5685_v26 = vcombine.high %v104_v17, %v108_v18  ;;  %v184_v18 = vld [vmem:[%s9072_s1 + $0x498] sm:$0xff] }
 0x1ab   :  { %4184 = vmatpush1.bf16.msra.mxu0 %v6130_v27  ;;  %4228 = vmatprep.subr.bf16.mxu1 %v5629_v28  ;;  %v6155_v51 = vcombine.high %v575_v23, %v579_v46  ;;  %v6154_v20 = vcombine.low %v575_v23, %v579_v46  ;;  %v6469_v27 = vld [vmem:[%s9074_s3 + $0x4] ss:$8 sps:$4 sm:$0xff]   ;;  %v112_v28 = vld [vmem:[%s9072_s1 + $0x258] sm:$0xff]  ;;  %v6473_v46 = vld [vmem:[%s9074_s3 + $0x20] ss:$8 sps:$4 sm:$0xff]  }
 0x1ac   :  { %4185 = vmatprep.subr.bf16.mxu0 %v6139_v29  ;;  %4215 = vmatprep.mubr.bf16.mxu0 %v6691_v39  ;;  %v116_v29 = vld [vmem:[%s9072_s1 + $0x278] sm:$0xff] }
 0x1ad   :  { %4258 = vmatprep.mubr.bf16.mxu1 %v6681_v47  ;;  %v5693_v37 = vcombine.high %v112_v28, %v116_v29  ;;  %v132_v23 = vld [vmem:[%s9072_s1 + $0x2f8] sm:$0xff] }
 0x1ae   :  { %4229 = vmatpush1.bf16.msra.mxu1 %v5628_v40  ;;  %v120_v40 = vld [vmem:[%s9072_s1 + $0x298] sm:$0xff] }
 0x1af   :  { %4186 = vmatpush1.bf16.msra.mxu0 %v6138_v41  ;;  %4230 = vmatprep.subr.bf16.mxu1 %v5637_v42  ;;  %v124_v41 = vld [vmem:[%s9072_s1 + $0x2b8] sm:$0xff]  ;;  %v5692_v42 = vcombine.low %v112_v28, %v116_v29 }
 0x1b0   :  { %4187 = vmatprep.subr.bf16.mxu0 %v6147_v43  ;;  %v6470_v43 = vld [vmem:[%s9074_s3 + $0x10] ss:$8 sps:$4 sm:$0xff]   ;;  %v5701_v44 = vcombine.high %v120_v40, %v124_v41  ;;  %v6496_v17 = vld [vmem:[%s9074_s3 + $0x94] ss:$8 sps:$4 sm:$0xff]  }
 0x1b1   :  { %v6494_v28 = vld [vmem:[%s9074_s3 + $0x90] ss:$8 sps:$4 sm:$0xff]  }
 0x1b2   :  { %4231 = vmatpush1.bf16.msra.mxu1 %v5636_v11  ;;  %v6478_v11 = vld [vmem:[%s9074_s3 + $0x34] ss:$8 sps:$4 sm:$0xff]  }
 0x1b3   :  { %4188 = vmatpush1.bf16.msra.mxu0 %v6146_v48  ;;  %4232 = vmatprep.subr.bf16.mxu1 %v5645_v49  ;;  %v136_v48 = vld [vmem:[%s9072_s1 + $0x318] sm:$0xff] }
 0x1b4   :  { %4189 = vmatprep.subr.bf16.mxu0 %v6155_v51  ;;  %v140_v49 = vld [vmem:[%s9072_s1 + $0x338] sm:$0xff] }
 0x1b5   :  { %v5717_v53 = vcombine.high %v136_v48, %v140_v49 }
 0x1b6   :  { %4233 = vmatpush1.bf16.msra.mxu1 %v5644_v57  ;;  %v148_v57 = vld [vmem:[%s9072_s1 + $0x378] sm:$0xff] }
 0x1b7   :  { %4190 = vmatpush1.bf16.msra.mxu0 %v6154_v20  ;;  %4234 = vmatprep.subr.bf16.mxu1 %v5653_v21  ;;  %v5716_v20 = vcombine.low %v136_v48, %v140_v49  ;;  %v6479_v21 = vld [vmem:[%s9074_s3 + $0x40] ss:$8 sps:$4 sm:$0xff]   ;;  %v5724_v34 = vcombine.low %v144_v56, %v148_v57 }
 0x1b8   :  { %4191 = vmatprep.subr.bf16.mxu0 %v6163_v30  ;;  %v5725_v30 = vcombine.high %v144_v56, %v148_v57  ;;  %v6503_v48 = vld [vmem:[%s9074_s3 + $0xc0] ss:$8 sps:$4 sm:$0xff]   ;;  %v6506_v56 = vld [vmem:[%s9074_s3 + $0xd0] ss:$8 sps:$4 sm:$0xff]  }
 0x1ba   :  { %4235 = vmatpush1.bf16.msra.mxu1 %v5652_v61  ;;  %v6482_v61 = vld [vmem:[%s9074_s3 + $0x50] ss:$8 sps:$4 sm:$0xff]  }
 0x1bb   :  { %4192 = vmatpush1.bf16.msra.mxu0 %v6162_v62  ;;  %4236 = vmatprep.subr.bf16.mxu1 %v5661_v36  ;;  %v5733_v62 = vcombine.high %v152_v60, %v156_v33  ;;  %v6487_v36 = vld [vmem:[%s9074_s3 + $0x64] ss:$8 sps:$4 sm:$0xff]   ;;  %v6509_v60 = vld [vmem:[%s9074_s3 + $0xe0] ss:$8 sps:$4 sm:$0xff]  }
 0x1bc   :  { %4193 = vmatprep.subr.bf16.mxu0 %v6171_v50  ;;  %v160_v50 = vld [vmem:[%s9072_s1 + $0x3d8] sm:$0xff] }
 0x1bd   :  { %v5741_v2 = vcombine.high %v160_v50, %v164_v63 }
 0x1be   :  { %4237 = vmatpush1.bf16.msra.mxu1 %v5660_v52  ;;  %v6490_v52 = vld [vmem:[%s9074_s3 + $0x74] ss:$8 sps:$4 sm:$0xff]  }
 0x1bf   :  { %4194 = vmatpush1.bf16.msra.mxu0 %v6170_v3  ;;  %4238 = vmatprep.subr.bf16.mxu1 %v5669_v4  ;;  %v168_v3 = vld [vmem:[%s9072_s1 + $0x418] sm:$0xff] }
 0x1c0   :  { %4195 = vmatprep.subr.bf16.mxu0 %v6179_v5  ;;  %v172_v4 = vld [vmem:[%s9072_s1 + $0x438] sm:$0xff]  ;;  %v5740_v5 = vcombine.low %v160_v50, %v164_v63 }
 0x1c1   :  { %v5749_v7 = vcombine.high %v168_v3, %v172_v4  ;;  %v6512_v50 = vld [vmem:[%s9074_s3 + $0xf0] ss:$8 sps:$4 sm:$0xff]  }
 0x1c2   :  { %4239 = vmatpush1.bf16.msra.mxu1 %v5668_v12  ;;  %v180_v12 = vld [vmem:[%s9072_s1 + $0x478] sm:$0xff] }
 0x1c3   :  { %4196 = vmatpush1.bf16.msra.mxu0 %v6178_v14  ;;  %4240 = vmatprep.subr.bf16.mxu1 %v5677_v15  ;;  %v5748_v14 = vcombine.low %v168_v3, %v172_v4  ;;  %v6491_v15 = vld [vmem:[%s9074_s3 + $0x80] ss:$8 sps:$4 sm:$0xff]  }
 0x1c4   :  { %4197 = vmatprep.subr.bf16.mxu0 %v6187_v16  ;;  %v5757_v16 = vcombine.high %v176_v55, %v180_v12  ;;  %v6515_v4 = vld [vmem:[%s9074_s3 + $0x100] ss:$8 sps:$4 sm:$0xff]  }
 0x1c6   :  { %4241 = vmatpush1.bf16.msra.mxu1 %v5676_v19  ;;  %v188_v19 = vld [vmem:[%s9072_s1 + $0x4b8] sm:$0xff] }
 0x1c7   :  { %4198 = vmatpush1.bf16.msra.mxu0 %v6186_v24  ;;  %4242 = vmatprep.subr.bf16.mxu1 %v5685_v26  ;;  %v6682_v24 = vld [vmem:[%s9073_s0] ss:$36 sps:$4 sm:$0xff]   ;;  %v5756_v26 = vcombine.low %v176_v55, %v180_v12  ;;  %v5765_v29 = vcombine.high %v184_v18, %v188_v19  ;;  %v6518_v12 = vld [vmem:[%s9074_s3 + $0x110] ss:$8 sps:$4 sm:$0xff]  }
 0x1c8   :  { %5245 = vmatprep.subr.bf16.mxu0 %v6469_v27  ;;  %v6683_v27 = vld [vmem:[%s9073_s0 + $0xc] ss:$36 sps:$4 sm:$0xff]  }
 0x1ca   :  { %4216 = vmatmul.mubr.bf16.vlgmr.msra.gmra.mrb[4].mxu0 %v8118_v35  ;;  %4243 = vmatpush1.bf16.msra.mxu1 %v5684_v31  ;;  %v128_v35 = vld [vmem:[%s9072_s1 + $0x2d8] sm:$0xff]  ;;  %v6499_v31 = vld [vmem:[%s9074_s3 + $0xa4] ss:$8 sps:$4 sm:$0xff]  }
 0x1cb   :  { %5246 = vmatpush1.bf16.msra.mxu0 %v6467_v32  ;;  %5277 = vmatprep.mubr.bf16.mxu0 %v8004_v13  ;;  %v5700_v13 = vcombine.low %v120_v40, %v124_v41  ;;  %v5709_v47 = vcombine.high %v128_v35, %v132_v23  ;;  %v5708_v51 = vcombine.low %v128_v35, %v132_v23  ;;  %v192_v32 = vld [vmem:[%s9072_s1 + $0x4d8] sm:$0xff]  ;;  %v6497_v40 = vld [vmem:[%s9074_s3 + $0xa0] ss:$8 sps:$4 sm:$0xff]  }
 0x1cc   :  { %4244 = vmatprep.subr.bf16.mxu1 %v5693_v37  ;;  %5247 = vmatprep.subr.bf16.mxu0 %v6472_v38  ;;  %v196_v37 = vld [vmem:[%s9072_s1 + $0x4f8] sm:$0xff]  ;;  %v5764_v38 = vcombine.low %v184_v18, %v188_v19  ;;  %v6521_v18 = vld [vmem:[%s9074_s3 + $0x120] ss:$8 sps:$4 sm:$0xff]  }
 0x1cd   :  { %v5773_v41 = vcombine.high %v192_v32, %v196_v37  ;;  %v6500_v35 = vld [vmem:[%s9074_s3 + $0xb0] ss:$8 sps:$4 sm:$0xff]  }
 0x1ce   :  { %4245 = vmatpush1.bf16.msra.mxu1 %v5692_v42  ;;  %v6502_v42 = vld [vmem:[%s9074_s3 + $0xb4] ss:$8 sps:$4 sm:$0xff]  }
 0x1cf   :  { %5248 = vmatpush1.bf16.msra.mxu0 %v6470_v43  ;;  %4246 = vmatprep.subr.bf16.mxu1 %v5701_v44  ;;  %v200_v43 = vld [vmem:[%s9072_s1 + $0x518] sm:$0xff] }
 0x1d0   :  { %5249 = vmatprep.subr.bf16.mxu0 %v6475_v45  ;;  %v204_v44 = vld [vmem:[%s9072_s1 + $0x538] sm:$0xff]  ;;  %v5772_v45 = vcombine.low %v192_v32, %v196_v37  ;;  %v6529_v37 = vld [vmem:[%s9074_s3 + $0x144] ss:$8 sps:$4 sm:$0xff]  }
 0x1d1   :  { %v5781_v23 = vcombine.high %v200_v43, %v204_v44  ;;  %v264_v19 = vld [vmem:[%s9072_s1 + $0x718] sm:$0xff] }
 0x1d2   :  { %4247 = vmatpush1.bf16.msra.mxu1 %v5700_v13  ;;  %v6505_v13 = vld [vmem:[%s9074_s3 + $0xc4] ss:$8 sps:$4 sm:$0xff]   ;;  %v276_v32 = vld [vmem:[%s9072_s1 + $0x778] sm:$0xff] }
 0x1d3   :  { %5250 = vmatpush1.bf16.msra.mxu0 %v6473_v46  ;;  %4248 = vmatprep.subr.bf16.mxu1 %v5709_v47  ;;  %v208_v46 = vld [vmem:[%s9072_s1 + $0x558] sm:$0xff] }
 0x1d4   :  { %5251 = vmatprep.subr.bf16.mxu0 %v6478_v11  ;;  %v212_v47 = vld [vmem:[%s9072_s1 + $0x578] sm:$0xff]  ;;  %v5780_v11 = vcombine.low %v200_v43, %v204_v44 }
 0x1d5   :  { %v5789_v49 = vcombine.high %v208_v46, %v212_v47  ;;  %v284_v43 = vld [vmem:[%s9072_s1 + $0x7b8] sm:$0xff] }
 0x1d6   :  { %4249 = vmatpush1.bf16.msra.mxu1 %v5708_v51  ;;  %v6508_v51 = vld [vmem:[%s9074_s3 + $0xd4] ss:$8 sps:$4 sm:$0xff]  }
 0x1d7   :  { %5252 = vmatpush1.bf16.msra.mxu0 %v6476_v58  ;;  %4250 = vmatprep.subr.bf16.mxu1 %v5717_v53  ;;  %v216_v58 = vld [vmem:[%s9072_s1 + $0x598] sm:$0xff] }
 0x1d8   :  { %5253 = vmatprep.subr.bf16.mxu0 %v6481_v54  ;;  %v220_v53 = vld [vmem:[%s9072_s1 + $0x5b8] sm:$0xff]  ;;  %v5788_v54 = vcombine.low %v208_v46, %v212_v47  ;;  %v6535_v47 = vld [vmem:[%s9074_s3 + $0x164] ss:$8 sps:$4 sm:$0xff]  }
 0x1d9   :  { %v5797_v57 = vcombine.high %v216_v58, %v220_v53  ;;  %v6532_v44 = vld [vmem:[%s9074_s3 + $0x154] ss:$8 sps:$4 sm:$0xff]  }
 0x1da   :  { %4251 = vmatpush1.bf16.msra.mxu1 %v5716_v20  ;;  %v6511_v20 = vld [vmem:[%s9074_s3 + $0xe4] ss:$8 sps:$4 sm:$0xff]   ;;  %v292_v46 = vld [vmem:[%s9072_s1 + $0x7f8] sm:$0xff] }
 0x1db   :  { %5254 = vmatpush1.bf16.msra.mxu0 %v6479_v21  ;;  %4252 = vmatprep.subr.bf16.mxu1 %v5725_v30  ;;  %v224_v21 = vld [vmem:[%s9072_s1 + $0x5d8] sm:$0xff] }
 0x1dc   :  { %5255 = vmatprep.subr.bf16.mxu0 %v6484_v59  ;;  %v228_v30 = vld [vmem:[%s9072_s1 + $0x5f8] sm:$0xff]  ;;  %v5796_v59 = vcombine.low %v216_v58, %v220_v53 }
 0x1dd   :  { %v5805_v33 = vcombine.high %v224_v21, %v228_v30  ;;  %v300_v58 = vld [vmem:[%s9072_s1 + $0x838] sm:$0xff] }
 0x1de   :  { %4253 = vmatpush1.bf16.msra.mxu1 %v5724_v34  ;;  %v6514_v34 = vld [vmem:[%s9074_s3 + $0xf4] ss:$8 sps:$4 sm:$0xff]  }
 0x1df   :  { %5256 = vmatpush1.bf16.msra.mxu0 %v6482_v61  ;;  %4254 = vmatprep.subr.bf16.mxu1 %v5733_v62  ;;  %v232_v61 = vld [vmem:[%s9072_s1 + $0x618] sm:$0xff] }
 0x1e0   :  { %5257 = vmatprep.subr.bf16.mxu0 %v6487_v36  ;;  %v236_v62 = vld [vmem:[%s9072_s1 + $0x638] sm:$0xff]  ;;  %v5804_v36 = vcombine.low %v224_v21, %v228_v30  ;;  %v6541_v30 = vld [vmem:[%s9074_s3 + $0x184] ss:$8 sps:$4 sm:$0xff]  }
 0x1e1   :  { %v5813_v63 = vcombine.high %v232_v61, %v236_v62  ;;  %v6538_v53 = vld [vmem:[%s9074_s3 + $0x174] ss:$8 sps:$4 sm:$0xff]  }
 0x1e2   :  { %4255 = vmatpush1.bf16.msra.mxu1 %v5732_v0  ;;  %v240_v0 = vld [vmem:[%s9072_s1 + $0x658] sm:$0xff] }
 0x1e3   :  { %5258 = vmatpush1.bf16.msra.mxu0 %v6485_v1  ;;  %4256 = vmatprep.subr.bf16.mxu1 %v5741_v2  ;;  %v244_v1 = vld [vmem:[%s9072_s1 + $0x678] sm:$0xff]  ;;  %v6517_v2 = vld [vmem:[%s9074_s3 + $0x104] ss:$8 sps:$4 sm:$0xff]  }
 0x1e4   :  { %5259 = vmatprep.subr.bf16.mxu0 %v6490_v52  ;;  %v5812_v52 = vcombine.low %v232_v61, %v236_v62  ;;  %v5821_v3 = vcombine.high %v240_v0, %v244_v1  ;;  %v308_v21 = vld [vmem:[%s9072_s1 + $0x878] sm:$0xff] }
 0x1e5   :  { %v316_v61 = vld [vmem:[%s9072_s1 + $0x8b8] sm:$0xff] }
 0x1e6   :  { %4257 = vmatpush1.bf16.msra.mxu1 %v5740_v5  ;;  %v248_v5 = vld [vmem:[%s9072_s1 + $0x698] sm:$0xff] }
 0x1e7   :  { %5260 = vmatpush1.bf16.msra.mxu0 %v6488_v6  ;;  %4269 = vmatprep.subr.bf16.mxu1 %v5749_v7  ;;  %v252_v6 = vld [vmem:[%s9072_s1 + $0x6b8] sm:$0xff] }
 0x1e8   :  { %5261 = vmatprep.subr.bf16.mxu0 %v6493_v8  ;;  %v6520_v7 = vld [vmem:[%s9074_s3 + $0x114] ss:$8 sps:$4 sm:$0xff]   ;;  %v5820_v8 = vcombine.low %v240_v0, %v244_v1  ;;  %v5829_v55 = vcombine.high %v248_v5, %v252_v6  ;;  %v6542_v1 = vld [vmem:[%s9074_s3 + $0x190] ss:$8 sps:$4 sm:$0xff]  }
 0x1e9   :  { %4259 = vmatmul.mubr.bf16.vlgmr.msra.gmra.mrb[8].mxu1 %v6682_v24  ;;  %v268_v24 = vld [vmem:[%s9072_s1 + $0x738] sm:$0xff] }
 0x1ea   :  { %4270 = vmatpush1.bf16.msra.mxu1 %v5748_v14  ;;  %4301 = vmatprep.mubr.bf16.mxu1 %v6683_v27  ;;  %v256_v14 = vld [vmem:[%s9072_s1 + $0x6d8] sm:$0xff] }
 0x1eb   :  { %5262 = vmatpush1.bf16.msra.mxu0 %v6491_v15  ;;  %4271 = vmatprep.subr.bf16.mxu1 %v5757_v16  ;;  %v260_v15 = vld [vmem:[%s9072_s1 + $0x6f8] sm:$0xff]  ;;  %v5828_v16 = vcombine.low %v248_v5, %v252_v6  ;;  %v6545_v6 = vld [vmem:[%s9074_s3 + $0x1a0] ss:$8 sps:$4 sm:$0xff]  }
 0x1ec   :  { %5263 = vmatprep.subr.bf16.mxu0 %v6496_v17  ;;  %v5837_v17 = vcombine.high %v256_v14, %v260_v15  ;;  %v5836_v27 = vcombine.low %v256_v14, %v260_v15  ;;  %v6544_v62 = vld [vmem:[%s9074_s3 + $0x194] ss:$8 sps:$4 sm:$0xff]   ;;  %v6548_v15 = vld [vmem:[%s9074_s3 + $0x1b0] ss:$8 sps:$4 sm:$0xff]  }
 0x1ee   :  { %4272 = vmatpush1.bf16.msra.mxu1 %v5756_v26  ;;  %v6526_v26 = vld [vmem:[%s9074_s3 + $0x134] ss:$8 sps:$4 sm:$0xff]  }
 0x1ef   :  { %5264 = vmatpush1.bf16.msra.mxu0 %v6494_v28  ;;  %4273 = vmatprep.subr.bf16.mxu1 %v5765_v29  ;;  %v5845_v28 = vcombine.high %v264_v19, %v268_v24  ;;  %v6524_v29 = vld [vmem:[%s9074_s3 + $0x130] ss:$8 sps:$4 sm:$0xff]  }
 0x1f0   :  { %5265 = vmatprep.subr.bf16.mxu0 %v6499_v31  ;;  %v272_v31 = vld [vmem:[%s9072_s1 + $0x758] sm:$0xff] }
 0x1f2   :  { %4274 = vmatpush1.bf16.msra.mxu1 %v5764_v38  ;;  %v5844_v38 = vcombine.low %v264_v19, %v268_v24  ;;  %v6551_v24 = vld [vmem:[%s9074_s3 + $0x1c0] ss:$8 sps:$4 sm:$0xff]  }
 0x1f3   :  { %5266 = vmatpush1.bf16.msra.mxu0 %v6497_v40  ;;  %4275 = vmatprep.subr.bf16.mxu1 %v5773_v41  ;;  %v5853_v40 = vcombine.high %v272_v31, %v276_v32  ;;  %v6527_v41 = vld [vmem:[%s9074_s3 + $0x140] ss:$8 sps:$4 sm:$0xff]  }
 0x1f4   :  { %5267 = vmatprep.subr.bf16.mxu0 %v6502_v42  ;;  %v280_v42 = vld [vmem:[%s9072_s1 + $0x798] sm:$0xff] }
 0x1f6   :  { %4276 = vmatpush1.bf16.msra.mxu1 %v5772_v45  ;;  %v5852_v45 = vcombine.low %v272_v31, %v276_v32  ;;  %v6554_v32 = vld [vmem:[%s9074_s3 + $0x1d0] ss:$8 sps:$4 sm:$0xff]  }
 0x1f7   :  { %5268 = vmatpush1.bf16.msra.mxu0 %v6500_v35  ;;  %4277 = vmatprep.subr.bf16.mxu1 %v5781_v23  ;;  %v5861_v35 = vcombine.high %v280_v42, %v284_v43  ;;  %v6530_v23 = vld [vmem:[%s9074_s3 + $0x150] ss:$8 sps:$4 sm:$0xff]  }
 0x1f8   :  { %5269 = vmatprep.subr.bf16.mxu0 %v6505_v13  ;;  %v288_v13 = vld [vmem:[%s9072_s1 + $0x7d8] sm:$0xff] }
 0x1fa   :  { %4278 = vmatpush1.bf16.msra.mxu1 %v5780_v11  ;;  %v5860_v11 = vcombine.low %v280_v42, %v284_v43  ;;  %v6557_v43 = vld [vmem:[%s9074_s3 + $0x1e0] ss:$8 sps:$4 sm:$0xff]  }
 0x1fb   :  { %5270 = vmatpush1.bf16.msra.mxu0 %v6503_v48  ;;  %4279 = vmatprep.subr.bf16.mxu1 %v5789_v49  ;;  %v5869_v48 = vcombine.high %v288_v13, %v292_v46  ;;  %v6533_v49 = vld [vmem:[%s9074_s3 + $0x160] ss:$8 sps:$4 sm:$0xff]  }
 0x1fc   :  { %5271 = vmatprep.subr.bf16.mxu0 %v6508_v51  ;;  %v296_v51 = vld [vmem:[%s9072_s1 + $0x818] sm:$0xff] }
 0x1fe   :  { %4280 = vmatpush1.bf16.msra.mxu1 %v5788_v54  ;;  %v5868_v54 = vcombine.low %v288_v13, %v292_v46  ;;  %v6560_v46 = vld [vmem:[%s9074_s3 + $0x1f0] ss:$8 sps:$4 sm:$0xff]  }
 0x1ff   :  { %5272 = vmatpush1.bf16.msra.mxu0 %v6506_v56  ;;  %4281 = vmatprep.subr.bf16.mxu1 %v5797_v57  ;;  %v5877_v56 = vcombine.high %v296_v51, %v300_v58  ;;  %v6536_v57 = vld [vmem:[%s9074_s3 + $0x170] ss:$8 sps:$4 sm:$0xff]  }
 0x200   :  { %5273 = vmatprep.subr.bf16.mxu0 %v6511_v20  ;;  %v304_v20 = vld [vmem:[%s9072_s1 + $0x858] sm:$0xff] }
 0x202   :  { %4282 = vmatpush1.bf16.msra.mxu1 %v5796_v59  ;;  %v5876_v59 = vcombine.low %v296_v51, %v300_v58  ;;  %v376_v58 = vld [vmem:[%s9072_s1 + $0xa98] sm:$0xff] }
 0x203   :  { %5274 = vmatpush1.bf16.msra.mxu0 %v6509_v60  ;;  %4283 = vmatprep.subr.bf16.mxu1 %v5805_v33  ;;  %v5885_v60 = vcombine.high %v304_v20, %v308_v21  ;;  %v6539_v33 = vld [vmem:[%s9074_s3 + $0x180] ss:$8 sps:$4 sm:$0xff]  }
 0x204   :  { %5275 = vmatprep.subr.bf16.mxu0 %v6514_v34  ;;  %v312_v34 = vld [vmem:[%s9072_s1 + $0x898] sm:$0xff] }
 0x205   :  { %v5893_v0 = vcombine.high %v312_v34, %v316_v61 }
 0x206   :  { %4284 = vmatpush1.bf16.msra.mxu1 %v5804_v36  ;;  %v6684_v36 = vld [vmem:[%s9073_s0 + $0x8] ss:$36 sps:$4 sm:$0xff]  }
 0x207   :  { %5276 = vmatpush1.bf16.msra.mxu0 %v6512_v50  ;;  %4285 = vmatprep.subr.bf16.mxu1 %v5813_v63  ;;  %v5884_v50 = vcombine.low %v304_v20, %v308_v21  ;;  %v6685_v63 = vld [vmem:[%s9073_s0 + $0x14] ss:$36 sps:$4 sm:$0xff]  }
 0x208   :  { %5288 = vmatprep.subr.bf16.mxu0 %v6517_v2  ;;  %v320_v2 = vld [vmem:[%s9072_s1 + $0x8d8] sm:$0xff] }
 0x209   :  { %v388_v20 = vld [vmem:[%s9072_s1 + $0xaf8] sm:$0xff] }
 0x20a   :  { %5278 = vmatmul.mubr.bf16.vlgmr.msra.gmra.mrb[8].mxu0 %v7999_v9  ;;  %4286 = vmatpush1.bf16.msra.mxu1 %v5812_v52  ;;  %v6523_v9 = vld [vmem:[%s9074_s3 + $0x124] ss:$8 sps:$4 sm:$0xff]   ;;  %v324_v52 = vld [vmem:[%s9072_s1 + $0x8f8] sm:$0xff] }
 0x20b   :  { %4287 = vmatprep.subr.bf16.mxu1 %v5821_v3  ;;  %5289 = vmatpush1.bf16.msra.mxu0 %v6515_v4  ;;  %v6547_v3 = vld [vmem:[%s9074_s3 + $0x1a4] ss:$8 sps:$4 sm:$0xff]   ;;  %v5892_v4 = vcombine.low %v312_v34, %v316_v61  ;;  %v5901_v5 = vcombine.high %v320_v2, %v324_v52  ;;  %v400_v61 = vld [vmem:[%s9072_s1 + $0xb58] sm:$0xff] }
 0x20c   :  { %5290 = vmatprep.subr.bf16.mxu0 %v6520_v7  ;;  %v328_v7 = vld [vmem:[%s9072_s1 + $0x918] sm:$0xff] }
 0x20e   :  { %4288 = vmatpush1.bf16.msra.mxu1 %v5820_v8  ;;  %v332_v8 = vld [vmem:[%s9072_s1 + $0x938] sm:$0xff] }
 0x20f   :  { %4289 = vmatprep.subr.bf16.mxu1 %v5829_v55  ;;  %5291 = vmatpush1.bf16.msra.mxu0 %v6518_v12  ;;  %v6550_v55 = vld [vmem:[%s9074_s3 + $0x1b4] ss:$8 sps:$4 sm:$0xff]   ;;  %v5900_v12 = vcombine.low %v320_v2, %v324_v52  ;;  %v5909_v14 = vcombine.high %v328_v7, %v332_v8 }
 0x210   :  { %5292 = vmatprep.subr.bf16.mxu0 %v6523_v9  ;;  %v336_v9 = vld [vmem:[%s9072_s1 + $0x958] sm:$0xff] }
 0x211   :  { %v416_v52 = vld [vmem:[%s9072_s1 + $0xbd8] sm:$0xff] }
 0x212   :  { %4290 = vmatpush1.bf16.msra.mxu1 %v5828_v16  ;;  %v340_v16 = vld [vmem:[%s9072_s1 + $0x978] sm:$0xff] }
 0x213   :  { %4291 = vmatprep.subr.bf16.mxu1 %v5837_v17  ;;  %5293 = vmatpush1.bf16.msra.mxu0 %v6521_v18  ;;  %v6553_v17 = vld [vmem:[%s9074_s3 + $0x1c4] ss:$8 sps:$4 sm:$0xff]   ;;  %v5908_v18 = vcombine.low %v328_v7, %v332_v8  ;;  %v5917_v19 = vcombine.high %v336_v9, %v340_v16  ;;  %v428_v7 = vld [vmem:[%s9072_s1 + $0xc38] sm:$0xff] }
 0x214   :  { %5294 = vmatprep.subr.bf16.mxu0 %v6526_v26  ;;  %v344_v26 = vld [vmem:[%s9072_s1 + $0x998] sm:$0xff] }
 0x216   :  { %4292 = vmatpush1.bf16.msra.mxu1 %v5836_v27  ;;  %v348_v27 = vld [vmem:[%s9072_s1 + $0x9b8] sm:$0xff] }
 0x217   :  { %4293 = vmatprep.subr.bf16.mxu1 %v5845_v28  ;;  %5295 = vmatpush1.bf16.msra.mxu0 %v6524_v29  ;;  %v6556_v28 = vld [vmem:[%s9074_s3 + $0x1d4] ss:$8 sps:$4 sm:$0xff]   ;;  %v5916_v29 = vcombine.low %v336_v9, %v340_v16  ;;  %v5925_v31 = vcombine.high %v344_v26, %v348_v27 }
 0x218   :  { %5296 = vmatprep.subr.bf16.mxu0 %v6529_v37  ;;  %v352_v37 = vld [vmem:[%s9072_s1 + $0x9d8] sm:$0xff] }
 0x219   :  { %v440_v16 = vld [vmem:[%s9072_s1 + $0xc98] sm:$0xff] }
 0x21a   :  { %4294 = vmatpush1.bf16.msra.mxu1 %v5844_v38  ;;  %v356_v38 = vld [vmem:[%s9072_s1 + $0x9f8] sm:$0xff] }
 0x21b   :  { %4295 = vmatprep.subr.bf16.mxu1 %v5853_v40  ;;  %5297 = vmatpush1.bf16.msra.mxu0 %v6527_v41  ;;  %v6559_v40 = vld [vmem:[%s9074_s3 + $0x1e4] ss:$8 sps:$4 sm:$0xff]   ;;  %v5924_v41 = vcombine.low %v344_v26, %v348_v27  ;;  %v5933_v42 = vcombine.high %v352_v37, %v356_v38  ;;  %v448_v27 = vld [vmem:[%s9072_s1 + $0xcd8] sm:$0xff] }
 0x21c   :  { %5298 = vmatprep.subr.bf16.mxu0 %v6532_v44  ;;  %v360_v44 = vld [vmem:[%s9072_s1 + $0xa18] sm:$0xff] }
 0x21e   :  { %4296 = vmatpush1.bf16.msra.mxu1 %v5852_v45  ;;  %v364_v45 = vld [vmem:[%s9072_s1 + $0xa38] sm:$0xff] }
 0x21f   :  { %4297 = vmatprep.subr.bf16.mxu1 %v5861_v35  ;;  %5299 = vmatpush1.bf16.msra.mxu0 %v6530_v23  ;;  %v6562_v35 = vld [vmem:[%s9074_s3 + $0x1f4] ss:$8 sps:$4 sm:$0xff]   ;;  %v5932_v23 = vcombine.low %v352_v37, %v356_v38  ;;  %v5941_v13 = vcombine.high %v360_v44, %v364_v45 }
 0x220   :  { %5300 = vmatprep.subr.bf16.mxu0 %v6535_v47  ;;  %v368_v47 = vld [vmem:[%s9072_s1 + $0xa58] sm:$0xff] }
 0x221   :  { %v460_v37 = vld [vmem:[%s9072_s1 + $0xd38] sm:$0xff] }
 0x222   :  { %4298 = vmatpush1.bf16.msra.mxu1 %v5860_v11  ;;  %v372_v11 = vld [vmem:[%s9072_s1 + $0xa78] sm:$0xff] }
 0x223   :  { %4299 = vmatprep.subr.bf16.mxu1 %v5869_v48  ;;  %5301 = vmatpush1.bf16.msra.mxu0 %v6533_v49  ;;  %v6565_v48 = vld [vmem:[%s9074_s3 + $0x204] ss:$8 sps:$4 sm:$0xff]   ;;  %v5940_v49 = vcombine.low %v360_v44, %v364_v45  ;;  %v5949_v51 = vcombine.high %v368_v47, %v372_v11  ;;  %v629_v45 = vsub.s32 3, %v7924_v10 }
 0x224   :  { %5302 = vmatprep.subr.bf16.mxu0 %v6538_v53  ;;  %v380_v53 = vld [vmem:[%s9072_s1 + $0xab8] sm:$0xff] }
 0x225   :  { %v5956_v21 = vcombine.low %v376_v58, %v380_v53 }
 0x226   :  { %4300 = vmatpush1.bf16.msra.mxu1 %v5868_v54  ;;  %v5948_v54 = vcombine.low %v368_v47, %v372_v11 }
 0x227   :  { %4312 = vmatprep.subr.bf16.mxu1 %v5877_v56  ;;  %5303 = vmatpush1.bf16.msra.mxu0 %v6536_v57  ;;  %v5957_v56 = vcombine.high %v376_v58, %v380_v53  ;;  %v384_v57 = vld [vmem:[%s9072_s1 + $0xad8] sm:$0xff] }
 0x228   :  { %5304 = vmatprep.subr.bf16.mxu0 %v6541_v30  ;;  %v5965_v30 = vcombine.high %v384_v57, %v388_v20  ;;  %v480_v58 = vld [vmem:[%s9072_s1 + $0xdd8] sm:$0xff] }
 0x229   :  { %4302 = vmatmul.mubr.bf16.vlgmr.msra.gmra.mrb[8].mxu1 %v6684_v36  ;;  %v484_v53 = vld [vmem:[%s9072_s1 + $0xdf8] sm:$0xff] }
 0x22a   :  { %4313 = vmatpush1.bf16.msra.mxu1 %v5876_v59  ;;  %4344 = vmatprep.mubr.bf16.mxu1 %v6685_v63  ;;  %v392_v59 = vld [vmem:[%s9072_s1 + $0xb18] sm:$0xff] }
 0x22b   :  { %4314 = vmatprep.subr.bf16.mxu1 %v5885_v60  ;;  %5305 = vmatpush1.bf16.msra.mxu0 %v6539_v33  ;;  %v396_v60 = vld [vmem:[%s9072_s1 + $0xb38] sm:$0xff]  ;;  %v5964_v33 = vcombine.low %v384_v57, %v388_v20 }
 0x22c   :  { %5306 = vmatprep.subr.bf16.mxu0 %v6544_v62  ;;  %v5973_v34 = vcombine.high %v392_v59, %v396_v60  ;;  %v404_v62 = vld [vmem:[%s9072_s1 + $0xb78] sm:$0xff]  ;;  %v5972_v36 = vcombine.low %v392_v59, %v396_v60  ;;  %v6061_v60 = vcombine.high %v480_v58, %v484_v53 }
 0x22d   :  { %v408_v63 = vld [vmem:[%s9072_s1 + $0xb98] sm:$0xff] }
 0x22e   :  { %4315 = vmatpush1.bf16.msra.mxu1 %v5884_v50  ;;  %v5981_v50 = vcombine.high %v400_v61, %v404_v62 }
 0x22f   :  { %4316 = vmatprep.subr.bf16.mxu1 %v5893_v0  ;;  %5307 = vmatpush1.bf16.msra.mxu0 %v6542_v1  ;;  %v412_v0 = vld [vmem:[%s9072_s1 + $0xbb8] sm:$0xff]  ;;  %v5980_v1 = vcombine.low %v400_v61, %v404_v62 }
 0x230   :  { %5308 = vmatprep.subr.bf16.mxu0 %v6547_v3  ;;  %v5989_v2 = vcombine.high %v408_v63, %v412_v0  ;;  %v420_v3 = vld [vmem:[%s9072_s1 + $0xbf8] sm:$0xff] }
 0x231   :  { %v5996_v8 = vcombine.low %v416_v52, %v420_v3  ;;  %v492_v61 = vld [vmem:[%s9072_s1 + $0xe38] sm:$0xff] }
 0x232   :  { %4317 = vmatpush1.bf16.msra.mxu1 %v5892_v4  ;;  %v5988_v4 = vcombine.low %v408_v63, %v412_v0  ;;  %v6060_v0 = vcombine.low %v480_v58, %v484_v53 }
 0x233   :  { %4318 = vmatprep.subr.bf16.mxu1 %v5901_v5  ;;  %5309 = vmatpush1.bf16.msra.mxu0 %v6545_v6  ;;  %v5997_v5 = vcombine.high %v416_v52, %v420_v3  ;;  %v424_v6 = vld [vmem:[%s9072_s1 + $0xc18] sm:$0xff]  ;;  %v6563_v3 = vld [vmem:[%s9074_s3 + $0x200] ss:$8 sps:$4 sm:$0xff]  }
 0x234   :  { %5310 = vmatprep.subr.bf16.mxu0 %v6550_v55  ;;  %v6005_v55 = vcombine.high %v424_v6, %v428_v7 }
 0x236   :  { %4319 = vmatpush1.bf16.msra.mxu1 %v5900_v12  ;;  %v432_v12 = vld [vmem:[%s9072_s1 + $0xc58] sm:$0xff] }
 0x237   :  { %4320 = vmatprep.subr.bf16.mxu1 %v5909_v14  ;;  %5311 = vmatpush1.bf16.msra.mxu0 %v6548_v15  ;;  %v436_v14 = vld [vmem:[%s9072_s1 + $0xc78] sm:$0xff]  ;;  %v6004_v15 = vcombine.low %v424_v6, %v428_v7 }
 0x238   :  { %5312 = vmatprep.subr.bf16.mxu0 %v6553_v17  ;;  %v6013_v9 = vcombine.high %v432_v12, %v436_v14  ;;  %v444_v17 = vld [vmem:[%s9072_s1 + $0xcb8] sm:$0xff] }
 0x239   :  { %v6021_v26 = vcombine.high %v440_v16, %v444_v17  ;;  %v6568_v6 = vld [vmem:[%s9074_s3 + $0x214] ss:$8 sps:$4 sm:$0xff]  }
 0x23a   :  { %4321 = vmatpush1.bf16.msra.mxu1 %v5908_v18  ;;  %v6686_v18 = vld [vmem:[%s9073_s0 + $0x10] ss:$36 sps:$4 sm:$0xff]  }
 0x23b   :  { %4322 = vmatprep.subr.bf16.mxu1 %v5917_v19  ;;  %5313 = vmatpush1.bf16.msra.mxu0 %v6551_v24  ;;  %v6012_v19 = vcombine.low %v432_v12, %v436_v14  ;;  %v6687_v24 = vld [vmem:[%s9073_s0 + $0x1c] ss:$36 sps:$4 sm:$0xff]  }
 0x23c   :  { %5314 = vmatprep.subr.bf16.mxu0 %v6556_v28  ;;  %v452_v28 = vld [vmem:[%s9072_s1 + $0xcf8] sm:$0xff] }
 0x23d   :  { %v6028_v38 = vcombine.low %v448_v27, %v452_v28  ;;  %v504_v12 = vld [vmem:[%s9072_s1 + $0xe98] sm:$0xff] }
 0x23e   :  { %4323 = vmatpush1.bf16.msra.mxu1 %v5916_v29  ;;  %v6020_v29 = vcombine.low %v440_v16, %v444_v17  ;;  %v508_v14 = vld [vmem:[%s9072_s1 + $0xeb8] sm:$0xff]  ;;  %v6569_v17 = vld [vmem:[%s9074_s3 + $0x220] ss:$8 sps:$4 sm:$0xff]  }
 0x23f   :  { %4324 = vmatprep.subr.bf16.mxu1 %v5925_v31  ;;  %5315 = vmatpush1.bf16.msra.mxu0 %v6554_v32  ;;  %v6029_v31 = vcombine.high %v448_v27, %v452_v28  ;;  %v456_v32 = vld [vmem:[%s9072_s1 + $0xd18] sm:$0xff]  ;;  %v6085_v16 = vcombine.high %v504_v12, %v508_v14 }
 0x240   :  { %5316 = vmatprep.subr.bf16.mxu0 %v6559_v40  ;;  %v6037_v40 = vcombine.high %v456_v32, %v460_v37  ;;  %v6036_v44 = vcombine.low %v456_v32, %v460_v37  ;;  %v6572_v28 = vld [vmem:[%s9074_s3 + $0x230] ss:$8 sps:$4 sm:$0xff]   ;;  %v6577_v32 = vld [vmem:[%s9074_s3 + $0x244] ss:$8 sps:$4 sm:$0xff]  }
 0x242   :  { %4325 = vmatpush1.bf16.msra.mxu1 %v5924_v41  ;;  %v464_v41 = vld [vmem:[%s9072_s1 + $0xd58] sm:$0xff] }
 0x243   :  { %4326 = vmatprep.subr.bf16.mxu1 %v5933_v42  ;;  %5317 = vmatpush1.bf16.msra.mxu0 %v6557_v43  ;;  %v468_v42 = vld [vmem:[%s9072_s1 + $0xd78] sm:$0xff]  ;;  %v625_v43 = vsub.s32 2, %v7924_v10 }
 0x244   :  { %5318 = vmatprep.subr.bf16.mxu0 %v6562_v35  ;;  %v6045_v35 = vcombine.high %v464_v41, %v468_v42 }
 0x246   :  { %4327 = vmatpush1.bf16.msra.mxu1 %v5932_v23  ;;  %v472_v23 = vld [vmem:[%s9072_s1 + $0xd98] sm:$0xff] }
 0x247   :  { %4328 = vmatprep.subr.bf16.mxu1 %v5941_v13  ;;  %5319 = vmatpush1.bf16.msra.mxu0 %v6560_v46  ;;  %v476_v13 = vld [vmem:[%s9072_s1 + $0xdb8] sm:$0xff]  ;;  %v8695_v46 = vld [vmem:[%s9075_s2] sm:$0xff] }
 0x248   :  { %5331 = vmatprep.subr.bf16.mxu0 %v6565_v48  ;;  %v626_v47 = vrot.slane %v8695_v46, %v625_v43  ;;  %v630_v11 = vrot.slane %v8695_v46, %v629_v45  ;;  %v6044_v48 = vcombine.low %v464_v41, %v468_v42  ;;  %v528_v41 = vld [vmem:[%s9072_s1 + $0xf58] sm:$0xff]  ;;  %v633_v45 = vsub.s32 4, %v7924_v10 }
 0x249   :  { %v532_v42 = vld [vmem:[%s9072_s1 + $0xf78] sm:$0xff] }
 0x24a   :  { %4329 = vmatpush1.bf16.msra.mxu1 %v5940_v49  ;;  %v6053_v49 = vcombine.high %v472_v23, %v476_v13  ;;  %v6580_v43 = vld [vmem:[%s9074_s3 + $0x254] ss:$8 sps:$4 sm:$0xff]  }
 0x24b   :  { %4330 = vmatprep.subr.bf16.mxu1 %v5949_v51 }
 0x24e   :  { %4331 = vmatpush1.bf16.msra.mxu1 %v5948_v54 }
 0x24f   :  { %4332 = vmatprep.subr.bf16.mxu1 %v5957_v56 }
 0x252   :  { %4333 = vmatpush1.bf16.msra.mxu1 %v5956_v21  ;;  %v6052_v21 = vcombine.low %v472_v23, %v476_v13  ;;  %v6109_v23 = vcombine.high %v528_v41, %v532_v42  ;;  %v6578_v13 = vld [vmem:[%s9074_s3 + $0x250] ss:$8 sps:$4 sm:$0xff]  }
 0x253   :  { %4334 = vmatprep.subr.bf16.mxu1 %v5965_v30 }
 0x256   :  { %4335 = vmatpush1.bf16.msra.mxu1 %v5964_v33 }
 0x257   :  { %4336 = vmatprep.subr.bf16.mxu1 %v5973_v34  ;;  %v488_v34 = vld [vmem:[%s9072_s1 + $0xe18] sm:$0xff] }
 0x258   :  { %v6068_v7 = vcombine.low %v488_v34, %v492_v61 }
 0x25a   :  { %4337 = vmatpush1.bf16.msra.mxu1 %v5972_v36 }
 0x25b   :  { %4338 = vmatprep.subr.bf16.mxu1 %v5981_v50 }
 0x25e   :  { %4339 = vmatpush1.bf16.msra.mxu1 %v5980_v1 }
 0x25f   :  { %4340 = vmatprep.subr.bf16.mxu1 %v5989_v2  ;;  %v6069_v2 = vcombine.high %v488_v34, %v492_v61 }
 0x262   :  { %4341 = vmatpush1.bf16.msra.mxu1 %v5988_v4  ;;  %v496_v4 = vld [vmem:[%s9072_s1 + $0xe58] sm:$0xff] }
 0x263   :  { %4342 = vmatprep.subr.bf16.mxu1 %v5997_v5  ;;  %v500_v5 = vld [vmem:[%s9072_s1 + $0xe78] sm:$0xff] }
 0x266   :  { %4343 = vmatpush1.bf16.msra.mxu1 %v5996_v8  ;;  %v6077_v8 = vcombine.high %v496_v4, %v500_v5 }
 0x267   :  { %4355 = vmatprep.subr.bf16.mxu1 %v6005_v55  ;;  %v6566_v55 = vld [vmem:[%s9074_s3 + $0x210] ss:$8 sps:$4 sm:$0xff]  }
 0x269   :  { %4345 = vmatmul.mubr.bf16.vlgmr.msra.gmra.mrb[8].mxu1 %v6686_v18  ;;  %v512_v18 = vld [vmem:[%s9072_s1 + $0xed8] sm:$0xff] }
 0x26a   :  { %4356 = vmatpush1.bf16.msra.mxu1 %v6004_v15  ;;  %4387 = vmatprep.mubr.bf16.mxu1 %v6687_v24  ;;  %v6571_v15 = vld [vmem:[%s9074_s3 + $0x224] ss:$8 sps:$4 sm:$0xff]   ;;  %v6574_v24 = vld [vmem:[%s9074_s3 + $0x234] ss:$8 sps:$4 sm:$0xff]  }
 0x26b   :  { %4357 = vmatprep.subr.bf16.mxu1 %v6013_v9  ;;  %v6076_v9 = vcombine.low %v496_v4, %v500_v5 }
 0x26e   :  { %4358 = vmatpush1.bf16.msra.mxu1 %v6012_v19  ;;  %v516_v19 = vld [vmem:[%s9072_s1 + $0xef8] sm:$0xff] }
 0x26f   :  { %4359 = vmatprep.subr.bf16.mxu1 %v6021_v26  ;;  %v6084_v26 = vcombine.low %v504_v12, %v508_v14  ;;  %v6093_v27 = vcombine.high %v512_v18, %v516_v19  ;;  %v6092_v37 = vcombine.low %v512_v18, %v516_v19  ;;  %v560_v12 = vld [vmem:[%s9072_s1 + $0x1058] sm:$0xff] }
 0x270   :  { %v564_v14 = vld [vmem:[%s9072_s1 + $0x1078] sm:$0xff] }
 0x271   :  { %v6590_v18 = vld [vmem:[%s9074_s3 + $0x290] ss:$8 sps:$4 sm:$0xff]  }
 0x272   :  { %4360 = vmatpush1.bf16.msra.mxu1 %v6020_v29  ;;  %v520_v29 = vld [vmem:[%s9072_s1 + $0xf18] sm:$0xff] }
 0x273   :  { %4361 = vmatprep.subr.bf16.mxu1 %v6029_v31  ;;  %v524_v31 = vld [vmem:[%s9072_s1 + $0xf38] sm:$0xff] }
 0x274   :  { %v568_v19 = vld [vmem:[%s9072_s1 + $0x1098] sm:$0xff] }
 0x276   :  { %4362 = vmatpush1.bf16.msra.mxu1 %v6028_v38  ;;  %v6101_v38 = vcombine.high %v520_v29, %v524_v31 }
 0x277   :  { %4363 = vmatprep.subr.bf16.mxu1 %v6037_v40  ;;  %v6575_v40 = vld [vmem:[%s9074_s3 + $0x240] ss:$8 sps:$4 sm:$0xff]  }
 0x27a   :  { %4364 = vmatpush1.bf16.msra.mxu1 %v6036_v44  ;;  %v6100_v44 = vcombine.low %v520_v29, %v524_v31  ;;  %v6593_v31 = vld [vmem:[%s9074_s3 + $0x2a0] ss:$8 sps:$4 sm:$0xff]  }
 0x27b   :  { %4365 = vmatprep.subr.bf16.mxu1 %v6045_v35  ;;  %v637_v35 = vsub.s32 5, %v7924_v10 }
 0x27c   :  { %v4002_v51 = vpop.f32.mrb[4].mxu1 }
 0x27d   :  { %v6365_v54 = vadd.f32 %v4002_v51, %v626_v47  ;;  %v4004_v56 = vpop.f32.mrb[5].mxu1  ;;  %v6108_v51 = vcombine.low %v528_v41, %v532_v42  ;;  %v638_v58 = vrot.slane %v8695_v46, %v637_v35  ;;  %v6596_v41 = vld [vmem:[%s9074_s3 + $0x2b0] ss:$8 sps:$4 sm:$0xff]  }
 0x27e   :  { %v6366_v57 = vadd.f32 %v4004_v56, %v630_v11  ;;  %v4006_v20 = vpop.f32.mrb[6].mxu1  ;;  %4366 = vmatpush1.bf16.msra.mxu1 %v6044_v48  ;;  %v6583_v48 = vld [vmem:[%s9074_s3 + $0x264] ss:$8 sps:$4 sm:$0xff]   ;;  %v544_v56 = vld [vmem:[%s9072_s1 + $0xfd8] sm:$0xff] }
 0x27f   :  { %v6367_v30 = vadd.f32 %v4006_v20, %v626_v47  ;;  %v4008_v59 = vpop.f32.mrb[7].mxu1  ;;  %4367 = vmatprep.subr.bf16.mxu1 %v6053_v49  ;;  %v4443_v62 = vmax.f32 %v6365_v54, 0.0  ;;  %v536_v47 = vld [vmem:[%s9072_s1 + $0xf98] sm:$0xff]  ;;  %v634_v49 = vrot.slane %v8695_v46, %v633_v45  ;;  %v6581_v54 = vld [vmem:[%s9074_s3 + $0x260] ss:$8 sps:$4 sm:$0xff]  }
 0x280   :  { %v6368_v33 = vadd.f32 %v4008_v59, %v630_v11  ;;  %v4444_v50 = vmax.f32 %v6366_v57, 0.0  ;;  %v540_v11 = vld [vmem:[%s9072_s1 + $0xfb8] sm:$0xff] }
 0x281   :  { %v4451_v36 = vmax.f32 %v6367_v30, 0.0  ;;  %v6117_v53 = vcombine.high %v536_v47, %v540_v11  ;;  %v548_v57 = vld [vmem:[%s9072_s1 + $0xff8] sm:$0xff] }
 0x282   :  { %v4452_v63 = vmax.f32 %v6368_v33, 0.0  ;;  %4368 = vmatpush1.bf16.msra.mxu1 %v6052_v21  ;;  %v6586_v21 = vld [vmem:[%s9074_s3 + $0x274] ss:$8 sps:$4 sm:$0xff]   ;;  %v6125_v61 = vcombine.high %v544_v56, %v548_v57  ;;  %v6124_v4 = vcombine.low %v544_v56, %v548_v57 }
 0x283   :  { %v4459_v1 = vpack.c.bf16 %v4451_v36, %v4443_v62  ;;  %4369 = vmatprep.subr.bf16.mxu1 %v6061_v60  ;;  %v6116_v60 = vcombine.low %v536_v47, %v540_v11  ;;  %v584_v42 = vld [vmem:[%s9072_s1 + $0x1118] sm:$0xff] }
 0x284   :  { %v4460_v52 = vpack.c.bf16 %v4452_v63, %v4444_v50  ;;  %v6584_v50 = vld [vmem:[%s9074_s3 + $0x270] ss:$8 sps:$4 sm:$0xff]   ;;  %v6604_v11 = vld [vmem:[%s9074_s3 + $0x2d4] ss:$8 sps:$4 sm:$0xff]  }
 0x285   :  { %v552_v63 = vld [vmem:[%s9072_s1 + $0x1018] sm:$0xff] }
 0x286   :  { %4370 = vmatpush1.bf16.msra.mxu1 %v6060_v0  ;;  %5320 = vmatprep.mubr.bf16.mxu0 %v4460_v52  ;;  %v556_v0 = vld [vmem:[%s9072_s1 + $0x1038] sm:$0xff] }
 0x287   :  { %5321 = vmatmul.mubr.bf16.vlgmr.msra.gmra.mrb[8].mxu0 %v4459_v1  ;;  %4371 = vmatprep.subr.bf16.mxu1 %v6069_v2  ;;  %v6589_v2 = vld [vmem:[%s9074_s3 + $0x284] ss:$8 sps:$4 sm:$0xff]   ;;  %v596_v47 = vld [vmem:[%s9072_s1 + $0x1178] sm:$0xff] }
 0x288   :  { %5332 = vmatpush1.bf16.msra.mxu0 %v6563_v3 }
 0x289   :  { %5333 = vmatprep.subr.bf16.mxu0 %v6568_v6 }
 0x28a   :  { %4372 = vmatpush1.bf16.msra.mxu1 %v6068_v7  ;;  %v6133_v7 = vcombine.high %v552_v63, %v556_v0 }
 0x28b   :  { %4373 = vmatprep.subr.bf16.mxu1 %v6077_v8 }
 0x28c   :  { %5334 = vmatpush1.bf16.msra.mxu0 %v6566_v55  ;;  %v6587_v55 = vld [vmem:[%s9074_s3 + $0x280] ss:$8 sps:$4 sm:$0xff]  }
 0x28d   :  { %5335 = vmatprep.subr.bf16.mxu0 %v6571_v15 }
 0x28e   :  { %4374 = vmatpush1.bf16.msra.mxu1 %v6076_v9  ;;  %v6592_v9 = vld [vmem:[%s9074_s3 + $0x294] ss:$8 sps:$4 sm:$0xff]  }
 0x28f   :  { %4375 = vmatprep.subr.bf16.mxu1 %v6085_v16  ;;  %v6132_v16 = vcombine.low %v552_v63, %v556_v0  ;;  %v6614_v63 = vld [vmem:[%s9074_s3 + $0x310] ss:$8 sps:$4 sm:$0xff]   ;;  %v6690_v0 = vld [vmem:[%s9073_s0 + $0x20] ss:$36 sps:$4 sm:$0xff]  }
 0x290   :  { %5336 = vmatpush1.bf16.msra.mxu0 %v6569_v17  ;;  %v6141_v17 = vcombine.high %v560_v12, %v564_v14 }
 0x291   :  { %5337 = vmatprep.subr.bf16.mxu0 %v6574_v24  ;;  %v572_v24 = vld [vmem:[%s9072_s1 + $0x10b8] sm:$0xff] }
 0x292   :  { %4376 = vmatpush1.bf16.msra.mxu1 %v6084_v26  ;;  %v6689_v26 = vld [vmem:[%s9073_s0 + $0x18] ss:$36 sps:$4 sm:$0xff]   ;;  %v6149_v29 = vcombine.high %v568_v19, %v572_v24 }
 0x293   :  { %4377 = vmatprep.subr.bf16.mxu1 %v6093_v27  ;;  %v6595_v27 = vld [vmem:[%s9074_s3 + $0x2a4] ss:$8 sps:$4 sm:$0xff]  }
 0x294   :  { %5338 = vmatpush1.bf16.msra.mxu0 %v6572_v28  ;;  %v6140_v28 = vcombine.low %v560_v12, %v564_v14  ;;  %v6634_v12 = vld [vmem:[%s9074_s3 + $0x374] ss:$8 sps:$4 sm:$0xff]   ;;  %v6632_v14 = vld [vmem:[%s9074_s3 + $0x370] ss:$8 sps:$4 sm:$0xff]  }
 0x295   :  { %5339 = vmatprep.subr.bf16.mxu0 %v6577_v32  ;;  %v576_v32 = vld [vmem:[%s9072_s1 + $0x10d8] sm:$0xff] }
 0x296   :  { %4378 = vmatpush1.bf16.msra.mxu1 %v6092_v37  ;;  %v580_v37 = vld [vmem:[%s9072_s1 + $0x10f8] sm:$0xff] }
 0x297   :  { %4379 = vmatprep.subr.bf16.mxu1 %v6101_v38  ;;  %v6148_v38 = vcombine.low %v568_v19, %v572_v24  ;;  %v6156_v45 = vcombine.low %v576_v32, %v580_v37  ;;  %v6641_v19 = vld [vmem:[%s9074_s3 + $0x3a0] ss:$8 sps:$4 sm:$0xff]   ;;  %v6646_v24 = vld [vmem:[%s9074_s3 + $0x3b4] ss:$8 sps:$4 sm:$0xff]  }
 0x298   :  { %5340 = vmatpush1.bf16.msra.mxu0 %v6575_v40  ;;  %v6157_v40 = vcombine.high %v576_v32, %v580_v37  ;;  %v6655_v32 = vld [vmem:[%s9074_s3 + $0x3e4] ss:$8 sps:$4 sm:$0xff]   ;;  %v6653_v37 = vld [vmem:[%s9074_s3 + $0x3e0] ss:$8 sps:$4 sm:$0xff]  }
 0x299   :  { %5341 = vmatprep.subr.bf16.mxu0 %v6580_v43  ;;  %v588_v43 = vld [vmem:[%s9072_s1 + $0x1138] sm:$0xff] }
 0x29a   :  { %4380 = vmatpush1.bf16.msra.mxu1 %v6100_v44  ;;  %v6601_v44 = vld [vmem:[%s9074_s3 + $0x2c4] ss:$8 sps:$4 sm:$0xff]   ;;  %v6165_v35 = vcombine.high %v584_v42, %v588_v43 }
 0x29b   :  { %4381 = vmatprep.subr.bf16.mxu1 %v6109_v23  ;;  %v6599_v23 = vld [vmem:[%s9074_s3 + $0x2c0] ss:$8 sps:$4 sm:$0xff]  }
 0x29c   :  { %5342 = vmatpush1.bf16.msra.mxu0 %v6578_v13  ;;  %v592_v13 = vld [vmem:[%s9072_s1 + $0x1158] sm:$0xff] }
 0x29d   :  { %v4217_v20 = vpop.f32.mrb[4].mxu0  ;;  %5343 = vmatprep.subr.bf16.mxu0 %v6583_v48  ;;  %v6164_v48 = vcombine.low %v584_v42, %v588_v43  ;;  %v6172_v56 = vcombine.low %v592_v13, %v596_v47  ;;  %v6661_v42 = vld [vmem:[%s9076_s5 + $0x48] sm:$0xff]  }
 0x29e   :  { %v6369_v30 = vadd.f32 %v4217_v20, %v634_v49  ;;  %v4219_v59 = vpop.f32.mrb[5].mxu0  ;;  %4382 = vmatpush1.bf16.msra.mxu1 %v6108_v51  ;;  %v6602_v51 = vld [vmem:[%s9074_s3 + $0x2d0] ss:$8 sps:$4 sm:$0xff]   ;;  %v6605_v20 = vld [vmem:[%s9074_s3 + $0x2e0] ss:$8 sps:$4 sm:$0xff]  }
 0x29f   :  { %v6370_v33 = vadd.f32 %v4219_v59, %v638_v58  ;;  %v4221_v34 = vpop.f32.mrb[6].mxu0  ;;  %4383 = vmatprep.subr.bf16.mxu1 %v6117_v53  ;;  %v604_v53 = vld [vmem:[%s9072_s1 + $0x11b8] sm:$0xff]  ;;  %v6662_v43 = vld [vmem:[%s9076_s5 + $0x8] sm:$0xff]  }
 0x2a0   :  { %v6371_v62 = vadd.f32 %v4221_v34, %v634_v49  ;;  %v4223_v36 = vpop.f32.mrb[7].mxu0  ;;  %5344 = vmatpush1.bf16.msra.mxu0 %v6581_v54  ;;  %v4445_v52 = vmax.f32 %v6369_v30, 0.0  ;;  %v6173_v49 = vcombine.high %v592_v13, %v596_v47  ;;  %v6607_v54 = vld [vmem:[%s9074_s3 + $0x2e4] ss:$8 sps:$4 sm:$0xff]   ;;  %v612_v30 = vld [vmem:[%s9072_s1 + $0x11f8] sm:$0xff] }
 0x2a1   :  { %v6372_v1 = vadd.f32 %v4223_v36, %v638_v58  ;;  %5345 = vmatprep.subr.bf16.mxu0 %v6586_v21  ;;  %v4446_v5 = vmax.f32 %v6370_v33, 0.0  ;;  %v600_v58 = vld [vmem:[%s9072_s1 + $0x1198] sm:$0xff]  ;;  %v6611_v36 = vld [vmem:[%s9074_s3 + $0x300] ss:$8 sps:$4 sm:$0xff]  }
 0x2a2   :  { %v4453_v3 = vmax.f32 %v6371_v62, 0.0  ;;  %4384 = vmatpush1.bf16.msra.mxu1 %v6116_v60  ;;  %v6181_v57 = vcombine.high %v600_v58, %v604_v53  ;;  %v608_v21 = vld [vmem:[%s9072_s1 + $0x11d8] sm:$0xff]  ;;  %v6180_v60 = vcombine.low %v600_v58, %v604_v53  ;;  %v6667_v13 = vld [vmem:[%s9076_s5 + $0x60] sm:$0xff]  }
 0x2a3   :  { %v4454_v6 = vmax.f32 %v6372_v1, 0.0  ;;  %4385 = vmatprep.subr.bf16.mxu1 %v6125_v61  ;;  %v6610_v59 = vld [vmem:[%s9074_s3 + $0x2f4] ss:$8 sps:$4 sm:$0xff]   ;;  %v6189_v33 = vcombine.high %v608_v21, %v612_v30  ;;  %v6608_v34 = vld [vmem:[%s9074_s3 + $0x2f0] ss:$8 sps:$4 sm:$0xff]   ;;  %v6188_v62 = vcombine.low %v608_v21, %v612_v30  ;;  %v6668_v47 = vld [vmem:[%s9076_s5 + $0x20] sm:$0xff]  }
 0x2a4   :  { %v8811_v8 = vpack.c.bf16 %v4453_v3, %v4445_v52  ;;  %5346 = vmatpush1.bf16.msra.mxu0 %v6584_v50  ;;  %v6613_v61 = vld [vmem:[%s9074_s3 + $0x304] ss:$8 sps:$4 sm:$0xff]   ;;  %v6616_v50 = vld [vmem:[%s9074_s3 + $0x314] ss:$8 sps:$4 sm:$0xff]   ;;  %v6620_v3 = vld [vmem:[%s9074_s3 + $0x330] ss:$8 sps:$4 sm:$0xff]  }
 0x2a5   :  { %v4462_v15 = vpack.c.bf16 %v4454_v6, %v4446_v5  ;;  %5347 = vmatprep.subr.bf16.mxu0 %v6589_v2  ;;  %v6619_v1 = vld [vmem:[%s9074_s3 + $0x324] ss:$8 sps:$4 sm:$0xff]   ;;  %v6617_v2 = vld [vmem:[%s9074_s3 + $0x320] ss:$8 sps:$4 sm:$0xff]   ;;  %v6622_v52 = vld [vmem:[%s9074_s3 + $0x334] ss:$8 sps:$4 sm:$0xff]  }
 0x2a6   :  { %4386 = vmatpush1.bf16.msra.mxu1 %v6124_v4  ;;  %v6625_v4 = vld [vmem:[%s9074_s3 + $0x344] ss:$8 sps:$4 sm:$0xff]   ;;  %v6623_v5 = vld [vmem:[%s9074_s3 + $0x340] ss:$8 sps:$4 sm:$0xff]   ;;  %v6628_v6 = vld [vmem:[%s9074_s3 + $0x354] ss:$8 sps:$4 sm:$0xff]  }
 0x2a7   :  { %5363 = vmatprep.mubr.bf16.mxu0 %v4462_v15  ;;  %4398 = vmatprep.subr.bf16.mxu1 %v6133_v7  ;;  %v6626_v7 = vld [vmem:[%s9074_s3 + $0x350] ss:$8 sps:$4 sm:$0xff]   ;;  %v6637_v15 = vld [vmem:[%s9074_s3 + $0x384] ss:$8 sps:$4 sm:$0xff]  }
 0x2a8   :  { %5348 = vmatpush1.bf16.msra.mxu0 %v6587_v55  ;;  %v6629_v55 = vld [vmem:[%s9074_s3 + $0x360] ss:$8 sps:$4 sm:$0xff]  }
 0x2a9   :  { %4388 = vmatmul.mubr.bf16.vlgmr.msra.gmra.mrb[8].mxu1 %v6689_v26  ;;  %5349 = vmatprep.subr.bf16.mxu0 %v6592_v9  ;;  %v6635_v9 = vld [vmem:[%s9074_s3 + $0x380] ss:$8 sps:$4 sm:$0xff]   ;;  %v6644_v26 = vld [vmem:[%s9074_s3 + $0x3b0] ss:$8 sps:$4 sm:$0xff]  }
 0x2aa   :  { %4399 = vmatpush1.bf16.msra.mxu1 %v6132_v16  ;;  %4430 = vmatprep.mubr.bf16.mxu1 %v6691_v39  ;;  %v6598_v39 = vld [vmem:[%s9074_s3 + $0x2b4] ss:$8 sps:$4 sm:$0xff]  }
 0x2ab   :  { %4400 = vmatprep.subr.bf16.mxu1 %v6141_v17  ;;  %v6640_v16 = vld [vmem:[%s9074_s3 + $0x394] ss:$8 sps:$4 sm:$0xff]   ;;  %v6638_v17 = vld [vmem:[%s9074_s3 + $0x390] ss:$8 sps:$4 sm:$0xff]  }
 0x2ac   :  { %5350 = vmatpush1.bf16.msra.mxu0 %v6590_v18  ;;  %v6643_v18 = vld [vmem:[%s9074_s3 + $0x3a4] ss:$8 sps:$4 sm:$0xff]  }
 0x2ad   :  { %5351 = vmatprep.subr.bf16.mxu0 %v6595_v27  ;;  %v6649_v27 = vld [vmem:[%s9074_s3 + $0x3c4] ss:$8 sps:$4 sm:$0xff]  }
 0x2ae   :  { %4401 = vmatpush1.bf16.msra.mxu1 %v6140_v28  ;;  %v6647_v28 = vld [vmem:[%s9074_s3 + $0x3c0] ss:$8 sps:$4 sm:$0xff]  }
 0x2af   :  { %4402 = vmatprep.subr.bf16.mxu1 %v6149_v29  ;;  %v6652_v29 = vld [vmem:[%s9074_s3 + $0x3d4] ss:$8 sps:$4 sm:$0xff]  }
 0x2b0   :  { %5352 = vmatpush1.bf16.msra.mxu0 %v6593_v31  ;;  %v6650_v31 = vld [vmem:[%s9074_s3 + $0x3d0] ss:$8 sps:$4 sm:$0xff]  }
 0x2b1   :  { %5353 = vmatprep.subr.bf16.mxu0 %v6598_v39  ;;  %v6658_v39 = vld [vmem:[%s9074_s3 + $0x3f4] ss:$8 sps:$4 sm:$0xff]  }
 0x2b2   :  { %4403 = vmatpush1.bf16.msra.mxu1 %v6148_v38  ;;  %v6656_v38 = vld [vmem:[%s9074_s3 + $0x3f0] ss:$8 sps:$4 sm:$0xff]  }
 0x2b3   :  { %4404 = vmatprep.subr.bf16.mxu1 %v6157_v40  ;;  %v6659_v40 = vld [vmem:[%s9076_s5 + $0x40] sm:$0xff]  }
 0x2b4   :  { %5354 = vmatpush1.bf16.msra.mxu0 %v6596_v41  ;;  %v6660_v41 = vld [vmem:[%s9076_s5] sm:$0xff]  }
 0x2b5   :  { %5355 = vmatprep.subr.bf16.mxu0 %v6601_v44  ;;  %v6663_v44 = vld [vmem:[%s9076_s5 + $0x50] sm:$0xff]  }
 0x2b6   :  { %4405 = vmatpush1.bf16.msra.mxu1 %v6156_v45  ;;  %v6664_v45 = vld [vmem:[%s9076_s5 + $0x10] sm:$0xff]  }
 0x2b7   :  { %4406 = vmatprep.subr.bf16.mxu1 %v6165_v35  ;;  %v6665_v35 = vld [vmem:[%s9076_s5 + $0x58] sm:$0xff]  }
 0x2b8   :  { %5356 = vmatpush1.bf16.msra.mxu0 %v6599_v23  ;;  %v6666_v23 = vld [vmem:[%s9076_s5 + $0x18] sm:$0xff]  }
 0x2b9   :  { %5357 = vmatprep.subr.bf16.mxu0 %v6604_v11  ;;  %v6669_v11 = vld [vmem:[%s9076_s5 + $0x68] sm:$0xff]  }
 0x2ba   :  { %4407 = vmatpush1.bf16.msra.mxu1 %v6164_v48  ;;  %v641_v48 = vsub.s32 6, %v7924_v10 }
 0x2bb   :  { %4408 = vmatprep.subr.bf16.mxu1 %v6173_v49  ;;  %v645_v49 = vsub.s32 7, %v7924_v10  ;;  %v6318_v10 = vld [vmem:[%s9078_s6] ss:$0 sm:$0xff] }
 0x2bc   :  { %5358 = vmatpush1.bf16.msra.mxu0 %v6602_v51  ;;  %v642_v51 = vrot.slane %v8695_v46, %v641_v48 }
 0x2bd   :  { %5359 = vmatprep.subr.bf16.mxu0 %v6607_v54  ;;  %v646_v58 = vrot.slane %v8695_v46, %v645_v49  ;;  %v6670_v46 = vld [vmem:[%s9076_s5 + $0x28] sm:$0xff]  }
 0x2be   :  { %4409 = vmatpush1.bf16.msra.mxu1 %v6172_v56 }
 0x2bf   :  { %4410 = vmatprep.subr.bf16.mxu1 %v6181_v57 }
 0x2c0   :  { %5360 = vmatpush1.bf16.msra.mxu0 %v6605_v20 }
 0x2c1   :  { %5361 = vmatprep.subr.bf16.mxu0 %v6610_v59 }
 0x2c2   :  { %4411 = vmatpush1.bf16.msra.mxu1 %v6180_v60 }
 0x2c3   :  { %4412 = vmatprep.subr.bf16.mxu1 %v6189_v33 }
 0x2c4   :  { %5362 = vmatpush1.bf16.msra.mxu0 %v6608_v34 }
 0x2c5   :  { %5374 = vmatprep.subr.bf16.mxu0 %v6613_v61 }
 0x2c6   :  { %4413 = vmatpush1.bf16.msra.mxu1 %v6188_v62 }
 0x2c7   :  { %5364 = vmatmul.mubr.bf16.vlgmr.msra.gmra.mrb[8].mxu0 %v8811_v8  ;;  %v6631_v8 = vld [vmem:[%s9074_s3 + $0x364] ss:$8 sps:$4 sm:$0xff]   ;;  %6335 = vmatprep.subr.bf16.mxu1 %v6659_v40 }
 0x2c8   :  { %5375 = vmatpush1.bf16.msra.mxu0 %v6611_v36 }
 0x2c9   :  { %4431 = vmatmul.mubr.bf16.vlgmr.msra.gmra.mrb[8].mxu1 %v6690_v0  ;;  %5376 = vmatprep.subr.bf16.mxu0 %v6616_v50  ;;  %v6671_v50 = vld [vmem:[%s9076_s5 + $0x70] sm:$0xff]   ;;  %v6673_v0 = vld [vmem:[%s9076_s5 + $0x78] sm:$0xff]  }
 0x2ca   :  { %6336 = vmatpush3.bf16.msra.mxu1 %v6660_v41 }
 0x2cb   :  { %6337 = vmatprep.subr.bf16.mxu1 %v6661_v42 }
 0x2cc   :  { %5377 = vmatpush1.bf16.msra.mxu0 %v6614_v63  ;;  %v6672_v63 = vld [vmem:[%s9076_s5 + $0x30] sm:$0xff]  }
 0x2cd   :  { %5378 = vmatprep.subr.bf16.mxu0 %v6619_v1  ;;  %v6674_v1 = vld [vmem:[%s9076_s5 + $0x38] sm:$0xff]  }
 0x2ce   :  { %6338 = vmatpush3.bf16.msra.mxu1 %v6662_v43 }
 0x2cf   :  { %6339 = vmatprep.subr.bf16.mxu1 %v6663_v44 }
 0x2d0   :  { %5379 = vmatpush1.bf16.msra.mxu0 %v6617_v2  ;;  %v4593_v2 = vld [vmem:[%s9077_s4] sm:$0x3] }
 0x2d1   :  { %5380 = vmatprep.subr.bf16.mxu0 %v6622_v52  ;;  %v4598_v52 = vrot.slane %v4593_v2, %v617_v22 }
 0x2d2   :  { %6340 = vmatpush3.bf16.msra.mxu1 %v6664_v45 }
 0x2d3   :  { %6341 = vmatprep.subr.bf16.mxu1 %v6665_v35 }
 0x2d4   :  { %5381 = vmatpush1.bf16.msra.mxu0 %v6620_v3  ;;  %v4602_v3 = vrot.slane %v4593_v2, %v621_v25 }
 0x2d5   :  { %5382 = vmatprep.subr.bf16.mxu0 %v6625_v4 }
 0x2d6   :  { %6342 = vmatpush3.bf16.msra.mxu1 %v6666_v23 }
 0x2d7   :  { %6343 = vmatprep.subr.bf16.mxu1 %v6667_v13 }
 0x2d8   :  { %5383 = vmatpush1.bf16.msra.mxu0 %v6623_v5 }
 0x2d9   :  { %5384 = vmatprep.subr.bf16.mxu0 %v6628_v6 }
 0x2da   :  { %6344 = vmatpush3.bf16.msra.mxu1 %v6668_v47 }
 0x2db   :  { %6345 = vmatprep.subr.bf16.mxu1 %v6669_v11 }
 0x2dc   :  { %5385 = vmatpush1.bf16.msra.mxu0 %v6626_v7 }
 0x2dd   :  { %5386 = vmatprep.subr.bf16.mxu0 %v6631_v8 }
 0x2de   :  { %6346 = vmatpush3.bf16.msra.mxu1 %v6670_v46 }
 0x2df   :  { %6347 = vmatprep.subr.bf16.mxu1 %v6671_v50 }
 0x2e0   :  { %5387 = vmatpush1.bf16.msra.mxu0 %v6629_v55 }
 0x2e1   :  { %5388 = vmatprep.subr.bf16.mxu0 %v6634_v12 }
 0x2e2   :  { %6348 = vmatpush3.bf16.msra.mxu1 %v6672_v63 }
 0x2e3   :  { %6349 = vmatprep.subr.bf16.mxu1 %v6673_v0 }
 0x2e4   :  { %5389 = vmatpush1.bf16.msra.mxu0 %v6632_v14 }
 0x2e5   :  { %5390 = vmatprep.subr.bf16.mxu0 %v6637_v15 }
 0x2e6   :  { %6350 = vmatpush3.bf16.msra.mxu1 %v6674_v1 }
 0x2e8   :  { %5391 = vmatpush1.bf16.msra.mxu0 %v6635_v9 }
 0x2e9   :  { %5392 = vmatprep.subr.bf16.mxu0 %v6640_v16 }
 0x2ec   :  { %5393 = vmatpush1.bf16.msra.mxu0 %v6638_v17 }
 0x2ed   :  { %5394 = vmatprep.subr.bf16.mxu0 %v6643_v18 }
 0x2f0   :  { %5395 = vmatpush1.bf16.msra.mxu0 %v6641_v19 }
 0x2f1   :  { %5396 = vmatprep.subr.bf16.mxu0 %v6646_v24 }
 0x2f4   :  { %5397 = vmatpush1.bf16.msra.mxu0 %v6644_v26 }
 0x2f5   :  { %5398 = vmatprep.subr.bf16.mxu0 %v6649_v27 }
 0x2f8   :  { %5399 = vmatpush1.bf16.msra.mxu0 %v6647_v28 }
 0x2f9   :  { %5400 = vmatprep.subr.bf16.mxu0 %v6652_v29 }
 0x2fc   :  { %5401 = vmatpush1.bf16.msra.mxu0 %v6650_v31 }
 0x2fd   :  { %5402 = vmatprep.subr.bf16.mxu0 %v6655_v32 }
 0x300   :  { %5403 = vmatpush1.bf16.msra.mxu0 %v6653_v37 }
 0x301   :  { %5404 = vmatprep.subr.bf16.mxu0 %v6658_v39 }
 0x304   :  { %5405 = vmatpush1.bf16.msra.mxu0 %v6656_v38 }
 0x39c   :  { %v4432_v53 = vpop.f32.mrb[8].mxu1 }
 0x39d   :  { %v6373_v54 = vadd.f32 %v4432_v53, %v642_v51  ;;  %v4434_v56 = vpop.f32.mrb[9].mxu1 }
 0x39e   :  { %v6374_v57 = vadd.f32 %v4434_v56, %v646_v58  ;;  %v4436_v20 = vpop.f32.mrb[10].mxu1 }
 0x39f   :  { %v6375_v21 = vadd.f32 %v4436_v20, %v642_v51  ;;  %v4438_v30 = vpop.f32.mrb[11].mxu1  ;;  %v4447_v60 = vmax.f32 %v6373_v54, 0.0 }
 0x3a0   :  { %v6376_v59 = vadd.f32 %v4438_v30, %v646_v58  ;;  %v4448_v34 = vmax.f32 %v6374_v57, 0.0 }
 0x3a1   :  { %v4455_v33 = vmax.f32 %v6375_v21, 0.0 }
 0x3a2   :  { %v4456_v61 = vmax.f32 %v6376_v59, 0.0 }
 0x3a3   :  { %v4463_v62 = vpack.c.bf16 %v4455_v33, %v4447_v60 }
 0x3a4   :  { %v4464_v36 = vpack.c.bf16 %v4456_v61, %v4448_v34 }
 0x3a6   :  { %5406 = vmatprep.mubr.bf16.mxu0 %v4464_v36 }
 0x3a7   :  { %5407 = vmatmul.mubr.bf16.vlgmr.msra.gmra.mrb[8].mxu0 %v4463_v62 }
 0x47a   :  { %v5408_v4 = vpop.f32.mrb[8].mxu0 }
 0x47b   :  { %v6377_v5 = vadd.f32 %v5408_v4, %v4598_v52  ;;  %v5410_v6 = vpop.f32.mrb[9].mxu0 }
 0x47c   :  { %v6378_v7 = vadd.f32 %v5410_v6, %v4602_v3  ;;  %v5412_v8 = vpop.f32.mrb[10].mxu0 }
 0x47d   :  { %v6379_v55 = vadd.f32 %v5412_v8, %v4598_v52  ;;  %v5414_v12 = vpop.f32.mrb[11].mxu0  ;;  %v5417_v15 = vmax.f32 %v6377_v5, 0.0 }
 0x47e   :  { %v6380_v14 = vadd.f32 %v5414_v12, %v4602_v3  ;;  %v5418_v16 = vmax.f32 %v6378_v7, 0.0 }
 0x47f   :  { %v5419_v9 = vmax.f32 %v6379_v55, 0.0 }
 0x480   :  { %v5420_v17 = vmax.f32 %v6380_v14, 0.0 }
 0x481   :  { %v5421_v18 = vpack.c.bf16 %v5419_v9, %v5417_v15 }
 0x482   :  { %v5422_v19 = vpack.c.bf16 %v5420_v17, %v5418_v16 }
 0x484   :  { %5590 = vmatprep.mubr.bf16.mxu1 %v5422_v19 }
 0x485   :  { %5591 = vmatmul.mubr.bf16.vlgmr.msra.gmra.mrb[12].mxu1 %v5421_v18 }
 0x558   :  { %v6351_v22 = vpop.f32.mrb[12].mxu1 }
 0x559   :  { %v6352_v25 = vpop.f32.mrb[13].mxu1 }
 0x55a   :  { %v6353_v24 = vadd.f32 %v6352_v25, %v6351_v22  ;;  %v6354_v26 = vpop.f32.mrb[14].mxu1 }
 0x55b   :  { %v6355_v27 = vpop.f32.mrb[15].mxu1 }
 0x55c   :  { %v5593_v28 = vadd.f32 %v6353_v24, %v6318_v10  ;;  %v6356_v29 = vadd.f32 %v6355_v27, %v6354_v26 }
 0x55e   :  { %5599 = vst [vmem:[%s9079_s7] sm:$0xff] %v5593_v28  ;;  %v5596_v31 = vadd.f32 %v6356_v29, %v6318_v10 }
 0x560   :  { %5600 = vst [vmem:[%s9079_s7 + $0x8] sm:$0xff] %v5596_v31 }

</bundles_post_ra>
